<compile_context>
chip_gen: v7x
topology: tpu7x:2x2x1
jax: 0.10.0
libtpu: 0.0.40
codegen_flags: <defaults>
</compile_context>

<pallas_src>
import math
import numpy as np

import jax
import jax.numpy as jnp
from jax import lax
from jax.experimental import pallas as pl
from jax.experimental.pallas import tpu as pltpu

# ------------------------------- configuration -------------------------------
HIDDEN      = 32                 # encoder hidden_size
DEC_HIDDEN  = 64                 # decoder_hidden_size
DEC_LAYERS  = 2                  # decoder_num_hidden_layers
DEC_HEADS   = 4                  # decoder_num_attention_heads
HEAD_DIM    = DEC_HIDDEN // DEC_HEADS
DEC_INTER   = 128                # decoder_intermediate_size
PATCH       = 4
CHANNELS    = 3
PRED_DIM    = PATCH * PATCH * CHANNELS      # 48
GRID_SIZE   = 4
NUM_PATCHES = GRID_SIZE * GRID_SIZE         # 16
LEN_KEEP    = 8
SEQ_ENC     = LEN_KEEP + 1                  # 9  (CLS + visible patches)
SEQ_DEC     = NUM_PATCHES + 1               # 17 (CLS + all patches)
TIME_CH     = 256                           # block_out_channels
TIME_EMB    = 256 * 4                       # time_embed_dim
LN_EPS      = 1e-12                         # ViT layer_norm_eps default
BATCH       = 2
IMG         = PATCH * GRID_SIZE             # 16
NEG_INF     = -1e30


# ----------------------------- sincos pos embed ------------------------------
def get_1d_sincos_pos_embed_from_grid(embed_dim, pos):
    omega = np.arange(embed_dim // 2, dtype=float)
    omega /= embed_dim / 2.0
    omega = 1.0 / 10000 ** omega
    pos = pos.reshape(-1)
    out = np.einsum('m,d->md', pos, omega)
    return np.concatenate([np.sin(out), np.cos(out)], axis=1)


def get_2d_sincos_pos_embed_from_grid(embed_dim, grid):
    emb_h = get_1d_sincos_pos_embed_from_grid(embed_dim // 2, grid[0])
    emb_w = get_1d_sincos_pos_embed_from_grid(embed_dim // 2, grid[1])
    return np.concatenate([emb_h, emb_w], axis=1)


def get_2d_sincos_pos_embed(embed_dim, grid_size, add_cls_token=False):
    grid_h = np.arange(grid_size, dtype=np.float32)
    grid_w = np.arange(grid_size, dtype=np.float32)
    grid = np.meshgrid(grid_w, grid_h)
    grid = np.stack(grid, axis=0).reshape([2, 1, grid_size, grid_size])
    pos_embed = get_2d_sincos_pos_embed_from_grid(embed_dim, grid)
    if add_cls_token:
        pos_embed = np.concatenate([np.zeros([1, embed_dim]), pos_embed], axis=0)
    return pos_embed


# ------------------------------- kernel helpers -------------------------------
def _layernorm(x, g, b):
    # Single-pass stats: E[x], E[x^2] -> mean/var (halves the cross-lane reductions).
    inv_d = 1.0 / x.shape[-1]
    s1 = jnp.sum(x, axis=-1, keepdims=True)
    s2 = jnp.sum(x * x, axis=-1, keepdims=True)
    mu = s1 * inv_d
    var = jnp.maximum(s2 * inv_d - mu * mu, 0.0)
    return (x - mu) * lax.rsqrt(var + LN_EPS) * g + b


def _gelu_exact(x):
    return 0.5 * x * (1.0 + lax.erf(x * (1.0 / math.sqrt(2.0))))


# -------------------------- fused decoder Pallas kernel -----------------------
def _fused_decoder_kernel(
        hs_ref,                       # (B*SEQ_ENC, HIDDEN)       f32  batch-stacked
        temb_ref,                     # (B, TIME_CH)              f32  sinusoidal time proj
        gmat_ref,                     # (B*SEQ_DEC, B*SEQ_ENC)    f32  block-diag gather matrix
        mind_ref,                     # (B*SEQ_DEC, 1)            f32  mask-token indicator
        pos_ref,                      # (B*SEQ_DEC, D)            f32  tiled sincos pos embed
        bm_ref,                       # (B*SEQ_DEC, B)            f32  batch-broadcast matrix
        amask_ref,                    # (B*SEQ_DEC, B*SEQ_DEC)    f32  block-diag additive mask
        mask_ref,                     # (1, D)                    f32  mask token
        dec_w_ref, dec_b_ref,         # (H, D), (1, D)
        tw1_hbm, tb1_ref,             # (256, 1024) bf16 [HBM],  (1, 1024) f32
        tw2_hbm, tb2_ref,             # (1024, 1024) bf16 [HBM], (1, 1024) f32
        tlw_hbm, tlb_ref,             # (1024, L*D) bf16 [HBM],  (1, L*D)  f32
        wqkv_ref, bqkv_ref,           # (L, D, 3D), (L, 1, 3D)
        wo_ref,                       # (L, D, D)
        w1_ref, b1_ref,               # (L, D, I), (L, 1, I)
        w2_ref,                       # (L, I, D)
        vec_ref,                      # (L, 6, D): ln1_g, ln1_b, bo, ln2_g, ln2_b, b2
        fin_ln_ref,                   # (2, D):    final ln gamma / beta
        pred_w_ref, pred_b_ref,       # (D, P), (1, P)
        out_ref,                      # (B*SEQ_DEC, P)
        tw1_vmem, tw2_vmem, tlw_vmem, dma_sem):
    f32 = jnp.float32
    bf16 = jnp.bfloat16

    # -- start the big time-MLP weight DMAs immediately; wait only when needed.
    cp_w1 = pltpu.make_async_copy(tw1_hbm, tw1_vmem, dma_sem.at[0])
    cp_w2 = pltpu.make_async_copy(tw2_hbm, tw2_vmem, dma_sem.at[1])
    cp_tl = pltpu.make_async_copy(tlw_hbm, tlw_vmem, dma_sem.at[2])
    cp_w1.start()
    cp_w2.start()
    cp_tl.start()

    pos = pos_ref[...]
    mask_tok = mask_ref[...]
    amask = amask_ref[...]
    bm = bm_ref[...]
    fin = fin_ln_ref[...]
    scale = 1.0 / math.sqrt(HEAD_DIM)

    # ---- decoder_embed on the batch-stacked block ----
    xe = jnp.dot(hs_ref[...], dec_w_ref[...],
                 preferred_element_type=f32) + dec_b_ref[...]           # (B*9, D)
    # mask-token append + un-shuffle via block-diag one-hot matmul, + pos embed
    h = (jnp.dot(gmat_ref[...], xe, preferred_element_type=f32)
         + mind_ref[...] * mask_tok
         + pos)                                                         # (B*17, D)

    ts_all = None
    for l in range(DEC_LAYERS):
        vec = vec_ref[l]                                                # (6, D)
        ln1_g, ln1_b = vec[0:1], vec[1:2]
        bo = vec[2:3]
        ln2_g, ln2_b = vec[3:4], vec[4:5]
        b2 = vec[5:6]

        # --- self attention (both batches at once, block-diag masked) ---
        ln1 = _layernorm(h, ln1_g, ln1_b)
        qkv = jnp.dot(ln1, wqkv_ref[l],
                      preferred_element_type=f32) + bqkv_ref[l]         # (B*17, 3D)
        wo_l = wo_ref[l]                                                # (D, D)

        attn = None
        for hh in range(DEC_HEADS):
            c0 = hh * HEAD_DIM
            qh = qkv[:, c0:c0 + HEAD_DIM]
            kh = qkv[:, DEC_HIDDEN + c0:DEC_HIDDEN + c0 + HEAD_DIM]
            vh = qkv[:, 2 * DEC_HIDDEN + c0:2 * DEC_HIDDEN + c0 + HEAD_DIM]
            # q . k^T without materializing the transpose, + block-diag mask
            scores = lax.dot_general(
                qh, kh, (((1,), (1,)), ((), ())),
                preferred_element_type=f32) * scale + amask             # (B*17, B*17)
            scores = scores - jnp.max(scores, axis=-1, keepdims=True)
            p = jnp.exp(scores)
            p = p * pl.reciprocal(jnp.sum(p, axis=-1, keepdims=True), approx=True)
            ctx_h = jnp.dot(p, vh, preferred_element_type=f32)          # (B*17, 16)
            # accumulate ctx_h @ wo[rows h*16:(h+1)*16] — no lane concat
            part = jnp.dot(ctx_h, wo_l[c0:c0 + HEAD_DIM, :],
                           preferred_element_type=f32)
            attn = part if attn is None else attn + part
        h1 = h + attn + bo                                              # residual

        # --- MLP ---
        ln2 = _layernorm(h1, ln2_g, ln2_b)
        mid = _gelu_exact(jnp.dot(ln2, w1_ref[l],
                                  preferred_element_type=f32) + b1_ref[l])
        mlp = jnp.dot(mid, w2_ref[l], preferred_element_type=f32) + b2

        if l == 0:
            # Time-MLP weights are only needed now; all the work above
            # overlapped their HBM->VMEM DMA.
            cp_w1.wait()
            cp_w2.wait()
            cp_tl.wait()
            # time embedding MLP: Linear -> SiLU -> Linear (bf16 weights, f32 acc)
            ht = jnp.dot(temb_ref[...].astype(bf16), tw1_vmem[...],
                         preferred_element_type=f32) + tb1_ref[...]
            ht = ht * lax.logistic(ht)                                  # SiLU
            emb = jnp.dot(ht.astype(bf16), tw2_vmem[...],
                          preferred_element_type=f32) + tb2_ref[...]    # (B, 1024)
            # both layers' time shifts in one (1024, L*D) matmul,
            # then broadcast per-batch rows over the stacked sequence.
            time_all = jnp.dot(emb.astype(bf16), tlw_vmem[...],
                               preferred_element_type=f32) + tlb_ref[...]   # (B, L*D)
            ts_all = jnp.dot(bm, time_all, preferred_element_type=f32)      # (B*17, L*D)

        # residual + per-layer time shift
        h = h1 + mlp + ts_all[:, l * DEC_HIDDEN:(l + 1) * DEC_HIDDEN]

    # --- final LayerNorm + prediction head (CLS row dropped in the wrapper) ---
    hn = _layernorm(h, fin[0:1], fin[1:2])
    out_ref[...] = (jnp.dot(hn, pred_w_ref[...], preferred_element_type=f32)
                    + pred_b_ref[...]).astype(out_ref.dtype)


# ------------------------------- wrapper (glue) -------------------------------
def time_proj(timesteps):
    """diffusers Timesteps(256, flip_sin_to_cos=True, downscale_freq_shift=0)."""
    half = TIME_CH // 2
    exponent = -math.log(10000.0) * jnp.arange(half, dtype=jnp.float32) / half
    freqs = jnp.exp(exponent)
    ang = timesteps.astype(jnp.float32)[:, None] * freqs[None, :]
    return jnp.concatenate([jnp.cos(ang), jnp.sin(ang)], axis=-1)        # [cos, sin]


def _build_gather_mats(ids_restore):
    """Block-diagonal one-hot gather matrix + mask indicator (index-only glue).

    Within each batch block: row 0 selects the CLS token; row j (>=1) selects
    visible-patch row 1 + ids_restore[j-1] of decoder_embed's output if that id
    is < LEN_KEEP, otherwise the mask token (indicator = 1)."""
    B = ids_restore.shape[0]
    ids = ids_restore.astype(jnp.int32)                                  # (B, 16)
    is_mask = ids >= LEN_KEEP
    src = jnp.where(is_mask, 0, ids + 1)                                 # source row in xe
    onehot = jax.nn.one_hot(src, SEQ_ENC, dtype=jnp.float32)             # (B, 16, 9)
    onehot = onehot * (~is_mask).astype(jnp.float32)[..., None]
    cls_row = jnp.zeros((B, 1, SEQ_ENC), jnp.float32).at[:, 0, 0].set(1.0)
    G = jnp.concatenate([cls_row, onehot], axis=1)                       # (B, 17, 9)
    m = jnp.concatenate([jnp.zeros((B, 1), jnp.float32),
                         is_mask.astype(jnp.float32)], axis=1)           # (B, 17)
    eyeB = jnp.eye(B, dtype=jnp.float32)
    Gbd = jnp.einsum('bc,bij->bicj', eyeB, G).reshape(B * SEQ_DEC, B * SEQ_ENC)
    m_st = m.reshape(B * SEQ_DEC, 1)
    return Gbd, m_st


def decoder_forward(params, pos_embed, hidden_states, pixel_noise, timesteps, ids_restore):
    # NOTE: pixel_noise is an input of the PyTorch forward() but is never used there.
    del pixel_noise
    B = hidden_states.shape[0]
    S_T = B * SEQ_DEC

    t_emb = time_proj(timesteps)                          # (B, 256) tiny sin/cos glue
    Gbd, m_st = _build_gather_mats(ids_restore)           # index-only glue
    pos_st = jnp.tile(pos_embed, (B, 1)).astype(jnp.float32)             # (B*17, D)
    bm = jnp.repeat(jnp.eye(B, dtype=jnp.float32), SEQ_DEC, axis=0)      # (B*17, B)
    bid = jnp.repeat(jnp.arange(B), SEQ_DEC)
    amask = jnp.where(bid[:, None] == bid[None, :], 0.0, NEG_INF).astype(jnp.float32)
    hs_st = hidden_states.reshape(B * SEQ_ENC, HIDDEN)

    inputs = [hs_st, t_emb, Gbd, m_st, pos_st, bm, amask,
              params['mask_token'], params['dec_w'], params['dec_b'],
              params['time_w1'], params['time_b1'],
              params['time_w2'], params['time_b2'],
              params['tl_w'], params['tl_b'],
              params['wqkv'], params['bqkv'], params['wo'],
              params['w1'], params['b1'], params['w2'], params['vec64'],
              params['fin_ln'], params['pred_w'], params['pred_b']]

    # The three big time-MLP weight tensors stay in HBM (manual DMA in-kernel).
    hbm_idx = {10, 12, 14}        # time_w1, time_w2, tl_w

    def full_spec(x):
        nd = x.ndim
        return pl.BlockSpec(x.shape, lambda i, _nd=nd: (0,) * _nd)

    in_specs = [pl.BlockSpec(memory_space=pl.ANY) if idx in hbm_idx else full_spec(x)
                for idx, x in enumerate(inputs)]

    out = pl.pallas_call(
        _fused_decoder_kernel,
        out_shape=jax.ShapeDtypeStruct((S_T, PRED_DIM), jnp.float32),
        grid=(1,),
        in_specs=in_specs,
        out_specs=pl.BlockSpec((S_T, PRED_DIM), lambda i: (0, 0)),
        scratch_shapes=[
            pltpu.VMEM((TIME_CH, TIME_EMB), jnp.bfloat16),               # time_w1
            pltpu.VMEM((TIME_EMB, TIME_EMB), jnp.bfloat16),              # time_w2
            pltpu.VMEM((TIME_EMB, DEC_LAYERS * DEC_HIDDEN), jnp.bfloat16),  # tl_w
            pltpu.SemaphoreType.DMA((3,)),
        ],
        compiler_params=pltpu.CompilerParams(
            dimension_semantics=("arbitrary",),
            vmem_limit_bytes=32 * 1024 * 1024),
    )(*inputs)

    # Drop the CLS row here (free XLA slice) instead of an unaligned sublane
    # slice inside the kernel.
    return out.reshape(B, SEQ_DEC, PRED_DIM)[:, 1:, :]


# ------------------------------- parameters ----------------------------------
def init_params(key):
    std = 0.02
    kit = iter(jax.random.split(key, 64))

    def w(shape):
        return jax.random.normal(next(kit), shape, jnp.float32) * std

    wqkv, bqkv, wo, w1, b1, w2, vec64 = [], [], [], [], [], [], []
    tl_w_list, tl_b_list = [], []
    ones = jnp.ones((DEC_HIDDEN,), jnp.float32)
    zeros = jnp.zeros((DEC_HIDDEN,), jnp.float32)
    for _ in range(DEC_LAYERS):
        wq_, wk_, wv_ = (w((DEC_HIDDEN, DEC_HIDDEN)) for _ in range(3))
        wqkv.append(jnp.concatenate([wq_, wk_, wv_], axis=1))            # (64, 192)
        bqkv.append(jnp.zeros((1, 3 * DEC_HIDDEN), jnp.float32))
        wo.append(w((DEC_HIDDEN, DEC_HIDDEN)))
        w1.append(w((DEC_HIDDEN, DEC_INTER)))
        b1.append(jnp.zeros((1, DEC_INTER), jnp.float32))
        w2.append(w((DEC_INTER, DEC_HIDDEN)))
        # rows: ln1_g, ln1_b, bo, ln2_g, ln2_b, b2
        vec64.append(jnp.stack([ones, zeros, zeros, ones, zeros, zeros], axis=0))
        tl_w_list.append(w((TIME_EMB, DEC_HIDDEN)))
        tl_b_list.append(jnp.zeros((DEC_HIDDEN,), jnp.float32))

    # TODO(synk): bf16 time-MLP weights (f32 accumulate) deviate from the f32
    # PyTorch reference by ~1e-2-level error in the time embedding; keep f32 if
    # bit-tight parity with the reference is required.
    params = dict(
        mask_token=w((1, DEC_HIDDEN)),
        dec_w=w((HIDDEN, DEC_HIDDEN)),
        dec_b=jnp.zeros((1, DEC_HIDDEN), jnp.float32),
        time_w1=w((TIME_CH, TIME_EMB)).astype(jnp.bfloat16),             # bf16, manual DMA
        time_b1=jnp.zeros((1, TIME_EMB), jnp.float32),
        time_w2=w((TIME_EMB, TIME_EMB)).astype(jnp.bfloat16),            # bf16, manual DMA
        time_b2=jnp.zeros((1, TIME_EMB), jnp.float32),
        tl_w=jnp.concatenate(tl_w_list, axis=1).astype(jnp.bfloat16),    # (1024, L*64) bf16
        tl_b=jnp.concatenate(tl_b_list).reshape(1, -1),                  # (1, L*64)
        wqkv=jnp.stack(wqkv), bqkv=jnp.stack(bqkv), wo=jnp.stack(wo),
        w1=jnp.stack(w1), b1=jnp.stack(b1), w2=jnp.stack(w2),
        vec64=jnp.stack(vec64),                                          # (L, 6, 64)
        fin_ln=jnp.stack([ones, zeros], axis=0),                         # (2, 64)
        pred_w=w((DEC_HIDDEN, PRED_DIM)),
        pred_b=jnp.zeros((1, PRED_DIM), jnp.float32),
    )
    return params


# ------------------------------------ main ------------------------------------
if __name__ == "__main__":
    key = jax.random.PRNGKey(0)
    k_param, k_h, k_noise, k_perm = jax.random.split(key, 4)

    params = init_params(k_param)
    pos_embed = jnp.asarray(
        get_2d_sincos_pos_embed(DEC_HIDDEN, GRID_SIZE, add_cls_token=True),
        dtype=jnp.float32)                                               # (17, 64)

    hidden_states = jax.random.normal(k_h, (BATCH, SEQ_ENC, HIDDEN), jnp.float32)
    pixel_noise = jax.random.normal(k_noise, (BATCH, CHANNELS, IMG, IMG), jnp.float32)
    timesteps = jnp.array([10, 500], dtype=jnp.int32)
    ids_restore = jnp.stack([
        jax.random.permutation(jax.random.fold_in(k_perm, b), NUM_PATCHES)
        for b in range(BATCH)]).astype(jnp.int32)                        # (B, 16)

    logits = decoder_forward(params, pos_embed, hidden_states,
                             pixel_noise, timesteps, ids_restore)
    jax.block_until_ready(logits)
    assert logits.shape == (BATCH, NUM_PATCHES, PRED_DIM)
    assert bool(jnp.all(jnp.isfinite(logits)))
    print("KERNEL_OK")
</pallas_src>

<mosaic_0001>
module attributes {stable_mosaic.version = 11 : i64} {
  func.func @_fused_decoder_kernel(%arg0: i32, %arg1: memref<18x32xf32, #tpu.memory_space<vmem>>, %arg2: memref<2x256xf32, #tpu.memory_space<vmem>>, %arg3: memref<34x18xf32, #tpu.memory_space<vmem>>, %arg4: memref<34x1xf32, #tpu.memory_space<vmem>>, %arg5: memref<34x64xf32, #tpu.memory_space<vmem>>, %arg6: memref<34x2xf32, #tpu.memory_space<vmem>>, %arg7: memref<34x34xf32, #tpu.memory_space<vmem>>, %arg8: memref<1x64xf32, #tpu.memory_space<vmem>>, %arg9: memref<32x64xf32, #tpu.memory_space<vmem>>, %arg10: memref<1x64xf32, #tpu.memory_space<vmem>>, %arg11: memref<256x1024xbf16, #tpu.memory_space<any>>, %arg12: memref<1x1024xf32, #tpu.memory_space<vmem>>, %arg13: memref<1024x1024xbf16, #tpu.memory_space<any>>, %arg14: memref<1x1024xf32, #tpu.memory_space<vmem>>, %arg15: memref<1024x128xbf16, #tpu.memory_space<any>>, %arg16: memref<1x128xf32, #tpu.memory_space<vmem>>, %arg17: memref<2x64x192xf32, #tpu.memory_space<vmem>>, %arg18: memref<2x1x192xf32, #tpu.memory_space<vmem>>, %arg19: memref<2x64x64xf32, #tpu.memory_space<vmem>>, %arg20: memref<2x64x128xf32, #tpu.memory_space<vmem>>, %arg21: memref<2x1x128xf32, #tpu.memory_space<vmem>>, %arg22: memref<2x128x64xf32, #tpu.memory_space<vmem>>, %arg23: memref<2x6x64xf32, #tpu.memory_space<vmem>>, %arg24: memref<2x64xf32, #tpu.memory_space<vmem>>, %arg25: memref<64x48xf32, #tpu.memory_space<vmem>>, %arg26: memref<1x48xf32, #tpu.memory_space<vmem>>, %arg27: memref<34x48xf32, #tpu.memory_space<vmem>>, %arg28: memref<256x1024xbf16, #tpu.memory_space<vmem>>, %arg29: memref<1024x1024xbf16, #tpu.memory_space<vmem>>, %arg30: memref<1024x128xbf16, #tpu.memory_space<vmem>>, %arg31: memref<3x!tpu.dma_semaphore, #tpu.memory_space<semaphore_mem>>) attributes {dimension_semantics = [#tpu.dimension_semantics<arbitrary>], iteration_bounds = array<i64: 1>, scalar_prefetch = 0 : i64, scratch_operands = 4 : i64, tpu.core_type = #tpu.core_type<tc>, window_params = [{pipeline_mode = #tpu.pipeline_mode<synchronous>, transform_indices = @transform_0, window_bounds = array<i64: 18, 32>}, {pipeline_mode = #tpu.pipeline_mode<synchronous>, transform_indices = @transform_1, window_bounds = array<i64: 2, 256>}, {pipeline_mode = #tpu.pipeline_mode<synchronous>, transform_indices = @transform_2, window_bounds = array<i64: 34, 18>}, {pipeline_mode = #tpu.pipeline_mode<synchronous>, transform_indices = @transform_3, window_bounds = array<i64: 34, 1>}, {pipeline_mode = #tpu.pipeline_mode<synchronous>, transform_indices = @transform_4, window_bounds = array<i64: 34, 64>}, {pipeline_mode = #tpu.pipeline_mode<synchronous>, transform_indices = @transform_5, window_bounds = array<i64: 34, 2>}, {pipeline_mode = #tpu.pipeline_mode<synchronous>, transform_indices = @transform_6, window_bounds = array<i64: 34, 34>}, {pipeline_mode = #tpu.pipeline_mode<synchronous>, transform_indices = @transform_7, window_bounds = array<i64: 1, 64>}, {pipeline_mode = #tpu.pipeline_mode<synchronous>, transform_indices = @transform_8, window_bounds = array<i64: 32, 64>}, {pipeline_mode = #tpu.pipeline_mode<synchronous>, transform_indices = @transform_9, window_bounds = array<i64: 1, 64>}, {}, {pipeline_mode = #tpu.pipeline_mode<synchronous>, transform_indices = @transform_11, window_bounds = array<i64: 1, 1024>}, {}, {pipeline_mode = #tpu.pipeline_mode<synchronous>, transform_indices = @transform_13, window_bounds = array<i64: 1, 1024>}, {}, {pipeline_mode = #tpu.pipeline_mode<synchronous>, transform_indices = @transform_15, window_bounds = array<i64: 1, 128>}, {pipeline_mode = #tpu.pipeline_mode<synchronous>, transform_indices = @transform_16, window_bounds = array<i64: 2, 64, 192>}, {pipeline_mode = #tpu.pipeline_mode<synchronous>, transform_indices = @transform_17, window_bounds = array<i64: 2, 1, 192>}, {pipeline_mode = #tpu.pipeline_mode<synchronous>, transform_indices = @transform_18, window_bounds = array<i64: 2, 64, 64>}, {pipeline_mode = #tpu.pipeline_mode<synchronous>, transform_indices = @transform_19, window_bounds = array<i64: 2, 64, 128>}, {pipeline_mode = #tpu.pipeline_mode<synchronous>, transform_indices = @transform_20, window_bounds = array<i64: 2, 1, 128>}, {pipeline_mode = #tpu.pipeline_mode<synchronous>, transform_indices = @transform_21, window_bounds = array<i64: 2, 128, 64>}, {pipeline_mode = #tpu.pipeline_mode<synchronous>, transform_indices = @transform_22, window_bounds = array<i64: 2, 6, 64>}, {pipeline_mode = #tpu.pipeline_mode<synchronous>, transform_indices = @transform_23, window_bounds = array<i64: 2, 64>}, {pipeline_mode = #tpu.pipeline_mode<synchronous>, transform_indices = @transform_24, window_bounds = array<i64: 64, 48>}, {pipeline_mode = #tpu.pipeline_mode<synchronous>, transform_indices = @transform_25, window_bounds = array<i64: 1, 48>}, {pipeline_mode = #tpu.pipeline_mode<synchronous>, transform_indices = @transform_26, window_bounds = array<i64: 34, 48>}]} {
    %c0_i32 = arith.constant 0 : i32
    %0 = tpu.memref_slice %arg31[%c0_i32] : memref<3x!tpu.dma_semaphore, #tpu.memory_space<semaphore_mem>> -> memref<1x!tpu.dma_semaphore, #tpu.memory_space<semaphore_mem>>
    %1 = tpu.memref_squeeze %0 : memref<1x!tpu.dma_semaphore, #tpu.memory_space<semaphore_mem>> -> memref<!tpu.dma_semaphore, #tpu.memory_space<semaphore_mem>>
    tpu.enqueue_dma source(%arg11 : memref<256x1024xbf16, #tpu.memory_space<any>>) target(%arg28 : memref<256x1024xbf16, #tpu.memory_space<vmem>>) target_semaphore(%1 : memref<!tpu.dma_semaphore, #tpu.memory_space<semaphore_mem>>)
    %c1_i32 = arith.constant 1 : i32
    %2 = tpu.memref_slice %arg31[%c1_i32] : memref<3x!tpu.dma_semaphore, #tpu.memory_space<semaphore_mem>> -> memref<1x!tpu.dma_semaphore, #tpu.memory_space<semaphore_mem>>
    %3 = tpu.memref_squeeze %2 : memref<1x!tpu.dma_semaphore, #tpu.memory_space<semaphore_mem>> -> memref<!tpu.dma_semaphore, #tpu.memory_space<semaphore_mem>>
    tpu.enqueue_dma source(%arg13 : memref<1024x1024xbf16, #tpu.memory_space<any>>) target(%arg29 : memref<1024x1024xbf16, #tpu.memory_space<vmem>>) target_semaphore(%3 : memref<!tpu.dma_semaphore, #tpu.memory_space<semaphore_mem>>)
    %c2_i32 = arith.constant 2 : i32
    %4 = tpu.memref_slice %arg31[%c2_i32] : memref<3x!tpu.dma_semaphore, #tpu.memory_space<semaphore_mem>> -> memref<1x!tpu.dma_semaphore, #tpu.memory_space<semaphore_mem>>
    %5 = tpu.memref_squeeze %4 : memref<1x!tpu.dma_semaphore, #tpu.memory_space<semaphore_mem>> -> memref<!tpu.dma_semaphore, #tpu.memory_space<semaphore_mem>>
    tpu.enqueue_dma source(%arg15 : memref<1024x128xbf16, #tpu.memory_space<any>>) target(%arg30 : memref<1024x128xbf16, #tpu.memory_space<vmem>>) target_semaphore(%5 : memref<!tpu.dma_semaphore, #tpu.memory_space<semaphore_mem>>)
    %c0 = arith.constant 0 : index
    %c0_0 = arith.constant 0 : index
    %6 = vector.load %arg5[%c0, %c0_0] : memref<34x64xf32, #tpu.memory_space<vmem>>, vector<34x64xf32>
    %c0_1 = arith.constant 0 : index
    %c0_2 = arith.constant 0 : index
    %7 = vector.load %arg8[%c0_1, %c0_2] : memref<1x64xf32, #tpu.memory_space<vmem>>, vector<1x64xf32>
    %c0_3 = arith.constant 0 : index
    %c0_4 = arith.constant 0 : index
    %8 = vector.load %arg7[%c0_3, %c0_4] : memref<34x34xf32, #tpu.memory_space<vmem>>, vector<34x34xf32>
    %c0_5 = arith.constant 0 : index
    %c0_6 = arith.constant 0 : index
    %9 = vector.load %arg6[%c0_5, %c0_6] : memref<34x2xf32, #tpu.memory_space<vmem>>, vector<34x2xf32>
    %c0_7 = arith.constant 0 : index
    %c0_8 = arith.constant 0 : index
    %10 = vector.load %arg24[%c0_7, %c0_8] : memref<2x64xf32, #tpu.memory_space<vmem>>, vector<2x64xf32>
    %c0_9 = arith.constant 0 : index
    %c0_10 = arith.constant 0 : index
    %11 = vector.load %arg1[%c0_9, %c0_10] : memref<18x32xf32, #tpu.memory_space<vmem>>, vector<18x32xf32>
    %c0_11 = arith.constant 0 : index
    %c0_12 = arith.constant 0 : index
    %12 = vector.load %arg9[%c0_11, %c0_12] : memref<32x64xf32, #tpu.memory_space<vmem>>, vector<32x64xf32>
    %cst = arith.constant dense<0.000000e+00> : vector<18x64xf32>
    %13 = tpu.matmul %11, %12, %cst {dimension_numbers = #tpu.dot_dimension_numbers<[1], [0], [0], [1], [0, 0, 1, 1], [], []>} : vector<18x32xf32>, vector<32x64xf32>, vector<18x64xf32> -> vector<18x64xf32>
    %c0_13 = arith.constant 0 : index
    %c0_14 = arith.constant 0 : index
    %14 = vector.load %arg10[%c0_13, %c0_14] : memref<1x64xf32, #tpu.memory_space<vmem>>, vector<1x64xf32>
    %15 = vector.broadcast %14 : vector<1x64xf32> to vector<18x64xf32>
    %16 = arith.addf %13, %15 : vector<18x64xf32>
    %c0_15 = arith.constant 0 : index
    %c0_16 = arith.constant 0 : index
    %17 = vector.load %arg3[%c0_15, %c0_16] : memref<34x18xf32, #tpu.memory_space<vmem>>, vector<34x18xf32>
    %cst_17 = arith.constant dense<0.000000e+00> : vector<34x64xf32>
    %18 = tpu.matmul %17, %16, %cst_17 {dimension_numbers = #tpu.dot_dimension_numbers<[1], [0], [0], [1], [0, 0, 1, 1], [], []>} : vector<34x18xf32>, vector<18x64xf32>, vector<34x64xf32> -> vector<34x64xf32>
    %c0_18 = arith.constant 0 : index
    %c0_19 = arith.constant 0 : index
    %19 = vector.load %arg4[%c0_18, %c0_19] : memref<34x1xf32, #tpu.memory_space<vmem>>, vector<34x1xf32>
    %20 = vector.broadcast %19 : vector<34x1xf32> to vector<34x64xf32>
    %21 = vector.broadcast %7 : vector<1x64xf32> to vector<34x64xf32>
    %22 = arith.mulf %20, %21 : vector<34x64xf32>
    %23 = arith.addf %18, %22 : vector<34x64xf32>
    %24 = arith.addf %23, %6 : vector<34x64xf32>
    %c0_20 = arith.constant 0 : index
    %c0_21 = arith.constant 0 : index
    %c0_22 = arith.constant 0 : index
    %25 = vector.load %arg23[%c0_20, %c0_21, %c0_22] : memref<2x6x64xf32, #tpu.memory_space<vmem>>, vector<1x6x64xf32>
    %26 = vector.shape_cast %25 : vector<1x6x64xf32> to vector<6x64xf32>
    %27 = vector.extract_strided_slice %26 {offsets = [0, 0], sizes = [1, 64], strides = [1, 1]} : vector<6x64xf32> to vector<1x64xf32>
    %28 = vector.extract_strided_slice %26 {offsets = [1, 0], sizes = [1, 64], strides = [1, 1]} : vector<6x64xf32> to vector<1x64xf32>
    %29 = vector.extract_strided_slice %26 {offsets = [2, 0], sizes = [1, 64], strides = [1, 1]} : vector<6x64xf32> to vector<1x64xf32>
    %30 = vector.extract_strided_slice %26 {offsets = [3, 0], sizes = [1, 64], strides = [1, 1]} : vector<6x64xf32> to vector<1x64xf32>
    %31 = vector.extract_strided_slice %26 {offsets = [4, 0], sizes = [1, 64], strides = [1, 1]} : vector<6x64xf32> to vector<1x64xf32>
    %32 = vector.extract_strided_slice %26 {offsets = [5, 0], sizes = [1, 64], strides = [1, 1]} : vector<6x64xf32> to vector<1x64xf32>
    %cst_23 = arith.constant dense<0.000000e+00> : vector<34xf32>
    %33 = vector.multi_reduction <add>, %24, %cst_23 [1] : vector<34x64xf32> to vector<34xf32>
    %34 = vector.shape_cast %33 : vector<34xf32> to vector<34x1xf32>
    %35 = arith.mulf %24, %24 : vector<34x64xf32>
    %cst_24 = arith.constant dense<0.000000e+00> : vector<34xf32>
    %36 = vector.multi_reduction <add>, %35, %cst_24 [1] : vector<34x64xf32> to vector<34xf32>
    %37 = vector.shape_cast %36 : vector<34xf32> to vector<34x1xf32>
    %cst_25 = arith.constant 1.562500e-02 : f32
    %38 = vector.broadcast %cst_25 : f32 to vector<34x1xf32>
    %39 = arith.mulf %34, %38 : vector<34x1xf32>
    %cst_26 = arith.constant 1.562500e-02 : f32
    %40 = vector.broadcast %cst_26 : f32 to vector<34x1xf32>
    %41 = arith.mulf %37, %40 : vector<34x1xf32>
    %42 = arith.mulf %39, %39 : vector<34x1xf32>
    %43 = arith.subf %41, %42 : vector<34x1xf32>
    %cst_27 = arith.constant 0.000000e+00 : f32
    %44 = vector.broadcast %cst_27 : f32 to vector<34x1xf32>
    %45 = arith.maximumf %43, %44 : vector<34x1xf32>
    %46 = vector.broadcast %39 : vector<34x1xf32> to vector<34x64xf32>
    %47 = arith.subf %24, %46 : vector<34x64xf32>
    %cst_28 = arith.constant 9.99999996E-13 : f32
    %48 = vector.broadcast %cst_28 : f32 to vector<34x1xf32>
    %49 = arith.addf %45, %48 : vector<34x1xf32>
    %50 = math.rsqrt %49 : vector<34x1xf32>
    %51 = vector.broadcast %50 : vector<34x1xf32> to vector<34x64xf32>
    %52 = arith.mulf %47, %51 : vector<34x64xf32>
    %53 = vector.broadcast %27 : vector<1x64xf32> to vector<34x64xf32>
    %54 = arith.mulf %52, %53 : vector<34x64xf32>
    %55 = vector.broadcast %28 : vector<1x64xf32> to vector<34x64xf32>
    %56 = arith.addf %54, %55 : vector<34x64xf32>
    %c0_29 = arith.constant 0 : index
    %c0_30 = arith.constant 0 : index
    %c0_31 = arith.constant 0 : index
    %57 = vector.load %arg17[%c0_29, %c0_30, %c0_31] : memref<2x64x192xf32, #tpu.memory_space<vmem>>, vector<1x64x192xf32>
    %58 = vector.shape_cast %57 : vector<1x64x192xf32> to vector<64x192xf32>
    %cst_32 = arith.constant dense<0.000000e+00> : vector<34x192xf32>
    %59 = tpu.matmul %56, %58, %cst_32 {dimension_numbers = #tpu.dot_dimension_numbers<[1], [0], [0], [1], [0, 0, 1, 1], [], []>} : vector<34x64xf32>, vector<64x192xf32>, vector<34x192xf32> -> vector<34x192xf32>
    %c0_33 = arith.constant 0 : index
    %c0_34 = arith.constant 0 : index
    %c0_35 = arith.constant 0 : index
    %60 = vector.load %arg18[%c0_33, %c0_34, %c0_35] : memref<2x1x192xf32, #tpu.memory_space<vmem>>, vector<1x1x192xf32>
    %61 = vector.shape_cast %60 : vector<1x1x192xf32> to vector<1x192xf32>
    %62 = vector.broadcast %61 : vector<1x192xf32> to vector<34x192xf32>
    %63 = arith.addf %59, %62 : vector<34x192xf32>
    %c0_36 = arith.constant 0 : index
    %c0_37 = arith.constant 0 : index
    %c0_38 = arith.constant 0 : index
    %64 = vector.load %arg19[%c0_36, %c0_37, %c0_38] : memref<2x64x64xf32, #tpu.memory_space<vmem>>, vector<1x64x64xf32>
    %65 = vector.shape_cast %64 : vector<1x64x64xf32> to vector<64x64xf32>
    %66 = vector.extract_strided_slice %63 {offsets = [0, 0], sizes = [34, 16], strides = [1, 1]} : vector<34x192xf32> to vector<34x16xf32>
    %67 = vector.extract_strided_slice %63 {offsets = [0, 64], sizes = [34, 16], strides = [1, 1]} : vector<34x192xf32> to vector<34x16xf32>
    %68 = vector.extract_strided_slice %63 {offsets = [0, 128], sizes = [34, 16], strides = [1, 1]} : vector<34x192xf32> to vector<34x16xf32>
    %cst_39 = arith.constant dense<0.000000e+00> : vector<34x34xf32>
    %69 = tpu.matmul %66, %67, %cst_39 {dimension_numbers = #tpu.dot_dimension_numbers<[1], [1], [0], [0], [0, 0, 1, 0], [], []>} : vector<34x16xf32>, vector<34x16xf32>, vector<34x34xf32> -> vector<34x34xf32>
    %cst_40 = arith.constant 2.500000e-01 : f32
    %70 = vector.broadcast %cst_40 : f32 to vector<34x34xf32>
    %71 = arith.mulf %69, %70 : vector<34x34xf32>
    %72 = arith.addf %71, %8 : vector<34x34xf32>
    %cst_41 = arith.constant dense<0xFF800000> : vector<34xf32>
    %73 = vector.multi_reduction <maximumf>, %72, %cst_41 [1] : vector<34x34xf32> to vector<34xf32>
    %74 = vector.shape_cast %73 : vector<34xf32> to vector<34x1xf32>
    %75 = vector.broadcast %74 : vector<34x1xf32> to vector<34x34xf32>
    %76 = arith.subf %72, %75 : vector<34x34xf32>
    %77 = math.exp %76 : vector<34x34xf32>
    %cst_42 = arith.constant dense<0.000000e+00> : vector<34xf32>
    %78 = vector.multi_reduction <add>, %77, %cst_42 [1] : vector<34x34xf32> to vector<34xf32>
    %79 = vector.shape_cast %78 : vector<34xf32> to vector<34x1xf32>
    %80 = tpu.reciprocal %79 {approx = true} : vector<34x1xf32> -> vector<34x1xf32>
    %81 = vector.broadcast %80 : vector<34x1xf32> to vector<34x34xf32>
    %82 = arith.mulf %77, %81 : vector<34x34xf32>
    %cst_43 = arith.constant dense<0.000000e+00> : vector<34x16xf32>
    %83 = tpu.matmul %82, %68, %cst_43 {dimension_numbers = #tpu.dot_dimension_numbers<[1], [0], [0], [1], [0, 0, 1, 1], [], []>} : vector<34x34xf32>, vector<34x16xf32>, vector<34x16xf32> -> vector<34x16xf32>
    %84 = vector.extract_strided_slice %65 {offsets = [0, 0], sizes = [16, 64], strides = [1, 1]} : vector<64x64xf32> to vector<16x64xf32>
    %cst_44 = arith.constant dense<0.000000e+00> : vector<34x64xf32>
    %85 = tpu.matmul %83, %84, %cst_44 {dimension_numbers = #tpu.dot_dimension_numbers<[1], [0], [0], [1], [0, 0, 1, 1], [], []>} : vector<34x16xf32>, vector<16x64xf32>, vector<34x64xf32> -> vector<34x64xf32>
    %86 = vector.extract_strided_slice %63 {offsets = [0, 16], sizes = [34, 16], strides = [1, 1]} : vector<34x192xf32> to vector<34x16xf32>
    %87 = vector.extract_strided_slice %63 {offsets = [0, 80], sizes = [34, 16], strides = [1, 1]} : vector<34x192xf32> to vector<34x16xf32>
    %88 = vector.extract_strided_slice %63 {offsets = [0, 144], sizes = [34, 16], strides = [1, 1]} : vector<34x192xf32> to vector<34x16xf32>
    %cst_45 = arith.constant dense<0.000000e+00> : vector<34x34xf32>
    %89 = tpu.matmul %86, %87, %cst_45 {dimension_numbers = #tpu.dot_dimension_numbers<[1], [1], [0], [0], [0, 0, 1, 0], [], []>} : vector<34x16xf32>, vector<34x16xf32>, vector<34x34xf32> -> vector<34x34xf32>
    %cst_46 = arith.constant 2.500000e-01 : f32
    %90 = vector.broadcast %cst_46 : f32 to vector<34x34xf32>
    %91 = arith.mulf %89, %90 : vector<34x34xf32>
    %92 = arith.addf %91, %8 : vector<34x34xf32>
    %cst_47 = arith.constant dense<0xFF800000> : vector<34xf32>
    %93 = vector.multi_reduction <maximumf>, %92, %cst_47 [1] : vector<34x34xf32> to vector<34xf32>
    %94 = vector.shape_cast %93 : vector<34xf32> to vector<34x1xf32>
    %95 = vector.broadcast %94 : vector<34x1xf32> to vector<34x34xf32>
    %96 = arith.subf %92, %95 : vector<34x34xf32>
    %97 = math.exp %96 : vector<34x34xf32>
    %cst_48 = arith.constant dense<0.000000e+00> : vector<34xf32>
    %98 = vector.multi_reduction <add>, %97, %cst_48 [1] : vector<34x34xf32> to vector<34xf32>
    %99 = vector.shape_cast %98 : vector<34xf32> to vector<34x1xf32>
    %100 = tpu.reciprocal %99 {approx = true} : vector<34x1xf32> -> vector<34x1xf32>
    %101 = vector.broadcast %100 : vector<34x1xf32> to vector<34x34xf32>
    %102 = arith.mulf %97, %101 : vector<34x34xf32>
    %cst_49 = arith.constant dense<0.000000e+00> : vector<34x16xf32>
    %103 = tpu.matmul %102, %88, %cst_49 {dimension_numbers = #tpu.dot_dimension_numbers<[1], [0], [0], [1], [0, 0, 1, 1], [], []>} : vector<34x34xf32>, vector<34x16xf32>, vector<34x16xf32> -> vector<34x16xf32>
    %104 = vector.extract_strided_slice %65 {offsets = [16, 0], sizes = [16, 64], strides = [1, 1]} : vector<64x64xf32> to vector<16x64xf32>
    %cst_50 = arith.constant dense<0.000000e+00> : vector<34x64xf32>
    %105 = tpu.matmul %103, %104, %cst_50 {dimension_numbers = #tpu.dot_dimension_numbers<[1], [0], [0], [1], [0, 0, 1, 1], [], []>} : vector<34x16xf32>, vector<16x64xf32>, vector<34x64xf32> -> vector<34x64xf32>
    %106 = arith.addf %85, %105 : vector<34x64xf32>
    %107 = vector.extract_strided_slice %63 {offsets = [0, 32], sizes = [34, 16], strides = [1, 1]} : vector<34x192xf32> to vector<34x16xf32>
    %108 = vector.extract_strided_slice %63 {offsets = [0, 96], sizes = [34, 16], strides = [1, 1]} : vector<34x192xf32> to vector<34x16xf32>
    %109 = vector.extract_strided_slice %63 {offsets = [0, 160], sizes = [34, 16], strides = [1, 1]} : vector<34x192xf32> to vector<34x16xf32>
    %cst_51 = arith.constant dense<0.000000e+00> : vector<34x34xf32>
    %110 = tpu.matmul %107, %108, %cst_51 {dimension_numbers = #tpu.dot_dimension_numbers<[1], [1], [0], [0], [0, 0, 1, 0], [], []>} : vector<34x16xf32>, vector<34x16xf32>, vector<34x34xf32> -> vector<34x34xf32>
    %cst_52 = arith.constant 2.500000e-01 : f32
    %111 = vector.broadcast %cst_52 : f32 to vector<34x34xf32>
    %112 = arith.mulf %110, %111 : vector<34x34xf32>
    %113 = arith.addf %112, %8 : vector<34x34xf32>
    %cst_53 = arith.constant dense<0xFF800000> : vector<34xf32>
    %114 = vector.multi_reduction <maximumf>, %113, %cst_53 [1] : vector<34x34xf32> to vector<34xf32>
    %115 = vector.shape_cast %114 : vector<34xf32> to vector<34x1xf32>
    %116 = vector.broadcast %115 : vector<34x1xf32> to vector<34x34xf32>
    %117 = arith.subf %113, %116 : vector<34x34xf32>
    %118 = math.exp %117 : vector<34x34xf32>
    %cst_54 = arith.constant dense<0.000000e+00> : vector<34xf32>
    %119 = vector.multi_reduction <add>, %118, %cst_54 [1] : vector<34x34xf32> to vector<34xf32>
    %120 = vector.shape_cast %119 : vector<34xf32> to vector<34x1xf32>
    %121 = tpu.reciprocal %120 {approx = true} : vector<34x1xf32> -> vector<34x1xf32>
    %122 = vector.broadcast %121 : vector<34x1xf32> to vector<34x34xf32>
    %123 = arith.mulf %118, %122 : vector<34x34xf32>
    %cst_55 = arith.constant dense<0.000000e+00> : vector<34x16xf32>
    %124 = tpu.matmul %123, %109, %cst_55 {dimension_numbers = #tpu.dot_dimension_numbers<[1], [0], [0], [1], [0, 0, 1, 1], [], []>} : vector<34x34xf32>, vector<34x16xf32>, vector<34x16xf32> -> vector<34x16xf32>
    %125 = vector.extract_strided_slice %65 {offsets = [32, 0], sizes = [16, 64], strides = [1, 1]} : vector<64x64xf32> to vector<16x64xf32>
    %cst_56 = arith.constant dense<0.000000e+00> : vector<34x64xf32>
    %126 = tpu.matmul %124, %125, %cst_56 {dimension_numbers = #tpu.dot_dimension_numbers<[1], [0], [0], [1], [0, 0, 1, 1], [], []>} : vector<34x16xf32>, vector<16x64xf32>, vector<34x64xf32> -> vector<34x64xf32>
    %127 = arith.addf %106, %126 : vector<34x64xf32>
    %128 = vector.extract_strided_slice %63 {offsets = [0, 48], sizes = [34, 16], strides = [1, 1]} : vector<34x192xf32> to vector<34x16xf32>
    %129 = vector.extract_strided_slice %63 {offsets = [0, 112], sizes = [34, 16], strides = [1, 1]} : vector<34x192xf32> to vector<34x16xf32>
    %130 = vector.extract_strided_slice %63 {offsets = [0, 176], sizes = [34, 16], strides = [1, 1]} : vector<34x192xf32> to vector<34x16xf32>
    %cst_57 = arith.constant dense<0.000000e+00> : vector<34x34xf32>
    %131 = tpu.matmul %128, %129, %cst_57 {dimension_numbers = #tpu.dot_dimension_numbers<[1], [1], [0], [0], [0, 0, 1, 0], [], []>} : vector<34x16xf32>, vector<34x16xf32>, vector<34x34xf32> -> vector<34x34xf32>
    %cst_58 = arith.constant 2.500000e-01 : f32
    %132 = vector.broadcast %cst_58 : f32 to vector<34x34xf32>
    %133 = arith.mulf %131, %132 : vector<34x34xf32>
    %134 = arith.addf %133, %8 : vector<34x34xf32>
    %cst_59 = arith.constant dense<0xFF800000> : vector<34xf32>
    %135 = vector.multi_reduction <maximumf>, %134, %cst_59 [1] : vector<34x34xf32> to vector<34xf32>
    %136 = vector.shape_cast %135 : vector<34xf32> to vector<34x1xf32>
    %137 = vector.broadcast %136 : vector<34x1xf32> to vector<34x34xf32>
    %138 = arith.subf %134, %137 : vector<34x34xf32>
    %139 = math.exp %138 : vector<34x34xf32>
    %cst_60 = arith.constant dense<0.000000e+00> : vector<34xf32>
    %140 = vector.multi_reduction <add>, %139, %cst_60 [1] : vector<34x34xf32> to vector<34xf32>
    %141 = vector.shape_cast %140 : vector<34xf32> to vector<34x1xf32>
    %142 = tpu.reciprocal %141 {approx = true} : vector<34x1xf32> -> vector<34x1xf32>
    %143 = vector.broadcast %142 : vector<34x1xf32> to vector<34x34xf32>
    %144 = arith.mulf %139, %143 : vector<34x34xf32>
    %cst_61 = arith.constant dense<0.000000e+00> : vector<34x16xf32>
    %145 = tpu.matmul %144, %130, %cst_61 {dimension_numbers = #tpu.dot_dimension_numbers<[1], [0], [0], [1], [0, 0, 1, 1], [], []>} : vector<34x34xf32>, vector<34x16xf32>, vector<34x16xf32> -> vector<34x16xf32>
    %146 = vector.extract_strided_slice %65 {offsets = [48, 0], sizes = [16, 64], strides = [1, 1]} : vector<64x64xf32> to vector<16x64xf32>
    %cst_62 = arith.constant dense<0.000000e+00> : vector<34x64xf32>
    %147 = tpu.matmul %145, %146, %cst_62 {dimension_numbers = #tpu.dot_dimension_numbers<[1], [0], [0], [1], [0, 0, 1, 1], [], []>} : vector<34x16xf32>, vector<16x64xf32>, vector<34x64xf32> -> vector<34x64xf32>
    %148 = arith.addf %127, %147 : vector<34x64xf32>
    %149 = arith.addf %24, %148 : vector<34x64xf32>
    %150 = vector.broadcast %29 : vector<1x64xf32> to vector<34x64xf32>
    %151 = arith.addf %149, %150 : vector<34x64xf32>
    %cst_63 = arith.constant dense<0.000000e+00> : vector<34xf32>
    %152 = vector.multi_reduction <add>, %151, %cst_63 [1] : vector<34x64xf32> to vector<34xf32>
    %153 = vector.shape_cast %152 : vector<34xf32> to vector<34x1xf32>
    %154 = arith.mulf %151, %151 : vector<34x64xf32>
    %cst_64 = arith.constant dense<0.000000e+00> : vector<34xf32>
    %155 = vector.multi_reduction <add>, %154, %cst_64 [1] : vector<34x64xf32> to vector<34xf32>
    %156 = vector.shape_cast %155 : vector<34xf32> to vector<34x1xf32>
    %cst_65 = arith.constant 1.562500e-02 : f32
    %157 = vector.broadcast %cst_65 : f32 to vector<34x1xf32>
    %158 = arith.mulf %153, %157 : vector<34x1xf32>
    %cst_66 = arith.constant 1.562500e-02 : f32
    %159 = vector.broadcast %cst_66 : f32 to vector<34x1xf32>
    %160 = arith.mulf %156, %159 : vector<34x1xf32>
    %161 = arith.mulf %158, %158 : vector<34x1xf32>
    %162 = arith.subf %160, %161 : vector<34x1xf32>
    %cst_67 = arith.constant 0.000000e+00 : f32
    %163 = vector.broadcast %cst_67 : f32 to vector<34x1xf32>
    %164 = arith.maximumf %162, %163 : vector<34x1xf32>
    %165 = vector.broadcast %158 : vector<34x1xf32> to vector<34x64xf32>
    %166 = arith.subf %151, %165 : vector<34x64xf32>
    %cst_68 = arith.constant 9.99999996E-13 : f32
    %167 = vector.broadcast %cst_68 : f32 to vector<34x1xf32>
    %168 = arith.addf %164, %167 : vector<34x1xf32>
    %169 = math.rsqrt %168 : vector<34x1xf32>
    %170 = vector.broadcast %169 : vector<34x1xf32> to vector<34x64xf32>
    %171 = arith.mulf %166, %170 : vector<34x64xf32>
    %172 = vector.broadcast %30 : vector<1x64xf32> to vector<34x64xf32>
    %173 = arith.mulf %171, %172 : vector<34x64xf32>
    %174 = vector.broadcast %31 : vector<1x64xf32> to vector<34x64xf32>
    %175 = arith.addf %173, %174 : vector<34x64xf32>
    %c0_69 = arith.constant 0 : index
    %c0_70 = arith.constant 0 : index
    %c0_71 = arith.constant 0 : index
    %176 = vector.load %arg20[%c0_69, %c0_70, %c0_71] : memref<2x64x128xf32, #tpu.memory_space<vmem>>, vector<1x64x128xf32>
    %177 = vector.shape_cast %176 : vector<1x64x128xf32> to vector<64x128xf32>
    %cst_72 = arith.constant dense<0.000000e+00> : vector<34x128xf32>
    %178 = tpu.matmul %175, %177, %cst_72 {dimension_numbers = #tpu.dot_dimension_numbers<[1], [0], [0], [1], [0, 0, 1, 1], [], []>} : vector<34x64xf32>, vector<64x128xf32>, vector<34x128xf32> -> vector<34x128xf32>
    %c0_73 = arith.constant 0 : index
    %c0_74 = arith.constant 0 : index
    %c0_75 = arith.constant 0 : index
    %179 = vector.load %arg21[%c0_73, %c0_74, %c0_75] : memref<2x1x128xf32, #tpu.memory_space<vmem>>, vector<1x1x128xf32>
    %180 = vector.shape_cast %179 : vector<1x1x128xf32> to vector<1x128xf32>
    %181 = vector.broadcast %180 : vector<1x128xf32> to vector<34x128xf32>
    %182 = arith.addf %178, %181 : vector<34x128xf32>
    %cst_76 = arith.constant 5.000000e-01 : f32
    %183 = vector.broadcast %cst_76 : f32 to vector<34x128xf32>
    %184 = arith.mulf %183, %182 : vector<34x128xf32>
    %cst_77 = arith.constant 0.707106769 : f32
    %185 = vector.broadcast %cst_77 : f32 to vector<34x128xf32>
    %186 = arith.mulf %182, %185 : vector<34x128xf32>
    %187 = math.erf %186 : vector<34x128xf32>
    %cst_78 = arith.constant 1.000000e+00 : f32
    %188 = vector.broadcast %cst_78 : f32 to vector<34x128xf32>
    %189 = arith.addf %188, %187 : vector<34x128xf32>
    %190 = arith.mulf %184, %189 : vector<34x128xf32>
    %c0_79 = arith.constant 0 : index
    %c0_80 = arith.constant 0 : index
    %c0_81 = arith.constant 0 : index
    %191 = vector.load %arg22[%c0_79, %c0_80, %c0_81] : memref<2x128x64xf32, #tpu.memory_space<vmem>>, vector<1x128x64xf32>
    %192 = vector.shape_cast %191 : vector<1x128x64xf32> to vector<128x64xf32>
    %cst_82 = arith.constant dense<0.000000e+00> : vector<34x64xf32>
    %193 = tpu.matmul %190, %192, %cst_82 {dimension_numbers = #tpu.dot_dimension_numbers<[1], [0], [0], [1], [0, 0, 1, 1], [], []>} : vector<34x128xf32>, vector<128x64xf32>, vector<34x64xf32> -> vector<34x64xf32>
    %194 = vector.broadcast %32 : vector<1x64xf32> to vector<34x64xf32>
    %195 = arith.addf %193, %194 : vector<34x64xf32>
    %c0_i32_83 = arith.constant 0 : i32
    %196 = tpu.memref_slice %arg31[%c0_i32_83] : memref<3x!tpu.dma_semaphore, #tpu.memory_space<semaphore_mem>> -> memref<1x!tpu.dma_semaphore, #tpu.memory_space<semaphore_mem>>
    %197 = tpu.memref_squeeze %196 : memref<1x!tpu.dma_semaphore, #tpu.memory_space<semaphore_mem>> -> memref<!tpu.dma_semaphore, #tpu.memory_space<semaphore_mem>>
    tpu.wait_dma2 semaphore(%197 : memref<!tpu.dma_semaphore, #tpu.memory_space<semaphore_mem>>) src(%arg11 : memref<256x1024xbf16, #tpu.memory_space<any>>) dst(%arg28 : memref<256x1024xbf16, #tpu.memory_space<vmem>>)
    %c1_i32_84 = arith.constant 1 : i32
    %198 = tpu.memref_slice %arg31[%c1_i32_84] : memref<3x!tpu.dma_semaphore, #tpu.memory_space<semaphore_mem>> -> memref<1x!tpu.dma_semaphore, #tpu.memory_space<semaphore_mem>>
    %199 = tpu.memref_squeeze %198 : memref<1x!tpu.dma_semaphore, #tpu.memory_space<semaphore_mem>> -> memref<!tpu.dma_semaphore, #tpu.memory_space<semaphore_mem>>
    tpu.wait_dma2 semaphore(%199 : memref<!tpu.dma_semaphore, #tpu.memory_space<semaphore_mem>>) src(%arg13 : memref<1024x1024xbf16, #tpu.memory_space<any>>) dst(%arg29 : memref<1024x1024xbf16, #tpu.memory_space<vmem>>)
    %c2_i32_85 = arith.constant 2 : i32
    %200 = tpu.memref_slice %arg31[%c2_i32_85] : memref<3x!tpu.dma_semaphore, #tpu.memory_space<semaphore_mem>> -> memref<1x!tpu.dma_semaphore, #tpu.memory_space<semaphore_mem>>
    %201 = tpu.memref_squeeze %200 : memref<1x!tpu.dma_semaphore, #tpu.memory_space<semaphore_mem>> -> memref<!tpu.dma_semaphore, #tpu.memory_space<semaphore_mem>>
    tpu.wait_dma2 semaphore(%201 : memref<!tpu.dma_semaphore, #tpu.memory_space<semaphore_mem>>) src(%arg15 : memref<1024x128xbf16, #tpu.memory_space<any>>) dst(%arg30 : memref<1024x128xbf16, #tpu.memory_space<vmem>>)
    %c0_86 = arith.constant 0 : index
    %c0_87 = arith.constant 0 : index
    %202 = vector.load %arg2[%c0_86, %c0_87] : memref<2x256xf32, #tpu.memory_space<vmem>>, vector<2x256xf32>
    %203 = arith.truncf %202 : vector<2x256xf32> to vector<2x256xbf16>
    %c0_88 = arith.constant 0 : index
    %c0_89 = arith.constant 0 : index
    %204 = vector.load %arg28[%c0_88, %c0_89] : memref<256x1024xbf16, #tpu.memory_space<vmem>>, vector<256x1024xbf16>
    %cst_90 = arith.constant dense<0.000000e+00> : vector<2x1024xf32>
    %205 = tpu.matmul %203, %204, %cst_90 {dimension_numbers = #tpu.dot_dimension_numbers<[1], [0], [0], [1], [0, 0, 1, 1], [], []>} : vector<2x256xbf16>, vector<256x1024xbf16>, vector<2x1024xf32> -> vector<2x1024xf32>
    %c0_91 = arith.constant 0 : index
    %c0_92 = arith.constant 0 : index
    %206 = vector.load %arg12[%c0_91, %c0_92] : memref<1x1024xf32, #tpu.memory_space<vmem>>, vector<1x1024xf32>
    %207 = vector.broadcast %206 : vector<1x1024xf32> to vector<2x1024xf32>
    %208 = arith.addf %205, %207 : vector<2x1024xf32>
    %209 = arith.negf %208 : vector<2x1024xf32>
    %210 = math.exp %209 : vector<2x1024xf32>
    %cst_93 = arith.constant 1.000000e+00 : f32
    %211 = vector.broadcast %cst_93 : f32 to vector<2x1024xf32>
    %212 = arith.addf %211, %210 : vector<2x1024xf32>
    %213 = arith.divf %211, %212 : vector<2x1024xf32>
    %214 = arith.mulf %208, %213 : vector<2x1024xf32>
    %215 = arith.truncf %214 : vector<2x1024xf32> to vector<2x1024xbf16>
    %c0_94 = arith.constant 0 : index
    %c0_95 = arith.constant 0 : index
    %216 = vector.load %arg29[%c0_94, %c0_95] : memref<1024x1024xbf16, #tpu.memory_space<vmem>>, vector<1024x1024xbf16>
    %cst_96 = arith.constant dense<0.000000e+00> : vector<2x1024xf32>
    %217 = tpu.matmul %215, %216, %cst_96 {dimension_numbers = #tpu.dot_dimension_numbers<[1], [0], [0], [1], [0, 0, 1, 1], [], []>} : vector<2x1024xbf16>, vector<1024x1024xbf16>, vector<2x1024xf32> -> vector<2x1024xf32>
    %c0_97 = arith.constant 0 : index
    %c0_98 = arith.constant 0 : index
    %218 = vector.load %arg14[%c0_97, %c0_98] : memref<1x1024xf32, #tpu.memory_space<vmem>>, vector<1x1024xf32>
    %219 = vector.broadcast %218 : vector<1x1024xf32> to vector<2x1024xf32>
    %220 = arith.addf %217, %219 : vector<2x1024xf32>
    %221 = arith.truncf %220 : vector<2x1024xf32> to vector<2x1024xbf16>
    %c0_99 = arith.constant 0 : index
    %c0_100 = arith.constant 0 : index
    %222 = vector.load %arg30[%c0_99, %c0_100] : memref<1024x128xbf16, #tpu.memory_space<vmem>>, vector<1024x128xbf16>
    %cst_101 = arith.constant dense<0.000000e+00> : vector<2x128xf32>
    %223 = tpu.matmul %221, %222, %cst_101 {dimension_numbers = #tpu.dot_dimension_numbers<[1], [0], [0], [1], [0, 0, 1, 1], [], []>} : vector<2x1024xbf16>, vector<1024x128xbf16>, vector<2x128xf32> -> vector<2x128xf32>
    %c0_102 = arith.constant 0 : index
    %c0_103 = arith.constant 0 : index
    %224 = vector.load %arg16[%c0_102, %c0_103] : memref<1x128xf32, #tpu.memory_space<vmem>>, vector<1x128xf32>
    %225 = vector.broadcast %224 : vector<1x128xf32> to vector<2x128xf32>
    %226 = arith.addf %223, %225 : vector<2x128xf32>
    %cst_104 = arith.constant dense<0.000000e+00> : vector<34x128xf32>
    %227 = tpu.matmul %9, %226, %cst_104 {dimension_numbers = #tpu.dot_dimension_numbers<[1], [0], [0], [1], [0, 0, 1, 1], [], []>} : vector<34x2xf32>, vector<2x128xf32>, vector<34x128xf32> -> vector<34x128xf32>
    %228 = arith.addf %151, %195 : vector<34x64xf32>
    %229 = vector.extract_strided_slice %227 {offsets = [0, 0], sizes = [34, 64], strides = [1, 1]} : vector<34x128xf32> to vector<34x64xf32>
    %230 = arith.addf %228, %229 : vector<34x64xf32>
    %c1 = arith.constant 1 : index
    %c0_105 = arith.constant 0 : index
    %c0_106 = arith.constant 0 : index
    %231 = vector.load %arg23[%c1, %c0_105, %c0_106] : memref<2x6x64xf32, #tpu.memory_space<vmem>>, vector<1x6x64xf32>
    %232 = vector.shape_cast %231 : vector<1x6x64xf32> to vector<6x64xf32>
    %233 = vector.extract_strided_slice %232 {offsets = [0, 0], sizes = [1, 64], strides = [1, 1]} : vector<6x64xf32> to vector<1x64xf32>
    %234 = vector.extract_strided_slice %232 {offsets = [1, 0], sizes = [1, 64], strides = [1, 1]} : vector<6x64xf32> to vector<1x64xf32>
    %235 = vector.extract_strided_slice %232 {offsets = [2, 0], sizes = [1, 64], strides = [1, 1]} : vector<6x64xf32> to vector<1x64xf32>
    %236 = vector.extract_strided_slice %232 {offsets = [3, 0], sizes = [1, 64], strides = [1, 1]} : vector<6x64xf32> to vector<1x64xf32>
    %237 = vector.extract_strided_slice %232 {offsets = [4, 0], sizes = [1, 64], strides = [1, 1]} : vector<6x64xf32> to vector<1x64xf32>
    %238 = vector.extract_strided_slice %232 {offsets = [5, 0], sizes = [1, 64], strides = [1, 1]} : vector<6x64xf32> to vector<1x64xf32>
    %cst_107 = arith.constant dense<0.000000e+00> : vector<34xf32>
    %239 = vector.multi_reduction <add>, %230, %cst_107 [1] : vector<34x64xf32> to vector<34xf32>
    %240 = vector.shape_cast %239 : vector<34xf32> to vector<34x1xf32>
    %241 = arith.mulf %230, %230 : vector<34x64xf32>
    %cst_108 = arith.constant dense<0.000000e+00> : vector<34xf32>
    %242 = vector.multi_reduction <add>, %241, %cst_108 [1] : vector<34x64xf32> to vector<34xf32>
    %243 = vector.shape_cast %242 : vector<34xf32> to vector<34x1xf32>
    %cst_109 = arith.constant 1.562500e-02 : f32
    %244 = vector.broadcast %cst_109 : f32 to vector<34x1xf32>
    %245 = arith.mulf %240, %244 : vector<34x1xf32>
    %cst_110 = arith.constant 1.562500e-02 : f32
    %246 = vector.broadcast %cst_110 : f32 to vector<34x1xf32>
    %247 = arith.mulf %243, %246 : vector<34x1xf32>
    %248 = arith.mulf %245, %245 : vector<34x1xf32>
    %249 = arith.subf %247, %248 : vector<34x1xf32>
    %cst_111 = arith.constant 0.000000e+00 : f32
    %250 = vector.broadcast %cst_111 : f32 to vector<34x1xf32>
    %251 = arith.maximumf %249, %250 : vector<34x1xf32>
    %252 = vector.broadcast %245 : vector<34x1xf32> to vector<34x64xf32>
    %253 = arith.subf %230, %252 : vector<34x64xf32>
    %cst_112 = arith.constant 9.99999996E-13 : f32
    %254 = vector.broadcast %cst_112 : f32 to vector<34x1xf32>
    %255 = arith.addf %251, %254 : vector<34x1xf32>
    %256 = math.rsqrt %255 : vector<34x1xf32>
    %257 = vector.broadcast %256 : vector<34x1xf32> to vector<34x64xf32>
    %258 = arith.mulf %253, %257 : vector<34x64xf32>
    %259 = vector.broadcast %233 : vector<1x64xf32> to vector<34x64xf32>
    %260 = arith.mulf %258, %259 : vector<34x64xf32>
    %261 = vector.broadcast %234 : vector<1x64xf32> to vector<34x64xf32>
    %262 = arith.addf %260, %261 : vector<34x64xf32>
    %c1_113 = arith.constant 1 : index
    %c0_114 = arith.constant 0 : index
    %c0_115 = arith.constant 0 : index
    %263 = vector.load %arg17[%c1_113, %c0_114, %c0_115] : memref<2x64x192xf32, #tpu.memory_space<vmem>>, vector<1x64x192xf32>
    %264 = vector.shape_cast %263 : vector<1x64x192xf32> to vector<64x192xf32>
    %cst_116 = arith.constant dense<0.000000e+00> : vector<34x192xf32>
    %265 = tpu.matmul %262, %264, %cst_116 {dimension_numbers = #tpu.dot_dimension_numbers<[1], [0], [0], [1], [0, 0, 1, 1], [], []>} : vector<34x64xf32>, vector<64x192xf32>, vector<34x192xf32> -> vector<34x192xf32>
    %c1_117 = arith.constant 1 : index
    %c0_118 = arith.constant 0 : index
    %c0_119 = arith.constant 0 : index
    %266 = vector.load %arg18[%c1_117, %c0_118, %c0_119] : memref<2x1x192xf32, #tpu.memory_space<vmem>>, vector<1x1x192xf32>
    %267 = vector.shape_cast %266 : vector<1x1x192xf32> to vector<1x192xf32>
    %268 = vector.broadcast %267 : vector<1x192xf32> to vector<34x192xf32>
    %269 = arith.addf %265, %268 : vector<34x192xf32>
    %c1_120 = arith.constant 1 : index
    %c0_121 = arith.constant 0 : index
    %c0_122 = arith.constant 0 : index
    %270 = vector.load %arg19[%c1_120, %c0_121, %c0_122] : memref<2x64x64xf32, #tpu.memory_space<vmem>>, vector<1x64x64xf32>
    %271 = vector.shape_cast %270 : vector<1x64x64xf32> to vector<64x64xf32>
    %272 = vector.extract_strided_slice %269 {offsets = [0, 0], sizes = [34, 16], strides = [1, 1]} : vector<34x192xf32> to vector<34x16xf32>
    %273 = vector.extract_strided_slice %269 {offsets = [0, 64], sizes = [34, 16], strides = [1, 1]} : vector<34x192xf32> to vector<34x16xf32>
    %274 = vector.extract_strided_slice %269 {offsets = [0, 128], sizes = [34, 16], strides = [1, 1]} : vector<34x192xf32> to vector<34x16xf32>
    %cst_123 = arith.constant dense<0.000000e+00> : vector<34x34xf32>
    %275 = tpu.matmul %272, %273, %cst_123 {dimension_numbers = #tpu.dot_dimension_numbers<[1], [1], [0], [0], [0, 0, 1, 0], [], []>} : vector<34x16xf32>, vector<34x16xf32>, vector<34x34xf32> -> vector<34x34xf32>
    %cst_124 = arith.constant 2.500000e-01 : f32
    %276 = vector.broadcast %cst_124 : f32 to vector<34x34xf32>
    %277 = arith.mulf %275, %276 : vector<34x34xf32>
    %278 = arith.addf %277, %8 : vector<34x34xf32>
    %cst_125 = arith.constant dense<0xFF800000> : vector<34xf32>
    %279 = vector.multi_reduction <maximumf>, %278, %cst_125 [1] : vector<34x34xf32> to vector<34xf32>
    %280 = vector.shape_cast %279 : vector<34xf32> to vector<34x1xf32>
    %281 = vector.broadcast %280 : vector<34x1xf32> to vector<34x34xf32>
    %282 = arith.subf %278, %281 : vector<34x34xf32>
    %283 = math.exp %282 : vector<34x34xf32>
    %cst_126 = arith.constant dense<0.000000e+00> : vector<34xf32>
    %284 = vector.multi_reduction <add>, %283, %cst_126 [1] : vector<34x34xf32> to vector<34xf32>
    %285 = vector.shape_cast %284 : vector<34xf32> to vector<34x1xf32>
    %286 = tpu.reciprocal %285 {approx = true} : vector<34x1xf32> -> vector<34x1xf32>
    %287 = vector.broadcast %286 : vector<34x1xf32> to vector<34x34xf32>
    %288 = arith.mulf %283, %287 : vector<34x34xf32>
    %cst_127 = arith.constant dense<0.000000e+00> : vector<34x16xf32>
    %289 = tpu.matmul %288, %274, %cst_127 {dimension_numbers = #tpu.dot_dimension_numbers<[1], [0], [0], [1], [0, 0, 1, 1], [], []>} : vector<34x34xf32>, vector<34x16xf32>, vector<34x16xf32> -> vector<34x16xf32>
    %290 = vector.extract_strided_slice %271 {offsets = [0, 0], sizes = [16, 64], strides = [1, 1]} : vector<64x64xf32> to vector<16x64xf32>
    %cst_128 = arith.constant dense<0.000000e+00> : vector<34x64xf32>
    %291 = tpu.matmul %289, %290, %cst_128 {dimension_numbers = #tpu.dot_dimension_numbers<[1], [0], [0], [1], [0, 0, 1, 1], [], []>} : vector<34x16xf32>, vector<16x64xf32>, vector<34x64xf32> -> vector<34x64xf32>
    %292 = vector.extract_strided_slice %269 {offsets = [0, 16], sizes = [34, 16], strides = [1, 1]} : vector<34x192xf32> to vector<34x16xf32>
    %293 = vector.extract_strided_slice %269 {offsets = [0, 80], sizes = [34, 16], strides = [1, 1]} : vector<34x192xf32> to vector<34x16xf32>
    %294 = vector.extract_strided_slice %269 {offsets = [0, 144], sizes = [34, 16], strides = [1, 1]} : vector<34x192xf32> to vector<34x16xf32>
    %cst_129 = arith.constant dense<0.000000e+00> : vector<34x34xf32>
    %295 = tpu.matmul %292, %293, %cst_129 {dimension_numbers = #tpu.dot_dimension_numbers<[1], [1], [0], [0], [0, 0, 1, 0], [], []>} : vector<34x16xf32>, vector<34x16xf32>, vector<34x34xf32> -> vector<34x34xf32>
    %cst_130 = arith.constant 2.500000e-01 : f32
    %296 = vector.broadcast %cst_130 : f32 to vector<34x34xf32>
    %297 = arith.mulf %295, %296 : vector<34x34xf32>
    %298 = arith.addf %297, %8 : vector<34x34xf32>
    %cst_131 = arith.constant dense<0xFF800000> : vector<34xf32>
    %299 = vector.multi_reduction <maximumf>, %298, %cst_131 [1] : vector<34x34xf32> to vector<34xf32>
    %300 = vector.shape_cast %299 : vector<34xf32> to vector<34x1xf32>
    %301 = vector.broadcast %300 : vector<34x1xf32> to vector<34x34xf32>
    %302 = arith.subf %298, %301 : vector<34x34xf32>
    %303 = math.exp %302 : vector<34x34xf32>
    %cst_132 = arith.constant dense<0.000000e+00> : vector<34xf32>
    %304 = vector.multi_reduction <add>, %303, %cst_132 [1] : vector<34x34xf32> to vector<34xf32>
    %305 = vector.shape_cast %304 : vector<34xf32> to vector<34x1xf32>
    %306 = tpu.reciprocal %305 {approx = true} : vector<34x1xf32> -> vector<34x1xf32>
    %307 = vector.broadcast %306 : vector<34x1xf32> to vector<34x34xf32>
    %308 = arith.mulf %303, %307 : vector<34x34xf32>
    %cst_133 = arith.constant dense<0.000000e+00> : vector<34x16xf32>
    %309 = tpu.matmul %308, %294, %cst_133 {dimension_numbers = #tpu.dot_dimension_numbers<[1], [0], [0], [1], [0, 0, 1, 1], [], []>} : vector<34x34xf32>, vector<34x16xf32>, vector<34x16xf32> -> vector<34x16xf32>
    %310 = vector.extract_strided_slice %271 {offsets = [16, 0], sizes = [16, 64], strides = [1, 1]} : vector<64x64xf32> to vector<16x64xf32>
    %cst_134 = arith.constant dense<0.000000e+00> : vector<34x64xf32>
    %311 = tpu.matmul %309, %310, %cst_134 {dimension_numbers = #tpu.dot_dimension_numbers<[1], [0], [0], [1], [0, 0, 1, 1], [], []>} : vector<34x16xf32>, vector<16x64xf32>, vector<34x64xf32> -> vector<34x64xf32>
    %312 = arith.addf %291, %311 : vector<34x64xf32>
    %313 = vector.extract_strided_slice %269 {offsets = [0, 32], sizes = [34, 16], strides = [1, 1]} : vector<34x192xf32> to vector<34x16xf32>
    %314 = vector.extract_strided_slice %269 {offsets = [0, 96], sizes = [34, 16], strides = [1, 1]} : vector<34x192xf32> to vector<34x16xf32>
    %315 = vector.extract_strided_slice %269 {offsets = [0, 160], sizes = [34, 16], strides = [1, 1]} : vector<34x192xf32> to vector<34x16xf32>
    %cst_135 = arith.constant dense<0.000000e+00> : vector<34x34xf32>
    %316 = tpu.matmul %313, %314, %cst_135 {dimension_numbers = #tpu.dot_dimension_numbers<[1], [1], [0], [0], [0, 0, 1, 0], [], []>} : vector<34x16xf32>, vector<34x16xf32>, vector<34x34xf32> -> vector<34x34xf32>
    %cst_136 = arith.constant 2.500000e-01 : f32
    %317 = vector.broadcast %cst_136 : f32 to vector<34x34xf32>
    %318 = arith.mulf %316, %317 : vector<34x34xf32>
    %319 = arith.addf %318, %8 : vector<34x34xf32>
    %cst_137 = arith.constant dense<0xFF800000> : vector<34xf32>
    %320 = vector.multi_reduction <maximumf>, %319, %cst_137 [1] : vector<34x34xf32> to vector<34xf32>
    %321 = vector.shape_cast %320 : vector<34xf32> to vector<34x1xf32>
    %322 = vector.broadcast %321 : vector<34x1xf32> to vector<34x34xf32>
    %323 = arith.subf %319, %322 : vector<34x34xf32>
    %324 = math.exp %323 : vector<34x34xf32>
    %cst_138 = arith.constant dense<0.000000e+00> : vector<34xf32>
    %325 = vector.multi_reduction <add>, %324, %cst_138 [1] : vector<34x34xf32> to vector<34xf32>
    %326 = vector.shape_cast %325 : vector<34xf32> to vector<34x1xf32>
    %327 = tpu.reciprocal %326 {approx = true} : vector<34x1xf32> -> vector<34x1xf32>
    %328 = vector.broadcast %327 : vector<34x1xf32> to vector<34x34xf32>
    %329 = arith.mulf %324, %328 : vector<34x34xf32>
    %cst_139 = arith.constant dense<0.000000e+00> : vector<34x16xf32>
    %330 = tpu.matmul %329, %315, %cst_139 {dimension_numbers = #tpu.dot_dimension_numbers<[1], [0], [0], [1], [0, 0, 1, 1], [], []>} : vector<34x34xf32>, vector<34x16xf32>, vector<34x16xf32> -> vector<34x16xf32>
    %331 = vector.extract_strided_slice %271 {offsets = [32, 0], sizes = [16, 64], strides = [1, 1]} : vector<64x64xf32> to vector<16x64xf32>
    %cst_140 = arith.constant dense<0.000000e+00> : vector<34x64xf32>
    %332 = tpu.matmul %330, %331, %cst_140 {dimension_numbers = #tpu.dot_dimension_numbers<[1], [0], [0], [1], [0, 0, 1, 1], [], []>} : vector<34x16xf32>, vector<16x64xf32>, vector<34x64xf32> -> vector<34x64xf32>
    %333 = arith.addf %312, %332 : vector<34x64xf32>
    %334 = vector.extract_strided_slice %269 {offsets = [0, 48], sizes = [34, 16], strides = [1, 1]} : vector<34x192xf32> to vector<34x16xf32>
    %335 = vector.extract_strided_slice %269 {offsets = [0, 112], sizes = [34, 16], strides = [1, 1]} : vector<34x192xf32> to vector<34x16xf32>
    %336 = vector.extract_strided_slice %269 {offsets = [0, 176], sizes = [34, 16], strides = [1, 1]} : vector<34x192xf32> to vector<34x16xf32>
    %cst_141 = arith.constant dense<0.000000e+00> : vector<34x34xf32>
    %337 = tpu.matmul %334, %335, %cst_141 {dimension_numbers = #tpu.dot_dimension_numbers<[1], [1], [0], [0], [0, 0, 1, 0], [], []>} : vector<34x16xf32>, vector<34x16xf32>, vector<34x34xf32> -> vector<34x34xf32>
    %cst_142 = arith.constant 2.500000e-01 : f32
    %338 = vector.broadcast %cst_142 : f32 to vector<34x34xf32>
    %339 = arith.mulf %337, %338 : vector<34x34xf32>
    %340 = arith.addf %339, %8 : vector<34x34xf32>
    %cst_143 = arith.constant dense<0xFF800000> : vector<34xf32>
    %341 = vector.multi_reduction <maximumf>, %340, %cst_143 [1] : vector<34x34xf32> to vector<34xf32>
    %342 = vector.shape_cast %341 : vector<34xf32> to vector<34x1xf32>
    %343 = vector.broadcast %342 : vector<34x1xf32> to vector<34x34xf32>
    %344 = arith.subf %340, %343 : vector<34x34xf32>
    %345 = math.exp %344 : vector<34x34xf32>
    %cst_144 = arith.constant dense<0.000000e+00> : vector<34xf32>
    %346 = vector.multi_reduction <add>, %345, %cst_144 [1] : vector<34x34xf32> to vector<34xf32>
    %347 = vector.shape_cast %346 : vector<34xf32> to vector<34x1xf32>
    %348 = tpu.reciprocal %347 {approx = true} : vector<34x1xf32> -> vector<34x1xf32>
    %349 = vector.broadcast %348 : vector<34x1xf32> to vector<34x34xf32>
    %350 = arith.mulf %345, %349 : vector<34x34xf32>
    %cst_145 = arith.constant dense<0.000000e+00> : vector<34x16xf32>
    %351 = tpu.matmul %350, %336, %cst_145 {dimension_numbers = #tpu.dot_dimension_numbers<[1], [0], [0], [1], [0, 0, 1, 1], [], []>} : vector<34x34xf32>, vector<34x16xf32>, vector<34x16xf32> -> vector<34x16xf32>
    %352 = vector.extract_strided_slice %271 {offsets = [48, 0], sizes = [16, 64], strides = [1, 1]} : vector<64x64xf32> to vector<16x64xf32>
    %cst_146 = arith.constant dense<0.000000e+00> : vector<34x64xf32>
    %353 = tpu.matmul %351, %352, %cst_146 {dimension_numbers = #tpu.dot_dimension_numbers<[1], [0], [0], [1], [0, 0, 1, 1], [], []>} : vector<34x16xf32>, vector<16x64xf32>, vector<34x64xf32> -> vector<34x64xf32>
    %354 = arith.addf %333, %353 : vector<34x64xf32>
    %355 = arith.addf %230, %354 : vector<34x64xf32>
    %356 = vector.broadcast %235 : vector<1x64xf32> to vector<34x64xf32>
    %357 = arith.addf %355, %356 : vector<34x64xf32>
    %cst_147 = arith.constant dense<0.000000e+00> : vector<34xf32>
    %358 = vector.multi_reduction <add>, %357, %cst_147 [1] : vector<34x64xf32> to vector<34xf32>
    %359 = vector.shape_cast %358 : vector<34xf32> to vector<34x1xf32>
    %360 = arith.mulf %357, %357 : vector<34x64xf32>
    %cst_148 = arith.constant dense<0.000000e+00> : vector<34xf32>
    %361 = vector.multi_reduction <add>, %360, %cst_148 [1] : vector<34x64xf32> to vector<34xf32>
    %362 = vector.shape_cast %361 : vector<34xf32> to vector<34x1xf32>
    %cst_149 = arith.constant 1.562500e-02 : f32
    %363 = vector.broadcast %cst_149 : f32 to vector<34x1xf32>
    %364 = arith.mulf %359, %363 : vector<34x1xf32>
    %cst_150 = arith.constant 1.562500e-02 : f32
    %365 = vector.broadcast %cst_150 : f32 to vector<34x1xf32>
    %366 = arith.mulf %362, %365 : vector<34x1xf32>
    %367 = arith.mulf %364, %364 : vector<34x1xf32>
    %368 = arith.subf %366, %367 : vector<34x1xf32>
    %cst_151 = arith.constant 0.000000e+00 : f32
    %369 = vector.broadcast %cst_151 : f32 to vector<34x1xf32>
    %370 = arith.maximumf %368, %369 : vector<34x1xf32>
    %371 = vector.broadcast %364 : vector<34x1xf32> to vector<34x64xf32>
    %372 = arith.subf %357, %371 : vector<34x64xf32>
    %cst_152 = arith.constant 9.99999996E-13 : f32
    %373 = vector.broadcast %cst_152 : f32 to vector<34x1xf32>
    %374 = arith.addf %370, %373 : vector<34x1xf32>
    %375 = math.rsqrt %374 : vector<34x1xf32>
    %376 = vector.broadcast %375 : vector<34x1xf32> to vector<34x64xf32>
    %377 = arith.mulf %372, %376 : vector<34x64xf32>
    %378 = vector.broadcast %236 : vector<1x64xf32> to vector<34x64xf32>
    %379 = arith.mulf %377, %378 : vector<34x64xf32>
    %380 = vector.broadcast %237 : vector<1x64xf32> to vector<34x64xf32>
    %381 = arith.addf %379, %380 : vector<34x64xf32>
    %c1_153 = arith.constant 1 : index
    %c0_154 = arith.constant 0 : index
    %c0_155 = arith.constant 0 : index
    %382 = vector.load %arg20[%c1_153, %c0_154, %c0_155] : memref<2x64x128xf32, #tpu.memory_space<vmem>>, vector<1x64x128xf32>
    %383 = vector.shape_cast %382 : vector<1x64x128xf32> to vector<64x128xf32>
    %cst_156 = arith.constant dense<0.000000e+00> : vector<34x128xf32>
    %384 = tpu.matmul %381, %383, %cst_156 {dimension_numbers = #tpu.dot_dimension_numbers<[1], [0], [0], [1], [0, 0, 1, 1], [], []>} : vector<34x64xf32>, vector<64x128xf32>, vector<34x128xf32> -> vector<34x128xf32>
    %c1_157 = arith.constant 1 : index
    %c0_158 = arith.constant 0 : index
    %c0_159 = arith.constant 0 : index
    %385 = vector.load %arg21[%c1_157, %c0_158, %c0_159] : memref<2x1x128xf32, #tpu.memory_space<vmem>>, vector<1x1x128xf32>
    %386 = vector.shape_cast %385 : vector<1x1x128xf32> to vector<1x128xf32>
    %387 = vector.broadcast %386 : vector<1x128xf32> to vector<34x128xf32>
    %388 = arith.addf %384, %387 : vector<34x128xf32>
    %cst_160 = arith.constant 5.000000e-01 : f32
    %389 = vector.broadcast %cst_160 : f32 to vector<34x128xf32>
    %390 = arith.mulf %389, %388 : vector<34x128xf32>
    %cst_161 = arith.constant 0.707106769 : f32
    %391 = vector.broadcast %cst_161 : f32 to vector<34x128xf32>
    %392 = arith.mulf %388, %391 : vector<34x128xf32>
    %393 = math.erf %392 : vector<34x128xf32>
    %cst_162 = arith.constant 1.000000e+00 : f32
    %394 = vector.broadcast %cst_162 : f32 to vector<34x128xf32>
    %395 = arith.addf %394, %393 : vector<34x128xf32>
    %396 = arith.mulf %390, %395 : vector<34x128xf32>
    %c1_163 = arith.constant 1 : index
    %c0_164 = arith.constant 0 : index
    %c0_165 = arith.constant 0 : index
    %397 = vector.load %arg22[%c1_163, %c0_164, %c0_165] : memref<2x128x64xf32, #tpu.memory_space<vmem>>, vector<1x128x64xf32>
    %398 = vector.shape_cast %397 : vector<1x128x64xf32> to vector<128x64xf32>
    %cst_166 = arith.constant dense<0.000000e+00> : vector<34x64xf32>
    %399 = tpu.matmul %396, %398, %cst_166 {dimension_numbers = #tpu.dot_dimension_numbers<[1], [0], [0], [1], [0, 0, 1, 1], [], []>} : vector<34x128xf32>, vector<128x64xf32>, vector<34x64xf32> -> vector<34x64xf32>
    %400 = vector.broadcast %238 : vector<1x64xf32> to vector<34x64xf32>
    %401 = arith.addf %399, %400 : vector<34x64xf32>
    %402 = arith.addf %357, %401 : vector<34x64xf32>
    %403 = vector.extract_strided_slice %227 {offsets = [0, 64], sizes = [34, 64], strides = [1, 1]} : vector<34x128xf32> to vector<34x64xf32>
    %404 = arith.addf %402, %403 : vector<34x64xf32>
    %405 = vector.extract_strided_slice %10 {offsets = [0, 0], sizes = [1, 64], strides = [1, 1]} : vector<2x64xf32> to vector<1x64xf32>
    %406 = vector.extract_strided_slice %10 {offsets = [1, 0], sizes = [1, 64], strides = [1, 1]} : vector<2x64xf32> to vector<1x64xf32>
    %cst_167 = arith.constant dense<0.000000e+00> : vector<34xf32>
    %407 = vector.multi_reduction <add>, %404, %cst_167 [1] : vector<34x64xf32> to vector<34xf32>
    %408 = vector.shape_cast %407 : vector<34xf32> to vector<34x1xf32>
    %409 = arith.mulf %404, %404 : vector<34x64xf32>
    %cst_168 = arith.constant dense<0.000000e+00> : vector<34xf32>
    %410 = vector.multi_reduction <add>, %409, %cst_168 [1] : vector<34x64xf32> to vector<34xf32>
    %411 = vector.shape_cast %410 : vector<34xf32> to vector<34x1xf32>
    %cst_169 = arith.constant 1.562500e-02 : f32
    %412 = vector.broadcast %cst_169 : f32 to vector<34x1xf32>
    %413 = arith.mulf %408, %412 : vector<34x1xf32>
    %cst_170 = arith.constant 1.562500e-02 : f32
    %414 = vector.broadcast %cst_170 : f32 to vector<34x1xf32>
    %415 = arith.mulf %411, %414 : vector<34x1xf32>
    %416 = arith.mulf %413, %413 : vector<34x1xf32>
    %417 = arith.subf %415, %416 : vector<34x1xf32>
    %cst_171 = arith.constant 0.000000e+00 : f32
    %418 = vector.broadcast %cst_171 : f32 to vector<34x1xf32>
    %419 = arith.maximumf %417, %418 : vector<34x1xf32>
    %420 = vector.broadcast %413 : vector<34x1xf32> to vector<34x64xf32>
    %421 = arith.subf %404, %420 : vector<34x64xf32>
    %cst_172 = arith.constant 9.99999996E-13 : f32
    %422 = vector.broadcast %cst_172 : f32 to vector<34x1xf32>
    %423 = arith.addf %419, %422 : vector<34x1xf32>
    %424 = math.rsqrt %423 : vector<34x1xf32>
    %425 = vector.broadcast %424 : vector<34x1xf32> to vector<34x64xf32>
    %426 = arith.mulf %421, %425 : vector<34x64xf32>
    %427 = vector.broadcast %405 : vector<1x64xf32> to vector<34x64xf32>
    %428 = arith.mulf %426, %427 : vector<34x64xf32>
    %429 = vector.broadcast %406 : vector<1x64xf32> to vector<34x64xf32>
    %430 = arith.addf %428, %429 : vector<34x64xf32>
    %c0_173 = arith.constant 0 : index
    %c0_174 = arith.constant 0 : index
    %431 = vector.load %arg25[%c0_173, %c0_174] : memref<64x48xf32, #tpu.memory_space<vmem>>, vector<64x48xf32>
    %cst_175 = arith.constant dense<0.000000e+00> : vector<34x48xf32>
    %432 = tpu.matmul %430, %431, %cst_175 {dimension_numbers = #tpu.dot_dimension_numbers<[1], [0], [0], [1], [0, 0, 1, 1], [], []>} : vector<34x64xf32>, vector<64x48xf32>, vector<34x48xf32> -> vector<34x48xf32>
    %c0_176 = arith.constant 0 : index
    %c0_177 = arith.constant 0 : index
    %433 = vector.load %arg26[%c0_176, %c0_177] : memref<1x48xf32, #tpu.memory_space<vmem>>, vector<1x48xf32>
    %434 = vector.broadcast %433 : vector<1x48xf32> to vector<34x48xf32>
    %435 = arith.addf %432, %434 : vector<34x48xf32>
    %c0_178 = arith.constant 0 : index
    %c0_179 = arith.constant 0 : index
    %436 = vector.load %arg27[%c0_178, %c0_179] : memref<34x48xf32, #tpu.memory_space<vmem>>, vector<34x48xf32>
    tpu.vector_store %arg27[%c0_178, %c0_179], %435 {strides = array<i32>} : memref<34x48xf32, #tpu.memory_space<vmem>>, vector<34x48xf32>,
    return
  }
  func.func @transform_0(%arg0: i32) -> (i32, i32) {
    %c0_i32 = arith.constant 0 : i32
    %c0_i32_0 = arith.constant 0 : i32
    %c0_i32_1 = arith.constant 0 : i32
    return %c0_i32, %c0_i32_0 : i32, i32
  }
  func.func @transform_1(%arg0: i32) -> (i32, i32) {
    %c0_i32 = arith.constant 0 : i32
    %c0_i32_0 = arith.constant 0 : i32
    %c0_i32_1 = arith.constant 0 : i32
    return %c0_i32, %c0_i32_0 : i32, i32
  }
  func.func @transform_2(%arg0: i32) -> (i32, i32) {
    %c0_i32 = arith.constant 0 : i32
    %c0_i32_0 = arith.constant 0 : i32
    %c0_i32_1 = arith.constant 0 : i32
    return %c0_i32, %c0_i32_0 : i32, i32
  }
  func.func @transform_3(%arg0: i32) -> (i32, i32) {
    %c0_i32 = arith.constant 0 : i32
    %c0_i32_0 = arith.constant 0 : i32
    %c0_i32_1 = arith.constant 0 : i32
    return %c0_i32, %c0_i32_0 : i32, i32
  }
  func.func @transform_4(%arg0: i32) -> (i32, i32) {
    %c0_i32 = arith.constant 0 : i32
    %c0_i32_0 = arith.constant 0 : i32
    %c0_i32_1 = arith.constant 0 : i32
    return %c0_i32, %c0_i32_0 : i32, i32
  }
  func.func @transform_5(%arg0: i32) -> (i32, i32) {
    %c0_i32 = arith.constant 0 : i32
    %c0_i32_0 = arith.constant 0 : i32
    %c0_i32_1 = arith.constant 0 : i32
    return %c0_i32, %c0_i32_0 : i32, i32
  }
  func.func @transform_6(%arg0: i32) -> (i32, i32) {
    %c0_i32 = arith.constant 0 : i32
    %c0_i32_0 = arith.constant 0 : i32
    %c0_i32_1 = arith.constant 0 : i32
    return %c0_i32, %c0_i32_0 : i32, i32
  }
  func.func @transform_7(%arg0: i32) -> (i32, i32) {
    %c0_i32 = arith.constant 0 : i32
    %c0_i32_0 = arith.constant 0 : i32
    %c0_i32_1 = arith.constant 0 : i32
    return %c0_i32, %c0_i32_0 : i32, i32
  }
  func.func @transform_8(%arg0: i32) -> (i32, i32) {
    %c0_i32 = arith.constant 0 : i32
    %c0_i32_0 = arith.constant 0 : i32
    %c0_i32_1 = arith.constant 0 : i32
    return %c0_i32, %c0_i32_0 : i32, i32
  }
  func.func @transform_9(%arg0: i32) -> (i32, i32) {
    %c0_i32 = arith.constant 0 : i32
    %c0_i32_0 = arith.constant 0 : i32
    %c0_i32_1 = arith.constant 0 : i32
    return %c0_i32, %c0_i32_0 : i32, i32
  }
  func.func @transform_11(%arg0: i32) -> (i32, i32) {
    %c0_i32 = arith.constant 0 : i32
    %c0_i32_0 = arith.constant 0 : i32
    %c0_i32_1 = arith.constant 0 : i32
    return %c0_i32, %c0_i32_0 : i32, i32
  }
  func.func @transform_13(%arg0: i32) -> (i32, i32) {
    %c0_i32 = arith.constant 0 : i32
    %c0_i32_0 = arith.constant 0 : i32
    %c0_i32_1 = arith.constant 0 : i32
    return %c0_i32, %c0_i32_0 : i32, i32
  }
  func.func @transform_15(%arg0: i32) -> (i32, i32) {
    %c0_i32 = arith.constant 0 : i32
    %c0_i32_0 = arith.constant 0 : i32
    %c0_i32_1 = arith.constant 0 : i32
    return %c0_i32, %c0_i32_0 : i32, i32
  }
  func.func @transform_16(%arg0: i32) -> (i32, i32, i32) {
    %c0_i32 = arith.constant 0 : i32
    %c0_i32_0 = arith.constant 0 : i32
    %c0_i32_1 = arith.constant 0 : i32
    %c0_i32_2 = arith.constant 0 : i32
    return %c0_i32, %c0_i32_0, %c0_i32_1 : i32, i32, i32
  }
  func.func @transform_17(%arg0: i32) -> (i32, i32, i32) {
    %c0_i32 = arith.constant 0 : i32
    %c0_i32_0 = arith.constant 0 : i32
    %c0_i32_1 = arith.constant 0 : i32
    %c0_i32_2 = arith.constant 0 : i32
    return %c0_i32, %c0_i32_0, %c0_i32_1 : i32, i32, i32
  }
  func.func @transform_18(%arg0: i32) -> (i32, i32, i32) {
    %c0_i32 = arith.constant 0 : i32
    %c0_i32_0 = arith.constant 0 : i32
    %c0_i32_1 = arith.constant 0 : i32
    %c0_i32_2 = arith.constant 0 : i32
    return %c0_i32, %c0_i32_0, %c0_i32_1 : i32, i32, i32
  }
  func.func @transform_19(%arg0: i32) -> (i32, i32, i32) {
    %c0_i32 = arith.constant 0 : i32
    %c0_i32_0 = arith.constant 0 : i32
    %c0_i32_1 = arith.constant 0 : i32
    %c0_i32_2 = arith.constant 0 : i32
    return %c0_i32, %c0_i32_0, %c0_i32_1 : i32, i32, i32
  }
  func.func @transform_20(%arg0: i32) -> (i32, i32, i32) {
    %c0_i32 = arith.constant 0 : i32
    %c0_i32_0 = arith.constant 0 : i32
    %c0_i32_1 = arith.constant 0 : i32
    %c0_i32_2 = arith.constant 0 : i32
    return %c0_i32, %c0_i32_0, %c0_i32_1 : i32, i32, i32
  }
  func.func @transform_21(%arg0: i32) -> (i32, i32, i32) {
    %c0_i32 = arith.constant 0 : i32
    %c0_i32_0 = arith.constant 0 : i32
    %c0_i32_1 = arith.constant 0 : i32
    %c0_i32_2 = arith.constant 0 : i32
    return %c0_i32, %c0_i32_0, %c0_i32_1 : i32, i32, i32
  }
  func.func @transform_22(%arg0: i32) -> (i32, i32, i32) {
    %c0_i32 = arith.constant 0 : i32
    %c0_i32_0 = arith.constant 0 : i32
    %c0_i32_1 = arith.constant 0 : i32
    %c0_i32_2 = arith.constant 0 : i32
    return %c0_i32, %c0_i32_0, %c0_i32_1 : i32, i32, i32
  }
  func.func @transform_23(%arg0: i32) -> (i32, i32) {
    %c0_i32 = arith.constant 0 : i32
    %c0_i32_0 = arith.constant 0 : i32
    %c0_i32_1 = arith.constant 0 : i32
    return %c0_i32, %c0_i32_0 : i32, i32
  }
  func.func @transform_24(%arg0: i32) -> (i32, i32) {
    %c0_i32 = arith.constant 0 : i32
    %c0_i32_0 = arith.constant 0 : i32
    %c0_i32_1 = arith.constant 0 : i32
    return %c0_i32, %c0_i32_0 : i32, i32
  }
  func.func @transform_25(%arg0: i32) -> (i32, i32) {
    %c0_i32 = arith.constant 0 : i32
    %c0_i32_0 = arith.constant 0 : i32
    %c0_i32_1 = arith.constant 0 : i32
    return %c0_i32, %c0_i32_0 : i32, i32
  }
  func.func @transform_26(%arg0: i32) -> (i32, i32) {
    %c0_i32 = arith.constant 0 : i32
    %c0_i32_0 = arith.constant 0 : i32
    %c0_i32_1 = arith.constant 0 : i32
    return %c0_i32, %c0_i32_0 : i32, i32
  }
}

</mosaic_0001>

<bundles_post_ra>
// kernel: tpu_custom_call.1
= control target key start
LH: loop header
LB: loop body
LE: loop exit
PB: predicated region body
PF: predicated region fallthrough
CT: control target
= control target key end

     0   :  { %s12448_s0 = inlined_call_operand.hbm [shape: f32[18,32], index: 0, kind: input, shape index: {}]   ;;  %s12449_s1 = inlined_call_operand.hbm [shape: f32[2,256], index: 1, kind: input, shape index: {}]   ;;  %s12450_s2 = inlined_call_operand.vmem [shape: f32[34,18], index: 2, kind: input, shape index: {}]   ;;  %s12451_s3 = inlined_call_operand.vmem [shape: f32[34,1], index: 3, kind: input, shape index: {}]   ;;  %s12452_s4 = inlined_call_operand.hbm [shape: f32[34,64], index: 4, kind: input, shape index: {}]   ;;  %s12453_s5 = inlined_call_operand.vmem [shape: f32[34,2], index: 5, kind: input, shape index: {}]   ;;  %s12454_s6 = inlined_call_operand.hbm [shape: f32[34,34], index: 6, kind: input, shape index: {}]   ;;  %s12455_s7 = inlined_call_operand.hbm [shape: f32[1,64], index: 7, kind: input, shape index: {}]   ;;  %s12456_s8 = inlined_call_operand.hbm [shape: f32[32,64], index: 8, kind: input, shape index: {}]   ;;  %s12457_s9 = inlined_call_operand.hbm [shape: f32[1,64], index: 9, kind: input, shape index: {}]   ;;  %s12458_s10 = inlined_call_operand.hbm [shape: bf16[256,1024], index: 10, kind: input, shape index: {}]   ;;  %s12459_s11 = inlined_call_operand.hbm [shape: f32[1,1024], index: 11, kind: input, shape index: {}]   ;;  %s12460_s12 = inlined_call_operand.hbm [shape: bf16[1024,1024], index: 12, kind: input, shape index: {}]   ;;  %s12461_s13 = inlined_call_operand.hbm [shape: f32[1,1024], index: 13, kind: input, shape index: {}]   ;;  %s12462_s14 = inlined_call_operand.hbm [shape: bf16[1024,128], index: 14, kind: input, shape index: {}]   ;;  %s12463_s15 = inlined_call_operand.hbm [shape: f32[1,128], index: 15, kind: input, shape index: {}]   ;;  %s12464_s16 = inlined_call_operand.hbm [shape: f32[2,64,192], index: 16, kind: input, shape index: {}]   ;;  %s12465_s17 = inlined_call_operand.hbm [shape: f32[2,1,192], index: 17, kind: input, shape index: {}]   ;;  %s12466_s18 = inlined_call_operand.hbm [shape: f32[2,64,64], index: 18, kind: input, shape index: {}]   ;;  %s12467_s19 = inlined_call_operand.hbm [shape: f32[2,64,128], index: 19, kind: input, shape index: {}]   ;;  %s12468_s20 = inlined_call_operand.hbm [shape: f32[2,1,128], index: 20, kind: input, shape index: {}]   ;;  %s12469_s21 = inlined_call_operand.vmem [shape: f32[2,128,64], index: 21, kind: input, shape index: {}]   ;;  %s12470_s22 = inlined_call_operand.vmem [shape: f32[2,6,64], index: 22, kind: input, shape index: {}]   ;;  %s12471_s23 = inlined_call_operand.hbm [shape: f32[2,64], index: 23, kind: input, shape index: {}]   ;;  %s12472_s24 = inlined_call_operand.vmem [shape: f32[64,48], index: 24, kind: input, shape index: {}]   ;;  %s12473_s25 = inlined_call_operand.hbm [shape: f32[1,48], index: 25, kind: input, shape index: {}]   ;;  %s12474_s26 = inlined_call_operand.hbm [shape: f32[34,48], index: 26, kind: output, shape index: {}]  }
   0x1   :  { %12487 = sst [smem:[#allocation55_spill]] %s12448_s0 }
   0x2   :  { %12488 = sst [smem:[#allocation56_spill]] %s12449_s1 }
   0x3   :  { %12489 = sst [smem:[#allocation57_spill]] %s12450_s2 }
   0x4   :  { %12490 = sst [smem:[#allocation58_spill]] %s12451_s3 }
   0x5   :  { %12491 = sst [smem:[#allocation59_spill]] %s12452_s4 }
   0x6   :  { %12492 = sst [smem:[#allocation60_spill]] %s12453_s5 }
   0x7   :  { %12493 = sst [smem:[#allocation61_spill]] %s12454_s6 }
   0x8   :  { %12494 = sst [smem:[#allocation62_spill]] %s12455_s7 }
   0x9   :  { %12495 = sst [smem:[#allocation63_spill]] %s12456_s8 }
   0xa   :  { %12496 = sst [smem:[#allocation64_spill]] %s12457_s9 }
   0xb   :  { %12497 = sst [smem:[#allocation65_spill]] %s12458_s10 }
   0xc   :  { %12498 = sst [smem:[#allocation66_spill]] %s12472_s24 }
   0xd   :  { %12499 = sst [smem:[#allocation67_spill]] %s12474_s26 }
   0xe   :  { %31 = vsyncpa [#allocation7], 0 }
   0xf   :  { %32 = vsyncpa [#allocation10], 0 }
  0x10   :  { %33 = vsyncpa [#allocation13], 0 }
  0x11   :  { %34 = vsyncpa [#allocation16], 0 }
  0x12   :  { %35 = vsyncpa [#allocation19], 0 }
  0x13   :  { %36 = vsyncpa [#allocation22], 0 }
  0x14   :  { %37 = vsyncpa [#allocation25], 0 }
  0x15   :  { %38 = vsyncpa [#allocation28], 0 }
  0x16   :  { %39 = vsyncpa [#allocation31], 0 }
  0x17   :  { %40 = vsyncpa [#allocation8], 0  ;;  %s10204_s27 = smov [#allocation9]   ;;  %s12500_s8 = sld [smem:[#allocation56_spill]] }
  0x18   :  { %s59_s3 = sshll.u32 %s10204_s27, 4  ;;  %s60_s3 = int_to_ptr.vmem [resolvable:$true] %s59_s3 }
  0x1d   :  { %s9760_s4 = scalar_lea.hbm %s12500_s8, 64 }
  0x1e   :  { %p9761_p0 = scmp.ne.s32.totalorder %s12500_s8, %s9760_s4  ;;  %p9764_p1 = scmp.lt.u32.totalorder %s9760_s4, %s12500_s8 }
  0x20   :  { %p9766_p2 = pnand %p9764_p1, %p9761_p0 }
  0x22   :  { %9769 = shalt.err (!%p9766_p2)
}
  0x23   :  { %s9770_s2 = scalar_lea.vmem %s60_s3, 64  ;;  %p9775_p4 = scmp.lt.s32.totalorder %s60_s3, %s60_s3 }
  0x24   :  { %p9771_p3 = scmp.ne.s32.totalorder %s60_s3, %s9770_s2  ;;  %p9776_p5 = scmp.lt.s32.totalorder %s9770_s2, %s9770_s2 }
  0x26   :  { %p9777_p6 = por %p9776_p5, %p9775_p4 }
  0x28   :  { %p9778_p7 = pnand %p9777_p6, %p9771_p3 }
  0x2a   :  { %9781 = shalt.err (!%p9778_p7)
}
  0x2b   :  { %62 = dma.hbm_to_vmem [thread:$0]  %s12500_s8, 64, %s60_s3, [#allocation10]  }
  0x2c   :  { %s10205_s6 = smov [#allocation12]   ;;  %s10206_s27 = smov [#allocation15]  }
  0x2d   :  { %s86_s1 = sshll.u32 %s10205_s6, 4  ;;  %s108_s7 = sshll.u32 %s10206_s27, 4  ;;  %s87_s1 = int_to_ptr.vmem [resolvable:$true] %s86_s1  ;;  %s109_s7 = int_to_ptr.vmem [resolvable:$true] %s108_s7 }
  0x2e   :  { %s12501_s29 = sld [smem:[#allocation61_spill]] }
  0x34   :  { %s9782_s0 = scalar_lea.hbm %s12501_s29, 640 }
  0x35   :  { %p9783_p8 = scmp.ne.s32.totalorder %s12501_s29, %s9782_s0  ;;  %p9786_p9 = scmp.lt.u32.totalorder %s9782_s0, %s12501_s29 }
  0x37   :  { %p9788_p10 = pnand %p9786_p9, %p9783_p8 }
  0x39   :  { %9791 = shalt.err (!%p9788_p10)
}
  0x3a   :  { %s9792_s3 = scalar_lea.vmem %s87_s1, 640  ;;  %p9797_p12 = scmp.lt.s32.totalorder %s87_s1, %s87_s1 }
  0x3b   :  { %p9793_p11 = scmp.ne.s32.totalorder %s87_s1, %s9792_s3  ;;  %p9798_p13 = scmp.lt.s32.totalorder %s9792_s3, %s9792_s3 }
  0x3d   :  { %p9799_p0 = por %p9798_p13, %p9797_p12 }
  0x3f   :  { %p9800_p1 = pnand %p9799_p0, %p9793_p11 }
  0x41   :  { %9803 = shalt.err (!%p9800_p1)
}
  0x42   :  { %s10207_s8 = smov 128   ;;  %s10208_s5 = smov 8  }
  0x43   :  { %92 = dma.hbm_to_vmem [thread:$0]  %s12501_s29, 640, %s87_s1, [#allocation13], %s10207_s8, %s10207_s8, %s10208_s5  }
  0x44   :  { %s12502_s28 = sld [smem:[#allocation63_spill]] }
  0x4a   :  { %s9804_s4 = scalar_lea.hbm %s12502_s28, 512 }
  0x4b   :  { %p9805_p2 = scmp.ne.s32.totalorder %s12502_s28, %s9804_s4  ;;  %p9808_p3 = scmp.lt.u32.totalorder %s9804_s4, %s12502_s28 }
  0x4d   :  { %p9810_p4 = pnand %p9808_p3, %p9805_p2 }
  0x4f   :  { %9813 = shalt.err (!%p9810_p4)
}
  0x50   :  { %s9814_s3 = scalar_lea.vmem %s109_s7, 512  ;;  %p9819_p6 = scmp.lt.s32.totalorder %s109_s7, %s109_s7 }
  0x51   :  { %p9815_p5 = scmp.ne.s32.totalorder %s109_s7, %s9814_s3  ;;  %p9820_p7 = scmp.lt.s32.totalorder %s9814_s3, %s9814_s3 }
  0x53   :  { %p9821_p8 = por %p9820_p7, %p9819_p6 }
  0x55   :  { %p9822_p9 = pnand %p9821_p8, %p9815_p5 }
  0x57   :  { %9825 = shalt.err (!%p9822_p9)
}
  0x58   :  { %114 = dma.hbm_to_vmem [thread:$0]  %s12502_s28, 512, %s109_s7, [#allocation16], %s10207_s8, %s10207_s8, %s10208_s5  }
  0x59   :  { %s10209_s10 = smov [#allocation18]   ;;  %s10210_s26 = smov [#allocation21]  }
  0x5a   :  { %s131_s6 = sshll.u32 %s10209_s10, 4  ;;  %s151_s27 = sshll.u32 %s10210_s26, 4  ;;  %s132_s6 = int_to_ptr.vmem [resolvable:$true] %s131_s6  ;;  %s152_s27 = int_to_ptr.vmem [resolvable:$true] %s151_s27 }
  0x5b   :  { %s9826_s9 = scalar_lea.hbm %s12459_s11, 128 }
  0x5c   :  { %p9827_p10 = scmp.ne.s32.totalorder %s12459_s11, %s9826_s9  ;;  %p9830_p11 = scmp.lt.u32.totalorder %s9826_s9, %s12459_s11 }
  0x5e   :  { %p9832_p12 = pnand %p9830_p11, %p9827_p10 }
  0x60   :  { %9835 = shalt.err (!%p9832_p12)
}
  0x61   :  { %s9836_s7 = scalar_lea.vmem %s132_s6, 128  ;;  %p9841_p0 = scmp.lt.s32.totalorder %s132_s6, %s132_s6 }
  0x62   :  { %p9837_p13 = scmp.ne.s32.totalorder %s132_s6, %s9836_s7  ;;  %p9842_p1 = scmp.lt.s32.totalorder %s9836_s7, %s9836_s7 }
  0x64   :  { %p9843_p2 = por %p9842_p1, %p9841_p0 }
  0x66   :  { %p9844_p3 = pnand %p9843_p2, %p9837_p13 }
  0x68   :  { %9847 = shalt.err (!%p9844_p3)
}
  0x69   :  { %134 = dma.hbm_to_vmem [thread:$0]  %s12459_s11, 128, %s132_s6, [#allocation19]  }
  0x6a   :  { %s9848_s26 = scalar_lea.hbm %s12463_s15, 16 }
  0x6b   :  { %p9849_p4 = scmp.ne.s32.totalorder %s12463_s15, %s9848_s26  ;;  %p9852_p5 = scmp.lt.u32.totalorder %s9848_s26, %s12463_s15 }
  0x6d   :  { %p9854_p6 = pnand %p9852_p5, %p9849_p4 }
  0x6f   :  { %9857 = shalt.err (!%p9854_p6)
}
  0x70   :  { %s9858_s30 = scalar_lea.vmem %s152_s27, 16  ;;  %s9862_s2 = scalar_lea.vmem %s152_s27, 32 }
  0x71   :  { %p9859_p7 = scmp.ne.s32.totalorder %s152_s27, %s9858_s30  ;;  %p9863_p8 = scmp.lt.s32.totalorder %s152_s27, %s152_s27 }
  0x72   :  { %p9864_p9 = scmp.lt.s32.totalorder %s9862_s2, %s9858_s30 }
  0x74   :  { %p9865_p10 = por %p9864_p9, %p9863_p8 }
  0x76   :  { %p9866_p11 = pnand %p9865_p10, %p9859_p7 }
  0x78   :  { %9869 = shalt.err (!%p9866_p11)
}
  0x79   :  { %154 = dma.hbm_to_vmem [thread:$0]  %s12463_s15, 16, %s152_s27, [#allocation22]  }
  0x7a   :  { %s10211_s3 = smov [#allocation24]   ;;  %s9870_s29 = scalar_lea.hbm %s12465_s17, 64 }
  0x7b   :  { %s172_s7 = sshll.u32 %s10211_s3, 4  ;;  %p9871_p12 = scmp.ne.s32.totalorder %s12465_s17, %s9870_s29  ;;  %s173_s7 = int_to_ptr.vmem [resolvable:$true] %s172_s7 }
  0x7c   :  { %p9874_p13 = scmp.lt.u32.totalorder %s9870_s29, %s12465_s17 }
  0x7e   :  { %p9876_p0 = pnand %p9874_p13, %p9871_p12 }
  0x80   :  { %9879 = shalt.err (!%p9876_p0)
}
  0x81   :  { %s9880_s0 = scalar_lea.vmem %s173_s7, 64  ;;  %p9885_p2 = scmp.lt.s32.totalorder %s173_s7, %s173_s7 }
  0x82   :  { %p9881_p1 = scmp.ne.s32.totalorder %s173_s7, %s9880_s0  ;;  %p9886_p3 = scmp.lt.s32.totalorder %s9880_s0, %s9880_s0 }
  0x84   :  { %p9887_p4 = por %p9886_p3, %p9885_p2 }
  0x86   :  { %p9888_p5 = pnand %p9887_p4, %p9881_p1 }
  0x88   :  { %9891 = shalt.err (!%p9888_p5)
}
  0x89   :  { %s10212_s15 = smov 32   ;;  %s10213_s27 = smov 2  }
  0x8a   :  { %178 = dma.hbm_to_vmem [thread:$0]  %s12465_s17, 64, %s173_s7, [#allocation25], %s10212_s15, %s10212_s15, %s10213_s27  }
  0x8b   :  { %s10214_s2 = smov [#allocation27]   ;;  %s10215_s6 = smov [#allocation30]  }
  0x8c   :  { %s196_s11 = sshll.u32 %s10214_s2, 4  ;;  %s225_s3 = sshll.u32 %s10215_s6, 4  ;;  %s197_s11 = int_to_ptr.vmem [resolvable:$true] %s196_s11  ;;  %s226_s3 = int_to_ptr.vmem [resolvable:$true] %s225_s3 }
  0x8d   :  { %s9892_s29 = scalar_lea.hbm %s12467_s19, 2048 }
  0x8e   :  { %p9893_p6 = scmp.ne.s32.totalorder %s12467_s19, %s9892_s29  ;;  %p9896_p7 = scmp.lt.u32.totalorder %s9892_s29, %s12467_s19 }
  0x90   :  { %p9898_p8 = pnand %p9896_p7, %p9893_p6 }
  0x92   :  { %9901 = shalt.err (!%p9898_p8)
}
  0x93   :  { %s9902_s17 = scalar_lea.vmem %s197_s11, 2048  ;;  %p9907_p10 = scmp.lt.s32.totalorder %s197_s11, %s197_s11 }
  0x94   :  { %p9903_p9 = scmp.ne.s32.totalorder %s197_s11, %s9902_s17  ;;  %p9908_p11 = scmp.lt.s32.totalorder %s9902_s17, %s9902_s17 }
  0x96   :  { %p9909_p12 = por %p9908_p11, %p9907_p10 }
  0x98   :  { %p9910_p13 = pnand %p9909_p12, %p9903_p9 }
  0x9a   :  { %9913 = shalt.err (!%p9910_p13)
}
  0x9b   :  { %202 = dma.hbm_to_vmem [thread:$0]  %s12467_s19, 2048, %s197_s11, [#allocation28], %s10207_s8, %s10207_s8, %s10208_s5  }
  0x9c   :  { %s9914_s2 = scalar_lea.hbm %s12471_s23, 32 }
  0x9d   :  { %p9915_p0 = scmp.ne.s32.totalorder %s12471_s23, %s9914_s2  ;;  %p9918_p1 = scmp.lt.u32.totalorder %s9914_s2, %s12471_s23 }
  0x9f   :  { %p9920_p2 = pnand %p9918_p1, %p9915_p0 }
  0xa1   :  { %9923 = shalt.err (!%p9920_p2)
}
  0xa2   :  { %s9924_s10 = scalar_lea.vmem %s226_s3, 32  ;;  %p9929_p4 = scmp.lt.s32.totalorder %s226_s3, %s226_s3 }
  0xa3   :  { %p9925_p3 = scmp.ne.s32.totalorder %s226_s3, %s9924_s10  ;;  %p9930_p5 = scmp.lt.s32.totalorder %s9924_s10, %s9924_s10 }
  0xa5   :  { %p9931_p6 = por %p9930_p5, %p9929_p4 }
  0xa7   :  { %p9932_p7 = pnand %p9931_p6, %p9925_p3 }
  0xa9   :  { %9935 = shalt.err (!%p9932_p7)
}
  0xaa   :  { %228 = dma.hbm_to_vmem [thread:$0]  %s12471_s23, 32, %s226_s3, [#allocation31]  }
  0xab   :  { %s10216_s26 = smov [#allocation6]   ;;  %s10217_s4 = smov [#allocation11]  }
  0xac   :  { %s46_s24 = sshll.u32 %s10216_s26, 4  ;;  %s72_s17 = sshll.u32 %s10217_s4, 4  ;;  %s47_s24 = int_to_ptr.vmem [resolvable:$true] %s46_s24  ;;  %s10491_s17 = int_to_ptr.vmem [resolvable:$true] %s72_s17 }
  0xad   :  { %s12503_s9 = sld [smem:[#allocation55_spill]] }
  0xb3   :  { %s9936_s30 = scalar_lea.hbm %s12503_s9, 384 }
  0xb4   :  { %p9937_p8 = scmp.ne.s32.totalorder %s12503_s9, %s9936_s30  ;;  %p9940_p9 = scmp.lt.u32.totalorder %s9936_s30, %s12503_s9 }
  0xb6   :  { %p9942_p10 = pnand %p9940_p9, %p9937_p8 }
  0xb8   :  { %9945 = shalt.err (!%p9942_p10)
}
  0xb9   :  { %s9946_s23 = scalar_lea.vmem %s47_s24, 384  ;;  %p9951_p12 = scmp.lt.s32.totalorder %s47_s24, %s47_s24 }
  0xba   :  { %p9947_p11 = scmp.ne.s32.totalorder %s47_s24, %s9946_s23  ;;  %p9952_p13 = scmp.lt.s32.totalorder %s9946_s23, %s9946_s23 }
  0xbc   :  { %p9953_p0 = por %p9952_p13, %p9951_p12 }
  0xbe   :  { %p9954_p1 = pnand %p9953_p0, %p9947_p11 }
  0xc0   :  { %9957 = shalt.err (!%p9954_p1)
}
  0xc1   :  { %52 = dma.hbm_to_vmem [thread:$0]  %s12503_s9, 384, %s47_s24, [#allocation7], %s10207_s8, %s10207_s8, %s10208_s5  }
  0xc2   :  { %s12504_s11 = sld [smem:[#allocation59_spill]] }
  0xc8   :  { %s9958_s26 = scalar_lea.hbm %s12504_s11, 640 }
  0xc9   :  { %p9959_p2 = scmp.ne.s32.totalorder %s12504_s11, %s9958_s26  ;;  %p9962_p3 = scmp.lt.u32.totalorder %s9958_s26, %s12504_s11 }
  0xcb   :  { %p9964_p4 = pnand %p9962_p3, %p9959_p2 }
  0xcd   :  { %9967 = shalt.err (!%p9964_p4)
}
  0xce   :  { %s9968_s2 = scalar_lea.vmem %s10491_s17, 640  ;;  %p9973_p6 = scmp.lt.s32.totalorder %s10491_s17, %s10491_s17 }
  0xcf   :  { %p9969_p5 = scmp.ne.s32.totalorder %s10491_s17, %s9968_s2  ;;  %p9974_p7 = scmp.lt.s32.totalorder %s9968_s2, %s9968_s2 }
  0xd1   :  { %p9975_p8 = por %p9974_p7, %p9973_p6 }
  0xd3   :  { %p9976_p9 = pnand %p9975_p8, %p9969_p5 }
  0xd5   :  { %9979 = shalt.err (!%p9976_p9)
}
  0xd6   :  { %78 = dma.hbm_to_vmem [thread:$0]  %s12504_s11, 640, %s10491_s17, [#allocation10], %s10207_s8, %s10207_s8, %s10208_s5  }
  0xd7   :  { %s10218_s6 = smov [#allocation14]   ;;  %s10219_s1 = smov [#allocation17]  }
  0xd8   :  { %s99_s28 = sshll.u32 %s10218_s6, 4  ;;  %s121_s23 = sshll.u32 %s10219_s1, 4  ;;  %s100_s28 = int_to_ptr.vmem [resolvable:$true] %s99_s28  ;;  %s122_s23 = int_to_ptr.vmem [resolvable:$true] %s121_s23 }
  0xd9   :  { %s12505_s10 = sld [smem:[#allocation62_spill]] }
  0xdf   :  { %s9980_s19 = scalar_lea.hbm %s12505_s10, 16 }
  0xe0   :  { %p9981_p10 = scmp.ne.s32.totalorder %s12505_s10, %s9980_s19  ;;  %p9984_p11 = scmp.lt.u32.totalorder %s9980_s19, %s12505_s10 }
  0xe2   :  { %p9986_p12 = pnand %p9984_p11, %p9981_p10 }
  0xe4   :  { %9989 = shalt.err (!%p9986_p12)
}
  0xe5   :  { %s9990_s17 = scalar_lea.vmem %s100_s28, 16  ;;  %s9994_s11 = scalar_lea.vmem %s100_s28, 32 }
  0xe6   :  { %p9991_p13 = scmp.ne.s32.totalorder %s100_s28, %s9990_s17  ;;  %p9995_p0 = scmp.lt.s32.totalorder %s100_s28, %s100_s28 }
  0xe7   :  { %p9996_p1 = scmp.lt.s32.totalorder %s9994_s11, %s9990_s17 }
  0xe9   :  { %p9997_p2 = por %p9996_p1, %p9995_p0 }
  0xeb   :  { %p9998_p3 = pnand %p9997_p2, %p9991_p13 }
  0xed   :  { %10001 = shalt.err (!%p9998_p3)
}
  0xee   :  { %102 = dma.hbm_to_vmem [thread:$0]  %s12505_s10, 16, %s100_s28, [#allocation13]  }
  0xef   :  { %s12506_s6 = sld [smem:[#allocation64_spill]] }
  0xf5   :  { %s10002_s1 = scalar_lea.hbm %s12506_s6, 16 }
  0xf6   :  { %p10003_p4 = scmp.ne.s32.totalorder %s12506_s6, %s10002_s1  ;;  %p10006_p5 = scmp.lt.u32.totalorder %s10002_s1, %s12506_s6 }
  0xf8   :  { %p10008_p6 = pnand %p10006_p5, %p10003_p4 }
  0xfa   :  { %10011 = shalt.err (!%p10008_p6)
}
  0xfb   :  { %s10012_s4 = scalar_lea.vmem %s122_s23, 16  ;;  %s10016_s7 = scalar_lea.vmem %s122_s23, 32 }
  0xfc   :  { %p10013_p7 = scmp.ne.s32.totalorder %s122_s23, %s10012_s4  ;;  %p10017_p8 = scmp.lt.s32.totalorder %s122_s23, %s122_s23 }
  0xfd   :  { %p10018_p9 = scmp.lt.s32.totalorder %s10016_s7, %s10012_s4 }
  0xff   :  { %p10019_p10 = por %p10018_p9, %p10017_p8 }
 0x101   :  { %p10020_p11 = pnand %p10019_p10, %p10013_p7 }
 0x103   :  { %10023 = shalt.err (!%p10020_p11)
}
 0x104   :  { %124 = dma.hbm_to_vmem [thread:$0]  %s12506_s6, 16, %s122_s23, [#allocation16]  }
 0x105   :  { %s10220_s0 = smov [#allocation20]   ;;  %s10221_s11 = smov [#allocation23]  }
 0x106   :  { %s141_s17 = sshll.u32 %s10220_s0, 4  ;;  %s160_s30 = sshll.u32 %s10221_s11, 4  ;;  %s142_s17 = int_to_ptr.vmem [resolvable:$true] %s141_s17  ;;  %s10552_s30 = int_to_ptr.vmem [resolvable:$true] %s160_s30 }
 0x107   :  { %s10024_s9 = scalar_lea.hbm %s12461_s13, 128 }
 0x108   :  { %p10025_p12 = scmp.ne.s32.totalorder %s12461_s13, %s10024_s9  ;;  %p10028_p13 = scmp.lt.u32.totalorder %s10024_s9, %s12461_s13 }
 0x10a   :  { %p10030_p0 = pnand %p10028_p13, %p10025_p12 }
 0x10c   :  { %10033 = shalt.err (!%p10030_p0)
}
 0x10d   :  { %s10034_s23 = scalar_lea.vmem %s142_s17, 128  ;;  %p10039_p2 = scmp.lt.s32.totalorder %s142_s17, %s142_s17 }
 0x10e   :  { %p10035_p1 = scmp.ne.s32.totalorder %s142_s17, %s10034_s23  ;;  %p10040_p3 = scmp.lt.s32.totalorder %s10034_s23, %s10034_s23 }
 0x110   :  { %p10041_p4 = por %p10040_p3, %p10039_p2 }
 0x112   :  { %p10042_p5 = pnand %p10041_p4, %p10035_p1 }
 0x114   :  { %10045 = shalt.err (!%p10042_p5)
}
 0x115   :  { %144 = dma.hbm_to_vmem [thread:$0]  %s12461_s13, 128, %s142_s17, [#allocation19]  }
 0x116   :  { %s10046_s28 = scalar_lea.hbm %s12464_s16, 4096 }
 0x117   :  { %p10047_p6 = scmp.ne.s32.totalorder %s12464_s16, %s10046_s28  ;;  %p10050_p7 = scmp.lt.u32.totalorder %s10046_s28, %s12464_s16 }
 0x119   :  { %p10052_p8 = pnand %p10050_p7, %p10047_p6 }
 0x11b   :  { %10055 = shalt.err (!%p10052_p8)
}
 0x11c   :  { %s10056_s24 = scalar_lea.vmem %s10552_s30, 4096  ;;  %p10061_p10 = scmp.lt.s32.totalorder %s10552_s30, %s10552_s30 }
 0x11d   :  { %p10057_p9 = scmp.ne.s32.totalorder %s10552_s30, %s10056_s24  ;;  %p10062_p11 = scmp.lt.s32.totalorder %s10056_s24, %s10056_s24 }
 0x11f   :  { %p10063_p12 = por %p10062_p11, %p10061_p10 }
 0x121   :  { %p10064_p13 = pnand %p10063_p12, %p10057_p9 }
 0x123   :  { %10067 = shalt.err (!%p10064_p13)
}
 0x124   :  { %s10222_s13 = smov 256   ;;  %s10223_s17 = smov 16  }
 0x125   :  { %166 = dma.hbm_to_vmem [thread:$0]  %s12464_s16, 4096, %s10552_s30, [#allocation22], %s10222_s13, %s10222_s13, %s10223_s17  }
 0x126   :  { %s10224_s3 = smov [#allocation26]   ;;  %s10225_s19 = smov [#allocation29]  }
 0x127   :  { %s184_s29 = sshll.u32 %s10224_s3, 4  ;;  %s208_s23 = sshll.u32 %s10225_s19, 4  ;;  %s185_s29 = int_to_ptr.vmem [resolvable:$true] %s184_s29  ;;  %s10584_s23 = int_to_ptr.vmem [resolvable:$true] %s208_s23 }
 0x128   :  { %s10068_s4 = scalar_lea.hbm %s12466_s18, 2048 }
 0x129   :  { %p10069_p0 = scmp.ne.s32.totalorder %s12466_s18, %s10068_s4  ;;  %p10072_p1 = scmp.lt.u32.totalorder %s10068_s4, %s12466_s18 }
 0x12b   :  { %p10074_p2 = pnand %p10072_p1, %p10069_p0 }
 0x12d   :  { %10077 = shalt.err (!%p10074_p2)
}
 0x12e   :  { %s10078_s16 = scalar_lea.vmem %s185_s29, 2048  ;;  %p10083_p4 = scmp.lt.s32.totalorder %s185_s29, %s185_s29 }
 0x12f   :  { %p10079_p3 = scmp.ne.s32.totalorder %s185_s29, %s10078_s16  ;;  %p10084_p5 = scmp.lt.s32.totalorder %s10078_s16, %s10078_s16 }
 0x131   :  { %p10085_p6 = por %p10084_p5, %p10083_p4 }
 0x133   :  { %p10086_p7 = pnand %p10085_p6, %p10079_p3 }
 0x135   :  { %10089 = shalt.err (!%p10086_p7)
}
 0x136   :  { %190 = dma.hbm_to_vmem [thread:$0]  %s12466_s18, 2048, %s185_s29, [#allocation25], %s10207_s8, %s10207_s8, %s10208_s5  }
 0x137   :  { %s10090_s13 = scalar_lea.hbm %s12468_s20, 32 }
 0x138   :  { %p10091_p8 = scmp.ne.s32.totalorder %s12468_s20, %s10090_s13  ;;  %p10094_p9 = scmp.lt.u32.totalorder %s10090_s13, %s12468_s20 }
 0x13a   :  { %p10096_p10 = pnand %p10094_p9, %p10091_p8 }
 0x13c   :  { %10099 = shalt.err (!%p10096_p10)
}
 0x13d   :  { %s10100_s6 = scalar_lea.vmem %s10584_s23, 32  ;;  %p10105_p12 = scmp.lt.s32.totalorder %s10584_s23, %s10584_s23 }
 0x13e   :  { %p10101_p11 = scmp.ne.s32.totalorder %s10584_s23, %s10100_s6  ;;  %p10106_p13 = scmp.lt.s32.totalorder %s10100_s6, %s10100_s6 }
 0x140   :  { %p10107_p0 = por %p10106_p13, %p10105_p12 }
 0x142   :  { %p10108_p1 = pnand %p10107_p0, %p10101_p11 }
 0x144   :  { %10111 = shalt.err (!%p10108_p1)
}
 0x145   :  { %s10226_s18 = smov 1   ;;  %s10227_s4 = smov [#allocation32]  }
 0x146   :  { %214 = dma.hbm_to_vmem [thread:$0]  %s12468_s20, 32, %s10584_s23, [#allocation28], %s10223_s17, %s10223_s17, %s10226_s18  }
 0x147   :  { %s237_s7 = sshll.u32 %s10227_s4, 4  ;;  %s10112_s0 = scalar_lea.hbm %s12473_s25, 16  ;;  %s238_s7 = int_to_ptr.vmem [resolvable:$true] %s237_s7 }
 0x148   :  { %p10113_p2 = scmp.ne.s32.totalorder %s12473_s25, %s10112_s0  ;;  %p10116_p3 = scmp.lt.u32.totalorder %s10112_s0, %s12473_s25 }
 0x14a   :  { %p10118_p4 = pnand %p10116_p3, %p10113_p2 }
 0x14c   :  { %10121 = shalt.err (!%p10118_p4)
}
 0x14d   :  { %s10122_s24 = scalar_lea.vmem %s238_s7, 16  ;;  %s10126_s20 = scalar_lea.vmem %s238_s7, 32 }
 0x14e   :  { %p10123_p5 = scmp.ne.s32.totalorder %s238_s7, %s10122_s24  ;;  %p10127_p6 = scmp.lt.s32.totalorder %s238_s7, %s238_s7 }
 0x14f   :  { %p10128_p7 = scmp.lt.s32.totalorder %s10126_s20, %s10122_s24 }
 0x151   :  { %p10129_p8 = por %p10128_p7, %p10127_p6 }
 0x153   :  { %p10130_p9 = pnand %p10129_p8, %p10123_p5 }
 0x155   :  { %10133 = shalt.err (!%p10130_p9)
}
 0x156   :  { %240 = dma.hbm_to_vmem [thread:$0]  %s12473_s25, 16, %s238_s7, [#allocation31]  }
 0x157   :  { %10178 = dma.done.wait [#allocation7], 384  }
 0x158   :  { %10179 = vsyncadd [#allocation7], 4294966912 }
 0x159   :  { %10180 = dma.done.wait [#allocation10], 704  }
 0x15a   :  { %10181 = vsyncadd [#allocation10], 4294966592 }
 0x15b   :  { %10182 = dma.done.wait [#allocation13], 656  }
 0x15c   :  { %10183 = vsyncadd [#allocation13], 4294966640 }
 0x15d   :  { %10184 = dma.done.wait [#allocation16], 528  }
 0x15e   :  { %10185 = vsyncadd [#allocation16], 4294966768 }
 0x15f   :  { %10186 = dma.done.wait [#allocation19], 256  }
 0x160   :  { %10187 = vsyncadd [#allocation19], 4294967040 }
 0x161   :  { %10188 = dma.done.wait [#allocation22], 4112  }
 0x162   :  { %10189 = vsyncadd [#allocation22], 4294963184 }
 0x163   :  { %10190 = dma.done.wait [#allocation25], 2112  }
 0x164   :  { %10191 = vsyncadd [#allocation25], 4294965184 }
 0x165   :  { %10192 = dma.done.wait [#allocation28], 2080  }
 0x166   :  { %10193 = vsyncadd [#allocation28], 4294965216 }
 0x167   :  { %10194 = dma.done.wait [#allocation31], 48  }
 0x168   :  { %10195 = vsyncadd [#allocation31], 4294967248  ;;  %s297_s9 = sld [smem:[#allocation0]]   ;;  %313 = sst [smem:[#allocation35 + $0x2]] %s10208_s5  ;;  %v10228_v0 = vmov 0.0|0.0   ;;  %vm10231_vm0 = vmmov 0  }
 0x169   :  { %8991 = vmatprep.subr.bf16.mxu0 %v10228_v0  ;;  %8997 = vmatprep.subr.bf16.mxu1 %v10228_v0  ;;  %s10229_s25 = smov 64   ;;  %s10230_s1 = smov [#allocation2]   ;;  %v10232_v1 = vmov 0.0   ;;  %vm406_vm1 = vcmask 261120   ;;  %v10241_v18 = vmov 0   ;;  %vm558_vm2 = vcmask 1041408  }
 0x16a   :  { %315 = sst [smem:[#allocation35 + $0x3]] %s10229_s25  ;;  %s305_s3 = sshll.u32 %s10230_s1, 4  ;;  %8205 = vmatprep.mubr.msk.f32.mxu0 %vm10231_vm0, %v10232_v1  ;;  %8220 = vmatprep.mubr.msk.f32.mxu1 %vm10231_vm0, %v10232_v1  ;;  %vm542_vm3 = vcmask 146432   ;;  %vm658_vm4 = vcmask 523264   ;;  %vm671_vm5 = vcmask 517120   ;;  %vm919_vm6 = vcmask 130048   ;;  %s306_s3 = int_to_ptr.vmem [resolvable:$true] %s305_s3 }
 0x16b   :  { %317 = sst [smem:[#allocation35 + $0x4]] %s10207_s8  ;;  %s10233_s19 = smov 1024   ;;  %9352 = vset.pattern.permute.xlu0 %v10241_v18  ;;  %9353 = vset.pattern.permute.xlu1 %v10241_v18  ;;  %vm10850_vm7 = vmpackc.low %vm919_vm6, %vm919_vm6  ;;  %vm1040_vm8 = vcmask 277504   ;;  %vm1053_vm9 = vcmask 271360  }
 0x16c   :  { %319 = sst [smem:[#allocation35 + $0x5]] %s10213_s27  ;;  %s10234_s29 = smov 512  }
 0x16d   :  { %323 = sst [smem:[#allocation35 + $0x7]] %s10229_s25  ;;  %s10235_s26 = smov 4  }
 0x16e   :  { %309 = sst [smem:[#allocation35]] %s10233_s19  ;;  %s7544_s6 = sshll.u32 %s297_s9, 26 }
 0x16f   :  { %311 = sst [smem:[#allocation35 + $0x1]] %s10233_s19  ;;  %s7545_s18 = sadd.s32 134217728, %s7544_s6 }
 0x170   :  { %321 = sst [smem:[#allocation35 + $0x6]] %s10234_s29  ;;  %s10236_s4 = smov [#allocation5]  }
 0x171   :  { %325 = sst [smem:[#allocation35 + $0x8]] %s10235_s26  ;;  %s10237_s7 = smov [#allocation34]  }
 0x172   :  { %s12507_s0 = sld [smem:[#allocation65_spill]]  ;;  %s10238_s16 = smov [#allocation3]  }
 0x173   :  { %s340_s30 = sshll.u32 %s10238_s16, 4  ;;  %s10239_s11 = smov [#allocation5 + $0x1]   ;;  %s341_s30 = int_to_ptr.vmem [resolvable:$true] %s340_s30 }
 0x174   :  { %s10240_s2 = smov [#allocation36]   ;;  %s10244_s28 = smov 96  }
 0x175   :  { %s10245_s10 = smov 80  }
 0x178   :  { %327 = dma.general %s12507_s0, 16384, %s306_s3, %s10236_s4, %s10237_s7, [#allocation35], %s7545_s18, 0  }
 0x179   :  { %344 = sst [smem:[#allocation37]] %s10233_s19  ;;  %s10242_s4 = smov 48  }
 0x17a   :  { %346 = sst [smem:[#allocation37 + $0x1]] %s10233_s19  ;;  %s10134_s0 = scalar_lea.hbm %s12462_s14, 8192 }
 0x17b   :  { %348 = sst [smem:[#allocation37 + $0x2]] %s10208_s5  ;;  %p10135_p10 = scmp.ne.s32.totalorder %s12462_s14, %s10134_s0 }
 0x17c   :  { %350 = sst [smem:[#allocation37 + $0x3]] %s10229_s25  ;;  %p10138_p11 = scmp.lt.u32.totalorder %s10134_s0, %s12462_s14 }
 0x17d   :  { %352 = sst [smem:[#allocation37 + $0x4]] %s10207_s8 }
 0x17e   :  { %354 = sst [smem:[#allocation37 + $0x5]] %s10213_s27  ;;  %p10140_p12 = pnand %p10138_p11, %p10135_p10 }
 0x17f   :  { %356 = sst [smem:[#allocation37 + $0x6]] %s10234_s29  ;;  %s10246_s29 = smov [#allocation4]  }
 0x180   :  { %358 = sst [smem:[#allocation37 + $0x7]] %s10229_s25 }
 0x181   :  { %360 = sst [smem:[#allocation37 + $0x8]] %s10235_s26 }
 0x182   :  { %362 = dma.general %s12460_s12, 65536, %s341_s30, %s10239_s11, %s10240_s2, [#allocation37], %s7545_s18, 0  }
 0x183   :  { %s12508_s9 = sld [smem:[#allocation60_spill]]  ;;  %v10679_v7 = vld [vmem:[#allocation30] sm:$0x3]  ;;  %v395_v8 = vld [vmem:[#allocation15] sm:$0xff]  ;;  %v396_v9 = vld [vmem:[#allocation15 + $0x8] sm:$0xff]  ;;  %s12509_s7 = sld [smem:[#allocation58_spill]] }
 0x184   :  { %v397_v10 = vld [vmem:[#allocation15 + $0x10] sm:$0xff]  ;;  %v8992_v11 = vpack.c.bf16 %v396_v9, %v395_v8  ;;  %v398_v12 = vld [vmem:[#allocation15 + $0x18] sm:$0xff]  ;;  %v394_v16 = vld [vmem:[#allocation6 + $0x10] sm:$0x3]  ;;  %s12510_s13 = sld [smem:[#allocation57_spill]]  ;;  %s371_s12 = sshll.u32 %s10246_s29, 4  ;;  %s372_s12 = int_to_ptr.vmem [resolvable:$true] %s371_s12 }
 0x185   :  { %v8995_v13 = vpack.c.bf16 %v398_v12, %v397_v10  ;;  %v392_v14 = vld [vmem:[#allocation6] sm:$0xff]  ;;  %v393_v15 = vld [vmem:[#allocation6 + $0x8] sm:$0xff] }
 0x186   :  { %8993 = vmatpush3.bf16.msra.mxu0 %v8992_v11  ;;  %v7548_v25 = vld [vmem:[#allocation17] ss:$0 sm:$0xff]  ;;  %v7552_v39 = vld [vmem:[#allocation14] ss:$0 sm:$0xff]  ;;  %v375_v42 = vld [vmem:[#allocation11] sm:$0xff] }
 0x187   :  { %8994 = vmatprep.subr.bf16.mxu0 %v10228_v0  ;;  %v376_v50 = vld [vmem:[#allocation11 + $0x8] sm:$0xff]  ;;  %v377_v60 = vld [vmem:[#allocation11 + $0x10] sm:$0xff] }
 0x189   :  { %v10657_v2 = vld [vmem:[%s12508_s9] sm:$0xff]  ;;  %v10662_v3 = vld [vmem:[%s12508_s9 + $0x8] sm:$0xff]  ;;  %v10667_v4 = vld [vmem:[%s12508_s9 + $0x10] sm:$0xff] }
 0x18a   :  { %v10672_v5 = vld [vmem:[%s12508_s9 + $0x18] sm:$0xff]  ;;  %v10677_v6 = vld [vmem:[%s12508_s9 + $0x20] sm:$0x3]  ;;  %8996 = vmatpush3.bf16.msra.mxu0 %v8995_v13  ;;  %v503_v19 = vld [vmem:[%s12509_s7 + $0x10] sm:$0xff] }
 0x18b   :  { %v501_v17 = vld [vmem:[%s12509_s7] sm:$0xff]  ;;  %518 = vperm.xlu1 %9353, %v503_v19   ;;  %v502_v20 = vld [vmem:[%s12509_s7 + $0x8] sm:$0xff]  ;;  %v504_v21 = vld [vmem:[%s12509_s7 + $0x18] sm:$0xff] }
 0x18c   :  { %508 = vperm.xlu0 %9352, %v501_v17   ;;  %v505_v22 = vld [vmem:[%s12509_s7 + $0x20] sm:$0x3]  ;;  %v497_v35 = vld [vmem:[%s12510_s13 + $0x8] sm:$0xff]  ;;  %v498_v36 = vld [vmem:[%s12510_s13 + $0x10] sm:$0xff]  ;;  %s10243_s7 = smov 112  }
 0x18d   :  { %8206 = vmatmul.mubr.msk.f32.vlgmr.msra.gmra.mrb[0].mxu0 %vm406_vm1, %v392_v14  ;;  %v496_v34 = vld [vmem:[%s12510_s13] sm:$0xff]  ;;  %v499_v37 = vld [vmem:[%s12510_s13 + $0x18] sm:$0xff] }
 0x18e   :  { %8208 = vmatprep.mubr.msk.f32.mxu0 %vm10231_vm0, %v10232_v1  ;;  %v500_v38 = vld [vmem:[%s12510_s13 + $0x20] sm:$0x3]  ;;  %v378_v14 = vld [vmem:[#allocation11 + $0x18] sm:$0xff] }
 0x18f   :  { %523 = vperm.xlu1 %9353, %v504_v21  }
 0x190   :  { %513 = vperm.xlu0 %9352, %v502_v20  }
 0x191   :  { %8209 = vmatmul.mubr.msk.f32.gmra.mrb[2].mxu0 %vm406_vm1, %v393_v15 }
 0x192   :  { %8211 = vmatprep.mubr.msk.f32.mxu0 %vm10231_vm0, %v10232_v1 }
 0x194   :  { %528 = vperm.xlu0 %9352, %v505_v22  }
 0x195   :  { %8212 = vmatmul.mubr.msk.f32.gmra.mrb[4].mxu0 %vm406_vm1, %v394_v16 }
 0x196   :  { %865 = vmatprep.mubr.f32.mxu0 %v10232_v1 }
 0x20a   :  { %v519_v47 = vpop.permute.xlu1 %518 }
 0x20b   :  { %v509_v40 = vpop.permute.xlu0 %508  ;;  %v539_v52 = vmul.f32 %v7552_v39, %v519_v47  ;;  %v769_v47 = vld [vmem:[#allocation23 + $0x58] sm:$0xff] }
 0x20c   :  { %v537_v41 = vmul.f32 %v7552_v39, %v509_v40  ;;  %v763_v40 = vld [vmem:[#allocation23 + $0x28] sm:$0xff] }
 0x20e   :  { %v524_v59 = vpop.permute.xlu1 %523 }
 0x20f   :  { %v514_v46 = vpop.permute.xlu0 %513  ;;  %v540_v9 = vmul.f32 %v7552_v39, %v524_v59 }
 0x210   :  { %v538_v48 = vmul.f32 %v7552_v39, %v514_v46  ;;  %v767_v46 = vld [vmem:[#allocation23 + $0x48] sm:$0xff] }
 0x213   :  { %v529_v13 = vpop.permute.xlu0 %528 }
 0x214   :  { %v541_v20 = vmul.f32 %v7552_v39, %v529_v13 }
 0x260   :  { %v482_v23 = vpop.f32.mrb[0].mxu0 }
 0x261   :  { %v8207_v24 = vpop.f32.mrb[1].mxu0  ;;  %v483_v27 = vadd.f32 %v7548_v25, %v482_v23  ;;  %v379_v23 = vld [vmem:[#allocation11 + $0x20] sm:$0x3] }
 0x264   :  { %v487_v26 = vpop.f32.mrb[2].mxu0 }
 0x265   :  { %v488_v28 = vadd.f32 %v7548_v25, %v487_v26  ;;  %v8210_v29 = vpop.f32.mrb[3].mxu0 }
 0x267   :  { %v8998_v30 = vpack.c.bf16 %v488_v28, %v483_v27 }
 0x268   :  { %v492_v31 = vpop.f32.mrb[4].mxu0 }
 0x269   :  { %v493_v32 = vadd.f32 %v7548_v25, %v492_v31  ;;  %8999 = vmatpush3.bf16.msra.mxu1 %v8998_v30  ;;  %v8213_v33 = vpop.f32.mrb[5].mxu0 }
 0x26a   :  { %8218 = vmatprep.subr.mxu1 %v10232_v1 }
 0x26d   :  { %8219 = vmatpush3.msk.msra.mxu1 %vm558_vm2, %v493_v32 }
 0x26e   :  { %8221 = vmatmul.mubr.msk.f32.vlgmr.msra.gmra.mrb[0].mxu1 %vm542_vm3, %v496_v34  ;;  %9016 = vmatprep.subr.bf16.mxu1 %v10228_v0  ;;  %v759_v34 = vld [vmem:[#allocation23 + $0x8] sm:$0xff] }
 0x26f   :  { %8223 = vmatprep.mubr.msk.f32.mxu1 %vm10231_vm0, %v10232_v1 }
 0x272   :  { %8224 = vmatmul.mubr.msk.f32.gmra.mrb[2].mxu1 %vm542_vm3, %v497_v35  ;;  %v761_v35 = vld [vmem:[#allocation23 + $0x18] sm:$0xff] }
 0x273   :  { %8226 = vmatprep.mubr.msk.f32.mxu1 %vm10231_vm0, %v10232_v1 }
 0x276   :  { %8227 = vmatmul.mubr.msk.f32.gmra.mrb[4].mxu1 %vm542_vm3, %v498_v36  ;;  %v9000_v36 = vpack.c.bf16 %v761_v35, %v759_v34  ;;  %v657_v35 = vld [vmem:[%s12470_s22] sm:$0x3f] }
 0x277   :  { %8229 = vmatprep.mubr.msk.f32.mxu1 %vm10231_vm0, %v10232_v1 }
 0x278   :  { %9001 = vmatprep.subr.bf16.mxu0 %v9000_v36 }
 0x27a   :  { %8230 = vmatmul.mubr.msk.f32.gmra.mrb[6].mxu1 %vm542_vm3, %v499_v37  ;;  %v758_v37 = vld [vmem:[#allocation23] sm:$0xff] }
 0x27b   :  { %8232 = vmatprep.mubr.msk.f32.mxu1 %vm10231_vm0, %v10232_v1 }
 0x27e   :  { %8233 = vmatmul.mubr.msk.f32.gmra.mrb[8].mxu1 %vm542_vm3, %v500_v38  ;;  %v760_v38 = vld [vmem:[#allocation23 + $0x10] sm:$0xff] }
 0x27f   :  { %8245 = vmatprep.mubr.msk.f32.mxu1 %vm10231_vm0, %v10232_v1  ;;  %v9002_v39 = vpack.c.bf16 %v760_v38, %v758_v37 }
 0x281   :  { %9003 = vmatpush1.bf16.msra.mxu0 %v9002_v39 }
 0x341   :  { %v628_v43 = vpop.f32.mrb[0].mxu1 }
 0x342   :  { %v629_v44 = vadd.f32 %v628_v43, %v537_v41  ;;  %v8222_v45 = vpop.f32.mrb[1].mxu1  ;;  %v765_v41 = vld [vmem:[#allocation23 + $0x38] sm:$0xff]  ;;  %v762_v43 = vld [vmem:[#allocation23 + $0x20] sm:$0xff] }
 0x344   :  { %v10730_v49 = vadd.f32 %v629_v44, %v375_v42  ;;  %v9004_v42 = vpack.c.bf16 %v765_v41, %v763_v40  ;;  %v764_v44 = vld [vmem:[#allocation23 + $0x30] sm:$0xff] }
 0x345   :  { %v633_v51 = vpop.f32.mrb[2].mxu1  ;;  %v9006_v45 = vpack.c.bf16 %v764_v44, %v762_v43 }
 0x346   :  { %v634_v53 = vadd.f32 %v633_v51, %v538_v48  ;;  %v8225_v54 = vpop.f32.mrb[3].mxu1  ;;  %v659_v55 = vsel %vm658_vm4, %v10730_v49, 0.0  ;;  %v675_v56 = vmul.f32 %v10730_v49, %v10730_v49  ;;  %9005 = vmatprep.subr.bf16.mxu0 %v9004_v42  ;;  %v9008_v48 = vpack.c.bf16 %v769_v47, %v767_v46  ;;  %v768_v51 = vld [vmem:[#allocation23 + $0x50] sm:$0xff] }
 0x347   :  { %660 = vadd.xlane.f32.xlu1 %v659_v55  ;;  %9007 = vmatpush1.bf16.msra.mxu0 %v9006_v45  ;;  %v773_v54 = vld [vmem:[#allocation23 + $0x78] sm:$0xff] }
 0x348   :  { %v10736_v57 = vadd.f32 %v634_v53, %v376_v50  ;;  %v680_v58 = vsel %vm658_vm4, %v675_v56, 0.0  ;;  %v766_v50 = vld [vmem:[#allocation23 + $0x40] sm:$0xff]  ;;  %9009 = vmatprep.subr.bf16.mxu0 %v9008_v48  ;;  %v771_v53 = vld [vmem:[#allocation23 + $0x68] sm:$0xff] }
 0x349   :  { %v638_v61 = vpop.f32.mrb[4].mxu1  ;;  %681 = vadd.xlane.f32.xlu0 %v680_v58  ;;  %v9012_v55 = vpack.c.bf16 %v773_v54, %v771_v53  ;;  %v770_v56 = vld [vmem:[#allocation23 + $0x60] sm:$0xff]  ;;  %v772_v58 = vld [vmem:[#allocation23 + $0x70] sm:$0xff] }
 0x34a   :  { %v639_v62 = vadd.f32 %v638_v61, %v539_v52  ;;  %v8228_v63 = vpop.f32.mrb[5].mxu1  ;;  %v676_v8 = vmul.f32 %v10736_v57, %v10736_v57  ;;  %v662_v11 = vsel %vm658_vm4, %v10736_v57, 0.0  ;;  %v9010_v52 = vpack.c.bf16 %v768_v51, %v766_v50 }
 0x34b   :  { %v9014_v59 = vpack.c.bf16 %v772_v58, %v770_v56 }
 0x34c   :  { %v10741_v10 = vadd.f32 %v639_v62, %v377_v60  ;;  %v683_v12 = vsel %vm658_vm4, %v676_v8, 0.0  ;;  %9011 = vmatpush1.bf16.msra.mxu0 %v9010_v52 }
 0x34d   :  { %v643_v15 = vpop.f32.mrb[6].mxu1  ;;  %663 = vadd.xlane.f32.xlu0 %v662_v11  ;;  %684 = vadd.xlane.f32.xlu1 %v683_v12 }
 0x34e   :  { %v644_v16 = vadd.f32 %v643_v15, %v540_v9  ;;  %v8231_v17 = vpop.f32.mrb[7].mxu1  ;;  %v665_v18 = vsel %vm658_vm4, %v10741_v10, 0.0  ;;  %v677_v19 = vmul.f32 %v10741_v10, %v10741_v10  ;;  %9013 = vmatprep.subr.bf16.mxu0 %v9012_v55  ;;  %v740_v15 = vlaneseq }
 0x350   :  { %v10750_v21 = vadd.f32 %v644_v16, %v378_v14  ;;  %v686_v22 = vsel %vm658_vm4, %v677_v19, 0.0  ;;  %9015 = vmatpush1.bf16.msra.mxu0 %v9014_v59 }
 0x351   :  { %v648_v24 = vpop.f32.mrb[8].mxu1  ;;  %666 = vadd.xlane.f32.xlu0 %v665_v18  ;;  %687 = vadd.xlane.f32.xlu1 %v686_v22 }
 0x352   :  { %v649_v25 = vadd.f32 %v648_v24, %v541_v20  ;;  %v678_v26 = vmul.f32 %v10750_v21, %v10750_v21  ;;  %v8234_v27 = vpop.f32.mrb[9].mxu1  ;;  %v668_v29 = vsel %vm658_vm4, %v10750_v21, 0.0  ;;  %9024 = vmatprep.subr.bf16.mxu0 %v10228_v0 }
 0x354   :  { %v10755_v28 = vadd.f32 %v649_v25, %v379_v23  ;;  %v689_v30 = vsel %vm658_vm4, %v678_v26, 0.0  ;;  %v10766_v25 = vshrl.u32 %v740_v15, 7 }
 0x355   :  { %669 = vadd.xlane.f32.xlu0 %v668_v29  ;;  %690 = vadd.xlane.f32.xlu1 %v689_v30 }
 0x356   :  { %v679_v31 = vmul.f32 %v10755_v28, %v10755_v28  ;;  %v672_v32 = vsel %vm671_vm5, %v10755_v28, 0.0  ;;  %v10769_v34 = vsub.s32 0, %v10766_v25  ;;  %v10775_v41 = vsub.s32 1, %v10766_v25 }
 0x358   :  { %v692_v33 = vsel %vm671_vm5, %v679_v31, 0.0  ;;  %v743_v46 = vrot.slane %v657_v35, %v10769_v34  ;;  %v752_v53 = vrot.slane %v657_v35, %v10775_v41 }
 0x359   :  { %673 = vadd.xlane.f32.xlu0 %v672_v32  ;;  %693 = vadd.xlane.f32.xlu1 %v692_v33 }
 0x3d4   :  { %v661_v60 = vpop.xlane.xlu1 %660 }
 0x3d5   :  { %v695_v61 = vmul.f32 0.015625, %v661_v60 }
 0x3d6   :  { %v682_v62 = vpop.xlane.xlu0 %681 }
 0x3d7   :  { %v705_v63 = vmul.f32 %v695_v61, %v695_v61  ;;  %v700_v8 = vmul.f32 0.015625, %v682_v62  ;;  %v720_v45 = vsub.f32 %v10730_v49, %v695_v61 }
 0x3d9   :  { %v710_v9 = vsub.f32 %v700_v8, %v705_v63 }
 0x3da   :  { %v664_v11 = vpop.xlane.xlu0 %663  ;;  %v685_v12 = vpop.xlane.xlu1 %684 }
 0x3db   :  { %v715_v13 = vmax.f32 %v710_v9, 0.0  ;;  %v696_v14 = vmul.f32 0.015625, %v664_v11  ;;  %v701_v18 = vmul.f32 0.015625, %v685_v12 }
 0x3dd   :  { %v725_v16 = vadd.f32 1e-12, %v715_v13  ;;  %v706_v17 = vmul.f32 %v696_v14, %v696_v14  ;;  %v721_v59 = vsub.f32 %v10736_v57, %v696_v14 }
 0x3de   :  { %v667_v19 = vpop.xlane.xlu0 %666  ;;  %v688_v20 = vpop.xlane.xlu1 %687 }
 0x3df   :  { %9424 = vrsqrt.f32 %v725_v16  ;;  %v711_v22 = vsub.f32 %v701_v18, %v706_v17  ;;  %v697_v23 = vmul.f32 0.015625, %v667_v19  ;;  %v702_v24 = vmul.f32 0.015625, %v688_v20 }
 0x3e1   :  { %v716_v26 = vmax.f32 %v711_v22, 0.0  ;;  %v707_v27 = vmul.f32 %v697_v23, %v697_v23  ;;  %v722_v8 = vsub.f32 %v10741_v10, %v697_v23 }
 0x3e2   :  { %v670_v29 = vpop.xlane.xlu0 %669  ;;  %v691_v30 = vpop.xlane.xlu1 %690 }
 0x3e3   :  { %v726_v31 = vadd.f32 1e-12, %v716_v26  ;;  %v712_v32 = vsub.f32 %v702_v24, %v707_v27  ;;  %v698_v33 = vmul.f32 0.015625, %v670_v29  ;;  %v703_v38 = vmul.f32 0.015625, %v691_v30  ;;  %v774_v29 = vld [vmem:[#allocation24] sm:$0x3] }
 0x3e4   :  { %v779_v30 = vrot.slane %v774_v29, %v10769_v34  ;;  %v783_v35 = vrot.slane %v774_v29, %v10775_v41 }
 0x3e5   :  { %9426 = vrsqrt.f32 %v726_v31  ;;  %v717_v36 = vmax.f32 %v712_v32, 0.0  ;;  %v708_v37 = vmul.f32 %v698_v33, %v698_v33  ;;  %v723_v15 = vsub.f32 %v10750_v21, %v698_v33 }
 0x3e6   :  { %v674_v39 = vpop.xlane.xlu0 %673  ;;  %v694_v40 = vpop.xlane.xlu1 %693 }
 0x3e7   :  { %v727_v42 = vadd.f32 1e-12, %v717_v36  ;;  %v713_v43 = vsub.f32 %v703_v38, %v708_v37  ;;  %v699_v44 = vmul.f32 0.015625, %v674_v39  ;;  %v704_v51 = vmul.f32 0.015625, %v694_v40 }
 0x3e9   :  { %v9425_v47 = vpop.eup %9424  ;;  %9428 = vrsqrt.f32 %v727_v42  ;;  %v718_v48 = vmax.f32 %v713_v43, 0.0  ;;  %v709_v50 = vmul.f32 %v699_v44, %v699_v44  ;;  %v724_v19 = vsub.f32 %v10755_v28, %v699_v44 }
 0x3ea   :  { %v735_v52 = vmul.f32 %v9425_v47, %v720_v45 }
 0x3eb   :  { %v728_v54 = vadd.f32 1e-12, %v718_v48  ;;  %v714_v55 = vsub.f32 %v704_v51, %v709_v50 }
 0x3ec   :  { %v744_v56 = vmul.f32 %v743_v46, %v735_v52 }
 0x3ed   :  { %9430 = vrsqrt.f32 %v728_v54  ;;  %v719_v58 = vmax.f32 %v714_v55, 0.0 }
 0x3ee   :  { %v753_v60 = vadd.f32 %v752_v53, %v744_v56 }
 0x3ef   :  { %v9427_v62 = vpop.eup %9426  ;;  %v729_v61 = vadd.f32 1e-12, %v719_v58 }
 0x3f0   :  { %7559 = vmatmul.mubr.msk.f32.vlgmr.msra.gmra.mrb[6].mxu0 %vm658_vm4, %v753_v60  ;;  %v736_v63 = vmul.f32 %v9427_v62, %v721_v59 }
 0x3f1   :  { %9432 = vrsqrt.f32 %v729_v61  ;;  %871 = vmatprep.mubr.f32.mxu0 %v10232_v1 }
 0x3f2   :  { %v745_v9 = vmul.f32 %v743_v46, %v736_v63 }
 0x3f3   :  { %v9429_v11 = vpop.eup %9428 }
 0x3f4   :  { %v754_v12 = vadd.f32 %v752_v53, %v745_v9  ;;  %v737_v13 = vmul.f32 %v9429_v11, %v722_v8 }
 0x3f6   :  { %7560 = vmatmul.mubr.msk.f32.gmra.mrb[8].mxu0 %vm658_vm4, %v754_v12  ;;  %v746_v14 = vmul.f32 %v743_v46, %v737_v13 }
 0x3f7   :  { %v9431_v16 = vpop.eup %9430  ;;  %877 = vmatprep.mubr.f32.mxu0 %v10232_v1 }
 0x3f8   :  { %v755_v17 = vadd.f32 %v752_v53, %v746_v14  ;;  %v738_v18 = vmul.f32 %v9431_v16, %v723_v15 }
 0x3fa   :  { %7561 = vmatmul.mubr.msk.f32.gmra.mrb[10].mxu0 %vm658_vm4, %v755_v17  ;;  %v747_v20 = vmul.f32 %v743_v46, %v738_v18 }
 0x3fb   :  { %v9433_v22 = vpop.eup %9432  ;;  %883 = vmatprep.mubr.f32.mxu0 %v10232_v1 }
 0x3fc   :  { %v756_v23 = vadd.f32 %v752_v53, %v747_v20  ;;  %v739_v24 = vmul.f32 %v9433_v22, %v724_v19 }
 0x3fe   :  { %7562 = vmatmul.mubr.msk.f32.gmra.mrb[12].mxu0 %vm658_vm4, %v756_v23  ;;  %v748_v26 = vmul.f32 %v743_v46, %v739_v24 }
 0x3ff   :  { %889 = vmatprep.mubr.f32.mxu0 %v10232_v1 }
 0x400   :  { %v757_v27 = vadd.f32 %v752_v53, %v748_v26 }
 0x402   :  { %7563 = vmatmul.mubr.msk.f32.gmra.mrb[14].mxu0 %vm658_vm4, %v757_v27 }
 0x403   :  { %8270 = vmatprep.mubr.msk.f32.mxu0 %vm10231_vm0, %v10232_v1 }
 0x4c3   :  { %v867_v31 = vpop.f32.mrb[6].mxu0 }
 0x4c4   :  { %v10796_v32 = vadd.f32 %v867_v31, %v779_v30  ;;  %v869_v33 = vpop.f32.mrb[7].mxu0 }
 0x4c5   :  { %v870_v39 = vadd.f32 %v869_v33, %v783_v35 }
 0x4c9   :  { %v873_v36 = vpop.f32.mrb[8].mxu0 }
 0x4ca   :  { %v10799_v37 = vadd.f32 %v873_v36, %v779_v30  ;;  %v875_v38 = vpop.f32.mrb[9].mxu0 }
 0x4cb   :  { %v876_v40 = vadd.f32 %v875_v38, %v783_v35  ;;  %v10905_v38 = vld [vmem:[#allocation12] sm:$0xff] }
 0x4cc   :  { %v10803_v42 = vpack.i.bf16 %v10799_v37, %v10796_v32 }
 0x4cd   :  { %v879_v43 = vpop.f32.mrb[10].mxu0  ;;  %v9025_v44 = vpack.c.bf16 %v876_v40, %v870_v39  ;;  %v10805_v45 = vpack.i.bf16 %v876_v40, %v870_v39 }
 0x4ce   :  { %v10807_v46 = vadd.f32 %v879_v43, %v779_v30  ;;  %9355 = vrot.lane.b32.xlu0 %v10803_v42, %s10229_s25  ;;  %v881_v47 = vpop.f32.mrb[11].mxu0 }
 0x4cf   :  { %9026 = vmatpush3.bf16.msra.mxu0 %v9025_v44  ;;  %v882_v52 = vadd.f32 %v881_v47, %v783_v35  ;;  %v10910_v47 = vld [vmem:[#allocation12 + $0x8] sm:$0xff] }
 0x4d0   :  { %9027 = vmatprep.subr.bf16.mxu0 %v10228_v0 }
 0x4d1   :  { %v885_v48 = vpop.f32.mrb[12].mxu0 }
 0x4d2   :  { %v10812_v50 = vadd.f32 %v885_v48, %v779_v30  ;;  %9365 = vrot.lane.b32.xlu0 %v10803_v42, %s10242_s4  ;;  %v887_v51 = vpop.f32.mrb[13].mxu0 }
 0x4d3   :  { %v888_v53 = vadd.f32 %v887_v51, %v783_v35 }
 0x4d4   :  { %v10818_v54 = vpack.i.bf16 %v10812_v50, %v10807_v46 }
 0x4d5   :  { %v891_v55 = vpop.f32.mrb[14].mxu0  ;;  %v9028_v56 = vpack.c.bf16 %v888_v53, %v882_v52  ;;  %v10820_v58 = vpack.i.bf16 %v888_v53, %v882_v52 }
 0x4d6   :  { %v10822_v59 = vadd.f32 %v891_v55, %v779_v30  ;;  %9360 = vrot.lane.b32.xlu1 %v10818_v54, %s10229_s25  ;;  %v893_v60 = vpop.f32.mrb[15].mxu0 }
 0x4d7   :  { %9029 = vmatpush3.bf16.msra.mxu0 %v9028_v56  ;;  %v10829_v62 = vadd.f32 %v893_v60, %v783_v35  ;;  %v10915_v56 = vld [vmem:[#allocation12 + $0x10] sm:$0xff] }
 0x4d8   :  { %1223 = vrot.lane.b32.xlu0 %v10822_v59, %s10242_s4  ;;  %8268 = vmatprep.subr.mxu0 %v10232_v1 }
 0x4da   :  { %917 = vrot.lane.b32.xlu1 %v10822_v59, %s10229_s25 }
 0x4db   :  { %8269 = vmatpush3.msk.msra.mxu0 %vm558_vm2, %v10829_v62 }
 0x4dc   :  { %1207 = vrot.lane.b32.xlu0 %v10799_v37, %s10243_s7  ;;  %9038 = vmatprep.subr.bf16.mxu0 %v10228_v0 }
 0x4de   :  { %9370 = vrot.lane.b32.xlu1 %v10818_v54, %s10242_s4 }
 0x4e0   :  { %1211 = vrot.lane.b32.xlu0 %v10812_v50, %s10243_s7 }
 0x4e2   :  { %1205 = vrot.lane.b32.xlu1 %v10796_v32, %s10243_s7 }
 0x4e6   :  { %1209 = vrot.lane.b32.xlu1 %v10807_v46, %s10243_s7 }
 0x4ea   :  { %1213 = vrot.lane.b32.xlu1 %v10822_v59, %s10243_s7 }
 0x540   :  { %v9356_v61 = vpop.permute.xlu0 %9355 }
 0x541   :  { %v9358_v63 = vunpack.i.h.bf16 %v9356_v61  ;;  %v9357_v8 = vunpack.i.l.bf16 %v9356_v61 }
 0x543   :  { %v9017_v11 = vpack.c.bf16 %v9358_v63, %v9357_v8 }
 0x544   :  { %v9366_v16 = vpop.permute.xlu0 %9365 }
 0x545   :  { %9019 = vmatpush3.bf16.xpose.msk.msra.mxu1 %vm10850_vm7, %v9017_v11  ;;  %v9368_v18 = vunpack.i.h.bf16 %v9366_v16  ;;  %v9367_v19 = vunpack.i.l.bf16 %v9366_v16 }
 0x546   :  { %9020 = vmatprep.subr.bf16.mxu1 %v10228_v0 }
 0x547   :  { %v9031_v20 = vpack.c.bf16 %v9368_v18, %v9367_v19  ;;  %v10923_v18 = vld [vmem:[#allocation12 + $0x20] sm:$0x3] }
 0x548   :  { %v9361_v12 = vpop.permute.xlu1 %9360 }
 0x549   :  { %v9363_v13 = vunpack.i.h.bf16 %v9361_v12  ;;  %v9362_v15 = vunpack.i.l.bf16 %v9361_v12  ;;  %v10919_v12 = vld [vmem:[#allocation12 + $0x18] sm:$0xff] }
 0x54a   :  { %v1224_v27 = vpop.permute.xlu0 %1223 }
 0x54b   :  { %v9021_v14 = vpack.c.bf16 %v9363_v13, %v9362_v15 }
 0x54c   :  { %v918_v17 = vpop.permute.xlu1 %917 }
 0x54d   :  { %9023 = vmatpush3.bf16.xpose.msk.msra.mxu1 %vm10850_vm7, %v9021_v14 }
 0x54e   :  { %8243 = vmatprep.subr.mxu1 %v10232_v1  ;;  %v1208_v30 = vpop.permute.xlu0 %1207 }
 0x550   :  { %v9371_v22 = vpop.permute.xlu1 %9370 }
 0x551   :  { %v9373_v23 = vunpack.i.h.bf16 %v9371_v22  ;;  %v9372_v24 = vunpack.i.l.bf16 %v9371_v22 }
 0x552   :  { %v1212_v33 = vpop.permute.xlu0 %1211 }
 0x553   :  { %v9035_v26 = vpack.c.bf16 %v9373_v23, %v9372_v24 }
 0x554   :  { %v1206_v29 = vpop.permute.xlu1 %1205 }
 0x555   :  { %8244 = vmatpush3.xpose.msk.msra.mxu1 %vm919_vm6, %v918_v17 }
 0x556   :  { %9030 = vmatprep.subr.bf16.mxu1 %v10228_v0 }
 0x558   :  { %8246 = vmatmul.mubr.msk.f32.vlgmr.msra.gmra.mrb[10].mxu1 %vm919_vm6, %v10796_v32  ;;  %v1210_v31 = vpop.permute.xlu1 %1209 }
 0x559   :  { %9033 = vmatpush3.bf16.xpose.msk.msra.mxu1 %vm10850_vm7, %v9031_v20  ;;  %8248 = vmatprep.mubr.msk.f32.mxu1 %vm10231_vm0, %v10232_v1 }
 0x55a   :  { %9034 = vmatprep.subr.bf16.mxu1 %v10228_v0 }
 0x55c   :  { %8249 = vmatmul.mubr.msk.f32.gmra.mrb[12].mxu1 %vm919_vm6, %v10799_v37  ;;  %v1214_v35 = vpop.permute.xlu1 %1213 }
 0x55d   :  { %8251 = vmatprep.mubr.msk.f32.mxu1 %vm10231_vm0, %v10232_v1 }
 0x560   :  { %8252 = vmatmul.mubr.msk.f32.gmra.mrb[14].mxu1 %vm919_vm6, %v10807_v46 }
 0x561   :  { %9037 = vmatpush3.bf16.xpose.msk.msra.mxu1 %vm10850_vm7, %v9035_v26  ;;  %8254 = vmatprep.mubr.msk.f32.mxu1 %vm10231_vm0, %v10232_v1 }
 0x562   :  { %8293 = vmatprep.subr.mxu1 %v10232_v1 }
 0x564   :  { %8255 = vmatmul.mubr.msk.f32.gmra.mrb[16].mxu1 %vm919_vm6, %v10812_v50 }
 0x565   :  { %8257 = vmatprep.mubr.msk.f32.mxu1 %vm10231_vm0, %v10232_v1 }
 0x568   :  { %8258 = vmatmul.mubr.msk.f32.gmra.mrb[18].mxu1 %vm919_vm6, %v10822_v59 }
 0x569   :  { %8294 = vmatpush3.xpose.msk.msra.mxu1 %vm919_vm6, %v1224_v27  ;;  %8295 = vmatprep.mubr.msk.f32.mxu1 %vm10231_vm0, %v10232_v1 }
 0x56a   :  { %9044 = vmatprep.subr.bf16.mxu1 %v10228_v0 }
 0x56c   :  { %8296 = vmatmul.mubr.msk.f32.vlgmr.msra.gmra.mrb[20].mxu1 %vm919_vm6, %v1206_v29 }
 0x56d   :  { %8298 = vmatprep.mubr.msk.f32.mxu1 %vm10231_vm0, %v10232_v1 }
 0x570   :  { %8299 = vmatmul.mubr.msk.f32.gmra.mrb[22].mxu1 %vm919_vm6, %v1208_v30 }
 0x571   :  { %8301 = vmatprep.mubr.msk.f32.mxu1 %vm10231_vm0, %v10232_v1 }
 0x574   :  { %8302 = vmatmul.mubr.msk.f32.gmra.mrb[24].mxu1 %vm919_vm6, %v1210_v31 }
 0x575   :  { %8304 = vmatprep.mubr.msk.f32.mxu1 %vm10231_vm0, %v10232_v1 }
 0x578   :  { %8305 = vmatmul.mubr.msk.f32.gmra.mrb[26].mxu1 %vm919_vm6, %v1212_v33 }
 0x579   :  { %8307 = vmatprep.mubr.msk.f32.mxu1 %vm10231_vm0, %v10232_v1 }
 0x57c   :  { %8308 = vmatmul.mubr.msk.f32.gmra.mrb[28].mxu1 %vm919_vm6, %v1214_v35 }
 0x57d   :  { %8339 = vmatprep.mubr.msk.f32.mxu1 %vm10231_vm0, %v10232_v1 }
 0x62b   :  { %v1006_v36 = vpop.f32.mrb[10].mxu1 }
 0x62c   :  { %v1030_v39 = vmul.f32 0.25, %v1006_v36  ;;  %v8247_v40 = vpop.f32.mrb[11].mxu1 }
 0x62e   :  { %v10908_v43 = vadd.f32 %v1030_v39, %v10905_v38 }
 0x62f   :  { %v1011_v44 = vpop.f32.mrb[12].mxu1 }
 0x630   :  { %v1031_v48 = vmul.f32 0.25, %v1011_v44  ;;  %v8250_v51 = vpop.f32.mrb[13].mxu1  ;;  %v1041_v52 = vsel %vm1040_vm8, %v10908_v43, -inf }
 0x631   :  { %1042 = vmax.xlane.f32.xlu0 %v1041_v52 }
 0x632   :  { %v1036_v53 = vadd.f32 %v1031_v48, %v10910_v47 }
 0x633   :  { %v1016_v55 = vpop.f32.mrb[14].mxu1 }
 0x634   :  { %v1032_v60 = vmul.f32 0.25, %v1016_v55  ;;  %v8253_v61 = vpop.f32.mrb[15].mxu1  ;;  %v1044_v63 = vsel %vm1040_vm8, %v1036_v53, -inf }
 0x635   :  { %1045 = vmax.xlane.f32.xlu1 %v1044_v63 }
 0x636   :  { %v1037_v8 = vadd.f32 %v1032_v60, %v10915_v56 }
 0x637   :  { %v1021_v11 = vpop.f32.mrb[16].mxu1 }
 0x638   :  { %v1033_v13 = vmul.f32 0.25, %v1021_v11  ;;  %v8256_v15 = vpop.f32.mrb[17].mxu1  ;;  %v1047_v14 = vsel %vm1040_vm8, %v1037_v8, -inf }
 0x639   :  { %1048 = vmax.xlane.f32.xlu0 %v1047_v14 }
 0x63a   :  { %v1038_v16 = vadd.f32 %v1033_v13, %v10919_v12 }
 0x63b   :  { %v1026_v17 = vpop.f32.mrb[18].mxu1 }
 0x63c   :  { %v1034_v19 = vmul.f32 0.25, %v1026_v17  ;;  %v8259_v20 = vpop.f32.mrb[19].mxu1  ;;  %v1050_v22 = vsel %vm1040_vm8, %v1038_v16, -inf }
 0x63d   :  { %1051 = vmax.xlane.f32.xlu0 %v1050_v22 }
 0x63e   :  { %v1039_v23 = vadd.f32 %v1034_v19, %v10923_v18 }
 0x63f   :  { %v1311_v24 = vpop.f32.mrb[20].mxu1 }
 0x640   :  { %v1335_v26 = vmul.f32 0.25, %v1311_v24  ;;  %v8297_v27 = vpop.f32.mrb[21].mxu1  ;;  %v1054_v29 = vsel %vm1053_vm9, %v1039_v23, -inf }
 0x641   :  { %1055 = vmax.xlane.f32.xlu1 %v1054_v29 }
 0x642   :  { %v1340_v30 = vadd.f32 %v1335_v26, %v10905_v38 }
 0x643   :  { %v1316_v31 = vpop.f32.mrb[22].mxu1 }
 0x644   :  { %v1336_v33 = vmul.f32 0.25, %v1316_v31  ;;  %v8300_v35 = vpop.f32.mrb[23].mxu1  ;;  %v1345_v36 = vsel %vm1040_vm8, %v1340_v30, -inf }
 0x645   :  { %1346 = vmax.xlane.f32.xlu0 %v1345_v36 }
 0x646   :  { %v1341_v39 = vadd.f32 %v1336_v33, %v10910_v47 }
 0x647   :  { %v1321_v40 = vpop.f32.mrb[24].mxu1 }
 0x648   :  { %v1337_v44 = vmul.f32 0.25, %v1321_v40  ;;  %v8303_v48 = vpop.f32.mrb[25].mxu1  ;;  %v1348_v51 = vsel %vm1040_vm8, %v1341_v39, -inf }
 0x649   :  { %1349 = vmax.xlane.f32.xlu1 %v1348_v51 }
 0x64a   :  { %v1342_v52 = vadd.f32 %v1337_v44, %v10915_v56 }
 0x64b   :  { %v1326_v55 = vpop.f32.mrb[26].mxu1 }
 0x64c   :  { %v1338_v60 = vmul.f32 0.25, %v1326_v55  ;;  %v8306_v61 = vpop.f32.mrb[27].mxu1  ;;  %v1351_v63 = vsel %vm1040_vm8, %v1342_v52, -inf }
 0x64d   :  { %1352 = vmax.xlane.f32.xlu0 %v1351_v63 }
 0x64e   :  { %v1343_v11 = vadd.f32 %v1338_v60, %v10919_v12 }
 0x64f   :  { %v1331_v13 = vpop.f32.mrb[28].mxu1 }
 0x650   :  { %v1339_v15 = vmul.f32 0.25, %v1331_v13  ;;  %v8309_v14 = vpop.f32.mrb[29].mxu1  ;;  %v1354_v17 = vsel %vm1040_vm8, %v1343_v11, -inf }
 0x651   :  { %1355 = vmax.xlane.f32.xlu1 %v1354_v17 }
 0x652   :  { %v1344_v19 = vadd.f32 %v1339_v15, %v10923_v18 }
 0x654   :  { %v1357_v20 = vsel %vm1053_vm9, %v1344_v19, -inf }
 0x655   :  { %1358 = vmax.xlane.f32.xlu0 %v1357_v20 }
 0x662   :  { %9375 = vrot.lane.b32.xlu1 %v10805_v45, %s10243_s7 }
 0x6be   :  { %v1043_v22 = vpop.xlane.xlu0 %1042 }
 0x6bf   :  { %v1057_v24 = vsub.f32 %v10908_v43, %v1043_v22 }
 0x6c1   :  { %v1062_v26 = vmul.f32 1.442695, %v1057_v24 }
 0x6c2   :  { %v1046_v27 = vpop.xlane.xlu1 %1045 }
 0x6c3   :  { %9434 = vpow2.f32 %v1062_v26  ;;  %v1058_v29 = vsub.f32 %v1036_v53, %v1046_v27 }
 0x6c5   :  { %v1064_v31 = vmul.f32 1.442695, %v1058_v29 }
 0x6c6   :  { %v1049_v33 = vpop.xlane.xlu0 %1048 }
 0x6c7   :  { %9436 = vpow2.f32 %v1064_v31  ;;  %v1059_v35 = vsub.f32 %v1037_v8, %v1049_v33 }
 0x6c9   :  { %v1066_v36 = vmul.f32 1.442695, %v1059_v35 }
 0x6ca   :  { %v1052_v40 = vpop.xlane.xlu0 %1051 }
 0x6cb   :  { %9438 = vpow2.f32 %v1066_v36  ;;  %v1060_v44 = vsub.f32 %v1038_v16, %v1052_v40 }
 0x6cd   :  { %v10941_v48 = vpop.eup %9434  ;;  %v1068_v51 = vmul.f32 1.442695, %v1060_v44 }
 0x6ce   :  { %v1056_v55 = vpop.xlane.xlu1 %1055  ;;  %v1072_v60 = vsel %vm1040_vm8, %v10941_v48, 0.0 }
 0x6cf   :  { %9440 = vpow2.f32 %v1068_v51  ;;  %v1061_v43 = vsub.f32 %v1039_v23, %v1056_v55  ;;  %1073 = vadd.xlane.f32.xlu1 %v1072_v60 }
 0x6d1   :  { %v10945_v61 = vpop.eup %9436  ;;  %v1070_v53 = vmul.f32 1.442695, %v1061_v43 }
 0x6d2   :  { %v1347_v63 = vpop.xlane.xlu0 %1346  ;;  %v1075_v8 = vsel %vm1040_vm8, %v10945_v61, 0.0 }
 0x6d3   :  { %9442 = vpow2.f32 %v1070_v53  ;;  %v1360_v13 = vsub.f32 %v1340_v30, %v1347_v63  ;;  %1076 = vadd.xlane.f32.xlu0 %v1075_v8 }
 0x6d5   :  { %v10949_v16 = vpop.eup %9438  ;;  %v1365_v15 = vmul.f32 1.442695, %v1360_v13 }
 0x6d6   :  { %v1350_v14 = vpop.xlane.xlu1 %1349  ;;  %v1078_v17 = vsel %vm1040_vm8, %v10949_v16, 0.0 }
 0x6d7   :  { %9444 = vpow2.f32 %v1365_v15  ;;  %v1361_v23 = vsub.f32 %v1341_v39, %v1350_v14  ;;  %1079 = vadd.xlane.f32.xlu1 %v1078_v17 }
 0x6d9   :  { %v10953_v20 = vpop.eup %9440  ;;  %v1367_v22 = vmul.f32 1.442695, %v1361_v23 }
 0x6da   :  { %v1353_v24 = vpop.xlane.xlu0 %1352  ;;  %v1081_v26 = vsel %vm1040_vm8, %v10953_v20, 0.0 }
 0x6db   :  { %9446 = vpow2.f32 %v1367_v22  ;;  %v1362_v30 = vsub.f32 %v1342_v52, %v1353_v24  ;;  %1082 = vadd.xlane.f32.xlu0 %v1081_v26 }
 0x6dd   :  { %v10957_v27 = vpop.eup %9442  ;;  %v1369_v29 = vmul.f32 1.442695, %v1362_v30 }
 0x6de   :  { %v1356_v31 = vpop.xlane.xlu1 %1355  ;;  %v1084_v33 = vsel %vm1053_vm9, %v10957_v27, 0.0 }
 0x6df   :  { %9448 = vpow2.f32 %v1369_v29  ;;  %v1363_v39 = vsub.f32 %v1343_v11, %v1356_v31  ;;  %1085 = vadd.xlane.f32.xlu1 %v1084_v33 }
 0x6e1   :  { %v10961_v35 = vpop.eup %9444  ;;  %v1371_v36 = vmul.f32 1.442695, %v1363_v39 }
 0x6e2   :  { %v1359_v40 = vpop.xlane.xlu0 %1358  ;;  %v1375_v44 = vsel %vm1040_vm8, %v10961_v35, 0.0  ;;  %v9376_v13 = vpop.permute.xlu1 %9375 }
 0x6e3   :  { %9450 = vpow2.f32 %v1371_v36  ;;  %v1364_v52 = vsub.f32 %v1344_v19, %v1359_v40  ;;  %1376 = vadd.xlane.f32.xlu0 %v1375_v44  ;;  %v9378_v23 = vunpack.i.h.bf16 %v9376_v13  ;;  %v9377_v22 = vunpack.i.l.bf16 %v9376_v13 }
 0x6e5   :  { %v10965_v51 = vpop.eup %9446  ;;  %v1373_v55 = vmul.f32 1.442695, %v1364_v52  ;;  %v9039_v29 = vpack.c.bf16 %v9378_v23, %v9377_v22 }
 0x6e6   :  { %v1378_v60 = vsel %vm1040_vm8, %v10965_v51, 0.0 }
 0x6e7   :  { %9452 = vpow2.f32 %v1373_v55  ;;  %1379 = vadd.xlane.f32.xlu1 %v1378_v60 }
 0x6e9   :  { %v10969_v11 = vpop.eup %9448 }
 0x6ea   :  { %v1381_v43 = vsel %vm1040_vm8, %v10969_v11, 0.0 }
 0x6eb   :  { %1382 = vadd.xlane.f32.xlu0 %v1381_v43 }
 0x6ed   :  { %v10973_v53 = vpop.eup %9450 }
 0x6ee   :  { %v1384_v19 = vsel %vm1040_vm8, %v10973_v53, 0.0 }
 0x6ef   :  { %1385 = vadd.xlane.f32.xlu1 %v1384_v19 }
 0x6f1   :  { %v10977_v63 = vpop.eup %9452 }
 0x6f2   :  { %v1387_v8 = vsel %vm1053_vm9, %v10977_v63, 0.0 }
 0x6f3   :  { %1388 = vadd.xlane.f32.xlu0 %v1387_v8 }
 0x700   :  { %1412 = vrot.lane.b32.xlu1 %v10829_v62, %s10243_s7 }
 0x704   :  { %9385 = vrot.lane.b32.xlu1 %v10803_v42, %s10212_s15 }
 0x708   :  { %1753 = vrot.lane.b32.xlu1 %v10822_v59, %s10212_s15 }
 0x709   :  { %9380 = vrot.lane.b32.xlu0 %v10820_v58, %s10243_s7 }
 0x70c   :  { %1737 = vrot.lane.b32.xlu1 %v10799_v37, %s10244_s28 }
 0x70d   :  { %9390 = vrot.lane.b32.xlu0 %v10818_v54, %s10212_s15 }
 0x710   :  { %1741 = vrot.lane.b32.xlu1 %v10812_v50, %s10244_s28 }
 0x711   :  { %1735 = vrot.lane.b32.xlu0 %v10796_v32, %s10244_s28 }
 0x715   :  { %1739 = vrot.lane.b32.xlu0 %v10807_v46, %s10244_s28 }
 0x719   :  { %1743 = vrot.lane.b32.xlu0 %v10822_v59, %s10244_s28 }
 0x75c   :  { %v1074_v15 = vpop.xlane.xlu1 %1073 }
 0x75d   :  { %9454 = vrcp.f32 %v1074_v15 }
 0x760   :  { %v1077_v14 = vpop.xlane.xlu0 %1076 }
 0x761   :  { %9456 = vrcp.f32 %v1077_v14  ;;  %v896_v14 = vld [vmem:[#allocation26] sm:$0xff] }
 0x764   :  { %v1080_v17 = vpop.xlane.xlu1 %1079 }
 0x765   :  { %9458 = vrcp.f32 %v1080_v17  ;;  %v897_v17 = vld [vmem:[#allocation26 + $0x8] sm:$0xff] }
 0x767   :  { %v9455_v24 = vpop.eup %9454 }
 0x768   :  { %v1092_v26 = vmul.f32 %v9455_v24, %v10941_v48  ;;  %v1083_v30 = vpop.xlane.xlu0 %1082 }
 0x769   :  { %9460 = vrcp.f32 %v1083_v30 }
 0x76a   :  { %8271 = vmatmul.mubr.msk.f32.vlgmr.msra.gmra.mrb[16].mxu0 %vm1040_vm8, %v1092_v26 }
 0x76b   :  { %v9457_v31 = vpop.eup %9456  ;;  %9040 = vmatpush3.bf16.msra.mxu0 %v9039_v29  ;;  %8273 = vmatprep.mubr.msk.f32.mxu0 %vm10231_vm0, %v10232_v1 }
 0x76c   :  { %v1086_v33 = vpop.xlane.xlu1 %1085  ;;  %v1093_v39 = vmul.f32 %v9457_v31, %v10945_v61  ;;  %9041 = vmatprep.subr.bf16.mxu0 %v10228_v0 }
 0x76d   :  { %9462 = vrcp.f32 %v1086_v33 }
 0x76e   :  { %8274 = vmatmul.mubr.msk.f32.gmra.mrb[18].mxu0 %vm1040_vm8, %v1093_v39 }
 0x76f   :  { %v9459_v36 = vpop.eup %9458  ;;  %8276 = vmatprep.mubr.msk.f32.mxu0 %vm10231_vm0, %v10232_v1 }
 0x770   :  { %v1094_v48 = vmul.f32 %v9459_v36, %v10949_v16  ;;  %v1377_v52 = vpop.xlane.xlu0 %1376  ;;  %v899_v36 = vld [vmem:[#allocation26 + $0x18] sm:$0xff] }
 0x771   :  { %9464 = vrcp.f32 %v1377_v52 }
 0x772   :  { %8277 = vmatmul.mubr.msk.f32.gmra.mrb[20].mxu0 %vm1040_vm8, %v1094_v48 }
 0x773   :  { %v9461_v40 = vpop.eup %9460  ;;  %8279 = vmatprep.mubr.msk.f32.mxu0 %vm10231_vm0, %v10232_v1 }
 0x774   :  { %v1095_v44 = vmul.f32 %v9461_v40, %v10953_v20  ;;  %v1380_v60 = vpop.xlane.xlu1 %1379 }
 0x775   :  { %9466 = vrcp.f32 %v1380_v60 }
 0x776   :  { %8280 = vmatmul.mubr.msk.f32.gmra.mrb[22].mxu0 %vm1040_vm8, %v1095_v44 }
 0x777   :  { %v9463_v61 = vpop.eup %9462  ;;  %8282 = vmatprep.mubr.msk.f32.mxu0 %vm10231_vm0, %v10232_v1 }
 0x778   :  { %v1096_v55 = vmul.f32 %v9463_v61, %v10957_v27  ;;  %v1383_v16 = vpop.xlane.xlu0 %1382  ;;  %v9048_v27 = vpack.c.bf16 %v897_v17, %v896_v14 }
 0x779   :  { %9468 = vrcp.f32 %v1383_v16 }
 0x77a   :  { %8283 = vmatmul.mubr.msk.f32.gmra.mrb[24].mxu0 %vm1040_vm8, %v1096_v55 }
 0x77b   :  { %8320 = vmatprep.mubr.msk.f32.mxu0 %vm10231_vm0, %v10232_v1  ;;  %v9465_v23 = vpop.eup %9464 }
 0x77c   :  { %v1386_v13 = vpop.xlane.xlu1 %1385  ;;  %v1395_v22 = vmul.f32 %v9465_v23, %v10961_v35 }
 0x77d   :  { %9470 = vrcp.f32 %v1386_v13 }
 0x77f   :  { %v9467_v26 = vpop.eup %9466 }
 0x780   :  { %v1389_v43 = vpop.xlane.xlu0 %1388  ;;  %v1413_v24 = vpop.permute.xlu1 %1412  ;;  %v1396_v30 = vmul.f32 %v9467_v26, %v10965_v51 }
 0x781   :  { %9472 = vrcp.f32 %v1389_v43 }
 0x783   :  { %v9469_v29 = vpop.eup %9468 }
 0x784   :  { %v9381_v20 = vpop.permute.xlu0 %9380  ;;  %v1397_v35 = vmul.f32 %v9469_v29, %v10969_v11  ;;  %v898_v11 = vld [vmem:[#allocation26 + $0x10] sm:$0xff] }
 0x785   :  { %v9383_v19 = vunpack.i.h.bf16 %v9381_v20  ;;  %v9382_v8 = vunpack.i.l.bf16 %v9381_v20  ;;  %v9045_v48 = vpack.c.bf16 %v899_v36, %v898_v11  ;;  %v9386_v20 = vpop.permute.xlu1 %9385 }
 0x787   :  { %v9042_v15 = vpack.c.bf16 %v9383_v19, %v9382_v8  ;;  %v9471_v31 = vpop.eup %9470  ;;  %9046 = vmatpush3.bf16.msra.mxu1 %v9045_v48  ;;  %v9388_v19 = vunpack.i.h.bf16 %v9386_v20  ;;  %v9387_v8 = vunpack.i.l.bf16 %v9386_v20 }
 0x788   :  { %v1398_v33 = vmul.f32 %v9471_v31, %v10973_v53  ;;  %9050 = vmatprep.subr.bf16.mxu1 %v10228_v0  ;;  %v9391_v14 = vpop.permute.xlu0 %9390 }
 0x789   :  { %9043 = vmatpush3.bf16.msra.mxu0 %v9042_v15  ;;  %v9051_v13 = vpack.c.bf16 %v9388_v19, %v9387_v8  ;;  %v9393_v23 = vunpack.i.h.bf16 %v9391_v14 }
 0x78a   :  { %8318 = vmatprep.subr.mxu0 %v10232_v1 }
 0x78b   :  { %v9473_v39 = vpop.eup %9472 }
 0x78c   :  { %v1399_v51 = vmul.f32 %v9473_v39, %v10977_v63  ;;  %v1754_v39 = vpop.permute.xlu1 %1753  ;;  %v1736_v11 = vpop.permute.xlu0 %1735 }
 0x78d   :  { %8319 = vmatpush3.msk.msra.mxu0 %vm558_vm2, %v1413_v24 }
 0x78e   :  { %8321 = vmatmul.mubr.msk.f32.vlgmr.msra.gmra.mrb[26].mxu0 %vm1040_vm8, %v1395_v22  ;;  %9047 = vmatprep.subr.bf16.mxu0 %v10228_v0 }
 0x78f   :  { %8323 = vmatprep.mubr.msk.f32.mxu0 %vm10231_vm0, %v10232_v1  ;;  %9049 = vmatpush3.bf16.msra.mxu0 %v9048_v27  ;;  %v9392_v27 = vunpack.i.l.bf16 %v9391_v14 }
 0x790   :  { %9058 = vmatprep.subr.bf16.mxu0 %v10228_v0  ;;  %v1738_v36 = vpop.permute.xlu1 %1737  ;;  %v1740_v48 = vpop.permute.xlu0 %1739 }
 0x791   :  { %v9055_v26 = vpack.c.bf16 %v9393_v23, %v9392_v27 }
 0x792   :  { %8324 = vmatmul.mubr.msk.f32.gmra.mrb[28].mxu0 %vm1040_vm8, %v1396_v30 }
 0x793   :  { %8326 = vmatprep.mubr.msk.f32.mxu0 %vm10231_vm0, %v10232_v1 }
 0x796   :  { %8327 = vmatmul.mubr.msk.f32.gmra.mrb[30].mxu0 %vm1040_vm8, %v1397_v35 }
 0x797   :  { %8329 = vmatprep.mubr.msk.f32.mxu0 %vm10231_vm0, %v10232_v1 }
 0x79a   :  { %8330 = vmatmul.mubr.msk.f32.gmra.mrb[32].mxu0 %vm1040_vm8, %v1398_v33 }
 0x79b   :  { %8332 = vmatprep.mubr.msk.f32.mxu0 %vm10231_vm0, %v10232_v1 }
 0x79e   :  { %8333 = vmatmul.mubr.msk.f32.gmra.mrb[34].mxu0 %vm1040_vm8, %v1399_v51 }
 0x79f   :  { %8358 = vmatprep.mubr.msk.f32.mxu0 %vm10231_vm0, %v10232_v1 }
 0x83d   :  { %v1181_v53 = vpop.f32.mrb[16].mxu0 }
 0x83e   :  { %v8272_v40 = vpop.f32.mrb[17].mxu0  ;;  %8359 = vmatmul.mubr.msk.f32.vlgmr.msra.gmra.mrb[36].mxu0 %vm919_vm6, %v1181_v53  ;;  %v1742_v53 = vpop.permute.xlu1 %1741 }
 0x83f   :  { %8361 = vmatprep.mubr.msk.f32.mxu0 %vm10231_vm0, %v10232_v1  ;;  %v1744_v40 = vpop.permute.xlu0 %1743 }
 0x841   :  { %v1186_v44 = vpop.f32.mrb[18].mxu0 }
 0x842   :  { %v8275_v63 = vpop.f32.mrb[19].mxu0  ;;  %8362 = vmatmul.mubr.msk.f32.gmra.mrb[38].mxu0 %vm919_vm6, %v1186_v44 }
 0x843   :  { %8364 = vmatprep.mubr.msk.f32.mxu0 %vm10231_vm0, %v10232_v1 }
 0x845   :  { %v1191_v61 = vpop.f32.mrb[20].mxu0 }
 0x846   :  { %v8278_v52 = vpop.f32.mrb[21].mxu0  ;;  %8365 = vmatmul.mubr.msk.f32.gmra.mrb[40].mxu0 %vm919_vm6, %v1191_v61 }
 0x847   :  { %8367 = vmatprep.mubr.msk.f32.mxu0 %vm10231_vm0, %v10232_v1 }
 0x849   :  { %v1196_v55 = vpop.f32.mrb[22].mxu0 }
 0x84a   :  { %v8281_v16 = vpop.f32.mrb[23].mxu0  ;;  %8368 = vmatmul.mubr.msk.f32.gmra.mrb[42].mxu0 %vm919_vm6, %v1196_v55 }
 0x84b   :  { %8370 = vmatprep.mubr.msk.f32.mxu0 %vm10231_vm0, %v10232_v1 }
 0x84d   :  { %v1201_v60 = vpop.f32.mrb[24].mxu0 }
 0x84e   :  { %v8284_v43 = vpop.f32.mrb[25].mxu0  ;;  %8371 = vmatmul.mubr.msk.f32.gmra.mrb[44].mxu0 %vm919_vm6, %v1201_v60 }
 0x84f   :  { %8408 = vmatprep.mubr.msk.f32.mxu0 %vm10231_vm0, %v10232_v1 }
 0x861   :  { %v1501_v15 = vpop.f32.mrb[26].mxu0 }
 0x862   :  { %v8322_v17 = vpop.f32.mrb[27].mxu0  ;;  %8340 = vmatmul.mubr.msk.f32.vlgmr.msra.gmra.mrb[30].mxu1 %vm919_vm6, %v1501_v15 }
 0x863   :  { %9053 = vmatpush3.bf16.xpose.msk.msra.mxu1 %vm10850_vm7, %v9051_v13  ;;  %8342 = vmatprep.mubr.msk.f32.mxu1 %vm10231_vm0, %v10232_v1 }
 0x864   :  { %9054 = vmatprep.subr.bf16.mxu1 %v10228_v0 }
 0x865   :  { %v1506_v22 = vpop.f32.mrb[28].mxu0 }
 0x866   :  { %v8325_v24 = vpop.f32.mrb[29].mxu0  ;;  %8343 = vmatmul.mubr.msk.f32.gmra.mrb[32].mxu1 %vm919_vm6, %v1506_v22 }
 0x867   :  { %8345 = vmatprep.mubr.msk.f32.mxu1 %vm10231_vm0, %v10232_v1 }
 0x869   :  { %v1511_v30 = vpop.f32.mrb[30].mxu0 }
 0x86a   :  { %v8328_v29 = vpop.f32.mrb[31].mxu0  ;;  %8346 = vmatmul.mubr.msk.f32.gmra.mrb[34].mxu1 %vm919_vm6, %v1511_v30 }
 0x86b   :  { %9057 = vmatpush3.bf16.xpose.msk.msra.mxu1 %vm10850_vm7, %v9055_v26  ;;  %8348 = vmatprep.mubr.msk.f32.mxu1 %vm10231_vm0, %v10232_v1 }
 0x86c   :  { %8381 = vmatprep.subr.mxu1 %v10232_v1 }
 0x86d   :  { %v1516_v35 = vpop.f32.mrb[32].mxu0 }
 0x86e   :  { %v8331_v31 = vpop.f32.mrb[33].mxu0  ;;  %8349 = vmatmul.mubr.msk.f32.gmra.mrb[36].mxu1 %vm919_vm6, %v1516_v35 }
 0x86f   :  { %8351 = vmatprep.mubr.msk.f32.mxu1 %vm10231_vm0, %v10232_v1 }
 0x871   :  { %v1521_v33 = vpop.f32.mrb[34].mxu0 }
 0x872   :  { %v8334_v51 = vpop.f32.mrb[35].mxu0  ;;  %8352 = vmatmul.mubr.msk.f32.gmra.mrb[38].mxu1 %vm919_vm6, %v1521_v33 }
 0x873   :  { %8382 = vmatpush3.xpose.msk.msra.mxu1 %vm919_vm6, %v1754_v39  ;;  %8383 = vmatprep.mubr.msk.f32.mxu1 %vm10231_vm0, %v10232_v1 }
 0x874   :  { %9064 = vmatprep.subr.bf16.mxu1 %v10228_v0 }
 0x876   :  { %8384 = vmatmul.mubr.msk.f32.vlgmr.msra.gmra.mrb[40].mxu1 %vm919_vm6, %v1736_v11 }
 0x877   :  { %8386 = vmatprep.mubr.msk.f32.mxu1 %vm10231_vm0, %v10232_v1 }
 0x87a   :  { %8387 = vmatmul.mubr.msk.f32.gmra.mrb[42].mxu1 %vm919_vm6, %v1738_v36 }
 0x87b   :  { %8389 = vmatprep.mubr.msk.f32.mxu1 %vm10231_vm0, %v10232_v1 }
 0x87e   :  { %8390 = vmatmul.mubr.msk.f32.gmra.mrb[44].mxu1 %vm919_vm6, %v1740_v48 }
 0x87f   :  { %8392 = vmatprep.mubr.msk.f32.mxu1 %vm10231_vm0, %v10232_v1 }
 0x882   :  { %8393 = vmatmul.mubr.msk.f32.gmra.mrb[46].mxu1 %vm919_vm6, %v1742_v53 }
 0x883   :  { %8395 = vmatprep.mubr.msk.f32.mxu1 %vm10231_vm0, %v10232_v1 }
 0x886   :  { %8396 = vmatmul.mubr.msk.f32.gmra.mrb[48].mxu1 %vm919_vm6, %v1744_v40 }
 0x887   :  { %8427 = vmatprep.mubr.msk.f32.mxu1 %vm10231_vm0, %v10232_v1 }
 0x911   :  { %v1711_v44 = vpop.f32.mrb[36].mxu0 }
 0x912   :  { %v8360_v63 = vpop.f32.mrb[37].mxu0 }
 0x915   :  { %v1716_v61 = vpop.f32.mrb[38].mxu0 }
 0x916   :  { %v8363_v52 = vpop.f32.mrb[39].mxu0 }
 0x919   :  { %v1721_v55 = vpop.f32.mrb[40].mxu0 }
 0x91a   :  { %v8366_v16 = vpop.f32.mrb[41].mxu0 }
 0x91d   :  { %v1726_v60 = vpop.f32.mrb[42].mxu0 }
 0x91e   :  { %v8369_v43 = vpop.f32.mrb[43].mxu0 }
 0x921   :  { %v1731_v20 = vpop.f32.mrb[44].mxu0 }
 0x922   :  { %v8372_v19 = vpop.f32.mrb[45].mxu0 }
 0x935   :  { %v1606_v8 = vpop.f32.mrb[30].mxu1 }
 0x936   :  { %v11100_v13 = vadd.f32 %v1711_v44, %v1606_v8  ;;  %v8341_v15 = vpop.f32.mrb[31].mxu1 }
 0x939   :  { %v1611_v14 = vpop.f32.mrb[32].mxu1 }
 0x93a   :  { %v11102_v17 = vadd.f32 %v1716_v61, %v1611_v14  ;;  %v8344_v23 = vpop.f32.mrb[33].mxu1 }
 0x93d   :  { %v1616_v27 = vpop.f32.mrb[34].mxu1 }
 0x93e   :  { %v11104_v22 = vadd.f32 %v1721_v55, %v1616_v27  ;;  %v8347_v24 = vpop.f32.mrb[35].mxu1 }
 0x941   :  { %v1621_v26 = vpop.f32.mrb[36].mxu1 }
 0x942   :  { %v11106_v30 = vadd.f32 %v1726_v60, %v1621_v26  ;;  %v8350_v29 = vpop.f32.mrb[37].mxu1 }
 0x945   :  { %v1626_v35 = vpop.f32.mrb[38].mxu1 }
 0x946   :  { %v11108_v31 = vadd.f32 %v1731_v20, %v1626_v35  ;;  %v8353_v33 = vpop.f32.mrb[39].mxu1 }
 0x949   :  { %v1841_v39 = vpop.f32.mrb[40].mxu1 }
 0x94a   :  { %v1865_v51 = vmul.f32 0.25, %v1841_v39  ;;  %v8385_v11 = vpop.f32.mrb[41].mxu1 }
 0x94c   :  { %v1870_v36 = vadd.f32 %v1865_v51, %v10905_v38 }
 0x94d   :  { %v1846_v48 = vpop.f32.mrb[42].mxu1 }
 0x94e   :  { %v1866_v53 = vmul.f32 0.25, %v1846_v48  ;;  %v8388_v40 = vpop.f32.mrb[43].mxu1  ;;  %v1875_v44 = vsel %vm1040_vm8, %v1870_v36, -inf }
 0x94f   :  { %1876 = vmax.xlane.f32.xlu1 %v1875_v44 }
 0x950   :  { %v1871_v63 = vadd.f32 %v1866_v53, %v10910_v47 }
 0x951   :  { %v1851_v61 = vpop.f32.mrb[44].mxu1 }
 0x952   :  { %v1867_v52 = vmul.f32 0.25, %v1851_v61  ;;  %v8391_v55 = vpop.f32.mrb[45].mxu1  ;;  %v1878_v16 = vsel %vm1040_vm8, %v1871_v63, -inf }
 0x953   :  { %1879 = vmax.xlane.f32.xlu0 %v1878_v16 }
 0x954   :  { %v1872_v60 = vadd.f32 %v1867_v52, %v10915_v56 }
 0x955   :  { %v1856_v43 = vpop.f32.mrb[46].mxu1 }
 0x956   :  { %v1868_v20 = vmul.f32 0.25, %v1856_v43  ;;  %v8394_v19 = vpop.f32.mrb[47].mxu1  ;;  %v1881_v8 = vsel %vm1040_vm8, %v1872_v60, -inf }
 0x957   :  { %1882 = vmax.xlane.f32.xlu0 %v1881_v8 }
 0x958   :  { %v1873_v15 = vadd.f32 %v1868_v20, %v10919_v12 }
 0x959   :  { %v1861_v14 = vpop.f32.mrb[48].mxu1 }
 0x95a   :  { %v1869_v23 = vmul.f32 0.25, %v1861_v14  ;;  %v8397_v27 = vpop.f32.mrb[49].mxu1  ;;  %v1884_v24 = vsel %vm1040_vm8, %v1873_v15, -inf }
 0x95b   :  { %1885 = vmax.xlane.f32.xlu1 %v1884_v24 }
 0x95c   :  { %v1874_v26 = vadd.f32 %v1869_v23, %v10923_v18 }
 0x95e   :  { %v1887_v29 = vsel %vm1053_vm9, %v1874_v26, -inf }
 0x95f   :  { %1888 = vmax.xlane.f32.xlu0 %v1887_v29 }
 0x9dc   :  { %v1877_v35 = vpop.xlane.xlu1 %1876 }
 0x9dd   :  { %v1890_v33 = vsub.f32 %v1870_v36, %v1877_v35 }
 0x9df   :  { %v1895_v39 = vmul.f32 1.442695, %v1890_v33 }
 0x9e0   :  { %v1880_v51 = vpop.xlane.xlu0 %1879 }
 0x9e1   :  { %9474 = vpow2.f32 %v1895_v39  ;;  %v1891_v11 = vsub.f32 %v1871_v63, %v1880_v51 }
 0x9e3   :  { %v1897_v48 = vmul.f32 1.442695, %v1891_v11 }
 0x9e4   :  { %v1883_v36 = vpop.xlane.xlu0 %1882 }
 0x9e5   :  { %9476 = vpow2.f32 %v1897_v48  ;;  %v1892_v63 = vsub.f32 %v1872_v60, %v1883_v36 }
 0x9e7   :  { %v1899_v43 = vmul.f32 1.442695, %v1892_v63 }
 0x9e8   :  { %v1886_v52 = vpop.xlane.xlu1 %1885 }
 0x9e9   :  { %v1893_v16 = vsub.f32 %v1873_v15, %v1886_v52  ;;  %9478 = vpow2.f32 %v1899_v43 }
 0x9eb   :  { %v11120_v53 = vpop.eup %9474  ;;  %v1901_v19 = vmul.f32 1.442695, %v1893_v16 }
 0x9ec   :  { %v1905_v40 = vsel %vm1040_vm8, %v11120_v53, 0.0  ;;  %v1889_v55 = vpop.xlane.xlu0 %1888 }
 0x9ed   :  { %1906 = vadd.xlane.f32.xlu1 %v1905_v40  ;;  %v1894_v20 = vsub.f32 %v1874_v26, %v1889_v55  ;;  %9480 = vpow2.f32 %v1901_v19  ;;  %v901_v26 = vld [vmem:[#allocation26 + $0x28] sm:$0xff] }
 0x9ef   :  { %v11124_v44 = vpop.eup %9476  ;;  %v1903_v8 = vmul.f32 1.442695, %v1894_v20 }
 0x9f0   :  { %v1908_v61 = vsel %vm1040_vm8, %v11124_v44, 0.0 }
 0x9f1   :  { %1909 = vadd.xlane.f32.xlu0 %v1908_v61  ;;  %9482 = vpow2.f32 %v1903_v8 }
 0x9f3   :  { %v11132_v14 = vpop.eup %9478 }
 0x9f4   :  { %v1911_v27 = vsel %vm1040_vm8, %v11132_v14, 0.0 }
 0x9f7   :  { %v11134_v23 = vpop.eup %9480 }
 0x9f8   :  { %v1914_v60 = vsel %vm1040_vm8, %v11134_v23, 0.0 }
 0x9fb   :  { %v11138_v24 = vpop.eup %9482 }
 0x9fc   :  { %v1917_v15 = vsel %vm1053_vm9, %v11138_v24, 0.0 }
 0x9fe   :  { %9400 = vrot.lane.b32.xlu1 %v10820_v58, %s10244_s28 }
 0xa07   :  { %9395 = vrot.lane.b32.xlu0 %v10805_v45, %s10244_s28 }
 0xa22   :  { %1912 = vadd.xlane.f32.xlu1 %v1911_v27 }
 0xa26   :  { %1915 = vadd.xlane.f32.xlu1 %v1914_v60  ;;  %1918 = vadd.xlane.f32.xlu0 %v1917_v15 }
 0xa37   :  { %1938 = vrot.lane.b32.xlu1 %v10829_v62, %s10244_s28 }
 0xa3b   :  { %9405 = vrot.lane.b32.xlu1 %v10803_v42, %s10223_s17  ;;  %v900_v42 = vld [vmem:[#allocation26 + $0x20] sm:$0xff] }
 0xa3c   :  { %2169 = vrot.lane.b32.xlu0 %v10822_v59, %s10245_s10  ;;  %v9065_v29 = vpack.c.bf16 %v901_v26, %v900_v42 }
 0xa3e   :  { %9066 = vmatpush3.bf16.msra.mxu1 %v9065_v29 }
 0xa3f   :  { %9410 = vrot.lane.b32.xlu1 %v10818_v54, %s10223_s17  ;;  %9075 = vmatprep.subr.bf16.mxu1 %v10228_v0 }
 0xa43   :  { %2179 = vrot.lane.b32.xlu1 %v10822_v59, %s10223_s17 }
 0xa47   :  { %2161 = vrot.lane.b32.xlu1 %v10796_v32, %s10245_s10 }
 0xa4b   :  { %2163 = vrot.lane.b32.xlu1 %v10799_v37, %s10245_s10 }
 0xa4f   :  { %2165 = vrot.lane.b32.xlu1 %v10807_v46, %s10245_s10 }
 0xa53   :  { %2167 = vrot.lane.b32.xlu1 %v10812_v50, %s10245_s10 }
 0xa7a   :  { %v1907_v54 = vpop.xlane.xlu1 %1906 }
 0xa7b   :  { %9484 = vrcp.f32 %v1907_v54 }
 0xa7e   :  { %v1910_v59 = vpop.xlane.xlu0 %1909  ;;  %v9401_v35 = vpop.permute.xlu1 %9400 }
 0xa7f   :  { %v9403_v51 = vunpack.i.h.bf16 %v9401_v35  ;;  %v9402_v37 = vunpack.i.l.bf16 %v9401_v35  ;;  %9486 = vrcp.f32 %v1910_v59 }
 0xa81   :  { %v9062_v46 = vpack.c.bf16 %v9403_v51, %v9402_v37 }
 0xa82   :  { %v9396_v33 = vpop.permute.xlu0 %9395 }
 0xa83   :  { %v9398_v32 = vunpack.i.h.bf16 %v9396_v33  ;;  %v9397_v39 = vunpack.i.l.bf16 %v9396_v33 }
 0xa85   :  { %v9059_v11 = vpack.c.bf16 %v9398_v32, %v9397_v39  ;;  %v9485_v40 = vpop.eup %9484 }
 0xa86   :  { %v1925_v61 = vmul.f32 %v9485_v40, %v11120_v53 }
 0xa87   :  { %9060 = vmatpush3.bf16.msra.mxu0 %v9059_v11 }
 0xa88   :  { %9061 = vmatprep.subr.bf16.mxu0 %v10228_v0 }
 0xa89   :  { %v9487_v52 = vpop.eup %9486 }
 0xa8a   :  { %v1926_v16 = vmul.f32 %v9487_v52, %v11124_v44 }
 0xa8b   :  { %9063 = vmatpush3.bf16.msra.mxu0 %v9062_v46 }
 0xa8c   :  { %8406 = vmatprep.subr.mxu0 %v10232_v1 }
 0xaaf   :  { %v1913_v50 = vpop.xlane.xlu1 %1912 }
 0xab0   :  { %9488 = vrcp.f32 %v1913_v50 }
 0xab3   :  { %v1916_v48 = vpop.xlane.xlu1 %1915  ;;  %v1919_v36 = vpop.xlane.xlu0 %1918 }
 0xab4   :  { %9490 = vrcp.f32 %v1916_v48 }
 0xab5   :  { %9492 = vrcp.f32 %v1919_v36 }
 0xab7   :  { %v1939_v63 = vpop.permute.xlu1 %1938  ;;  %v2170_v33 = vpop.permute.xlu0 %2169 }
 0xab8   :  { %8407 = vmatpush3.msk.msra.mxu0 %vm558_vm2, %v1939_v63 }
 0xab9   :  { %8409 = vmatmul.mubr.msk.f32.vlgmr.msra.gmra.mrb[46].mxu0 %vm1040_vm8, %v1925_v61  ;;  %9067 = vmatprep.subr.bf16.mxu0 %v10228_v0 }
 0xaba   :  { %8411 = vmatprep.mubr.msk.f32.mxu0 %vm10231_vm0, %v10232_v1  ;;  %v9489_v43 = vpop.eup %9488 }
 0xabb   :  { %v9406_v55 = vpop.permute.xlu1 %9405  ;;  %v1927_v27 = vmul.f32 %v9489_v43, %v11132_v14 }
 0xabc   :  { %v9408_v20 = vunpack.i.h.bf16 %v9406_v55  ;;  %v9407_v19 = vunpack.i.l.bf16 %v9406_v55  ;;  %v9534_v55 = vld [vmem:[#allocation12] sm:$0xff] }
 0xabd   :  { %8412 = vmatmul.mubr.msk.f32.gmra.mrb[48].mxu0 %vm1040_vm8, %v1926_v16 }
 0xabe   :  { %v9068_v53 = vpack.c.bf16 %v9408_v20, %v9407_v19  ;;  %8414 = vmatprep.mubr.msk.f32.mxu0 %vm10231_vm0, %v10232_v1  ;;  %v9491_v60 = vpop.eup %9490 }
 0xabf   :  { %v9411_v8 = vpop.permute.xlu1 %9410  ;;  %v1928_v42 = vmul.f32 %v9491_v60, %v11134_v23  ;;  %v9493_v26 = vpop.eup %9492 }
 0xac0   :  { %9070 = vmatpush3.bf16.xpose.msk.msra.mxu0 %vm10850_vm7, %v9068_v53  ;;  %v9413_v44 = vunpack.i.h.bf16 %v9411_v8  ;;  %v9412_v15 = vunpack.i.l.bf16 %v9411_v8  ;;  %v1929_v54 = vmul.f32 %v9493_v26, %v11138_v24  ;;  %v9535_v8 = vld [vmem:[#allocation12 + $0x8] sm:$0xff] }
 0xac1   :  { %8415 = vmatmul.mubr.msk.f32.gmra.mrb[50].mxu0 %vm1040_vm8, %v1927_v27  ;;  %9071 = vmatprep.subr.bf16.mxu0 %v10228_v0 }
 0xac2   :  { %8417 = vmatprep.mubr.msk.f32.mxu0 %vm10231_vm0, %v10232_v1  ;;  %v9072_v29 = vpack.c.bf16 %v9413_v44, %v9412_v15 }
 0xac3   :  { %v2180_v14 = vpop.permute.xlu1 %2179 }
 0xac5   :  { %8418 = vmatmul.mubr.msk.f32.gmra.mrb[52].mxu0 %vm1040_vm8, %v1928_v42 }
 0xac6   :  { %8420 = vmatprep.mubr.msk.f32.mxu0 %vm10231_vm0, %v10232_v1 }
 0xac7   :  { %v2162_v23 = vpop.permute.xlu1 %2161 }
 0xac8   :  { %9074 = vmatpush3.bf16.xpose.msk.msra.mxu0 %vm10850_vm7, %v9072_v29 }
 0xac9   :  { %8421 = vmatmul.mubr.msk.f32.gmra.mrb[54].mxu0 %vm1040_vm8, %v1929_v54  ;;  %8450 = vmatprep.subr.mxu0 %v10232_v1 }
 0xaca   :  { %8452 = vmatprep.mubr.msk.f32.mxu0 %vm10231_vm0, %v10232_v1 }
 0xacb   :  { %v2164_v59 = vpop.permute.xlu1 %2163 }
 0xacf   :  { %v2166_v24 = vpop.permute.xlu1 %2165 }
 0xad0   :  { %8451 = vmatpush3.xpose.msk.msra.mxu0 %vm919_vm6, %v2180_v14 }
 0xad1   :  { %9081 = vmatprep.subr.bf16.mxu0 %v10228_v0 }
 0xad3   :  { %8453 = vmatmul.mubr.msk.f32.vlgmr.msra.gmra.mrb[56].mxu0 %vm919_vm6, %v2162_v23  ;;  %v2168_v35 = vpop.permute.xlu1 %2167 }
 0xad4   :  { %8455 = vmatprep.mubr.msk.f32.mxu0 %vm10231_vm0, %v10232_v1 }
 0xad7   :  { %8456 = vmatmul.mubr.msk.f32.gmra.mrb[58].mxu0 %vm919_vm6, %v2164_v59 }
 0xad8   :  { %8458 = vmatprep.mubr.msk.f32.mxu0 %vm10231_vm0, %v10232_v1 }
 0xadb   :  { %8459 = vmatmul.mubr.msk.f32.gmra.mrb[60].mxu0 %vm919_vm6, %v2166_v24 }
 0xadc   :  { %8461 = vmatprep.mubr.msk.f32.mxu0 %vm10231_vm0, %v10232_v1 }
 0xadf   :  { %8462 = vmatmul.mubr.msk.f32.gmra.mrb[62].mxu0 %vm919_vm6, %v2168_v35 }
 0xae0   :  { %8464 = vmatprep.mubr.msk.f32.mxu0 %vm10231_vm0, %v10232_v1 }
 0xae3   :  { %8465 = vmatmul.mubr.msk.f32.gmra.mrb[64].mxu0 %vm919_vm6, %v2170_v33 }
 0xae4   :  { %8496 = vmatprep.mubr.msk.f32.mxu0 %vm10231_vm0, %v10232_v1 }
 0xb8c   :  { %v2027_v32 = vpop.f32.mrb[46].mxu0 }
 0xb8d   :  { %v8410_v39 = vpop.f32.mrb[47].mxu0  ;;  %8428 = vmatmul.mubr.msk.f32.vlgmr.msra.gmra.mrb[50].mxu1 %vm919_vm6, %v2027_v32 }
 0xb8e   :  { %8430 = vmatprep.mubr.msk.f32.mxu1 %vm10231_vm0, %v10232_v1 }
 0xb90   :  { %v2032_v51 = vpop.f32.mrb[48].mxu0 }
 0xb91   :  { %v8413_v37 = vpop.f32.mrb[49].mxu0  ;;  %8431 = vmatmul.mubr.msk.f32.gmra.mrb[52].mxu1 %vm919_vm6, %v2032_v51 }
 0xb92   :  { %8433 = vmatprep.mubr.msk.f32.mxu1 %vm10231_vm0, %v10232_v1 }
 0xb94   :  { %v2037_v11 = vpop.f32.mrb[50].mxu0 }
 0xb95   :  { %v8416_v46 = vpop.f32.mrb[51].mxu0  ;;  %8434 = vmatmul.mubr.msk.f32.gmra.mrb[54].mxu1 %vm919_vm6, %v2037_v11 }
 0xb96   :  { %8436 = vmatprep.mubr.msk.f32.mxu1 %vm10231_vm0, %v10232_v1 }
 0xb98   :  { %v2042_v50 = vpop.f32.mrb[52].mxu0 }
 0xb99   :  { %v8419_v48 = vpop.f32.mrb[53].mxu0  ;;  %8437 = vmatmul.mubr.msk.f32.gmra.mrb[56].mxu1 %vm919_vm6, %v2042_v50 }
 0xb9a   :  { %8439 = vmatprep.mubr.msk.f32.mxu1 %vm10231_vm0, %v10232_v1 }
 0xb9c   :  { %v2047_v40 = vpop.f32.mrb[54].mxu0 }
 0xb9d   :  { %v8422_v61 = vpop.f32.mrb[55].mxu0  ;;  %8440 = vmatmul.mubr.msk.f32.gmra.mrb[58].mxu1 %vm919_vm6, %v2047_v40 }
 0xb9e   :  { %8477 = vmatprep.mubr.msk.f32.mxu1 %vm10231_vm0, %v10232_v1 }
 0xba6   :  { %v2267_v36 = vpop.f32.mrb[56].mxu0 }
 0xba7   :  { %v2291_v63 = vmul.f32 0.25, %v2267_v36  ;;  %v8454_v52 = vpop.f32.mrb[57].mxu0 }
 0xba9   :  { %v2296_v16 = vadd.f32 %v9534_v55, %v2291_v63 }
 0xbaa   :  { %v2272_v43 = vpop.f32.mrb[58].mxu0 }
 0xbab   :  { %v2292_v20 = vmul.f32 0.25, %v2272_v43  ;;  %v8457_v19 = vpop.f32.mrb[59].mxu0  ;;  %v2301_v53 = vsel %vm1040_vm8, %v2296_v16, -inf }
 0xbac   :  { %2302 = vmax.xlane.f32.xlu1 %v2301_v53 }
 0xbad   :  { %v2297_v27 = vadd.f32 %v9535_v8, %v2292_v20 }
 0xbae   :  { %v2277_v60 = vpop.f32.mrb[60].mxu0 }
 0xbaf   :  { %v2293_v44 = vmul.f32 0.25, %v2277_v60  ;;  %v8460_v15 = vpop.f32.mrb[61].mxu0  ;;  %v2304_v42 = vsel %vm1040_vm8, %v2297_v27, -inf }
 0xbb0   :  { %2305 = vmax.xlane.f32.xlu0 %v2304_v42 }
 0xbb1   :  { %v2298_v26 = vadd.f32 %v2293_v44, %v10915_v56 }
 0xbb2   :  { %v2282_v29 = vpop.f32.mrb[62].mxu0 }
 0xbb3   :  { %v2294_v14 = vmul.f32 0.25, %v2282_v29  ;;  %v8463_v54 = vpop.f32.mrb[63].mxu0  ;;  %v2307_v23 = vsel %vm1040_vm8, %v2298_v26, -inf }
 0xbb4   :  { %2308 = vmax.xlane.f32.xlu1 %v2307_v23 }
 0xbb5   :  { %v2299_v59 = vadd.f32 %v2294_v14, %v10919_v12 }
 0xbb6   :  { %v2287_v24 = vpop.f32.mrb[64].mxu0 }
 0xbb7   :  { %v2295_v35 = vmul.f32 0.25, %v2287_v24  ;;  %v8466_v33 = vpop.f32.mrb[65].mxu0  ;;  %v2310_v32 = vsel %vm1040_vm8, %v2299_v59, -inf }
 0xbb8   :  { %2311 = vmax.xlane.f32.xlu1 %v2310_v32 }
 0xbb9   :  { %v2300_v39 = vadd.f32 %v2295_v35, %v10923_v18 }
 0xbbb   :  { %v2313_v51 = vsel %vm1053_vm9, %v2300_v39, -inf }
 0xbbc   :  { %2314 = vmax.xlane.f32.xlu1 %v2313_v51 }
 0xc39   :  { %v2303_v37 = vpop.xlane.xlu1 %2302 }
 0xc3a   :  { %v2316_v11 = vsub.f32 %v2296_v16, %v2303_v37 }
 0xc3c   :  { %v2321_v46 = vmul.f32 1.442695, %v2316_v11 }
 0xc3d   :  { %v2306_v50 = vpop.xlane.xlu0 %2305 }
 0xc3e   :  { %9494 = vpow2.f32 %v2321_v46  ;;  %v2317_v48 = vsub.f32 %v2297_v27, %v2306_v50 }
 0xc40   :  { %v2323_v40 = vmul.f32 1.442695, %v2317_v48 }
 0xc41   :  { %v2309_v61 = vpop.xlane.xlu1 %2308 }
 0xc42   :  { %9496 = vpow2.f32 %v2323_v40  ;;  %v2318_v36 = vsub.f32 %v2298_v26, %v2309_v61 }
 0xc44   :  { %v2325_v63 = vmul.f32 1.442695, %v2318_v36 }
 0xc45   :  { %v2312_v52 = vpop.xlane.xlu1 %2311 }
 0xc46   :  { %9498 = vpow2.f32 %v2325_v63  ;;  %v2319_v55 = vsub.f32 %v2299_v59, %v2312_v52 }
 0xc48   :  { %v11233_v43 = vpop.eup %9494  ;;  %v2327_v20 = vmul.f32 1.442695, %v2319_v55 }
 0xc49   :  { %v2331_v19 = vsel %vm1040_vm8, %v11233_v43, 0.0  ;;  %v2315_v32 = vpop.xlane.xlu1 %2314 }
 0xc4a   :  { %9500 = vpow2.f32 %v2327_v20  ;;  %2332 = vadd.xlane.f32.xlu1 %v2331_v19  ;;  %v2320_v51 = vsub.f32 %v2300_v39, %v2315_v32 }
 0xc4c   :  { %v11237_v16 = vpop.eup %9496  ;;  %v2329_v11 = vmul.f32 1.442695, %v2320_v51 }
 0xc4d   :  { %v2334_v53 = vsel %vm1040_vm8, %v11237_v16, 0.0 }
 0xc4e   :  { %2335 = vadd.xlane.f32.xlu0 %v2334_v53  ;;  %9502 = vpow2.f32 %v2329_v11 }
 0xc50   :  { %v11241_v8 = vpop.eup %9498 }
 0xc51   :  { %v2337_v27 = vsel %vm1040_vm8, %v11241_v8, 0.0 }
 0xc52   :  { %2338 = vadd.xlane.f32.xlu1 %v2337_v27 }
 0xc54   :  { %v11245_v60 = vpop.eup %9500 }
 0xc55   :  { %v2340_v44 = vsel %vm1040_vm8, %v11245_v60, 0.0 }
 0xc56   :  { %2341 = vadd.xlane.f32.xlu0 %v2340_v44 }
 0xc60   :  { %v2132_v15 = vpop.f32.mrb[50].mxu1 }
 0xc61   :  { %v11250_v42 = vadd.f32 %v2132_v15, %v11100_v13  ;;  %v8429_v26 = vpop.f32.mrb[51].mxu1 }
 0xc63   :  { %9420 = vrot.lane.b32.xlu1 %v10820_v58, %s10245_s10 }
 0xc64   :  { %v2137_v29 = vpop.f32.mrb[52].mxu1 }
 0xc65   :  { %v11255_v14 = vadd.f32 %v2137_v29, %v11102_v17  ;;  %v8432_v54 = vpop.f32.mrb[53].mxu1 }
 0xc68   :  { %v2142_v23 = vpop.f32.mrb[54].mxu1 }
 0xc69   :  { %v11258_v59 = vadd.f32 %v2142_v23, %v11104_v22  ;;  %v8435_v24 = vpop.f32.mrb[55].mxu1  ;;  %v9503_v22 = vpop.eup %9502 }
 0xc6a   :  { %v2343_v46 = vsel %vm1053_vm9, %v9503_v22, 0.0 }
 0xc6c   :  { %9415 = vrot.lane.b32.xlu0 %v10805_v45, %s10245_s10  ;;  %v2147_v35 = vpop.f32.mrb[56].mxu1  ;;  %v902_v45 = vld [vmem:[#allocation26 + $0x30] sm:$0xff] }
 0xc6d   :  { %v11263_v13 = vadd.f32 %v2147_v35, %v11106_v30  ;;  %v8438_v33 = vpop.f32.mrb[57].mxu1  ;;  %v903_v30 = vld [vmem:[#allocation26 + $0x38] sm:$0xff] }
 0xc6e   :  { %v9082_v50 = vpack.c.bf16 %v903_v30, %v902_v45  ;;  %v11311_v45 = vsub.s32 2, %v10766_v25 }
 0xc70   :  { %v2152_v58 = vpop.f32.mrb[58].mxu1  ;;  %9083 = vmatpush3.bf16.msra.mxu0 %v9082_v50 }
 0xc71   :  { %v11266_v17 = vadd.f32 %v2152_v58, %v11108_v31  ;;  %v8441_v37 = vpop.f32.mrb[59].mxu1  ;;  %9096 = vmatprep.subr.bf16.mxu0 %v10228_v0 }
 0xc87   :  { %2344 = vadd.xlane.f32.xlu1 %v2343_v46 }
 0xc98   :  { %2364 = vrot.lane.b32.xlu1 %v10829_v62, %s10245_s10 }
 0xcd7   :  { %v2333_v39 = vpop.xlane.xlu1 %2332 }
 0xcd8   :  { %9504 = vrcp.f32 %v2333_v39  ;;  %v11317_v39 = vld [vmem:[%s12470_s22] sm:$0x3f] }
 0xcdb   :  { %v2336_v48 = vpop.xlane.xlu0 %2335 }
 0xcdc   :  { %9506 = vrcp.f32 %v2336_v48  ;;  %v2595_v48 = vrot.slane %v11317_v39, %v11311_v45 }
 0xcdf   :  { %v2339_v31 = vpop.xlane.xlu1 %2338 }
 0xce0   :  { %9508 = vrcp.f32 %v2339_v31 }
 0xce2   :  { %v9505_v27 = vpop.eup %9504 }
 0xce3   :  { %v2342_v40 = vpop.xlane.xlu0 %2341  ;;  %v9421_v61 = vpop.permute.xlu1 %9420  ;;  %v2351_v44 = vmul.f32 %v9505_v27, %v11233_v43 }
 0xce4   :  { %v9423_v55 = vunpack.i.h.bf16 %v9421_v61  ;;  %v9422_v20 = vunpack.i.l.bf16 %v9421_v61  ;;  %9510 = vrcp.f32 %v2342_v40 }
 0xce6   :  { %v9079_v62 = vpack.c.bf16 %v9423_v55, %v9422_v20  ;;  %v9507_v26 = vpop.eup %9506 }
 0xce7   :  { %v9416_v36 = vpop.permute.xlu0 %9415  ;;  %v2352_v29 = vmul.f32 %v9507_v26, %v11237_v16 }
 0xce8   :  { %v9418_v63 = vunpack.i.h.bf16 %v9416_v36  ;;  %v9417_v52 = vunpack.i.l.bf16 %v9416_v36 }
 0xcea   :  { %v9076_v19 = vpack.c.bf16 %v9418_v63, %v9417_v52  ;;  %v9509_v54 = vpop.eup %9508 }
 0xceb   :  { %v2353_v43 = vmul.f32 %v9509_v54, %v11241_v8 }
 0xcec   :  { %9077 = vmatpush3.bf16.msra.mxu1 %v9076_v19 }
 0xced   :  { %9078 = vmatprep.subr.bf16.mxu1 %v10228_v0 }
 0xcee   :  { %v9511_v23 = vpop.eup %9510 }
 0xcef   :  { %v2354_v24 = vmul.f32 %v9511_v23, %v11245_v60 }
 0xcf0   :  { %9080 = vmatpush3.bf16.msra.mxu1 %v9079_v62 }
 0xcf1   :  { %8475 = vmatprep.subr.mxu1 %v10232_v1 }
 0xd14   :  { %v2345_v53 = vpop.xlane.xlu1 %2344 }
 0xd15   :  { %9512 = vrcp.f32 %v2345_v53 }
 0xd18   :  { %v2365_v15 = vpop.permute.xlu1 %2364 }
 0xd19   :  { %8476 = vmatpush3.msk.msra.mxu1 %vm558_vm2, %v2365_v15 }
 0xd1a   :  { %8478 = vmatmul.mubr.msk.f32.vlgmr.msra.gmra.mrb[60].mxu1 %vm1040_vm8, %v2351_v44  ;;  %9084 = vmatprep.subr.bf16.mxu1 %v10228_v0 }
 0xd1b   :  { %8480 = vmatprep.mubr.msk.f32.mxu1 %vm10231_vm0, %v10232_v1 }
 0xd1e   :  { %8481 = vmatmul.mubr.msk.f32.gmra.mrb[62].mxu1 %vm1040_vm8, %v2352_v29 }
 0xd1f   :  { %8483 = vmatprep.mubr.msk.f32.mxu1 %vm10231_vm0, %v10232_v1  ;;  %v9513_v35 = vpop.eup %9512 }
 0xd20   :  { %v2355_v16 = vmul.f32 %v9513_v35, %v9503_v22 }
 0xd22   :  { %8484 = vmatmul.mubr.msk.f32.gmra.mrb[64].mxu1 %vm1040_vm8, %v2353_v43 }
 0xd23   :  { %8486 = vmatprep.mubr.msk.f32.mxu1 %vm10231_vm0, %v10232_v1 }
 0xd26   :  { %8487 = vmatmul.mubr.msk.f32.gmra.mrb[66].mxu1 %vm1040_vm8, %v2354_v24 }
 0xd27   :  { %8489 = vmatprep.mubr.msk.f32.mxu1 %vm10231_vm0, %v10232_v1 }
 0xd2a   :  { %8490 = vmatmul.mubr.msk.f32.gmra.mrb[68].mxu1 %vm1040_vm8, %v2355_v16 }
 0xd2b   :  { %8527 = vmatprep.mubr.msk.f32.mxu1 %vm10231_vm0, %v10232_v1 }
 0xded   :  { %v2453_v8 = vpop.f32.mrb[60].mxu1 }
 0xdee   :  { %v8479_v33 = vpop.f32.mrb[61].mxu1  ;;  %8497 = vmatmul.mubr.msk.f32.vlgmr.msra.gmra.mrb[66].mxu0 %vm919_vm6, %v2453_v8 }
 0xdef   :  { %8499 = vmatprep.mubr.msk.f32.mxu0 %vm10231_vm0, %v10232_v1 }
 0xdf1   :  { %v2458_v60 = vpop.f32.mrb[62].mxu1 }
 0xdf2   :  { %v8482_v32 = vpop.f32.mrb[63].mxu1  ;;  %8500 = vmatmul.mubr.msk.f32.gmra.mrb[68].mxu0 %vm919_vm6, %v2458_v60 }
 0xdf3   :  { %8502 = vmatprep.mubr.msk.f32.mxu0 %vm10231_vm0, %v10232_v1 }
 0xdf5   :  { %v2463_v58 = vpop.f32.mrb[64].mxu1 }
 0xdf6   :  { %v8485_v51 = vpop.f32.mrb[65].mxu1  ;;  %8503 = vmatmul.mubr.msk.f32.gmra.mrb[70].mxu0 %vm919_vm6, %v2463_v58 }
 0xdf7   :  { %8505 = vmatprep.mubr.msk.f32.mxu0 %vm10231_vm0, %v10232_v1 }
 0xdf9   :  { %v2468_v37 = vpop.f32.mrb[66].mxu1 }
 0xdfa   :  { %v8488_v11 = vpop.f32.mrb[67].mxu1  ;;  %8506 = vmatmul.mubr.msk.f32.gmra.mrb[72].mxu0 %vm919_vm6, %v2468_v37  ;;  %v2699_v37 = vld [vmem:[#allocation27] sm:$0xff] }
 0xdfb   :  { %8508 = vmatprep.mubr.msk.f32.mxu0 %vm10231_vm0, %v10232_v1  ;;  %v2700_v11 = vld [vmem:[#allocation27 + $0x8] sm:$0xff] }
 0xdfd   :  { %v2473_v22 = vpop.f32.mrb[68].mxu1 }
 0xdfe   :  { %v8491_v46 = vpop.f32.mrb[69].mxu1  ;;  %8509 = vmatmul.mubr.msk.f32.gmra.mrb[74].mxu0 %vm919_vm6, %v2473_v22  ;;  %v9085_v22 = vpack.c.bf16 %v2700_v11, %v2699_v37 }
 0xdff   :  { %8574 = vmatprep.mubr.msk.f32.mxu0 %vm10231_vm0, %v10232_v1  ;;  %v2701_v46 = vld [vmem:[#allocation27 + $0x10] sm:$0xff] }
 0xe00   :  { %9086 = vmatpush3.bf16.msra.mxu1 %v9085_v22  ;;  %v11390_v22 = vsub.s32 3, %v10766_v25 }
 0xe01   :  { %9087 = vmatprep.subr.bf16.mxu1 %v10228_v0 }
 0xec1   :  { %v2558_v30 = vpop.f32.mrb[66].mxu0 }
 0xec2   :  { %v2582_v50 = vadd.f32 %v2558_v30, %v11250_v42  ;;  %v8498_v31 = vpop.f32.mrb[67].mxu0  ;;  %v2702_v30 = vld [vmem:[#allocation27 + $0x18] sm:$0xff] }
 0xec3   :  { %v2704_v31 = vld [vmem:[#allocation27 + $0x28] sm:$0xff] }
 0xec4   :  { %v2587_v40 = vadd.f32 %v2582_v50, %v10730_v49  ;;  %v9088_v50 = vpack.c.bf16 %v2702_v30, %v2701_v46 }
 0xec5   :  { %v2563_v61 = vpop.f32.mrb[68].mxu0 }
 0xec6   :  { %v11322_v36 = vadd.f32 %v2595_v48, %v2587_v40  ;;  %v2583_v63 = vadd.f32 %v2563_v61, %v11255_v14  ;;  %v8501_v52 = vpop.f32.mrb[69].mxu0  ;;  %9089 = vmatpush3.bf16.msra.mxu1 %v9088_v50  ;;  %v2705_v61 = vld [vmem:[#allocation27 + $0x30] sm:$0xff] }
 0xec7   :  { %9090 = vmatprep.subr.bf16.mxu1 %v10228_v0 }
 0xec8   :  { %v2588_v55 = vadd.f32 %v2583_v63, %v10736_v57  ;;  %v2601_v42 = vsel %vm658_vm4, %v11322_v36, 0.0  ;;  %v2616_v20 = vmul.f32 %v11322_v36, %v11322_v36  ;;  %v2706_v63 = vld [vmem:[#allocation27 + $0x38] sm:$0xff] }
 0xec9   :  { %2602 = vadd.xlane.f32.xlu1 %v2601_v42  ;;  %v2568_v19 = vpop.f32.mrb[70].mxu0  ;;  %v9094_v52 = vpack.c.bf16 %v2706_v63, %v2705_v61  ;;  %v2845_v42 = vld [vmem:[%s12469_s21 + $0x8] sm:$0xff] }
 0xeca   :  { %v11330_v62 = vadd.f32 %v2595_v48, %v2588_v55  ;;  %v2584_v49 = vadd.f32 %v2568_v19, %v11258_v59  ;;  %v8504_v53 = vpop.f32.mrb[71].mxu0  ;;  %v2621_v27 = vsel %vm658_vm4, %v2616_v20, 0.0  ;;  %v2844_v55 = vld [vmem:[%s12469_s21] sm:$0xff]  ;;  %v2846_v20 = vld [vmem:[%s12469_s21 + $0x10] sm:$0xff] }
 0xecb   :  { %2622 = vadd.xlane.f32.xlu0 %v2621_v27  ;;  %v9097_v19 = vpack.c.bf16 %v2845_v42, %v2844_v55  ;;  %v2848_v27 = vld [vmem:[%s12469_s21 + $0x20] sm:$0xff]  ;;  %v2684_v55 = vrot.slane %v11317_v39, %v11390_v22 }
 0xecc   :  { %v2589_v14 = vadd.f32 %v2584_v49, %v10741_v10  ;;  %v2604_v29 = vsel %vm658_vm4, %v11330_v62, 0.0  ;;  %v2617_v54 = vmul.f32 %v11330_v62, %v11330_v62  ;;  %v2847_v49 = vld [vmem:[%s12469_s21 + $0x18] sm:$0xff] }
 0xecd   :  { %v2573_v44 = vpop.f32.mrb[72].mxu0  ;;  %9098 = vmatpush3.bf16.msra.mxu0 %v9097_v19  ;;  %v9100_v53 = vpack.c.bf16 %v2847_v49, %v2846_v20 }
 0xece   :  { %v11335_v57 = vadd.f32 %v2595_v48, %v2589_v14  ;;  %v2585_v15 = vadd.f32 %v2573_v44, %v11263_v13  ;;  %v8507_v26 = vpop.f32.mrb[73].mxu0  ;;  %v2624_v35 = vsel %vm658_vm4, %v2617_v54, 0.0  ;;  %9099 = vmatprep.subr.bf16.mxu0 %v10228_v0  ;;  %v2849_v14 = vld [vmem:[%s12469_s21 + $0x28] sm:$0xff] }
 0xecf   :  { %2605 = vadd.xlane.f32.xlu0 %v2604_v29  ;;  %v9103_v44 = vpack.c.bf16 %v2849_v14, %v2848_v27 }
 0xed0   :  { %v2590_v59 = vadd.f32 %v2585_v15, %v10750_v21  ;;  %v2607_v43 = vsel %vm658_vm4, %v11335_v57, 0.0  ;;  %v2618_v16 = vmul.f32 %v11335_v57, %v11335_v57 }
 0xed1   :  { %2608 = vadd.xlane.f32.xlu1 %v2607_v43  ;;  %v2578_v10 = vpop.f32.mrb[74].mxu0  ;;  %9101 = vmatpush3.bf16.msra.mxu0 %v9100_v53 }
 0xed2   :  { %v11345_v23 = vadd.f32 %v2595_v48, %v2590_v59  ;;  %v2586_v24 = vadd.f32 %v2578_v10, %v11266_v17  ;;  %v8510_v13 = vpop.f32.mrb[75].mxu0  ;;  %v2627_v60 = vsel %vm658_vm4, %v2618_v16, 0.0  ;;  %9102 = vmatprep.subr.bf16.mxu0 %v10228_v0 }
 0xed3   :  { %2625 = vadd.xlane.f32.xlu0 %v2624_v35 }
 0xed4   :  { %v2591_v8 = vadd.f32 %v2586_v24, %v10755_v28  ;;  %v2610_v21 = vsel %vm658_vm4, %v11345_v23, 0.0  ;;  %v2619_v17 = vmul.f32 %v11345_v23, %v11345_v23 }
 0xed5   :  { %2611 = vadd.xlane.f32.xlu1 %v2610_v21  ;;  %9104 = vmatpush3.bf16.msra.mxu0 %v9103_v44 }
 0xed6   :  { %v11354_v33 = vadd.f32 %v2595_v48, %v2591_v8  ;;  %v2630_v58 = vsel %vm658_vm4, %v2619_v17, 0.0  ;;  %v2703_v48 = vld [vmem:[#allocation27 + $0x20] sm:$0xff]  ;;  %9105 = vmatprep.subr.bf16.mxu0 %v10228_v0 }
 0xed7   :  { %2628 = vadd.xlane.f32.xlu0 %v2627_v60  ;;  %v9091_v40 = vpack.c.bf16 %v2704_v31, %v2703_v48 }
 0xed8   :  { %v2613_v32 = vsel %vm671_vm5, %v11354_v33, 0.0  ;;  %v2620_v28 = vmul.f32 %v11354_v33, %v11354_v33 }
 0xed9   :  { %2614 = vadd.xlane.f32.xlu1 %v2613_v32  ;;  %9092 = vmatpush3.bf16.msra.mxu1 %v9091_v40  ;;  %v11393_v40 = vsub.s32 4, %v10766_v25 }
 0xeda   :  { %v2633_v51 = vsel %vm671_vm5, %v2620_v28, 0.0  ;;  %9093 = vmatprep.subr.bf16.mxu1 %v10228_v0 }
 0xedb   :  { %2631 = vadd.xlane.f32.xlu0 %v2630_v58  ;;  %v2693_v44 = vrot.slane %v11317_v39, %v11393_v40 }
 0xedd   :  { %9095 = vmatpush3.bf16.msra.mxu1 %v9094_v52 }
 0xedf   :  { %2634 = vadd.xlane.f32.xlu0 %v2633_v51 }
 0xf56   :  { %v2603_v15 = vpop.xlane.xlu1 %2602 }
 0xf57   :  { %v2636_v26 = vmul.f32 0.015625, %v2603_v15 }
 0xf58   :  { %v2623_v29 = vpop.xlane.xlu0 %2622 }
 0xf59   :  { %v2646_v54 = vmul.f32 %v2636_v26, %v2636_v26  ;;  %v2641_v59 = vmul.f32 0.015625, %v2623_v29  ;;  %v2661_v52 = vsub.f32 %v11322_v36, %v2636_v26 }
 0xf5b   :  { %v2651_v43 = vsub.f32 %v2641_v59, %v2646_v54 }
 0xf5c   :  { %v2606_v10 = vpop.xlane.xlu0 %2605 }
 0xf5d   :  { %v2656_v24 = vmax.f32 %v2651_v43, 0.0  ;;  %v2637_v13 = vmul.f32 0.015625, %v2606_v10 }
 0xf5e   :  { %v2609_v35 = vpop.xlane.xlu1 %2608 }
 0xf5f   :  { %v2666_v16 = vadd.f32 1e-12, %v2656_v24  ;;  %v2647_v21 = vmul.f32 %v2637_v13, %v2637_v13  ;;  %v2638_v60 = vmul.f32 0.015625, %v2609_v35  ;;  %v2662_v35 = vsub.f32 %v11330_v62, %v2637_v13 }
 0xf60   :  { %v2626_v8 = vpop.xlane.xlu0 %2625 }
 0xf61   :  { %9514 = vrsqrt.f32 %v2666_v16  ;;  %v2642_v17 = vmul.f32 0.015625, %v2626_v8  ;;  %v2648_v51 = vmul.f32 %v2638_v60, %v2638_v60 }
 0xf62   :  { %v2612_v32 = vpop.xlane.xlu1 %2611 }
 0xf63   :  { %v2652_v58 = vsub.f32 %v2642_v17, %v2647_v21  ;;  %v2639_v46 = vmul.f32 0.015625, %v2612_v32  ;;  %v2663_v17 = vsub.f32 %v11335_v57, %v2638_v60 }
 0xf64   :  { %v2629_v28 = vpop.xlane.xlu0 %2628 }
 0xf65   :  { %v2657_v37 = vmax.f32 %v2652_v58, 0.0  ;;  %v2643_v11 = vmul.f32 0.015625, %v2629_v28  ;;  %v2649_v42 = vmul.f32 %v2639_v46, %v2639_v46  ;;  %v2664_v13 = vsub.f32 %v11345_v23, %v2639_v46 }
 0xf66   :  { %v2615_v30 = vpop.xlane.xlu1 %2614 }
 0xf67   :  { %v2667_v50 = vadd.f32 1e-12, %v2657_v37  ;;  %v2653_v48 = vsub.f32 %v2643_v11, %v2648_v51  ;;  %v2640_v63 = vmul.f32 0.015625, %v2615_v30 }
 0xf68   :  { %v2632_v31 = vpop.xlane.xlu0 %2631 }
 0xf69   :  { %9516 = vrsqrt.f32 %v2667_v50  ;;  %v2658_v61 = vmax.f32 %v2653_v48, 0.0  ;;  %v2644_v20 = vmul.f32 0.015625, %v2632_v31  ;;  %v2650_v15 = vmul.f32 %v2640_v63, %v2640_v63 }
 0xf6a   :  { %v2665_v48 = vsub.f32 %v11354_v33, %v2640_v63  ;;  %v2850_v63 = vld [vmem:[%s12469_s21 + $0x30] sm:$0xff] }
 0xf6b   :  { %v9515_v19 = vpop.eup %9514  ;;  %v2668_v49 = vadd.f32 1e-12, %v2658_v61  ;;  %v2654_v27 = vsub.f32 %v2644_v20, %v2649_v42  ;;  %v2851_v20 = vld [vmem:[%s12469_s21 + $0x38] sm:$0xff] }
 0xf6c   :  { %v2676_v53 = vmul.f32 %v9515_v19, %v2661_v52  ;;  %v2635_v14 = vpop.xlane.xlu0 %2634  ;;  %v9106_v19 = vpack.c.bf16 %v2851_v20, %v2850_v63 }
 0xf6d   :  { %9518 = vrsqrt.f32 %v2668_v49  ;;  %v2645_v29 = vmul.f32 0.015625, %v2635_v14  ;;  %v2659_v59 = vmax.f32 %v2654_v27, 0.0  ;;  %v2853_v49 = vld [vmem:[%s12469_s21 + $0x48] sm:$0xff]  ;;  %v2854_v27 = vld [vmem:[%s12469_s21 + $0x50] sm:$0xff]  ;;  %v2855_v14 = vld [vmem:[%s12469_s21 + $0x58] sm:$0xff] }
 0xf6e   :  { %v2685_v54 = vmul.f32 %v2684_v55, %v2676_v53  ;;  %9107 = vmatpush3.bf16.msra.mxu0 %v9106_v19 }
 0xf6f   :  { %v2655_v43 = vsub.f32 %v2645_v29, %v2650_v15  ;;  %v2669_v26 = vadd.f32 1e-12, %v2659_v59  ;;  %9108 = vmatprep.subr.bf16.mxu0 %v10228_v0  ;;  %v2856_v15 = vld [vmem:[%s12469_s21 + $0x60] sm:$0xff]  ;;  %v2857_v29 = vld [vmem:[%s12469_s21 + $0x68] sm:$0xff]  ;;  %v2858_v59 = vld [vmem:[%s12469_s21 + $0x70] sm:$0xff] }
 0xf70   :  { %v2694_v10 = vadd.f32 %v2693_v44, %v2685_v54  ;;  %v9115_v54 = vpack.c.bf16 %v2857_v29, %v2856_v15 }
 0xf71   :  { %v2660_v24 = vmax.f32 %v2655_v43, 0.0  ;;  %9520 = vrsqrt.f32 %v2669_v26  ;;  %v2859_v43 = vld [vmem:[%s12469_s21 + $0x78] sm:$0xff] }
 0xf72   :  { %8528 = vmatmul.mubr.msk.f32.vlgmr.msra.gmra.mrb[70].mxu1 %vm658_vm4, %v2694_v10  ;;  %v9118_v26 = vpack.c.bf16 %v2859_v43, %v2858_v59  ;;  %v7648_v10 = vld [vmem:[#allocation29] ss:$0 sm:$0xff] }
 0xf73   :  { %v9517_v16 = vpop.eup %9516  ;;  %v2670_v8 = vadd.f32 1e-12, %v2660_v24  ;;  %8530 = vmatprep.mubr.msk.f32.mxu1 %vm10231_vm0, %v10232_v1 }
 0xf74   :  { %v2677_v21 = vmul.f32 %v9517_v16, %v2662_v35 }
 0xf75   :  { %9522 = vrsqrt.f32 %v2670_v8 }
 0xf76   :  { %v2686_v32 = vmul.f32 %v2684_v55, %v2677_v21 }
 0xf77   :  { %v9519_v58 = vpop.eup %9518 }
 0xf78   :  { %v2695_v28 = vadd.f32 %v2693_v44, %v2686_v32  ;;  %v2678_v51 = vmul.f32 %v9519_v58, %v2663_v17 }
 0xf7a   :  { %8531 = vmatmul.mubr.msk.f32.gmra.mrb[72].mxu1 %vm658_vm4, %v2695_v28  ;;  %v2687_v37 = vmul.f32 %v2684_v55, %v2678_v51 }
 0xf7b   :  { %8533 = vmatprep.mubr.msk.f32.mxu1 %vm10231_vm0, %v10232_v1  ;;  %v9521_v11 = vpop.eup %9520 }
 0xf7c   :  { %v2696_v30 = vadd.f32 %v2693_v44, %v2687_v37  ;;  %v2679_v50 = vmul.f32 %v9521_v11, %v2664_v13 }
 0xf7e   :  { %8534 = vmatmul.mubr.msk.f32.gmra.mrb[74].mxu1 %vm658_vm4, %v2696_v30  ;;  %v2688_v31 = vmul.f32 %v2684_v55, %v2679_v50 }
 0xf7f   :  { %v9523_v60 = vpop.eup %9522  ;;  %8536 = vmatprep.mubr.msk.f32.mxu1 %vm10231_vm0, %v10232_v1 }
 0xf80   :  { %v2680_v61 = vmul.f32 %v9523_v60, %v2665_v48  ;;  %v2697_v52 = vadd.f32 %v2693_v44, %v2688_v31 }
 0xf82   :  { %v2689_v42 = vmul.f32 %v2684_v55, %v2680_v61  ;;  %8537 = vmatmul.mubr.msk.f32.gmra.mrb[76].mxu1 %vm658_vm4, %v2697_v52  ;;  %v2852_v55 = vld [vmem:[%s12469_s21 + $0x40] sm:$0xff] }
 0xf83   :  { %8539 = vmatprep.mubr.msk.f32.mxu1 %vm10231_vm0, %v10232_v1  ;;  %v9109_v53 = vpack.c.bf16 %v2853_v49, %v2852_v55 }
 0xf84   :  { %v2698_v46 = vadd.f32 %v2693_v44, %v2689_v42  ;;  %v9112_v44 = vpack.c.bf16 %v2855_v14, %v2854_v27 }
 0xf85   :  { %9110 = vmatpush3.bf16.msra.mxu0 %v9109_v53 }
 0xf86   :  { %8540 = vmatmul.mubr.msk.f32.gmra.mrb[78].mxu1 %vm658_vm4, %v2698_v46  ;;  %9111 = vmatprep.subr.bf16.mxu0 %v10228_v0 }
 0xf89   :  { %9113 = vmatpush3.bf16.msra.mxu0 %v9112_v44 }
 0xf8a   :  { %9114 = vmatprep.subr.bf16.mxu0 %v10228_v0 }
 0xf8d   :  { %9116 = vmatpush3.bf16.msra.mxu0 %v9115_v54 }
 0xf8e   :  { %9117 = vmatprep.subr.bf16.mxu0 %v10228_v0 }
 0xf91   :  { %9119 = vmatpush3.bf16.msra.mxu0 %v9118_v26 }
0x1045   :  { %v2795_v24 = vpop.f32.mrb[70].mxu1 }
0x1046   :  { %v2796_v35 = vadd.f32 %v7648_v10, %v2795_v24  ;;  %v8529_v16 = vpop.f32.mrb[71].mxu1 }
0x1048   :  { %v2824_v8 = vmul.f32 0.70710677, %v2796_v35  ;;  %v2819_v30 = vmul.f32 0.5, %v2796_v35 }
0x104a   :  { %9524 = verf.f32 %v2824_v8 }
0x104d   :  { %v2800_v21 = vpop.f32.mrb[72].mxu1 }
0x104e   :  { %v2801_v17 = vadd.f32 %v7648_v10, %v2800_v21  ;;  %v8532_v32 = vpop.f32.mrb[73].mxu1 }
0x1050   :  { %v2825_v58 = vmul.f32 0.70710677, %v2801_v17  ;;  %v2820_v19 = vmul.f32 0.5, %v2801_v17 }
0x1051   :  { %v2805_v28 = vpop.f32.mrb[74].mxu1 }
0x1052   :  { %9526 = verf.f32 %v2825_v58  ;;  %v2806_v51 = vadd.f32 %v7648_v10, %v2805_v28  ;;  %v8535_v37 = vpop.f32.mrb[75].mxu1 }
0x1054   :  { %v9525_v13 = vpop.eup %9524  ;;  %v2826_v11 = vmul.f32 0.70710677, %v2806_v51  ;;  %v2821_v14 = vmul.f32 0.5, %v2806_v51 }
0x1055   :  { %v2834_v50 = vadd.f32 1.0, %v9525_v13  ;;  %v2810_v48 = vpop.f32.mrb[76].mxu1 }
0x1056   :  { %9528 = verf.f32 %v2826_v11  ;;  %v2811_v31 = vadd.f32 %v7648_v10, %v2810_v48  ;;  %v8538_v61 = vpop.f32.mrb[77].mxu1 }
0x1057   :  { %v2839_v60 = vmul.f32 %v2834_v50, %v2819_v30 }
0x1058   :  { %v2827_v52 = vmul.f32 0.70710677, %v2811_v31  ;;  %v2822_v54 = vmul.f32 0.5, %v2811_v31 }
0x1059   :  { %8575 = vmatmul.mubr.f32.vlgmr.msra.gmra.mrb[76].mxu0 %v2839_v60  ;;  %v2815_v42 = vpop.f32.mrb[78].mxu1 }
0x105a   :  { %8577 = vmatprep.mubr.msk.f32.mxu0 %vm10231_vm0, %v10232_v1  ;;  %9530 = verf.f32 %v2827_v52  ;;  %v2816_v46 = vadd.f32 %v7648_v10, %v2815_v42  ;;  %v8541_v63 = vpop.f32.mrb[79].mxu1 }
0x105c   :  { %v9527_v20 = vpop.eup %9526  ;;  %v2828_v49 = vmul.f32 0.70710677, %v2816_v46  ;;  %v2823_v10 = vmul.f32 0.5, %v2816_v46 }
0x105d   :  { %v2835_v55 = vadd.f32 1.0, %v9527_v20 }
0x105e   :  { %9532 = verf.f32 %v2828_v49 }
0x105f   :  { %v2840_v53 = vmul.f32 %v2835_v55, %v2820_v19 }
0x1060   :  { %v9529_v27 = vpop.eup %9528 }
0x1061   :  { %v2836_v44 = vadd.f32 1.0, %v9529_v27  ;;  %8578 = vmatmul.mubr.f32.gmra.mrb[78].mxu0 %v2840_v53 }
0x1062   :  { %8580 = vmatprep.mubr.msk.f32.mxu0 %vm10231_vm0, %v10232_v1 }
0x1063   :  { %v2841_v15 = vmul.f32 %v2836_v44, %v2821_v14 }
0x1064   :  { %v9531_v29 = vpop.eup %9530 }
0x1065   :  { %8581 = vmatmul.mubr.f32.gmra.mrb[80].mxu0 %v2841_v15  ;;  %v2837_v59 = vadd.f32 1.0, %v9531_v29 }
0x1066   :  { %8583 = vmatprep.mubr.msk.f32.mxu0 %vm10231_vm0, %v10232_v1 }
0x1067   :  { %v2842_v43 = vmul.f32 %v2837_v59, %v2822_v54 }
0x1068   :  { %v9533_v26 = vpop.eup %9532 }
0x1069   :  { %v2838_v24 = vadd.f32 1.0, %v9533_v26  ;;  %8584 = vmatmul.mubr.f32.gmra.mrb[82].mxu0 %v2842_v43 }
0x106a   :  { %8586 = vmatprep.mubr.msk.f32.mxu0 %vm10231_vm0, %v10232_v1 }
0x106b   :  { %v2843_v35 = vmul.f32 %v2838_v24, %v2823_v10 }
0x106d   :  { %8587 = vmatmul.mubr.f32.gmra.mrb[84].mxu0 %v2843_v35 }
0x106e   :  { %10143 = shalt.err (!%p10140_p12)  }
0x106f   :  { %s10144_s24 = scalar_lea.vmem %s372_s12, 8192  ;;  %p10149_p0 = scmp.lt.s32.totalorder %s372_s12, %s372_s12 }
0x1070   :  { %p10145_p13 = scmp.ne.s32.totalorder %s372_s12, %s10144_s24  ;;  %p10150_p1 = scmp.lt.s32.totalorder %s10144_s24, %s10144_s24 }
0x1072   :  { %p10151_p2 = por %p10150_p1, %p10149_p0 }
0x1074   :  { %p10152_p3 = pnand %p10151_p2, %p10145_p13 }
0x1076   :  { %10155 = shalt.err (!%p10152_p3)  }
0x1077   :  { %374 = dma.hbm_to_vmem [thread:$0]  %s12462_s14, 8192, %s372_s12, [#allocation5 + $0x2]  ;;  %v11472_v16 = vsub.s32 5, %v10766_v25 }
0x1079   :  { %v2863_v8 = vrot.slane %v11317_v39, %v11472_v16 }
0x112c   :  { %v2930_v21 = vpop.f32.mrb[76].mxu0 }
0x112d   :  { %v11476_v17 = vadd.f32 %v2930_v21, %v2863_v8  ;;  %v8576_v32 = vpop.f32.mrb[77].mxu0 }
0x1134   :  { %v2935_v58 = vpop.f32.mrb[78].mxu0 }
0x1135   :  { %v11478_v28 = vadd.f32 %v2935_v58, %v2863_v8  ;;  %v8579_v51 = vpop.f32.mrb[79].mxu0 }
0x1138   :  { %v2940_v37 = vpop.f32.mrb[80].mxu0 }
0x1139   :  { %v11480_v13 = vadd.f32 %v2940_v37, %v2863_v8  ;;  %v8582_v11 = vpop.f32.mrb[81].mxu0 }
0x113c   :  { %v2945_v30 = vpop.f32.mrb[82].mxu0 }
0x113d   :  { %v11482_v50 = vadd.f32 %v2945_v30, %v2863_v8  ;;  %v8585_v48 = vpop.f32.mrb[83].mxu0 }
0x1140   :  { %v2950_v60 = vpop.f32.mrb[84].mxu0 }
0x1141   :  { %v11484_v31 = vadd.f32 %v2950_v60, %v2863_v8  ;;  %v8588_v39 = vpop.f32.mrb[85].mxu0 }
0x1142   :  { %10196 = dma.done.wait [#allocation5], 16384 }
0x1143   :  { %10197 = vsyncadd [#allocation5], 4294950912 }
0x1144   :  { %10198 = dma.done.wait [#allocation5 + $0x1], 65536 }
0x1145   :  { %10199 = vsyncadd [#allocation5 + $0x1], 4294901760 }
0x1146   :  { %10200 = dma.done.wait [#allocation5 + $0x2], 8192 }
0x1147   :  { %10201 = vsyncadd [#allocation5 + $0x2], 4294959104  ;;  %v2980_v61 = vld [vmem:[#allocation2 + $0x8] sm:$0xff]  ;;  %v2979_v52 = vld [vmem:[#allocation2] sm:$0xff]  ;;  %vm4826_vm10 = vcmask 15360   ;;  %s12513_s9 = sld [smem:[#allocation66_spill]] }
0x1148   :  { %v2988_v42 = vld [vmem:[#allocation2 + $0x48] sm:$0xff]  ;;  %3149 = vmatprep.subr.bf16.mxu1 %v2980_v61  ;;  %v2987_v46 = vld [vmem:[#allocation2 + $0x40] sm:$0xff]  ;;  %v2982_v20 = vld [vmem:[#allocation2 + $0x18] sm:$0xff]  ;;  %vm7492_vm11 = vcmask 392192   ;;  %s10247_s2 = smov [#allocation33]   ;;  %vm7497_vm12 = vcmask 386048  }
0x1149   :  { %3150 = vmatpush1.bf16.msra.mxu1 %v2979_v52  ;;  %v2996_v63 = vld [vmem:[#allocation2 + $0x88] sm:$0xff]  ;;  %v2995_v19 = vld [vmem:[#allocation2 + $0x80] sm:$0xff]  ;;  %3190 = vmatprep.subr.bf16.mxu0 %v2982_v20  ;;  %v2981_v55 = vld [vmem:[#allocation2 + $0x10] sm:$0xff]  ;;  %s7504_s24 = sshll.u32 %s10247_s2, 4  ;;  %s7505_s24 = int_to_ptr.vmem [resolvable:$true] %s7504_s24 }
0x114a   :  { %3151 = vmatprep.subr.bf16.mxu1 %v2988_v42  ;;  %v3004_v49 = vld [vmem:[#allocation2 + $0xc8] sm:$0xff]  ;;  %3191 = vmatpush1.bf16.msra.mxu0 %v2981_v55  ;;  %v2990_v53 = vld [vmem:[#allocation2 + $0x58] sm:$0xff]  ;;  %v2989_v27 = vld [vmem:[#allocation2 + $0x50] sm:$0xff]  ;;  %s10156_s20 = scalar_lea.vmem %s7505_s24, 640  ;;  %p10161_p5 = scmp.lt.s32.totalorder %s7505_s24, %s7505_s24 }
0x114b   :  { %3192 = vmatprep.subr.bf16.mxu0 %v2990_v53  ;;  %v2998_v14 = vld [vmem:[#allocation2 + $0x98] sm:$0xff]  ;;  %v3003_v44 = vld [vmem:[#allocation2 + $0xc0] sm:$0xff]  ;;  %v3012_v15 = vld [vmem:[#allocation2 + $0x108] sm:$0xff]  ;;  %p10157_p4 = scmp.ne.s32.totalorder %s7505_s24, %s10156_s20  ;;  %p10162_p6 = scmp.lt.s32.totalorder %s10156_s20, %s10156_s20 }
0x114c   :  { %v2997_v29 = vld [vmem:[#allocation2 + $0x90] sm:$0xff]  ;;  %v3006_v54 = vld [vmem:[#allocation2 + $0xd8] sm:$0xff]  ;;  %v3011_v59 = vld [vmem:[#allocation2 + $0x100] sm:$0xff] }
0x114d   :  { %3152 = vmatpush1.bf16.msra.mxu1 %v2987_v46  ;;  %v11486_v43 = vld.sshfl [vmem:[#allocation9] sm:$0x33 pattern:$0x76325410]  ;;  %v3020_v26 = vld [vmem:[#allocation2 + $0x148] sm:$0xff]  ;;  %v3005_v24 = vld [vmem:[#allocation2 + $0xd0] sm:$0xff]  ;;  %p10163_p7 = por %p10162_p6, %p10161_p5 }
0x114e   :  { %3153 = vmatprep.subr.bf16.mxu1 %v2996_v63  ;;  %3193 = vmatpush1.bf16.msra.mxu0 %v2989_v27  ;;  %v2974_v10 = vcombine.high %v11486_v43, %v11486_v43  ;;  %v3014_v35 = vld [vmem:[#allocation2 + $0x118] sm:$0xff]  ;;  %v3019_v21 = vld [vmem:[#allocation2 + $0x140] sm:$0xff]  ;;  %v3028_v32 = vld [vmem:[#allocation2 + $0x188] sm:$0xff] }
0x114f   :  { %3194 = vmatprep.subr.bf16.mxu0 %v2998_v14  ;;  %v3013_v58 = vld [vmem:[#allocation2 + $0x110] sm:$0xff]  ;;  %v3022_v51 = vld [vmem:[#allocation2 + $0x158] sm:$0xff]  ;;  %v3027_v37 = vld [vmem:[#allocation2 + $0x180] sm:$0xff]  ;;  %p10164_p8 = pnand %p10163_p7, %p10157_p4 }
0x1150   :  { %v11490_v8 = vpack.c.bf16 %v2974_v10, %v2974_v10  ;;  %v3036_v11 = vld [vmem:[#allocation2 + $0x1c8] sm:$0xff]  ;;  %v3021_v30 = vld [vmem:[#allocation2 + $0x150] sm:$0xff]  ;;  %v3030_v48 = vld [vmem:[#allocation2 + $0x198] sm:$0xff] }
0x1151   :  { %3154 = vmatpush1.bf16.msra.mxu1 %v2995_v19  ;;  %v3035_v60 = vld [vmem:[#allocation2 + $0x1c0] sm:$0xff]  ;;  %v3044_v39 = vld [vmem:[#allocation2 + $0x208] sm:$0xff]  ;;  %v3029_v61 = vld [vmem:[#allocation2 + $0x190] sm:$0xff] }
0x1152   :  { %3155 = vmatprep.subr.bf16.mxu1 %v3004_v49  ;;  %3195 = vmatpush1.bf16.msra.mxu0 %v2997_v29  ;;  %v3038_v52 = vld [vmem:[#allocation2 + $0x1d8] sm:$0xff]  ;;  %v3043_v42 = vld [vmem:[#allocation2 + $0x200] sm:$0xff]  ;;  %v3052_v46 = vld [vmem:[#allocation2 + $0x248] sm:$0xff] }
0x1153   :  { %3196 = vmatprep.subr.bf16.mxu0 %v3006_v54  ;;  %3181 = vmatprep.mubr.bf16.mxu1 %v11490_v8  ;;  %v3037_v63 = vld [vmem:[#allocation2 + $0x1d0] sm:$0xff]  ;;  %v3046_v20 = vld [vmem:[#allocation2 + $0x218] sm:$0xff]  ;;  %v3051_v19 = vld [vmem:[#allocation2 + $0x240] sm:$0xff] }
0x1154   :  { %3222 = vmatprep.mubr.bf16.mxu0 %v11490_v8  ;;  %v3060_v55 = vld [vmem:[#allocation2 + $0x288] sm:$0xff]  ;;  %v3045_v49 = vld [vmem:[#allocation2 + $0x210] sm:$0xff]  ;;  %v3054_v53 = vld [vmem:[#allocation2 + $0x258] sm:$0xff] }
0x1155   :  { %3156 = vmatpush1.bf16.msra.mxu1 %v3003_v44  ;;  %v3059_v27 = vld [vmem:[#allocation2 + $0x280] sm:$0xff]  ;;  %v3068_v14 = vld [vmem:[#allocation2 + $0x2c8] sm:$0xff]  ;;  %v3053_v44 = vld [vmem:[#allocation2 + $0x250] sm:$0xff] }
0x1156   :  { %3157 = vmatprep.subr.bf16.mxu1 %v3012_v15  ;;  %3197 = vmatpush1.bf16.msra.mxu0 %v3005_v24  ;;  %v3062_v15 = vld [vmem:[#allocation2 + $0x298] sm:$0xff]  ;;  %v3067_v29 = vld [vmem:[#allocation2 + $0x2c0] sm:$0xff]  ;;  %v3076_v54 = vld [vmem:[#allocation2 + $0x308] sm:$0xff] }
0x1157   :  { %3198 = vmatprep.subr.bf16.mxu0 %v3014_v35  ;;  %v3075_v10 = vld [vmem:[#allocation2 + $0x300] sm:$0xff]  ;;  %v3084_v24 = vld [vmem:[#allocation2 + $0x348] sm:$0xff]  ;;  %v3069_v35 = vld [vmem:[#allocation2 + $0x2d0] sm:$0xff] }
0x1159   :  { %3158 = vmatpush1.bf16.msra.mxu1 %v3011_v59  ;;  %v3061_v59 = vld [vmem:[#allocation2 + $0x290] sm:$0xff] }
0x115a   :  { %3159 = vmatprep.subr.bf16.mxu1 %v3020_v26  ;;  %3199 = vmatpush1.bf16.msra.mxu0 %v3013_v58  ;;  %v3070_v26 = vld [vmem:[#allocation2 + $0x2d8] sm:$0xff]  ;;  %v3092_v58 = vld [vmem:[#allocation2 + $0x388] sm:$0xff] }
0x115b   :  { %3200 = vmatprep.subr.bf16.mxu0 %v3022_v51  ;;  %v3077_v51 = vld [vmem:[#allocation2 + $0x310] sm:$0xff] }
0x115d   :  { %3160 = vmatpush1.bf16.msra.mxu1 %v3019_v21  ;;  %v3078_v21 = vld [vmem:[#allocation2 + $0x318] sm:$0xff] }
0x115e   :  { %3161 = vmatprep.subr.bf16.mxu1 %v3028_v32  ;;  %3201 = vmatpush1.bf16.msra.mxu0 %v3021_v30  ;;  %v3083_v32 = vld [vmem:[#allocation2 + $0x340] sm:$0xff]  ;;  %v3100_v30 = vld [vmem:[#allocation2 + $0x3c8] sm:$0xff] }
0x115f   :  { %3202 = vmatprep.subr.bf16.mxu0 %v3030_v48  ;;  %v3085_v48 = vld [vmem:[#allocation2 + $0x350] sm:$0xff] }
0x1161   :  { %3162 = vmatpush1.bf16.msra.mxu1 %v3027_v37  ;;  %v3086_v37 = vld [vmem:[#allocation2 + $0x358] sm:$0xff] }
0x1162   :  { %3163 = vmatprep.subr.bf16.mxu1 %v3036_v11  ;;  %3203 = vmatpush1.bf16.msra.mxu0 %v3029_v61  ;;  %v3091_v11 = vld [vmem:[#allocation2 + $0x380] sm:$0xff]  ;;  %v2984_v61 = vld [vmem:[#allocation2 + $0x28] sm:$0xff] }
0x1163   :  { %3204 = vmatprep.subr.bf16.mxu0 %v3038_v52  ;;  %v11496_v52 = vpack.c.bf16 %v11486_v43, %v11486_v43  ;;  %v3000_v43 = vld [vmem:[#allocation2 + $0xa8] sm:$0xff] }
0x1165   :  { %3164 = vmatpush1.bf16.msra.mxu1 %v3035_v60  ;;  %v3094_v60 = vld [vmem:[#allocation2 + $0x398] sm:$0xff] }
0x1166   :  { %3165 = vmatprep.subr.bf16.mxu1 %v3044_v39  ;;  %3205 = vmatpush1.bf16.msra.mxu0 %v3037_v63  ;;  %v3099_v39 = vld [vmem:[#allocation2 + $0x3c0] sm:$0xff] }
0x1167   :  { %3206 = vmatprep.subr.bf16.mxu0 %v3046_v20  ;;  %v2983_v63 = vld [vmem:[#allocation2 + $0x20] sm:$0xff]  ;;  %v2992_v20 = vld [vmem:[#allocation2 + $0x68] sm:$0xff] }
0x1169   :  { %3166 = vmatpush1.bf16.msra.mxu1 %v3043_v42  ;;  %v3093_v42 = vld [vmem:[#allocation2 + $0x390] sm:$0xff] }
0x116a   :  { %3167 = vmatprep.subr.bf16.mxu1 %v3052_v46  ;;  %3207 = vmatpush1.bf16.msra.mxu0 %v3045_v49  ;;  %v3102_v46 = vld [vmem:[#allocation2 + $0x3d8] sm:$0xff]  ;;  %v2991_v49 = vld [vmem:[#allocation2 + $0x60] sm:$0xff] }
0x116b   :  { %3208 = vmatprep.subr.bf16.mxu0 %v3054_v53  ;;  %v2985_v53 = vld [vmem:[#allocation2 + $0x30] sm:$0xff] }
0x116d   :  { %3168 = vmatpush1.bf16.msra.mxu1 %v3051_v19  ;;  %v3101_v19 = vld [vmem:[#allocation2 + $0x3d0] sm:$0xff] }
0x116e   :  { %3169 = vmatprep.subr.bf16.mxu1 %v3060_v55  ;;  %3209 = vmatpush1.bf16.msra.mxu0 %v3053_v44  ;;  %v2986_v55 = vld [vmem:[#allocation2 + $0x38] sm:$0xff]  ;;  %v3008_v44 = vld [vmem:[#allocation2 + $0xe8] sm:$0xff] }
0x116f   :  { %3210 = vmatprep.subr.bf16.mxu0 %v3062_v15  ;;  %v2993_v15 = vld [vmem:[#allocation2 + $0x70] sm:$0xff] }
0x1171   :  { %3170 = vmatpush1.bf16.msra.mxu1 %v3059_v27  ;;  %v2994_v27 = vld [vmem:[#allocation2 + $0x78] sm:$0xff] }
0x1172   :  { %3171 = vmatprep.subr.bf16.mxu1 %v3068_v14  ;;  %3211 = vmatpush1.bf16.msra.mxu0 %v3061_v59  ;;  %v2999_v14 = vld [vmem:[#allocation2 + $0xa0] sm:$0xff]  ;;  %v3016_v59 = vld [vmem:[#allocation2 + $0x128] sm:$0xff] }
0x1173   :  { %3212 = vmatprep.subr.bf16.mxu0 %v3070_v26  ;;  %v3001_v26 = vld [vmem:[#allocation2 + $0xb0] sm:$0xff] }
0x1175   :  { %3172 = vmatpush1.bf16.msra.mxu1 %v3067_v29  ;;  %v3002_v29 = vld [vmem:[#allocation2 + $0xb8] sm:$0xff] }
0x1176   :  { %3173 = vmatprep.subr.bf16.mxu1 %v3076_v54  ;;  %3213 = vmatpush1.bf16.msra.mxu0 %v3069_v35  ;;  %v3007_v54 = vld [vmem:[#allocation2 + $0xe0] sm:$0xff]  ;;  %v3024_v35 = vld [vmem:[#allocation2 + $0x168] sm:$0xff] }
0x1177   :  { %3214 = vmatprep.subr.bf16.mxu0 %v3078_v21  ;;  %v3009_v21 = vld [vmem:[#allocation2 + $0xf0] sm:$0xff] }
0x1179   :  { %3174 = vmatpush1.bf16.msra.mxu1 %v3075_v10  ;;  %v3010_v10 = vld [vmem:[#allocation2 + $0xf8] sm:$0xff] }
0x117a   :  { %3175 = vmatprep.subr.bf16.mxu1 %v3084_v24  ;;  %3215 = vmatpush1.bf16.msra.mxu0 %v3077_v51  ;;  %v3015_v24 = vld [vmem:[#allocation2 + $0x120] sm:$0xff]  ;;  %v3017_v51 = vld [vmem:[#allocation2 + $0x130] sm:$0xff] }
0x117b   :  { %3216 = vmatprep.subr.bf16.mxu0 %v3086_v37  ;;  %v3026_v37 = vld [vmem:[#allocation2 + $0x178] sm:$0xff] }
0x117d   :  { %3176 = vmatpush1.bf16.msra.mxu1 %v3083_v32  ;;  %v3023_v32 = vld [vmem:[#allocation2 + $0x160] sm:$0xff] }
0x117e   :  { %3177 = vmatprep.subr.bf16.mxu1 %v3092_v58  ;;  %3217 = vmatpush1.bf16.msra.mxu0 %v3085_v48  ;;  %v3032_v58 = vld [vmem:[#allocation2 + $0x1a8] sm:$0xff]  ;;  %v3025_v48 = vld [vmem:[#allocation2 + $0x170] sm:$0xff] }
0x117f   :  { %3218 = vmatprep.subr.bf16.mxu0 %v3094_v60  ;;  %v3034_v60 = vld [vmem:[#allocation2 + $0x1b8] sm:$0xff] }
0x1181   :  { %3178 = vmatpush1.bf16.msra.mxu1 %v3091_v11  ;;  %v3031_v11 = vld [vmem:[#allocation2 + $0x1a0] sm:$0xff] }
0x1182   :  { %3179 = vmatprep.subr.bf16.mxu1 %v3100_v30  ;;  %3219 = vmatpush1.bf16.msra.mxu0 %v3093_v42  ;;  %v3040_v30 = vld [vmem:[#allocation2 + $0x1e8] sm:$0xff]  ;;  %v3033_v42 = vld [vmem:[#allocation2 + $0x1b0] sm:$0xff] }
0x1183   :  { %3220 = vmatprep.subr.bf16.mxu0 %v3102_v46  ;;  %v3042_v46 = vld [vmem:[#allocation2 + $0x1f8] sm:$0xff] }
0x1185   :  { %3180 = vmatpush1.bf16.msra.mxu1 %v3099_v39  ;;  %v3039_v39 = vld [vmem:[#allocation2 + $0x1e0] sm:$0xff] }
0x1186   :  { %3231 = vmatprep.subr.bf16.mxu1 %v2984_v61  ;;  %3221 = vmatpush1.bf16.msra.mxu0 %v3101_v19  ;;  %v3048_v61 = vld [vmem:[#allocation2 + $0x228] sm:$0xff]  ;;  %v3041_v19 = vld [vmem:[#allocation2 + $0x1f0] sm:$0xff] }
0x1187   :  { %3272 = vmatprep.subr.bf16.mxu0 %v2986_v55  ;;  %v3050_v55 = vld [vmem:[#allocation2 + $0x238] sm:$0xff] }
0x1188   :  { %3182 = vmatmul.mubr.bf16.vlgmr.msra.gmra.mrb[80].mxu1 %v11496_v52 }
0x1189   :  { %3232 = vmatpush1.bf16.msra.mxu1 %v2983_v63  ;;  %3263 = vmatprep.mubr.bf16.mxu1 %v11490_v8  ;;  %v3047_v63 = vld [vmem:[#allocation2 + $0x220] sm:$0xff] }
0x118a   :  { %3233 = vmatprep.subr.bf16.mxu1 %v2992_v20  ;;  %3223 = vmatmul.mubr.bf16.vlgmr.msra.gmra.mrb[88].mxu0 %v11496_v52  ;;  %v3056_v20 = vld [vmem:[#allocation2 + $0x268] sm:$0xff] }
0x118b   :  { %3273 = vmatpush1.bf16.msra.mxu0 %v2985_v53  ;;  %3304 = vmatprep.mubr.bf16.mxu0 %v11490_v8  ;;  %v3018_v8 = vld [vmem:[#allocation2 + $0x138] sm:$0xff]  ;;  %v3049_v53 = vld [vmem:[#allocation2 + $0x230] sm:$0xff] }
0x118c   :  { %3274 = vmatprep.subr.bf16.mxu0 %v2994_v27  ;;  %v3058_v27 = vld [vmem:[#allocation2 + $0x278] sm:$0xff] }
0x118d   :  { %3234 = vmatpush1.bf16.msra.mxu1 %v2991_v49  ;;  %v3055_v49 = vld [vmem:[#allocation2 + $0x260] sm:$0xff] }
0x118e   :  { %3235 = vmatprep.subr.bf16.mxu1 %v3000_v43  ;;  %v3064_v43 = vld [vmem:[#allocation2 + $0x2a8] sm:$0xff] }
0x118f   :  { %3275 = vmatpush1.bf16.msra.mxu0 %v2993_v15  ;;  %v3057_v15 = vld [vmem:[#allocation2 + $0x270] sm:$0xff] }
0x1190   :  { %3276 = vmatprep.subr.bf16.mxu0 %v3002_v29  ;;  %v3066_v29 = vld [vmem:[#allocation2 + $0x2b8] sm:$0xff] }
0x1191   :  { %3236 = vmatpush1.bf16.msra.mxu1 %v2999_v14  ;;  %v3063_v14 = vld [vmem:[#allocation2 + $0x2a0] sm:$0xff] }
0x1192   :  { %3237 = vmatprep.subr.bf16.mxu1 %v3008_v44  ;;  %v3072_v44 = vld [vmem:[#allocation2 + $0x2e8] sm:$0xff] }
0x1193   :  { %3277 = vmatpush1.bf16.msra.mxu0 %v3001_v26  ;;  %v3065_v26 = vld [vmem:[#allocation2 + $0x2b0] sm:$0xff] }
0x1194   :  { %3278 = vmatprep.subr.bf16.mxu0 %v3010_v10  ;;  %v3074_v10 = vld [vmem:[#allocation2 + $0x2f8] sm:$0xff] }
0x1195   :  { %3238 = vmatpush1.bf16.msra.mxu1 %v3007_v54  ;;  %v3071_v54 = vld [vmem:[#allocation2 + $0x2e0] sm:$0xff] }
0x1196   :  { %3239 = vmatprep.subr.bf16.mxu1 %v3016_v59  ;;  %v3080_v59 = vld [vmem:[#allocation2 + $0x328] sm:$0xff] }
0x1197   :  { %3279 = vmatpush1.bf16.msra.mxu0 %v3009_v21  ;;  %v3073_v21 = vld [vmem:[#allocation2 + $0x2f0] sm:$0xff] }
0x1198   :  { %3280 = vmatprep.subr.bf16.mxu0 %v3018_v8  ;;  %v3082_v8 = vld [vmem:[#allocation2 + $0x338] sm:$0xff] }
0x1199   :  { %3240 = vmatpush1.bf16.msra.mxu1 %v3015_v24  ;;  %v3079_v24 = vld [vmem:[#allocation2 + $0x320] sm:$0xff] }
0x119a   :  { %3241 = vmatprep.subr.bf16.mxu1 %v3024_v35  ;;  %v3088_v35 = vld [vmem:[#allocation2 + $0x368] sm:$0xff] }
0x119b   :  { %3281 = vmatpush1.bf16.msra.mxu0 %v3017_v51  ;;  %v3081_v51 = vld [vmem:[#allocation2 + $0x330] sm:$0xff] }
0x119c   :  { %3282 = vmatprep.subr.bf16.mxu0 %v3026_v37  ;;  %v3090_v37 = vld [vmem:[#allocation2 + $0x378] sm:$0xff] }
0x119d   :  { %3242 = vmatpush1.bf16.msra.mxu1 %v3023_v32  ;;  %v3087_v32 = vld [vmem:[#allocation2 + $0x360] sm:$0xff] }
0x119e   :  { %3243 = vmatprep.subr.bf16.mxu1 %v3032_v58  ;;  %v3096_v58 = vld [vmem:[#allocation2 + $0x3a8] sm:$0xff] }
0x119f   :  { %3283 = vmatpush1.bf16.msra.mxu0 %v3025_v48  ;;  %v3089_v48 = vld [vmem:[#allocation2 + $0x370] sm:$0xff] }
0x11a0   :  { %3284 = vmatprep.subr.bf16.mxu0 %v3034_v60  ;;  %v3098_v60 = vld [vmem:[#allocation2 + $0x3b8] sm:$0xff] }
0x11a1   :  { %3244 = vmatpush1.bf16.msra.mxu1 %v3031_v11  ;;  %v3095_v11 = vld [vmem:[#allocation2 + $0x3a0] sm:$0xff] }
0x11a2   :  { %3245 = vmatprep.subr.bf16.mxu1 %v3040_v30  ;;  %v3104_v30 = vld [vmem:[#allocation2 + $0x3e8] sm:$0xff] }
0x11a3   :  { %3285 = vmatpush1.bf16.msra.mxu0 %v3033_v42  ;;  %v3097_v42 = vld [vmem:[#allocation2 + $0x3b0] sm:$0xff] }
0x11a4   :  { %3286 = vmatprep.subr.bf16.mxu0 %v3042_v46  ;;  %v3106_v46 = vld [vmem:[#allocation2 + $0x3f8] sm:$0xff] }
0x11a5   :  { %3246 = vmatpush1.bf16.msra.mxu1 %v3039_v39  ;;  %v3103_v39 = vld [vmem:[#allocation2 + $0x3e0] sm:$0xff] }
0x11a6   :  { %3247 = vmatprep.subr.bf16.mxu1 %v3048_v61  ;;  %v3378_v61 = vld [vmem:[#allocation3 + $0x8] sm:$0xff] }
0x11a7   :  { %3287 = vmatpush1.bf16.msra.mxu0 %v3041_v19  ;;  %v3105_v19 = vld [vmem:[#allocation2 + $0x3f0] sm:$0xff] }
0x11a8   :  { %3288 = vmatprep.subr.bf16.mxu0 %v3050_v55  ;;  %v3380_v55 = vld [vmem:[#allocation3 + $0x18] sm:$0xff] }
0x11a9   :  { %3248 = vmatpush1.bf16.msra.mxu1 %v3047_v63  ;;  %v3377_v63 = vld [vmem:[#allocation3] sm:$0xff] }
0x11aa   :  { %3249 = vmatprep.subr.bf16.mxu1 %v3056_v20  ;;  %v3386_v20 = vld [vmem:[#allocation3 + $0x48] sm:$0xff] }
0x11ab   :  { %3289 = vmatpush1.bf16.msra.mxu0 %v3049_v53  ;;  %v3379_v53 = vld [vmem:[#allocation3 + $0x10] sm:$0xff] }
0x11ac   :  { %3290 = vmatprep.subr.bf16.mxu0 %v3058_v27  ;;  %v3388_v27 = vld [vmem:[#allocation3 + $0x58] sm:$0xff] }
0x11ad   :  { %3250 = vmatpush1.bf16.msra.mxu1 %v3055_v49  ;;  %v3385_v49 = vld [vmem:[#allocation3 + $0x40] sm:$0xff] }
0x11ae   :  { %3251 = vmatprep.subr.bf16.mxu1 %v3064_v43  ;;  %v3394_v43 = vld [vmem:[#allocation3 + $0x88] sm:$0xff] }
0x11af   :  { %3291 = vmatpush1.bf16.msra.mxu0 %v3057_v15  ;;  %v3387_v15 = vld [vmem:[#allocation3 + $0x50] sm:$0xff] }
0x11b0   :  { %3292 = vmatprep.subr.bf16.mxu0 %v3066_v29  ;;  %v3396_v29 = vld [vmem:[#allocation3 + $0x98] sm:$0xff] }
0x11b1   :  { %3252 = vmatpush1.bf16.msra.mxu1 %v3063_v14  ;;  %v3393_v14 = vld [vmem:[#allocation3 + $0x80] sm:$0xff] }
0x11b2   :  { %3253 = vmatprep.subr.bf16.mxu1 %v3072_v44  ;;  %v3402_v44 = vld [vmem:[#allocation3 + $0xc8] sm:$0xff] }
0x11b3   :  { %3293 = vmatpush1.bf16.msra.mxu0 %v3065_v26  ;;  %v3395_v26 = vld [vmem:[#allocation3 + $0x90] sm:$0xff] }
0x11b4   :  { %3294 = vmatprep.subr.bf16.mxu0 %v3074_v10  ;;  %v3404_v10 = vld [vmem:[#allocation3 + $0xd8] sm:$0xff] }
0x11b5   :  { %3254 = vmatpush1.bf16.msra.mxu1 %v3071_v54  ;;  %v3401_v54 = vld [vmem:[#allocation3 + $0xc0] sm:$0xff] }
0x11b6   :  { %3255 = vmatprep.subr.bf16.mxu1 %v3080_v59  ;;  %v3410_v59 = vld [vmem:[#allocation3 + $0x108] sm:$0xff] }
0x11b7   :  { %3295 = vmatpush1.bf16.msra.mxu0 %v3073_v21  ;;  %v3412_v21 = vld [vmem:[#allocation3 + $0x118] sm:$0xff] }
0x11b8   :  { %3296 = vmatprep.subr.bf16.mxu0 %v3082_v8  ;;  %v3417_v8 = vld [vmem:[#allocation3 + $0x140] sm:$0xff] }
0x11b9   :  { %3256 = vmatpush1.bf16.msra.mxu1 %v3079_v24  ;;  %v3409_v24 = vld [vmem:[#allocation3 + $0x100] sm:$0xff] }
0x11ba   :  { %3257 = vmatprep.subr.bf16.mxu1 %v3088_v35  ;;  %v3403_v35 = vld [vmem:[#allocation3 + $0xd0] sm:$0xff] }
0x11bb   :  { %3297 = vmatpush1.bf16.msra.mxu0 %v3081_v51  ;;  %v3420_v51 = vld [vmem:[#allocation3 + $0x158] sm:$0xff] }
0x11bc   :  { %3298 = vmatprep.subr.bf16.mxu0 %v3090_v37  ;;  %v3425_v37 = vld [vmem:[#allocation3 + $0x180] sm:$0xff] }
0x11bd   :  { %3258 = vmatpush1.bf16.msra.mxu1 %v3087_v32  ;;  %v3426_v32 = vld [vmem:[#allocation3 + $0x188] sm:$0xff] }
0x11be   :  { %3259 = vmatprep.subr.bf16.mxu1 %v3096_v58  ;;  %v3411_v58 = vld [vmem:[#allocation3 + $0x110] sm:$0xff] }
0x11bf   :  { %3299 = vmatpush1.bf16.msra.mxu0 %v3089_v48  ;;  %v3428_v48 = vld [vmem:[#allocation3 + $0x198] sm:$0xff] }
0x11c0   :  { %3300 = vmatprep.subr.bf16.mxu0 %v3098_v60  ;;  %v3433_v60 = vld [vmem:[#allocation3 + $0x1c0] sm:$0xff] }
0x11c1   :  { %3260 = vmatpush1.bf16.msra.mxu1 %v3095_v11  ;;  %v3434_v11 = vld [vmem:[#allocation3 + $0x1c8] sm:$0xff] }
0x11c2   :  { %3261 = vmatprep.subr.bf16.mxu1 %v3104_v30  ;;  %v3419_v30 = vld [vmem:[#allocation3 + $0x150] sm:$0xff] }
0x11c3   :  { %3301 = vmatpush1.bf16.msra.mxu0 %v3097_v42  ;;  %v3436_v42 = vld [vmem:[#allocation3 + $0x1d8] sm:$0xff] }
0x11c4   :  { %3302 = vmatprep.subr.bf16.mxu0 %v3106_v46  ;;  %v3441_v46 = vld [vmem:[#allocation3 + $0x200] sm:$0xff] }
0x11c5   :  { %3262 = vmatpush1.bf16.msra.mxu1 %v3103_v39  ;;  %v3442_v39 = vld [vmem:[#allocation3 + $0x208] sm:$0xff] }
0x11c6   :  { %3931 = vmatprep.subr.bf16.mxu1 %v3378_v61  ;;  %v3427_v61 = vld [vmem:[#allocation3 + $0x190] sm:$0xff] }
0x11c7   :  { %3303 = vmatpush1.bf16.msra.mxu0 %v3105_v19  ;;  %v3444_v19 = vld [vmem:[#allocation3 + $0x218] sm:$0xff] }
0x11c8   :  { %3264 = vmatmul.mubr.bf16.vlgmr.msra.gmra.mrb[84].mxu1 %v11496_v52  ;;  %4095 = vmatprep.subr.bf16.mxu0 %v3380_v55  ;;  %v3449_v55 = vld [vmem:[#allocation3 + $0x240] sm:$0xff] }
0x11c9   :  { %3932 = vmatpush1.bf16.msra.mxu1 %v3377_v63  ;;  %v3450_v63 = vld [vmem:[#allocation3 + $0x248] sm:$0xff] }
0x11ca   :  { %3933 = vmatprep.subr.bf16.mxu1 %v3386_v20  ;;  %3305 = vmatmul.mubr.bf16.vlgmr.msra.gmra.mrb[92].mxu0 %v11496_v52  ;;  %v3418_v52 = vld [vmem:[#allocation3 + $0x148] sm:$0xff]  ;;  %v3435_v20 = vld [vmem:[#allocation3 + $0x1d0] sm:$0xff] }
0x11cb   :  { %4096 = vmatpush1.bf16.msra.mxu0 %v3379_v53  ;;  %v3452_v53 = vld [vmem:[#allocation3 + $0x258] sm:$0xff] }
0x11cc   :  { %4097 = vmatprep.subr.bf16.mxu0 %v3388_v27  ;;  %v3457_v27 = vld [vmem:[#allocation3 + $0x280] sm:$0xff] }
0x11cd   :  { %3934 = vmatpush1.bf16.msra.mxu1 %v3385_v49  ;;  %v3458_v49 = vld [vmem:[#allocation3 + $0x288] sm:$0xff] }
0x11ce   :  { %3935 = vmatprep.subr.bf16.mxu1 %v3394_v43  ;;  %v3443_v43 = vld [vmem:[#allocation3 + $0x210] sm:$0xff] }
0x11cf   :  { %4098 = vmatpush1.bf16.msra.mxu0 %v3387_v15  ;;  %v3460_v15 = vld [vmem:[#allocation3 + $0x298] sm:$0xff] }
0x11d0   :  { %4099 = vmatprep.subr.bf16.mxu0 %v3396_v29  ;;  %v3465_v29 = vld [vmem:[#allocation3 + $0x2c0] sm:$0xff] }
0x11d1   :  { %3936 = vmatpush1.bf16.msra.mxu1 %v3393_v14  ;;  %v3466_v14 = vld [vmem:[#allocation3 + $0x2c8] sm:$0xff] }
0x11d2   :  { %3937 = vmatprep.subr.bf16.mxu1 %v3402_v44  ;;  %v3451_v44 = vld [vmem:[#allocation3 + $0x250] sm:$0xff] }
0x11d3   :  { %4100 = vmatpush1.bf16.msra.mxu0 %v3395_v26  ;;  %v3468_v26 = vld [vmem:[#allocation3 + $0x2d8] sm:$0xff] }
0x11d4   :  { %4101 = vmatprep.subr.bf16.mxu0 %v3404_v10  ;;  %v3473_v10 = vld [vmem:[#allocation3 + $0x300] sm:$0xff] }
0x11d5   :  { %3938 = vmatpush1.bf16.msra.mxu1 %v3401_v54  ;;  %v3474_v54 = vld [vmem:[#allocation3 + $0x308] sm:$0xff] }
0x11d6   :  { %3939 = vmatprep.subr.bf16.mxu1 %v3410_v59  ;;  %v3459_v59 = vld [vmem:[#allocation3 + $0x290] sm:$0xff] }
0x11d7   :  { %4102 = vmatpush1.bf16.msra.mxu0 %v3403_v35  ;;  %v3476_v35 = vld [vmem:[#allocation3 + $0x318] sm:$0xff] }
0x11d8   :  { %4103 = vmatprep.subr.bf16.mxu0 %v3412_v21  ;;  %v3481_v21 = vld [vmem:[#allocation3 + $0x340] sm:$0xff] }
0x11d9   :  { %3940 = vmatpush1.bf16.msra.mxu1 %v3409_v24  ;;  %v3482_v24 = vld [vmem:[#allocation3 + $0x348] sm:$0xff] }
0x11da   :  { %3941 = vmatprep.subr.bf16.mxu1 %v3418_v52  ;;  %v3467_v52 = vld [vmem:[#allocation3 + $0x2d0] sm:$0xff] }
0x11db   :  { %4104 = vmatpush1.bf16.msra.mxu0 %v3411_v58  ;;  %v3484_v58 = vld [vmem:[#allocation3 + $0x358] sm:$0xff] }
0x11dc   :  { %4105 = vmatprep.subr.bf16.mxu0 %v3420_v51  ;;  %v3489_v51 = vld [vmem:[#allocation3 + $0x380] sm:$0xff] }
0x11dd   :  { %3942 = vmatpush1.bf16.msra.mxu1 %v3417_v8  ;;  %v3490_v8 = vld [vmem:[#allocation3 + $0x388] sm:$0xff] }
0x11de   :  { %3943 = vmatprep.subr.bf16.mxu1 %v3426_v32  ;;  %v3475_v32 = vld [vmem:[#allocation3 + $0x310] sm:$0xff] }
0x11df   :  { %4106 = vmatpush1.bf16.msra.mxu0 %v3419_v30  ;;  %v3492_v30 = vld [vmem:[#allocation3 + $0x398] sm:$0xff] }
0x11e0   :  { %4107 = vmatprep.subr.bf16.mxu0 %v3428_v48  ;;  %v3497_v48 = vld [vmem:[#allocation3 + $0x3c0] sm:$0xff] }
0x11e1   :  { %3944 = vmatpush1.bf16.msra.mxu1 %v3425_v37  ;;  %v3498_v37 = vld [vmem:[#allocation3 + $0x3c8] sm:$0xff] }
0x11e2   :  { %3945 = vmatprep.subr.bf16.mxu1 %v3434_v11  ;;  %v3483_v11 = vld [vmem:[#allocation3 + $0x350] sm:$0xff] }
0x11e3   :  { %4108 = vmatpush1.bf16.msra.mxu0 %v3427_v61  ;;  %v3500_v61 = vld [vmem:[#allocation3 + $0x3d8] sm:$0xff] }
0x11e4   :  { %4109 = vmatprep.subr.bf16.mxu0 %v3436_v42  ;;  %v3499_v42 = vld [vmem:[#allocation3 + $0x3d0] sm:$0xff] }
0x11e5   :  { %3946 = vmatpush1.bf16.msra.mxu1 %v3433_v60  ;;  %v3506_v60 = vld [vmem:[#allocation3 + $0x408] sm:$0xff] }
0x11e6   :  { %3947 = vmatprep.subr.bf16.mxu1 %v3442_v39  ;;  %v3491_v39 = vld [vmem:[#allocation3 + $0x390] sm:$0xff] }
0x11e7   :  { %4110 = vmatpush1.bf16.msra.mxu0 %v3435_v20 }
0x11e8   :  { %4111 = vmatprep.subr.bf16.mxu0 %v3444_v19 }
0x11e9   :  { %3948 = vmatpush1.bf16.msra.mxu1 %v3441_v46  ;;  %v3508_v46 = vld [vmem:[#allocation3 + $0x418] sm:$0xff] }
0x11ea   :  { %3949 = vmatprep.subr.bf16.mxu1 %v3450_v63  ;;  %v11504_v63 = vld [vmem:[#allocation18] sm:$0xff] }
0x11eb   :  { %4112 = vmatpush1.bf16.msra.mxu0 %v3443_v43  ;;  %v3112_v20 = vrot.slane %v11504_v63, %v10769_v34  ;;  %v3116_v19 = vrot.slane %v11504_v63, %v10775_v41 }
0x11ec   :  { %4113 = vmatprep.subr.bf16.mxu0 %v3452_v53 }
0x11ed   :  { %3950 = vmatpush1.bf16.msra.mxu1 %v3449_v55 }
0x11ee   :  { %3951 = vmatprep.subr.bf16.mxu1 %v3458_v49 }
0x11ef   :  { %4114 = vmatpush1.bf16.msra.mxu0 %v3451_v44 }
0x11f0   :  { %4115 = vmatprep.subr.bf16.mxu0 %v3460_v15 }
0x11f1   :  { %3952 = vmatpush1.bf16.msra.mxu1 %v3457_v27 }
0x11f2   :  { %3953 = vmatprep.subr.bf16.mxu1 %v3466_v14 }
0x11f3   :  { %4116 = vmatpush1.bf16.msra.mxu0 %v3459_v59 }
0x11f4   :  { %4117 = vmatprep.subr.bf16.mxu0 %v3468_v26 }
0x11f5   :  { %3954 = vmatpush1.bf16.msra.mxu1 %v3465_v29  ;;  %v3124_v29 = vrot.slane %v11504_v63, %v11390_v22 }
0x11f6   :  { %3955 = vmatprep.subr.bf16.mxu1 %v3474_v54 }
0x11f7   :  { %4118 = vmatpush1.bf16.msra.mxu0 %v3467_v52 }
0x11f8   :  { %4119 = vmatprep.subr.bf16.mxu0 %v3476_v35 }
0x11f9   :  { %3956 = vmatpush1.bf16.msra.mxu1 %v3473_v10 }
0x11fa   :  { %3957 = vmatprep.subr.bf16.mxu1 %v3482_v24 }
0x11fb   :  { %4120 = vmatpush1.bf16.msra.mxu0 %v3475_v32 }
0x11fc   :  { %4121 = vmatprep.subr.bf16.mxu0 %v3484_v58 }
0x11fd   :  { %3958 = vmatpush1.bf16.msra.mxu1 %v3481_v21 }
0x11fe   :  { %3959 = vmatprep.subr.bf16.mxu1 %v3490_v8 }
0x11ff   :  { %4122 = vmatpush1.bf16.msra.mxu0 %v3483_v11 }
0x1200   :  { %4123 = vmatprep.subr.bf16.mxu0 %v3492_v30 }
0x1201   :  { %3960 = vmatpush1.bf16.msra.mxu1 %v3489_v51 }
0x1202   :  { %3961 = vmatprep.subr.bf16.mxu1 %v3498_v37 }
0x1203   :  { %4124 = vmatpush1.bf16.msra.mxu0 %v3491_v39 }
0x1204   :  { %4125 = vmatprep.subr.bf16.mxu0 %v3500_v61  ;;  %v3505_v61 = vld [vmem:[#allocation3 + $0x400] sm:$0xff] }
0x1205   :  { %3962 = vmatpush1.bf16.msra.mxu1 %v3497_v48 }
0x1206   :  { %3972 = vmatprep.subr.bf16.mxu1 %v3506_v60 }
0x1207   :  { %4126 = vmatpush1.bf16.msra.mxu0 %v3499_v42  ;;  %v3507_v42 = vld [vmem:[#allocation3 + $0x410] sm:$0xff] }
0x1208   :  { %4136 = vmatprep.subr.bf16.mxu0 %v3508_v46  ;;  %v3514_v46 = vld [vmem:[#allocation3 + $0x448] sm:$0xff] }
0x125b   :  { %v3183_v55 = vpop.f32.mrb[80].mxu1 }
0x125c   :  { %v3184_v49 = vadd.f32 %v3183_v55, %v3112_v20  ;;  %v3185_v43 = vpop.f32.mrb[81].mxu1  ;;  %v3516_v20 = vld [vmem:[#allocation3 + $0x458] sm:$0xff] }
0x125d   :  { %v3186_v53 = vadd.f32 %v3185_v43, %v3116_v19  ;;  %v3187_v27 = vpop.f32.mrb[82].mxu1  ;;  %v11512_v54 = vpop.f32.mrb[88].mxu0  ;;  %v3515_v43 = vld [vmem:[#allocation3 + $0x450] sm:$0xff] }
0x125e   :  { %v7655_v14 = vmul.f32 -1.442695, %v3184_v49  ;;  %v3188_v44 = vpop.f32.mrb[83].mxu1  ;;  %v3226_v59 = vpop.f32.mrb[89].mxu0  ;;  %v3522_v27 = vld [vmem:[#allocation3 + $0x488] sm:$0xff] }
0x125f   :  { %v7656_v15 = vmul.f32 -1.442695, %v3186_v53  ;;  %v3227_v26 = vadd.f32 %v3226_v59, %v3124_v29  ;;  %v3228_v10 = vpop.f32.mrb[90].mxu0  ;;  %v3521_v44 = vld [vmem:[#allocation3 + $0x480] sm:$0xff]  ;;  %v3530_v29 = vld [vmem:[#allocation3 + $0x4c8] sm:$0xff]  ;;  %v3532_v59 = vld [vmem:[#allocation3 + $0x4d8] sm:$0xff] }
0x1260   :  { %9607 = vpow2.f32 %v7655_v14  ;;  %v3229_v24 = vpop.f32.mrb[91].mxu0  ;;  %v3524_v14 = vld [vmem:[#allocation3 + $0x498] sm:$0xff]  ;;  %v3531_v10 = vld [vmem:[#allocation3 + $0x4d0] sm:$0xff] }
0x1261   :  { %9609 = vpow2.f32 %v7656_v15  ;;  %v7658_v52 = vmul.f32 -1.442695, %v3227_v26  ;;  %v3523_v15 = vld [vmem:[#allocation3 + $0x490] sm:$0xff]  ;;  %v3538_v24 = vld [vmem:[#allocation3 + $0x508] sm:$0xff] }
0x1263   :  { %9611 = vpow2.f32 %v7658_v52  ;;  %v3540_v52 = vld [vmem:[#allocation3 + $0x518] sm:$0xff] }
0x126a   :  { %v9608_v35 = vpop.eup %9607 }
0x126b   :  { %v9610_v21 = vpop.eup %9609  ;;  %v3337_v8 = vadd.f32 1.0, %v9608_v35  ;;  %v3537_v35 = vld [vmem:[#allocation3 + $0x500] sm:$0xff] }
0x126c   :  { %v3338_v32 = vadd.f32 1.0, %v9610_v21  ;;  %v3539_v21 = vld [vmem:[#allocation3 + $0x510] sm:$0xff] }
0x126d   :  { %9613 = vrcp.f32 %v3337_v8  ;;  %v9612_v58 = vpop.eup %9611  ;;  %v3546_v8 = vld [vmem:[#allocation3 + $0x548] sm:$0xff] }
0x126e   :  { %9615 = vrcp.f32 %v3338_v32  ;;  %v3340_v51 = vadd.f32 1.0, %v9612_v58  ;;  %v3548_v32 = vld [vmem:[#allocation3 + $0x558] sm:$0xff]  ;;  %v3120_v58 = vrot.slane %v11504_v63, %v11311_v45 }
0x1270   :  { %9617 = vrcp.f32 %v3340_v51  ;;  %v3545_v51 = vld [vmem:[#allocation3 + $0x540] sm:$0xff] }
0x1277   :  { %v9614_v37 = vpop.eup %9613 }
0x1278   :  { %v9616_v11 = vpop.eup %9615  ;;  %v3361_v30 = vmul.f32 %v9614_v37, %v3184_v49  ;;  %v3513_v49 = vld [vmem:[#allocation3 + $0x440] sm:$0xff]  ;;  %v3547_v37 = vld [vmem:[#allocation3 + $0x550] sm:$0xff] }
0x1279   :  { %v3362_v48 = vmul.f32 %v9616_v11, %v3186_v53  ;;  %v3554_v11 = vld [vmem:[#allocation3 + $0x588] sm:$0xff] }
0x127a   :  { %v11516_v39 = vpack.c.bf16 %v3361_v30, %v3361_v30  ;;  %v9618_v19 = vpop.eup %9617  ;;  %v3556_v30 = vld [vmem:[#allocation3 + $0x598] sm:$0xff] }
0x127b   :  { %v11514_v60 = vpack.c.bf16 %v3362_v48, %v3362_v48  ;;  %v3364_v55 = vmul.f32 %v9618_v19, %v3227_v26  ;;  %v3529_v26 = vld [vmem:[#allocation3 + $0x4c0] sm:$0xff]  ;;  %v11529_v48 = vadd.f32 %v11512_v54, %v3120_v58  ;;  %v3132_v54 = vrot.slane %v11504_v63, %v11472_v16  ;;  %v3588_v58 = vld [vmem:[#allocation3 + $0x698] sm:$0xff] }
0x127d   :  { %3963 = vmatprep.mubr.bf16.mxu1 %v11514_v60  ;;  %4127 = vmatprep.mubr.bf16.mxu0 %v11514_v60  ;;  %v11522_v53 = vpack.c.bf16 %v3364_v55, %v3364_v55  ;;  %v7657_v19 = vmul.f32 -1.442695, %v11529_v48  ;;  %v3561_v55 = vld [vmem:[#allocation3 + $0x5c0] sm:$0xff] }
0x127e   :  { %3964 = vmatmul.mubr.bf16.vlgmr.msra.gmra.mrb[88].mxu1 %v11516_v39  ;;  %4128 = vmatmul.mubr.bf16.vlgmr.msra.gmra.mrb[96].mxu0 %v11516_v39 }
0x127f   :  { %3973 = vmatpush1.bf16.msra.mxu1 %v3505_v61  ;;  %4137 = vmatpush1.bf16.msra.mxu0 %v3507_v42  ;;  %v3553_v61 = vld [vmem:[#allocation3 + $0x580] sm:$0xff]  ;;  %v3555_v42 = vld [vmem:[#allocation3 + $0x590] sm:$0xff]  ;;  %9619 = vpow2.f32 %v7657_v19  ;;  %v3596_v19 = vld [vmem:[#allocation3 + $0x6d8] sm:$0xff] }
0x1280   :  { %3974 = vmatprep.subr.bf16.mxu1 %v3514_v46  ;;  %4138 = vmatprep.subr.bf16.mxu0 %v3516_v20  ;;  %v3562_v46 = vld [vmem:[#allocation3 + $0x5c8] sm:$0xff]  ;;  %v3564_v20 = vld [vmem:[#allocation3 + $0x5d8] sm:$0xff] }
0x1281   :  { %4004 = vmatprep.mubr.bf16.mxu1 %v11522_v53  ;;  %4168 = vmatprep.mubr.bf16.mxu0 %v11522_v53 }
0x1283   :  { %3975 = vmatpush1.bf16.msra.mxu1 %v3513_v49  ;;  %4139 = vmatpush1.bf16.msra.mxu0 %v3515_v43  ;;  %v3563_v49 = vld [vmem:[#allocation3 + $0x5d0] sm:$0xff]  ;;  %v3570_v43 = vld [vmem:[#allocation3 + $0x608] sm:$0xff] }
0x1284   :  { %3976 = vmatprep.subr.bf16.mxu1 %v3522_v27  ;;  %4140 = vmatprep.subr.bf16.mxu0 %v3524_v14  ;;  %v3572_v27 = vld [vmem:[#allocation3 + $0x618] sm:$0xff] }
0x1287   :  { %3977 = vmatpush1.bf16.msra.mxu1 %v3521_v44  ;;  %4141 = vmatpush1.bf16.msra.mxu0 %v3523_v15  ;;  %v3569_v44 = vld [vmem:[#allocation3 + $0x600] sm:$0xff]  ;;  %v3571_v15 = vld [vmem:[#allocation3 + $0x610] sm:$0xff] }
0x1288   :  { %3978 = vmatprep.subr.bf16.mxu1 %v3530_v29  ;;  %4142 = vmatprep.subr.bf16.mxu0 %v3532_v59  ;;  %v3578_v59 = vld [vmem:[#allocation3 + $0x648] sm:$0xff] }
0x128b   :  { %3979 = vmatpush1.bf16.msra.mxu1 %v3529_v26  ;;  %4143 = vmatpush1.bf16.msra.mxu0 %v3531_v10  ;;  %v3580_v26 = vld [vmem:[#allocation3 + $0x658] sm:$0xff] }
0x128c   :  { %3980 = vmatprep.subr.bf16.mxu1 %v3538_v24  ;;  %4144 = vmatprep.subr.bf16.mxu0 %v3540_v52 }
0x128f   :  { %3981 = vmatpush1.bf16.msra.mxu1 %v3537_v35  ;;  %4145 = vmatpush1.bf16.msra.mxu0 %v3539_v21  ;;  %v3577_v21 = vld [vmem:[#allocation3 + $0x640] sm:$0xff] }
0x1290   :  { %3982 = vmatprep.subr.bf16.mxu1 %v3546_v8  ;;  %4146 = vmatprep.subr.bf16.mxu0 %v3548_v32  ;;  %v3579_v8 = vld [vmem:[#allocation3 + $0x650] sm:$0xff]  ;;  %v3586_v32 = vld [vmem:[#allocation3 + $0x688] sm:$0xff] }
0x1293   :  { %3983 = vmatpush1.bf16.msra.mxu1 %v3545_v51  ;;  %4147 = vmatpush1.bf16.msra.mxu0 %v3547_v37 }
0x1294   :  { %3984 = vmatprep.subr.bf16.mxu1 %v3554_v11  ;;  %4148 = vmatprep.subr.bf16.mxu0 %v3556_v30  ;;  %v9620_v30 = vpop.eup %9619 }
0x1297   :  { %3985 = vmatpush1.bf16.msra.mxu1 %v3553_v61  ;;  %4149 = vmatpush1.bf16.msra.mxu0 %v3555_v42  ;;  %v3585_v61 = vld [vmem:[#allocation3 + $0x680] sm:$0xff]  ;;  %v3587_v42 = vld [vmem:[#allocation3 + $0x690] sm:$0xff] }
0x1298   :  { %3986 = vmatprep.subr.bf16.mxu1 %v3562_v46  ;;  %4150 = vmatprep.subr.bf16.mxu0 %v3564_v20  ;;  %v3594_v20 = vld [vmem:[#allocation3 + $0x6c8] sm:$0xff] }
0x129b   :  { %3987 = vmatpush1.bf16.msra.mxu1 %v3561_v55  ;;  %4151 = vmatpush1.bf16.msra.mxu0 %v3563_v49  ;;  %v11534_v14 = vpop.f32.mrb[84].mxu1  ;;  %v3339_v55 = vadd.f32 1.0, %v9620_v30  ;;  %v3593_v49 = vld [vmem:[#allocation3 + $0x6c0] sm:$0xff]  ;;  %v3626_v30 = vld [vmem:[#allocation3 + $0x7c8] sm:$0xff] }
0x129c   :  { %3988 = vmatprep.subr.bf16.mxu1 %v3570_v43  ;;  %4152 = vmatprep.subr.bf16.mxu0 %v3572_v27  ;;  %v3267_v29 = vpop.f32.mrb[85].mxu1  ;;  %v3595_v43 = vld [vmem:[#allocation3 + $0x6d0] sm:$0xff]  ;;  %v3602_v27 = vld [vmem:[#allocation3 + $0x708] sm:$0xff] }
0x129d   :  { %v11536_v10 = vadd.f32 %v3267_v29, %v3132_v54  ;;  %v3269_v24 = vpop.f32.mrb[86].mxu1  ;;  %v11539_v51 = vpop.f32.mrb[92].mxu0  ;;  %v3604_v54 = vld [vmem:[#allocation3 + $0x718] sm:$0xff]  ;;  %v3603_v29 = vld [vmem:[#allocation3 + $0x710] sm:$0xff] }
0x129e   :  { %v3270_v52 = vpop.f32.mrb[87].mxu1  ;;  %v11541_v37 = vpop.f32.mrb[93].mxu0  ;;  %v3612_v24 = vld [vmem:[#allocation3 + $0x758] sm:$0xff] }
0x129f   :  { %3989 = vmatpush1.bf16.msra.mxu1 %v3569_v44  ;;  %4153 = vmatpush1.bf16.msra.mxu0 %v3571_v15  ;;  %v7660_v35 = vmul.f32 -1.442695, %v11536_v10  ;;  %v3310_v11 = vpop.f32.mrb[94].mxu0  ;;  %v3601_v15 = vld [vmem:[#allocation3 + $0x700] sm:$0xff] }
0x12a0   :  { %3990 = vmatprep.subr.bf16.mxu1 %v3578_v59  ;;  %4154 = vmatprep.subr.bf16.mxu0 %v3580_v26  ;;  %v3311_v46 = vpop.f32.mrb[95].mxu0  ;;  %v3610_v26 = vld [vmem:[#allocation3 + $0x748] sm:$0xff]  ;;  %v3609_v52 = vld [vmem:[#allocation3 + $0x740] sm:$0xff] }
0x12a1   :  { %9621 = vpow2.f32 %v7660_v35  ;;  %v3611_v35 = vld [vmem:[#allocation3 + $0x750] sm:$0xff] }
0x12a2   :  { %9623 = vrcp.f32 %v3339_v55  ;;  %v3634_v55 = vld [vmem:[#allocation3 + $0x808] sm:$0xff] }
0x12a3   :  { %3991 = vmatpush1.bf16.msra.mxu1 %v3577_v21  ;;  %4155 = vmatpush1.bf16.msra.mxu0 %v3579_v8  ;;  %v3618_v21 = vld [vmem:[#allocation3 + $0x788] sm:$0xff]  ;;  %v3620_v8 = vld [vmem:[#allocation3 + $0x798] sm:$0xff] }
0x12a4   :  { %3992 = vmatprep.subr.bf16.mxu1 %v3586_v32  ;;  %4156 = vmatprep.subr.bf16.mxu0 %v3588_v58  ;;  %v3617_v32 = vld [vmem:[#allocation3 + $0x780] sm:$0xff]  ;;  %v3619_v58 = vld [vmem:[#allocation3 + $0x790] sm:$0xff] }
0x12a7   :  { %3993 = vmatpush1.bf16.msra.mxu1 %v3585_v61  ;;  %4157 = vmatpush1.bf16.msra.mxu0 %v3587_v42  ;;  %v3628_v61 = vld [vmem:[#allocation3 + $0x7d8] sm:$0xff] }
0x12a8   :  { %3994 = vmatprep.subr.bf16.mxu1 %v3594_v20  ;;  %4158 = vmatprep.subr.bf16.mxu0 %v3596_v19  ;;  %v3625_v20 = vld [vmem:[#allocation3 + $0x7c0] sm:$0xff]  ;;  %v3627_v19 = vld [vmem:[#allocation3 + $0x7d0] sm:$0xff] }
0x12ab   :  { %v9622_v44 = vpop.eup %9621  ;;  %3995 = vmatpush1.bf16.msra.mxu1 %v3593_v49  ;;  %4159 = vmatpush1.bf16.msra.mxu0 %v3595_v43  ;;  %v3636_v49 = vld [vmem:[#allocation3 + $0x818] sm:$0xff] }
0x12ac   :  { %3996 = vmatprep.subr.bf16.mxu1 %v3602_v27  ;;  %4160 = vmatprep.subr.bf16.mxu0 %v3604_v54  ;;  %v3342_v59 = vadd.f32 1.0, %v9622_v44  ;;  %v9624_v11 = vpop.eup %9623  ;;  %v3633_v54 = vld [vmem:[#allocation3 + $0x800] sm:$0xff]  ;;  %v3635_v44 = vld [vmem:[#allocation3 + $0x810] sm:$0xff] }
0x12ad   :  { %v3363_v46 = vmul.f32 %v9624_v11, %v11529_v48  ;;  %v3644_v48 = vld [vmem:[#allocation3 + $0x858] sm:$0xff]  ;;  %v3666_v11 = vld [vmem:[#allocation3 + $0x908] sm:$0xff] }
0x12ae   :  { %9625 = vrcp.f32 %v3342_v59  ;;  %v3643_v59 = vld [vmem:[#allocation3 + $0x850] sm:$0xff] }
0x12af   :  { %3997 = vmatpush1.bf16.msra.mxu1 %v3601_v15  ;;  %4161 = vmatpush1.bf16.msra.mxu0 %v3603_v29  ;;  %v11545_v27 = vpack.c.bf16 %v3363_v46, %v3363_v46  ;;  %v3642_v29 = vld [vmem:[#allocation3 + $0x848] sm:$0xff]  ;;  %v3667_v46 = vld [vmem:[#allocation3 + $0x910] sm:$0xff] }
0x12b0   :  { %3998 = vmatprep.subr.bf16.mxu1 %v3610_v26  ;;  %4162 = vmatprep.subr.bf16.mxu0 %v3612_v24  ;;  %v3650_v26 = vld [vmem:[#allocation3 + $0x888] sm:$0xff]  ;;  %v3652_v24 = vld [vmem:[#allocation3 + $0x898] sm:$0xff] }
0x12b3   :  { %3999 = vmatpush1.bf16.msra.mxu1 %v3609_v52  ;;  %4163 = vmatpush1.bf16.msra.mxu0 %v3611_v35  ;;  %v3649_v52 = vld [vmem:[#allocation3 + $0x880] sm:$0xff]  ;;  %v3651_v35 = vld [vmem:[#allocation3 + $0x890] sm:$0xff] }
0x12b4   :  { %4000 = vmatprep.subr.bf16.mxu1 %v3618_v21  ;;  %4164 = vmatprep.subr.bf16.mxu0 %v3620_v8  ;;  %v3658_v21 = vld [vmem:[#allocation3 + $0x8c8] sm:$0xff]  ;;  %v3660_v8 = vld [vmem:[#allocation3 + $0x8d8] sm:$0xff] }
0x12b7   :  { %4001 = vmatpush1.bf16.msra.mxu1 %v3617_v32  ;;  %4165 = vmatpush1.bf16.msra.mxu0 %v3619_v58  ;;  %v3657_v32 = vld [vmem:[#allocation3 + $0x8c0] sm:$0xff]  ;;  %v3659_v58 = vld [vmem:[#allocation3 + $0x8d0] sm:$0xff] }
0x12b8   :  { %v9626_v42 = vpop.eup %9625  ;;  %4002 = vmatprep.subr.bf16.mxu1 %v3626_v30  ;;  %4166 = vmatprep.subr.bf16.mxu0 %v3628_v61  ;;  %v3668_v30 = vld [vmem:[#allocation3 + $0x918] sm:$0xff]  ;;  %v3139_v61 = vsub.s32 7, %v10766_v25 }
0x12b9   :  { %v3366_v43 = vmul.f32 %v9626_v42, %v11536_v10  ;;  %v3641_v10 = vld [vmem:[#allocation3 + $0x840] sm:$0xff] }
0x12ba   :  { %v3665_v42 = vld [vmem:[#allocation3 + $0x900] sm:$0xff] }
0x12bb   :  { %4003 = vmatpush1.bf16.msra.mxu1 %v3625_v20  ;;  %4167 = vmatpush1.bf16.msra.mxu0 %v3627_v19  ;;  %v11547_v15 = vpack.c.bf16 %v3366_v43, %v3366_v43  ;;  %v3674_v20 = vld [vmem:[#allocation3 + $0x948] sm:$0xff]  ;;  %v3676_v19 = vld [vmem:[#allocation3 + $0x958] sm:$0xff]  ;;  %v3673_v43 = vld [vmem:[#allocation3 + $0x940] sm:$0xff] }
0x12bc   :  { %4013 = vmatprep.subr.bf16.mxu1 %v3634_v55  ;;  %4177 = vmatprep.subr.bf16.mxu0 %v3636_v49  ;;  %v3128_v55 = vrot.slane %v11504_v63, %v11393_v40  ;;  %v3140_v49 = vrot.slane %v11504_v63, %v3139_v61 }
0x12be   :  { %4005 = vmatmul.mubr.bf16.vlgmr.msra.gmra.mrb[88].mxu1 %v11545_v27  ;;  %4169 = vmatmul.mubr.bf16.vlgmr.msra.gmra.mrb[96].mxu0 %v11545_v27 }
0x12bf   :  { %4014 = vmatpush1.bf16.msra.mxu1 %v3633_v54  ;;  %4178 = vmatpush1.bf16.msra.mxu0 %v3635_v44  ;;  %v3675_v54 = vld [vmem:[#allocation3 + $0x950] sm:$0xff]  ;;  %v3682_v44 = vld [vmem:[#allocation3 + $0x988] sm:$0xff] }
0x12c0   :  { %4015 = vmatprep.subr.bf16.mxu1 %v3642_v29  ;;  %4179 = vmatprep.subr.bf16.mxu0 %v3644_v48  ;;  %v3684_v29 = vld [vmem:[#allocation3 + $0x998] sm:$0xff]  ;;  %v11560_v48 = vadd.f32 %v11534_v14, %v3128_v55  ;;  %v3689_v14 = vld [vmem:[#allocation3 + $0x9c0] sm:$0xff] }
0x12c1   :  { %4045 = vmatprep.mubr.bf16.mxu1 %v11547_v15  ;;  %4209 = vmatprep.mubr.bf16.mxu0 %v11547_v15  ;;  %v3716_v55 = vld [vmem:[#allocation3 + $0xa98] sm:$0xff] }
0x12c3   :  { %4016 = vmatpush1.bf16.msra.mxu1 %v3641_v10  ;;  %4180 = vmatpush1.bf16.msra.mxu0 %v3643_v59  ;;  %v11563_v10 = vadd.f32 %v11541_v37, %v3140_v49  ;;  %v3681_v59 = vld [vmem:[#allocation3 + $0x980] sm:$0xff] }
0x12c4   :  { %4017 = vmatprep.subr.bf16.mxu1 %v3650_v26  ;;  %4181 = vmatprep.subr.bf16.mxu0 %v3652_v24  ;;  %v3683_v26 = vld [vmem:[#allocation3 + $0x990] sm:$0xff]  ;;  %v3690_v24 = vld [vmem:[#allocation3 + $0x9c8] sm:$0xff]  ;;  %v3697_v37 = vld [vmem:[#allocation3 + $0xa00] sm:$0xff] }
0x12c7   :  { %4018 = vmatpush1.bf16.msra.mxu1 %v3649_v52  ;;  %4182 = vmatpush1.bf16.msra.mxu0 %v3651_v35  ;;  %v3692_v52 = vld [vmem:[#allocation3 + $0x9d8] sm:$0xff]  ;;  %v7659_v35 = vmul.f32 -1.442695, %v11560_v48 }
0x12c8   :  { %4019 = vmatprep.subr.bf16.mxu1 %v3658_v21  ;;  %4183 = vmatprep.subr.bf16.mxu0 %v3660_v8  ;;  %v7662_v21 = vmul.f32 -1.442695, %v11563_v10  ;;  %v3691_v8 = vld [vmem:[#allocation3 + $0x9d0] sm:$0xff] }
0x12c9   :  { %9627 = vpow2.f32 %v7659_v35 }
0x12ca   :  { %9629 = vpow2.f32 %v7662_v21  ;;  %v3730_v21 = vld [vmem:[#allocation3 + $0xb08] sm:$0xff] }
0x12cb   :  { %4020 = vmatpush1.bf16.msra.mxu1 %v3657_v32  ;;  %4184 = vmatpush1.bf16.msra.mxu0 %v3659_v58  ;;  %v3698_v32 = vld [vmem:[#allocation3 + $0xa08] sm:$0xff]  ;;  %v3700_v58 = vld [vmem:[#allocation3 + $0xa18] sm:$0xff] }
0x12cc   :  { %4021 = vmatprep.subr.bf16.mxu1 %v3666_v11  ;;  %4185 = vmatprep.subr.bf16.mxu0 %v3668_v30  ;;  %v3699_v11 = vld [vmem:[#allocation3 + $0xa10] sm:$0xff]  ;;  %v3706_v30 = vld [vmem:[#allocation3 + $0xa48] sm:$0xff] }
0x12cf   :  { %4022 = vmatpush1.bf16.msra.mxu1 %v3665_v42  ;;  %4186 = vmatpush1.bf16.msra.mxu0 %v3667_v46  ;;  %v3708_v42 = vld [vmem:[#allocation3 + $0xa58] sm:$0xff]  ;;  %v3705_v46 = vld [vmem:[#allocation3 + $0xa40] sm:$0xff] }
0x12d0   :  { %4023 = vmatprep.subr.bf16.mxu1 %v3674_v20  ;;  %4187 = vmatprep.subr.bf16.mxu0 %v3676_v19  ;;  %v3707_v20 = vld [vmem:[#allocation3 + $0xa50] sm:$0xff]  ;;  %v3714_v19 = vld [vmem:[#allocation3 + $0xa88] sm:$0xff] }
0x12d3   :  { %4024 = vmatpush1.bf16.msra.mxu1 %v3673_v43  ;;  %4188 = vmatpush1.bf16.msra.mxu0 %v3675_v54  ;;  %v9628_v49 = vpop.eup %9627  ;;  %v3713_v43 = vld [vmem:[#allocation3 + $0xa80] sm:$0xff]  ;;  %v3715_v54 = vld [vmem:[#allocation3 + $0xa90] sm:$0xff] }
0x12d4   :  { %4025 = vmatprep.subr.bf16.mxu1 %v3682_v44  ;;  %4189 = vmatprep.subr.bf16.mxu0 %v3684_v29  ;;  %v9630_v44 = vpop.eup %9629  ;;  %v3722_v29 = vld [vmem:[#allocation3 + $0xac8] sm:$0xff] }
0x12d5   :  { %v3344_v35 = vadd.f32 1.0, %v9630_v44 }
0x12d7   :  { %4026 = vmatpush1.bf16.msra.mxu1 %v3681_v59  ;;  %4190 = vmatpush1.bf16.msra.mxu0 %v3683_v26  ;;  %v3724_v59 = vld [vmem:[#allocation3 + $0xad8] sm:$0xff]  ;;  %v3341_v26 = vadd.f32 1.0, %v9628_v49  ;;  %v3754_v49 = vld [vmem:[#allocation3 + $0xbc8] sm:$0xff] }
0x12d8   :  { %4027 = vmatprep.subr.bf16.mxu1 %v3690_v24  ;;  %4191 = vmatprep.subr.bf16.mxu0 %v3692_v52  ;;  %v3721_v24 = vld [vmem:[#allocation3 + $0xac0] sm:$0xff]  ;;  %v3723_v52 = vld [vmem:[#allocation3 + $0xad0] sm:$0xff] }
0x12d9   :  { %9631 = vrcp.f32 %v3341_v26 }
0x12da   :  { %9633 = vrcp.f32 %v3344_v35 }
0x12db   :  { %4028 = vmatpush1.bf16.msra.mxu1 %v3689_v14  ;;  %4192 = vmatpush1.bf16.msra.mxu0 %v3691_v8  ;;  %v3732_v14 = vld [vmem:[#allocation3 + $0xb18] sm:$0xff]  ;;  %v3729_v8 = vld [vmem:[#allocation3 + $0xb00] sm:$0xff] }
0x12dc   :  { %4029 = vmatprep.subr.bf16.mxu1 %v3698_v32  ;;  %4193 = vmatprep.subr.bf16.mxu0 %v3700_v58  ;;  %v3731_v32 = vld [vmem:[#allocation3 + $0xb10] sm:$0xff]  ;;  %v3738_v58 = vld [vmem:[#allocation3 + $0xb48] sm:$0xff] }
0x12df   :  { %4030 = vmatpush1.bf16.msra.mxu1 %v3697_v37  ;;  %4194 = vmatpush1.bf16.msra.mxu0 %v3699_v11  ;;  %v3740_v37 = vld [vmem:[#allocation3 + $0xb58] sm:$0xff]  ;;  %v3737_v11 = vld [vmem:[#allocation3 + $0xb40] sm:$0xff] }
0x12e0   :  { %4031 = vmatprep.subr.bf16.mxu1 %v3706_v30  ;;  %4195 = vmatprep.subr.bf16.mxu0 %v3708_v42  ;;  %v3739_v30 = vld [vmem:[#allocation3 + $0xb50] sm:$0xff]  ;;  %v3746_v42 = vld [vmem:[#allocation3 + $0xb88] sm:$0xff] }
0x12e3   :  { %4032 = vmatpush1.bf16.msra.mxu1 %v3705_v46  ;;  %4196 = vmatpush1.bf16.msra.mxu0 %v3707_v20  ;;  %v3748_v46 = vld [vmem:[#allocation3 + $0xb98] sm:$0xff]  ;;  %v3745_v20 = vld [vmem:[#allocation3 + $0xb80] sm:$0xff] }
0x12e4   :  { %4033 = vmatprep.subr.bf16.mxu1 %v3714_v19  ;;  %4197 = vmatprep.subr.bf16.mxu0 %v3716_v55  ;;  %v3747_v19 = vld [vmem:[#allocation3 + $0xb90] sm:$0xff]  ;;  %v9632_v55 = vpop.eup %9631 }
0x12e5   :  { %v3365_v44 = vmul.f32 %v9632_v55, %v11560_v48  ;;  %v3772_v48 = vld [vmem:[#allocation3 + $0xc58] sm:$0xff]  ;;  %v3787_v55 = vld [vmem:[#allocation3 + $0xcd0] sm:$0xff] }
0x12e7   :  { %4034 = vmatpush1.bf16.msra.mxu1 %v3713_v43  ;;  %4198 = vmatpush1.bf16.msra.mxu0 %v3715_v54  ;;  %v3756_v43 = vld [vmem:[#allocation3 + $0xbd8] sm:$0xff]  ;;  %v9634_v54 = vpop.eup %9633  ;;  %v11569_v35 = vpack.c.bf16 %v3365_v44, %v3365_v44  ;;  %v3793_v44 = vld [vmem:[#allocation3 + $0xd00] sm:$0xff] }
0x12e8   :  { %4035 = vmatprep.subr.bf16.mxu1 %v3722_v29  ;;  %4199 = vmatprep.subr.bf16.mxu0 %v3724_v59  ;;  %v3753_v29 = vld [vmem:[#allocation3 + $0xbc0] sm:$0xff]  ;;  %v3755_v59 = vld [vmem:[#allocation3 + $0xbd0] sm:$0xff]  ;;  %v3368_v26 = vmul.f32 %v9634_v54, %v11563_v10  ;;  %v3135_v54 = vsub.s32 6, %v10766_v25 }
0x12e9   :  { %v3769_v10 = vld [vmem:[#allocation3 + $0xc40] sm:$0xff] }
0x12eb   :  { %4036 = vmatpush1.bf16.msra.mxu1 %v3721_v24  ;;  %4200 = vmatpush1.bf16.msra.mxu0 %v3723_v52  ;;  %v3762_v24 = vld [vmem:[#allocation3 + $0xc08] sm:$0xff]  ;;  %v3764_v52 = vld [vmem:[#allocation3 + $0xc18] sm:$0xff] }
0x12ec   :  { %4037 = vmatprep.subr.bf16.mxu1 %v3730_v21  ;;  %4201 = vmatprep.subr.bf16.mxu0 %v3732_v14  ;;  %v3761_v21 = vld [vmem:[#allocation3 + $0xc00] sm:$0xff]  ;;  %v3763_v14 = vld [vmem:[#allocation3 + $0xc10] sm:$0xff] }
0x12ef   :  { %4038 = vmatpush1.bf16.msra.mxu1 %v3729_v8  ;;  %4202 = vmatpush1.bf16.msra.mxu0 %v3731_v32  ;;  %v11571_v8 = vpack.c.bf16 %v3368_v26, %v3368_v26  ;;  %v3770_v32 = vld [vmem:[#allocation3 + $0xc48] sm:$0xff]  ;;  %v3804_v26 = vld [vmem:[#allocation3 + $0xd58] sm:$0xff] }
0x12f0   :  { %4039 = vmatprep.subr.bf16.mxu1 %v3738_v58  ;;  %4203 = vmatprep.subr.bf16.mxu0 %v3740_v37  ;;  %v3771_v58 = vld [vmem:[#allocation3 + $0xc50] sm:$0xff]  ;;  %v3778_v37 = vld [vmem:[#allocation3 + $0xc88] sm:$0xff] }
0x12f3   :  { %4040 = vmatpush1.bf16.msra.mxu1 %v3737_v11  ;;  %4204 = vmatpush1.bf16.msra.mxu0 %v3739_v30  ;;  %v3780_v11 = vld [vmem:[#allocation3 + $0xc98] sm:$0xff]  ;;  %v3777_v30 = vld [vmem:[#allocation3 + $0xc80] sm:$0xff] }
0x12f4   :  { %4041 = vmatprep.subr.bf16.mxu1 %v3746_v42  ;;  %4205 = vmatprep.subr.bf16.mxu0 %v3748_v46  ;;  %v3779_v42 = vld [vmem:[#allocation3 + $0xc90] sm:$0xff]  ;;  %v3786_v46 = vld [vmem:[#allocation3 + $0xcc8] sm:$0xff] }
0x12f7   :  { %4042 = vmatpush1.bf16.msra.mxu1 %v3745_v20  ;;  %4206 = vmatpush1.bf16.msra.mxu0 %v3747_v19  ;;  %v3788_v20 = vld [vmem:[#allocation3 + $0xcd8] sm:$0xff]  ;;  %v3785_v19 = vld [vmem:[#allocation3 + $0xcc0] sm:$0xff] }
0x12f8   :  { %4043 = vmatprep.subr.bf16.mxu1 %v3754_v49  ;;  %4207 = vmatprep.subr.bf16.mxu0 %v3756_v43  ;;  %v3794_v49 = vld [vmem:[#allocation3 + $0xd08] sm:$0xff]  ;;  %v3796_v43 = vld [vmem:[#allocation3 + $0xd18] sm:$0xff] }
0x12fb   :  { %4044 = vmatpush1.bf16.msra.mxu1 %v3753_v29  ;;  %4208 = vmatpush1.bf16.msra.mxu0 %v3755_v59  ;;  %v3795_v29 = vld [vmem:[#allocation3 + $0xd10] sm:$0xff]  ;;  %v3802_v59 = vld [vmem:[#allocation3 + $0xd48] sm:$0xff] }
0x12fc   :  { %4054 = vmatprep.subr.bf16.mxu1 %v3762_v24  ;;  %4218 = vmatprep.subr.bf16.mxu0 %v3764_v52  ;;  %v3136_v24 = vrot.slane %v11504_v63, %v3135_v54  ;;  %v3801_v52 = vld [vmem:[#allocation3 + $0xd40] sm:$0xff] }
0x12fe   :  { %4046 = vmatmul.mubr.bf16.vlgmr.msra.gmra.mrb[88].mxu1 %v11569_v35  ;;  %4210 = vmatmul.mubr.bf16.vlgmr.msra.gmra.mrb[96].mxu0 %v11569_v35 }
0x12ff   :  { %4055 = vmatpush1.bf16.msra.mxu1 %v3761_v21  ;;  %4219 = vmatpush1.bf16.msra.mxu0 %v3763_v14  ;;  %v3803_v21 = vld [vmem:[#allocation3 + $0xd50] sm:$0xff]  ;;  %v3810_v14 = vld [vmem:[#allocation3 + $0xd88] sm:$0xff] }
0x1300   :  { %4056 = vmatprep.subr.bf16.mxu1 %v3770_v32  ;;  %4220 = vmatprep.subr.bf16.mxu0 %v3772_v48  ;;  %v3812_v32 = vld [vmem:[#allocation3 + $0xd98] sm:$0xff]  ;;  %v11582_v48 = vadd.f32 %v11539_v51, %v3136_v24  ;;  %v3825_v51 = vld [vmem:[#allocation3 + $0xe00] sm:$0xff] }
0x1301   :  { %4086 = vmatprep.mubr.bf16.mxu1 %v11571_v8  ;;  %4250 = vmatprep.mubr.bf16.mxu0 %v11571_v8  ;;  %v3841_v24 = vld [vmem:[#allocation3 + $0xe80] sm:$0xff] }
0x1302   :  { %v7661_v63 = vmul.f32 -1.442695, %v11582_v48 }
0x1303   :  { %4057 = vmatpush1.bf16.msra.mxu1 %v3769_v10  ;;  %4221 = vmatpush1.bf16.msra.mxu0 %v3771_v58  ;;  %v3809_v10 = vld [vmem:[#allocation3 + $0xd80] sm:$0xff]  ;;  %v3811_v58 = vld [vmem:[#allocation3 + $0xd90] sm:$0xff] }
0x1304   :  { %4058 = vmatprep.subr.bf16.mxu1 %v3778_v37  ;;  %4222 = vmatprep.subr.bf16.mxu0 %v3780_v11  ;;  %v3818_v37 = vld [vmem:[#allocation3 + $0xdc8] sm:$0xff]  ;;  %v3820_v11 = vld [vmem:[#allocation3 + $0xdd8] sm:$0xff]  ;;  %9635 = vpow2.f32 %v7661_v63  ;;  %v3857_v63 = vld [vmem:[#allocation3 + $0xf00] sm:$0xff] }
0x1307   :  { %4059 = vmatpush1.bf16.msra.mxu1 %v3777_v30  ;;  %4223 = vmatpush1.bf16.msra.mxu0 %v3779_v42  ;;  %v3817_v30 = vld [vmem:[#allocation3 + $0xdc0] sm:$0xff]  ;;  %v3819_v42 = vld [vmem:[#allocation3 + $0xdd0] sm:$0xff] }
0x1308   :  { %4060 = vmatprep.subr.bf16.mxu1 %v3786_v46  ;;  %4224 = vmatprep.subr.bf16.mxu0 %v3788_v20  ;;  %v3826_v46 = vld [vmem:[#allocation3 + $0xe08] sm:$0xff]  ;;  %v3828_v20 = vld [vmem:[#allocation3 + $0xe18] sm:$0xff] }
0x130b   :  { %4061 = vmatpush1.bf16.msra.mxu1 %v3785_v19  ;;  %4225 = vmatpush1.bf16.msra.mxu0 %v3787_v55  ;;  %v3827_v19 = vld [vmem:[#allocation3 + $0xe10] sm:$0xff]  ;;  %v3834_v55 = vld [vmem:[#allocation3 + $0xe48] sm:$0xff] }
0x130c   :  { %4062 = vmatprep.subr.bf16.mxu1 %v3794_v49  ;;  %4226 = vmatprep.subr.bf16.mxu0 %v3796_v43  ;;  %v3836_v49 = vld [vmem:[#allocation3 + $0xe58] sm:$0xff]  ;;  %v3833_v43 = vld [vmem:[#allocation3 + $0xe40] sm:$0xff] }
0x130f   :  { %4063 = vmatpush1.bf16.msra.mxu1 %v3793_v44  ;;  %4227 = vmatpush1.bf16.msra.mxu0 %v3795_v29  ;;  %v3835_v44 = vld [vmem:[#allocation3 + $0xe50] sm:$0xff]  ;;  %v3842_v29 = vld [vmem:[#allocation3 + $0xe88] sm:$0xff] }
0x1310   :  { %4064 = vmatprep.subr.bf16.mxu1 %v3802_v59  ;;  %4228 = vmatprep.subr.bf16.mxu0 %v3804_v26  ;;  %v3844_v59 = vld [vmem:[#allocation3 + $0xe98] sm:$0xff]  ;;  %v9636_v26 = vpop.eup %9635 }
0x1313   :  { %4065 = vmatpush1.bf16.msra.mxu1 %v3801_v52  ;;  %4229 = vmatpush1.bf16.msra.mxu0 %v3803_v21  ;;  %v3843_v52 = vld [vmem:[#allocation3 + $0xe90] sm:$0xff]  ;;  %v3850_v21 = vld [vmem:[#allocation3 + $0xec8] sm:$0xff] }
0x1314   :  { %4066 = vmatprep.subr.bf16.mxu1 %v3810_v14  ;;  %4230 = vmatprep.subr.bf16.mxu0 %v3812_v32  ;;  %v3852_v14 = vld [vmem:[#allocation3 + $0xed8] sm:$0xff]  ;;  %v3343_v32 = vadd.f32 1.0, %v9636_v26 }
0x1316   :  { %9637 = vrcp.f32 %v3343_v32 }
0x1317   :  { %4067 = vmatpush1.bf16.msra.mxu1 %v3809_v10  ;;  %4231 = vmatpush1.bf16.msra.mxu0 %v3811_v58  ;;  %v3849_v10 = vld [vmem:[#allocation3 + $0xec0] sm:$0xff]  ;;  %v3851_v58 = vld [vmem:[#allocation3 + $0xed0] sm:$0xff] }
0x1318   :  { %4068 = vmatprep.subr.bf16.mxu1 %v3818_v37  ;;  %4232 = vmatprep.subr.bf16.mxu0 %v3820_v11  ;;  %v3858_v37 = vld [vmem:[#allocation3 + $0xf08] sm:$0xff]  ;;  %v3860_v11 = vld [vmem:[#allocation3 + $0xf18] sm:$0xff] }
0x131b   :  { %4069 = vmatpush1.bf16.msra.mxu1 %v3817_v30  ;;  %4233 = vmatpush1.bf16.msra.mxu0 %v3819_v42  ;;  %v3859_v30 = vld [vmem:[#allocation3 + $0xf10] sm:$0xff]  ;;  %v3866_v42 = vld [vmem:[#allocation3 + $0xf48] sm:$0xff] }
0x131c   :  { %4070 = vmatprep.subr.bf16.mxu1 %v3826_v46  ;;  %4234 = vmatprep.subr.bf16.mxu0 %v3828_v20  ;;  %v3868_v46 = vld [vmem:[#allocation3 + $0xf58] sm:$0xff]  ;;  %v3865_v20 = vld [vmem:[#allocation3 + $0xf40] sm:$0xff] }
0x131f   :  { %4071 = vmatpush1.bf16.msra.mxu1 %v3825_v51  ;;  %4235 = vmatpush1.bf16.msra.mxu0 %v3827_v19  ;;  %v3867_v51 = vld [vmem:[#allocation3 + $0xf50] sm:$0xff]  ;;  %v3874_v19 = vld [vmem:[#allocation3 + $0xf88] sm:$0xff] }
0x1320   :  { %4072 = vmatprep.subr.bf16.mxu1 %v3834_v55  ;;  %4236 = vmatprep.subr.bf16.mxu0 %v3836_v49  ;;  %v3876_v55 = vld [vmem:[#allocation3 + $0xf98] sm:$0xff]  ;;  %v3873_v49 = vld [vmem:[#allocation3 + $0xf80] sm:$0xff] }
0x1323   :  { %4073 = vmatpush1.bf16.msra.mxu1 %v3833_v43  ;;  %4237 = vmatpush1.bf16.msra.mxu0 %v3835_v44  ;;  %v3875_v43 = vld [vmem:[#allocation3 + $0xf90] sm:$0xff]  ;;  %v9638_v44 = vpop.eup %9637 }
0x1324   :  { %4074 = vmatprep.subr.bf16.mxu1 %v3842_v29  ;;  %4238 = vmatprep.subr.bf16.mxu0 %v3844_v59  ;;  %v3882_v29 = vld [vmem:[#allocation3 + $0xfc8] sm:$0xff]  ;;  %v3884_v59 = vld [vmem:[#allocation3 + $0xfd8] sm:$0xff]  ;;  %v3367_v26 = vmul.f32 %v9638_v44, %v11582_v48  ;;  %v3413_v44 = vld [vmem:[#allocation3 + $0x120] sm:$0xff] }
0x1325   :  { %v3392_v48 = vld [vmem:[#allocation3 + $0x78] sm:$0xff] }
0x1326   :  { %v11586_v32 = vpack.c.bf16 %v3367_v26, %v3367_v26  ;;  %v3424_v26 = vld [vmem:[#allocation3 + $0x178] sm:$0xff] }
0x1327   :  { %4075 = vmatpush1.bf16.msra.mxu1 %v3841_v24  ;;  %4239 = vmatpush1.bf16.msra.mxu0 %v3843_v52  ;;  %v3881_v24 = vld [vmem:[#allocation3 + $0xfc0] sm:$0xff]  ;;  %v3883_v52 = vld [vmem:[#allocation3 + $0xfd0] sm:$0xff] }
0x1328   :  { %4076 = vmatprep.subr.bf16.mxu1 %v3850_v21  ;;  %4240 = vmatprep.subr.bf16.mxu0 %v3852_v14  ;;  %v3382_v21 = vld [vmem:[#allocation3 + $0x28] sm:$0xff]  ;;  %v3384_v14 = vld [vmem:[#allocation3 + $0x38] sm:$0xff] }
0x132b   :  { %4077 = vmatpush1.bf16.msra.mxu1 %v3849_v10  ;;  %4241 = vmatpush1.bf16.msra.mxu0 %v3851_v58  ;;  %v3381_v10 = vld [vmem:[#allocation3 + $0x20] sm:$0xff]  ;;  %v3383_v58 = vld [vmem:[#allocation3 + $0x30] sm:$0xff] }
0x132c   :  { %4078 = vmatprep.subr.bf16.mxu1 %v3858_v37  ;;  %4242 = vmatprep.subr.bf16.mxu0 %v3860_v11  ;;  %v3390_v37 = vld [vmem:[#allocation3 + $0x68] sm:$0xff]  ;;  %v3389_v11 = vld [vmem:[#allocation3 + $0x60] sm:$0xff] }
0x132f   :  { %4079 = vmatpush1.bf16.msra.mxu1 %v3857_v63  ;;  %4243 = vmatpush1.bf16.msra.mxu0 %v3859_v30  ;;  %v3391_v63 = vld [vmem:[#allocation3 + $0x70] sm:$0xff]  ;;  %v3398_v30 = vld [vmem:[#allocation3 + $0xa8] sm:$0xff] }
0x1330   :  { %4080 = vmatprep.subr.bf16.mxu1 %v3866_v42  ;;  %4244 = vmatprep.subr.bf16.mxu0 %v3868_v46  ;;  %v3400_v42 = vld [vmem:[#allocation3 + $0xb8] sm:$0xff]  ;;  %v3397_v46 = vld [vmem:[#allocation3 + $0xa0] sm:$0xff] }
0x1333   :  { %4081 = vmatpush1.bf16.msra.mxu1 %v3865_v20  ;;  %4245 = vmatpush1.bf16.msra.mxu0 %v3867_v51  ;;  %v3399_v20 = vld [vmem:[#allocation3 + $0xb0] sm:$0xff]  ;;  %v3406_v51 = vld [vmem:[#allocation3 + $0xe8] sm:$0xff] }
0x1334   :  { %4082 = vmatprep.subr.bf16.mxu1 %v3874_v19  ;;  %4246 = vmatprep.subr.bf16.mxu0 %v3876_v55  ;;  %v3408_v19 = vld [vmem:[#allocation3 + $0xf8] sm:$0xff]  ;;  %v3405_v55 = vld [vmem:[#allocation3 + $0xe0] sm:$0xff] }
0x1337   :  { %4083 = vmatpush1.bf16.msra.mxu1 %v3873_v49  ;;  %4247 = vmatpush1.bf16.msra.mxu0 %v3875_v43  ;;  %v3414_v49 = vld [vmem:[#allocation3 + $0x128] sm:$0xff]  ;;  %v3416_v43 = vld [vmem:[#allocation3 + $0x138] sm:$0xff] }
0x1338   :  { %4084 = vmatprep.subr.bf16.mxu1 %v3882_v29  ;;  %4248 = vmatprep.subr.bf16.mxu0 %v3884_v59  ;;  %v3415_v29 = vld [vmem:[#allocation3 + $0x130] sm:$0xff]  ;;  %v3422_v59 = vld [vmem:[#allocation3 + $0x168] sm:$0xff] }
0x133b   :  { %4085 = vmatpush1.bf16.msra.mxu1 %v3881_v24  ;;  %4249 = vmatpush1.bf16.msra.mxu0 %v3883_v52  ;;  %v3421_v24 = vld [vmem:[#allocation3 + $0x160] sm:$0xff]  ;;  %v3423_v52 = vld [vmem:[#allocation3 + $0x170] sm:$0xff] }
0x133c   :  { %4259 = vmatprep.subr.bf16.mxu1 %v3382_v21  ;;  %4423 = vmatprep.subr.bf16.mxu0 %v3384_v14  ;;  %v3430_v21 = vld [vmem:[#allocation3 + $0x1a8] sm:$0xff]  ;;  %v3432_v14 = vld [vmem:[#allocation3 + $0x1b8] sm:$0xff] }
0x133e   :  { %4087 = vmatmul.mubr.bf16.vlgmr.msra.gmra.mrb[88].mxu1 %v11586_v32  ;;  %4251 = vmatmul.mubr.bf16.vlgmr.msra.gmra.mrb[96].mxu0 %v11586_v32 }
0x133f   :  { %4260 = vmatpush1.bf16.msra.mxu1 %v3381_v10  ;;  %4291 = vmatprep.mubr.bf16.mxu1 %v11514_v60  ;;  %v3429_v10 = vld [vmem:[#allocation3 + $0x1a0] sm:$0xff] }
0x1340   :  { %4424 = vmatpush1.bf16.msra.mxu0 %v3383_v58  ;;  %4455 = vmatprep.mubr.bf16.mxu0 %v11514_v60  ;;  %v3407_v60 = vld [vmem:[#allocation3 + $0xf0] sm:$0xff] }
0x1341   :  { %4261 = vmatprep.subr.bf16.mxu1 %v3390_v37  ;;  %4425 = vmatprep.subr.bf16.mxu0 %v3392_v48  ;;  %v3431_v58 = vld [vmem:[#allocation3 + $0x1b0] sm:$0xff]  ;;  %v3438_v37 = vld [vmem:[#allocation3 + $0x1e8] sm:$0xff]  ;;  %v3440_v48 = vld [vmem:[#allocation3 + $0x1f8] sm:$0xff] }
0x1343   :  { %4262 = vmatpush1.bf16.msra.mxu1 %v3389_v11  ;;  %v3437_v11 = vld [vmem:[#allocation3 + $0x1e0] sm:$0xff] }
0x1344   :  { %4426 = vmatpush1.bf16.msra.mxu0 %v3391_v63  ;;  %4263 = vmatprep.subr.bf16.mxu1 %v3398_v30  ;;  %v3439_v63 = vld [vmem:[#allocation3 + $0x1f0] sm:$0xff]  ;;  %v3446_v30 = vld [vmem:[#allocation3 + $0x228] sm:$0xff] }
0x1345   :  { %4427 = vmatprep.subr.bf16.mxu0 %v3400_v42  ;;  %v3448_v42 = vld [vmem:[#allocation3 + $0x238] sm:$0xff] }
0x1347   :  { %4264 = vmatpush1.bf16.msra.mxu1 %v3397_v46  ;;  %v3445_v46 = vld [vmem:[#allocation3 + $0x220] sm:$0xff] }
0x1348   :  { %4428 = vmatpush1.bf16.msra.mxu0 %v3399_v20  ;;  %4265 = vmatprep.subr.bf16.mxu1 %v3406_v51  ;;  %v3447_v20 = vld [vmem:[#allocation3 + $0x230] sm:$0xff]  ;;  %v3454_v51 = vld [vmem:[#allocation3 + $0x268] sm:$0xff] }
0x1349   :  { %4429 = vmatprep.subr.bf16.mxu0 %v3408_v19  ;;  %v3456_v19 = vld [vmem:[#allocation3 + $0x278] sm:$0xff] }
0x134b   :  { %4266 = vmatpush1.bf16.msra.mxu1 %v3405_v55  ;;  %v3453_v55 = vld [vmem:[#allocation3 + $0x260] sm:$0xff] }
0x134c   :  { %4430 = vmatpush1.bf16.msra.mxu0 %v3407_v60  ;;  %4267 = vmatprep.subr.bf16.mxu1 %v3414_v49  ;;  %v3455_v60 = vld [vmem:[#allocation3 + $0x270] sm:$0xff]  ;;  %v3462_v49 = vld [vmem:[#allocation3 + $0x2a8] sm:$0xff] }
0x134d   :  { %4431 = vmatprep.subr.bf16.mxu0 %v3416_v43  ;;  %v3464_v43 = vld [vmem:[#allocation3 + $0x2b8] sm:$0xff] }
0x134f   :  { %4268 = vmatpush1.bf16.msra.mxu1 %v3413_v44  ;;  %v3461_v44 = vld [vmem:[#allocation3 + $0x2a0] sm:$0xff] }
0x1350   :  { %4432 = vmatpush1.bf16.msra.mxu0 %v3415_v29  ;;  %4269 = vmatprep.subr.bf16.mxu1 %v3422_v59  ;;  %v3463_v29 = vld [vmem:[#allocation3 + $0x2b0] sm:$0xff]  ;;  %v3470_v59 = vld [vmem:[#allocation3 + $0x2e8] sm:$0xff] }
0x1351   :  { %4433 = vmatprep.subr.bf16.mxu0 %v3424_v26  ;;  %v3472_v26 = vld [vmem:[#allocation3 + $0x2f8] sm:$0xff] }
0x1353   :  { %4270 = vmatpush1.bf16.msra.mxu1 %v3421_v24  ;;  %v3469_v24 = vld [vmem:[#allocation3 + $0x2e0] sm:$0xff] }
0x1354   :  { %4434 = vmatpush1.bf16.msra.mxu0 %v3423_v52  ;;  %4271 = vmatprep.subr.bf16.mxu1 %v3430_v21  ;;  %v3471_v52 = vld [vmem:[#allocation3 + $0x2f0] sm:$0xff]  ;;  %v3478_v21 = vld [vmem:[#allocation3 + $0x328] sm:$0xff] }
0x1355   :  { %4435 = vmatprep.subr.bf16.mxu0 %v3432_v14  ;;  %v3480_v14 = vld [vmem:[#allocation3 + $0x338] sm:$0xff] }
0x1357   :  { %4272 = vmatpush1.bf16.msra.mxu1 %v3429_v10  ;;  %v3477_v10 = vld [vmem:[#allocation3 + $0x320] sm:$0xff] }
0x1358   :  { %4436 = vmatpush1.bf16.msra.mxu0 %v3431_v58  ;;  %4273 = vmatprep.subr.bf16.mxu1 %v3438_v37  ;;  %v3479_v58 = vld [vmem:[#allocation3 + $0x330] sm:$0xff]  ;;  %v3486_v37 = vld [vmem:[#allocation3 + $0x368] sm:$0xff] }
0x1359   :  { %4437 = vmatprep.subr.bf16.mxu0 %v3440_v48  ;;  %v3488_v48 = vld [vmem:[#allocation3 + $0x378] sm:$0xff] }
0x135b   :  { %4274 = vmatpush1.bf16.msra.mxu1 %v3437_v11  ;;  %v3485_v11 = vld [vmem:[#allocation3 + $0x360] sm:$0xff] }
0x135c   :  { %4438 = vmatpush1.bf16.msra.mxu0 %v3439_v63  ;;  %4275 = vmatprep.subr.bf16.mxu1 %v3446_v30  ;;  %v3487_v63 = vld [vmem:[#allocation3 + $0x370] sm:$0xff]  ;;  %v3494_v30 = vld [vmem:[#allocation3 + $0x3a8] sm:$0xff] }
0x135d   :  { %4439 = vmatprep.subr.bf16.mxu0 %v3448_v42  ;;  %v3496_v42 = vld [vmem:[#allocation3 + $0x3b8] sm:$0xff] }
0x135f   :  { %4276 = vmatpush1.bf16.msra.mxu1 %v3445_v46  ;;  %v3493_v46 = vld [vmem:[#allocation3 + $0x3a0] sm:$0xff] }
0x1360   :  { %4440 = vmatpush1.bf16.msra.mxu0 %v3447_v20  ;;  %4277 = vmatprep.subr.bf16.mxu1 %v3454_v51  ;;  %v3495_v20 = vld [vmem:[#allocation3 + $0x3b0] sm:$0xff]  ;;  %v3502_v51 = vld [vmem:[#allocation3 + $0x3e8] sm:$0xff] }
0x1361   :  { %4441 = vmatprep.subr.bf16.mxu0 %v3456_v19  ;;  %v3504_v19 = vld [vmem:[#allocation3 + $0x3f8] sm:$0xff] }
0x1363   :  { %4278 = vmatpush1.bf16.msra.mxu1 %v3453_v55  ;;  %v3501_v55 = vld [vmem:[#allocation3 + $0x3e0] sm:$0xff] }
0x1364   :  { %4442 = vmatpush1.bf16.msra.mxu0 %v3455_v60  ;;  %4279 = vmatprep.subr.bf16.mxu1 %v3462_v49  ;;  %v3503_v60 = vld [vmem:[#allocation3 + $0x3f0] sm:$0xff]  ;;  %v3510_v49 = vld [vmem:[#allocation3 + $0x428] sm:$0xff] }
0x1365   :  { %4443 = vmatprep.subr.bf16.mxu0 %v3464_v43  ;;  %v3512_v43 = vld [vmem:[#allocation3 + $0x438] sm:$0xff] }
0x1367   :  { %4280 = vmatpush1.bf16.msra.mxu1 %v3461_v44  ;;  %v3509_v44 = vld [vmem:[#allocation3 + $0x420] sm:$0xff] }
0x1368   :  { %4444 = vmatpush1.bf16.msra.mxu0 %v3463_v29  ;;  %4281 = vmatprep.subr.bf16.mxu1 %v3470_v59  ;;  %v3511_v29 = vld [vmem:[#allocation3 + $0x430] sm:$0xff]  ;;  %v3518_v59 = vld [vmem:[#allocation3 + $0x468] sm:$0xff] }
0x1369   :  { %4445 = vmatprep.subr.bf16.mxu0 %v3472_v26  ;;  %v3520_v26 = vld [vmem:[#allocation3 + $0x478] sm:$0xff] }
0x136b   :  { %4282 = vmatpush1.bf16.msra.mxu1 %v3469_v24  ;;  %v3517_v24 = vld [vmem:[#allocation3 + $0x460] sm:$0xff] }
0x136c   :  { %4446 = vmatpush1.bf16.msra.mxu0 %v3471_v52  ;;  %4283 = vmatprep.subr.bf16.mxu1 %v3478_v21  ;;  %v3519_v52 = vld [vmem:[#allocation3 + $0x470] sm:$0xff]  ;;  %v3526_v21 = vld [vmem:[#allocation3 + $0x4a8] sm:$0xff] }
0x136d   :  { %4447 = vmatprep.subr.bf16.mxu0 %v3480_v14  ;;  %v3528_v14 = vld [vmem:[#allocation3 + $0x4b8] sm:$0xff] }
0x136f   :  { %4284 = vmatpush1.bf16.msra.mxu1 %v3477_v10  ;;  %v3525_v10 = vld [vmem:[#allocation3 + $0x4a0] sm:$0xff] }
0x1370   :  { %4448 = vmatpush1.bf16.msra.mxu0 %v3479_v58  ;;  %4285 = vmatprep.subr.bf16.mxu1 %v3486_v37  ;;  %v3527_v58 = vld [vmem:[#allocation3 + $0x4b0] sm:$0xff]  ;;  %v3536_v37 = vld [vmem:[#allocation3 + $0x4f8] sm:$0xff] }
0x1371   :  { %4449 = vmatprep.subr.bf16.mxu0 %v3488_v48  ;;  %v3533_v48 = vld [vmem:[#allocation3 + $0x4e0] sm:$0xff] }
0x1373   :  { %4286 = vmatpush1.bf16.msra.mxu1 %v3485_v11  ;;  %v3535_v11 = vld [vmem:[#allocation3 + $0x4f0] sm:$0xff] }
0x1374   :  { %4450 = vmatpush1.bf16.msra.mxu0 %v3487_v63  ;;  %4287 = vmatprep.subr.bf16.mxu1 %v3494_v30  ;;  %v3544_v63 = vld [vmem:[#allocation3 + $0x538] sm:$0xff]  ;;  %v3541_v30 = vld [vmem:[#allocation3 + $0x520] sm:$0xff] }
0x1375   :  { %4451 = vmatprep.subr.bf16.mxu0 %v3496_v42  ;;  %v3543_v42 = vld [vmem:[#allocation3 + $0x530] sm:$0xff] }
0x1377   :  { %4288 = vmatpush1.bf16.msra.mxu1 %v3493_v46  ;;  %v3550_v46 = vld [vmem:[#allocation3 + $0x568] sm:$0xff] }
0x1378   :  { %4452 = vmatpush1.bf16.msra.mxu0 %v3495_v20  ;;  %4289 = vmatprep.subr.bf16.mxu1 %v3502_v51  ;;  %v3552_v20 = vld [vmem:[#allocation3 + $0x578] sm:$0xff]  ;;  %v3549_v51 = vld [vmem:[#allocation3 + $0x560] sm:$0xff] }
0x1379   :  { %4453 = vmatprep.subr.bf16.mxu0 %v3504_v19  ;;  %v3551_v19 = vld [vmem:[#allocation3 + $0x570] sm:$0xff] }
0x137b   :  { %4290 = vmatpush1.bf16.msra.mxu1 %v3501_v55  ;;  %v3558_v55 = vld [vmem:[#allocation3 + $0x5a8] sm:$0xff] }
0x137c   :  { %4454 = vmatpush1.bf16.msra.mxu0 %v3503_v60  ;;  %4300 = vmatprep.subr.bf16.mxu1 %v3510_v49  ;;  %v3560_v60 = vld [vmem:[#allocation3 + $0x5b8] sm:$0xff]  ;;  %v3557_v49 = vld [vmem:[#allocation3 + $0x5a0] sm:$0xff] }
0x137d   :  { %4464 = vmatprep.subr.bf16.mxu0 %v3512_v43  ;;  %v3559_v43 = vld [vmem:[#allocation3 + $0x5b0] sm:$0xff] }
0x137e   :  { %4292 = vmatmul.mubr.bf16.vlgmr.msra.gmra.mrb[92].mxu1 %v11516_v39 }
0x137f   :  { %4456 = vmatmul.mubr.bf16.vlgmr.msra.gmra.mrb[100].mxu0 %v11516_v39  ;;  %4301 = vmatpush1.bf16.msra.mxu1 %v3509_v44  ;;  %v3534_v39 = vld [vmem:[#allocation3 + $0x4e8] sm:$0xff] }
0x1380   :  { %4332 = vmatprep.mubr.bf16.mxu1 %v11522_v53  ;;  %4465 = vmatpush1.bf16.msra.mxu0 %v3511_v29  ;;  %v3566_v44 = vld [vmem:[#allocation3 + $0x5e8] sm:$0xff]  ;;  %v3568_v29 = vld [vmem:[#allocation3 + $0x5f8] sm:$0xff] }
0x1381   :  { %4496 = vmatprep.mubr.bf16.mxu0 %v11522_v53  ;;  %4302 = vmatprep.subr.bf16.mxu1 %v3518_v59  ;;  %v3542_v53 = vld [vmem:[#allocation3 + $0x528] sm:$0xff]  ;;  %v3565_v59 = vld [vmem:[#allocation3 + $0x5e0] sm:$0xff] }
0x1382   :  { %4466 = vmatprep.subr.bf16.mxu0 %v3520_v26  ;;  %v3567_v26 = vld [vmem:[#allocation3 + $0x5f0] sm:$0xff] }
0x1383   :  { %4303 = vmatpush1.bf16.msra.mxu1 %v3517_v24  ;;  %v3574_v24 = vld [vmem:[#allocation3 + $0x628] sm:$0xff] }
0x1384   :  { %4467 = vmatpush1.bf16.msra.mxu0 %v3519_v52  ;;  %4304 = vmatprep.subr.bf16.mxu1 %v3526_v21  ;;  %v3576_v52 = vld [vmem:[#allocation3 + $0x638] sm:$0xff]  ;;  %v3573_v21 = vld [vmem:[#allocation3 + $0x620] sm:$0xff] }
0x1385   :  { %4468 = vmatprep.subr.bf16.mxu0 %v3528_v14  ;;  %v3575_v14 = vld [vmem:[#allocation3 + $0x630] sm:$0xff] }
0x1387   :  { %4305 = vmatpush1.bf16.msra.mxu1 %v3525_v10  ;;  %v3582_v10 = vld [vmem:[#allocation3 + $0x668] sm:$0xff] }
0x1388   :  { %4469 = vmatpush1.bf16.msra.mxu0 %v3527_v58  ;;  %4306 = vmatprep.subr.bf16.mxu1 %v3534_v39  ;;  %v3584_v58 = vld [vmem:[#allocation3 + $0x678] sm:$0xff]  ;;  %v3581_v39 = vld [vmem:[#allocation3 + $0x660] sm:$0xff] }
0x1389   :  { %4470 = vmatprep.subr.bf16.mxu0 %v3536_v37  ;;  %v3583_v37 = vld [vmem:[#allocation3 + $0x670] sm:$0xff] }
0x138b   :  { %4307 = vmatpush1.bf16.msra.mxu1 %v3533_v48  ;;  %v3590_v48 = vld [vmem:[#allocation3 + $0x6a8] sm:$0xff] }
0x138c   :  { %4471 = vmatpush1.bf16.msra.mxu0 %v3535_v11  ;;  %4308 = vmatprep.subr.bf16.mxu1 %v3542_v53  ;;  %v3592_v11 = vld [vmem:[#allocation3 + $0x6b8] sm:$0xff]  ;;  %v3589_v53 = vld [vmem:[#allocation3 + $0x6a0] sm:$0xff] }
0x138d   :  { %4472 = vmatprep.subr.bf16.mxu0 %v3544_v63  ;;  %v3591_v63 = vld [vmem:[#allocation3 + $0x6b0] sm:$0xff] }
0x138f   :  { %4309 = vmatpush1.bf16.msra.mxu1 %v3541_v30  ;;  %v3598_v30 = vld [vmem:[#allocation3 + $0x6e8] sm:$0xff] }
0x1390   :  { %4473 = vmatpush1.bf16.msra.mxu0 %v3543_v42  ;;  %4310 = vmatprep.subr.bf16.mxu1 %v3550_v46  ;;  %v3600_v42 = vld [vmem:[#allocation3 + $0x6f8] sm:$0xff]  ;;  %v3597_v46 = vld [vmem:[#allocation3 + $0x6e0] sm:$0xff] }
0x1391   :  { %4474 = vmatprep.subr.bf16.mxu0 %v3552_v20  ;;  %v3599_v20 = vld [vmem:[#allocation3 + $0x6f0] sm:$0xff] }
0x1393   :  { %4311 = vmatpush1.bf16.msra.mxu1 %v3549_v51  ;;  %v3606_v51 = vld [vmem:[#allocation3 + $0x728] sm:$0xff] }
0x1394   :  { %4475 = vmatpush1.bf16.msra.mxu0 %v3551_v19  ;;  %4312 = vmatprep.subr.bf16.mxu1 %v3558_v55  ;;  %v3608_v19 = vld [vmem:[#allocation3 + $0x738] sm:$0xff]  ;;  %v3605_v55 = vld [vmem:[#allocation3 + $0x720] sm:$0xff] }
0x1395   :  { %4476 = vmatprep.subr.bf16.mxu0 %v3560_v60  ;;  %v3607_v60 = vld [vmem:[#allocation3 + $0x730] sm:$0xff] }
0x1397   :  { %4313 = vmatpush1.bf16.msra.mxu1 %v3557_v49  ;;  %v3614_v49 = vld [vmem:[#allocation3 + $0x768] sm:$0xff] }
0x1398   :  { %4477 = vmatpush1.bf16.msra.mxu0 %v3559_v43  ;;  %4314 = vmatprep.subr.bf16.mxu1 %v3566_v44  ;;  %v3616_v43 = vld [vmem:[#allocation3 + $0x778] sm:$0xff]  ;;  %v3613_v44 = vld [vmem:[#allocation3 + $0x760] sm:$0xff] }
0x1399   :  { %4478 = vmatprep.subr.bf16.mxu0 %v3568_v29  ;;  %v3615_v29 = vld [vmem:[#allocation3 + $0x770] sm:$0xff] }
0x139b   :  { %4315 = vmatpush1.bf16.msra.mxu1 %v3565_v59  ;;  %v3622_v59 = vld [vmem:[#allocation3 + $0x7a8] sm:$0xff] }
0x139c   :  { %4479 = vmatpush1.bf16.msra.mxu0 %v3567_v26  ;;  %4316 = vmatprep.subr.bf16.mxu1 %v3574_v24  ;;  %v3624_v26 = vld [vmem:[#allocation3 + $0x7b8] sm:$0xff]  ;;  %v3621_v24 = vld [vmem:[#allocation3 + $0x7a0] sm:$0xff] }
0x139d   :  { %4480 = vmatprep.subr.bf16.mxu0 %v3576_v52  ;;  %v3623_v52 = vld [vmem:[#allocation3 + $0x7b0] sm:$0xff] }
0x139f   :  { %4317 = vmatpush1.bf16.msra.mxu1 %v3573_v21  ;;  %v3630_v21 = vld [vmem:[#allocation3 + $0x7e8] sm:$0xff] }
0x13a0   :  { %4481 = vmatpush1.bf16.msra.mxu0 %v3575_v14  ;;  %4318 = vmatprep.subr.bf16.mxu1 %v3582_v10  ;;  %v3632_v14 = vld [vmem:[#allocation3 + $0x7f8] sm:$0xff]  ;;  %v3629_v10 = vld [vmem:[#allocation3 + $0x7e0] sm:$0xff] }
0x13a1   :  { %4482 = vmatprep.subr.bf16.mxu0 %v3584_v58  ;;  %v3631_v58 = vld [vmem:[#allocation3 + $0x7f0] sm:$0xff] }
0x13a3   :  { %4319 = vmatpush1.bf16.msra.mxu1 %v3581_v39  ;;  %v3638_v39 = vld [vmem:[#allocation3 + $0x828] sm:$0xff] }
0x13a4   :  { %4483 = vmatpush1.bf16.msra.mxu0 %v3583_v37  ;;  %4320 = vmatprep.subr.bf16.mxu1 %v3590_v48  ;;  %v3640_v37 = vld [vmem:[#allocation3 + $0x838] sm:$0xff]  ;;  %v3637_v48 = vld [vmem:[#allocation3 + $0x820] sm:$0xff] }
0x13a5   :  { %4484 = vmatprep.subr.bf16.mxu0 %v3592_v11  ;;  %v3639_v11 = vld [vmem:[#allocation3 + $0x830] sm:$0xff] }
0x13a7   :  { %4321 = vmatpush1.bf16.msra.mxu1 %v3589_v53  ;;  %v3646_v53 = vld [vmem:[#allocation3 + $0x868] sm:$0xff] }
0x13a8   :  { %4485 = vmatpush1.bf16.msra.mxu0 %v3591_v63  ;;  %4322 = vmatprep.subr.bf16.mxu1 %v3598_v30  ;;  %v3648_v63 = vld [vmem:[#allocation3 + $0x878] sm:$0xff]  ;;  %v3645_v30 = vld [vmem:[#allocation3 + $0x860] sm:$0xff] }
0x13a9   :  { %4486 = vmatprep.subr.bf16.mxu0 %v3600_v42  ;;  %v3647_v42 = vld [vmem:[#allocation3 + $0x870] sm:$0xff] }
0x13ab   :  { %4323 = vmatpush1.bf16.msra.mxu1 %v3597_v46  ;;  %v3654_v46 = vld [vmem:[#allocation3 + $0x8a8] sm:$0xff] }
0x13ac   :  { %4487 = vmatpush1.bf16.msra.mxu0 %v3599_v20  ;;  %4324 = vmatprep.subr.bf16.mxu1 %v3606_v51  ;;  %v3656_v20 = vld [vmem:[#allocation3 + $0x8b8] sm:$0xff]  ;;  %v3653_v51 = vld [vmem:[#allocation3 + $0x8a0] sm:$0xff] }
0x13ad   :  { %4488 = vmatprep.subr.bf16.mxu0 %v3608_v19  ;;  %v3655_v19 = vld [vmem:[#allocation3 + $0x8b0] sm:$0xff] }
0x13af   :  { %4325 = vmatpush1.bf16.msra.mxu1 %v3605_v55  ;;  %v3664_v55 = vld [vmem:[#allocation3 + $0x8f8] sm:$0xff] }
0x13b0   :  { %4489 = vmatpush1.bf16.msra.mxu0 %v3607_v60  ;;  %4326 = vmatprep.subr.bf16.mxu1 %v3614_v49  ;;  %v3661_v60 = vld [vmem:[#allocation3 + $0x8e0] sm:$0xff]  ;;  %v3663_v49 = vld [vmem:[#allocation3 + $0x8f0] sm:$0xff] }
0x13b1   :  { %4490 = vmatprep.subr.bf16.mxu0 %v3616_v43  ;;  %v3672_v43 = vld [vmem:[#allocation3 + $0x938] sm:$0xff] }
0x13b3   :  { %4327 = vmatpush1.bf16.msra.mxu1 %v3613_v44  ;;  %v3669_v44 = vld [vmem:[#allocation3 + $0x920] sm:$0xff] }
0x13b4   :  { %4491 = vmatpush1.bf16.msra.mxu0 %v3615_v29  ;;  %4328 = vmatprep.subr.bf16.mxu1 %v3622_v59  ;;  %v3671_v29 = vld [vmem:[#allocation3 + $0x930] sm:$0xff]  ;;  %v3678_v59 = vld [vmem:[#allocation3 + $0x968] sm:$0xff] }
0x13b5   :  { %4492 = vmatprep.subr.bf16.mxu0 %v3624_v26  ;;  %v3680_v26 = vld [vmem:[#allocation3 + $0x978] sm:$0xff] }
0x13b7   :  { %4329 = vmatpush1.bf16.msra.mxu1 %v3621_v24  ;;  %v3677_v24 = vld [vmem:[#allocation3 + $0x960] sm:$0xff] }
0x13b8   :  { %4493 = vmatpush1.bf16.msra.mxu0 %v3623_v52  ;;  %4330 = vmatprep.subr.bf16.mxu1 %v3630_v21  ;;  %v3679_v52 = vld [vmem:[#allocation3 + $0x970] sm:$0xff]  ;;  %v3686_v21 = vld [vmem:[#allocation3 + $0x9a8] sm:$0xff] }
0x13b9   :  { %4494 = vmatprep.subr.bf16.mxu0 %v3632_v14  ;;  %v3688_v14 = vld [vmem:[#allocation3 + $0x9b8] sm:$0xff] }
0x13bb   :  { %4331 = vmatpush1.bf16.msra.mxu1 %v3629_v10  ;;  %v3685_v10 = vld [vmem:[#allocation3 + $0x9a0] sm:$0xff] }
0x13bc   :  { %4495 = vmatpush1.bf16.msra.mxu0 %v3631_v58  ;;  %4341 = vmatprep.subr.bf16.mxu1 %v3638_v39  ;;  %v3687_v58 = vld [vmem:[#allocation3 + $0x9b0] sm:$0xff]  ;;  %v3694_v39 = vld [vmem:[#allocation3 + $0x9e8] sm:$0xff] }
0x13bd   :  { %4505 = vmatprep.subr.bf16.mxu0 %v3640_v37  ;;  %v3696_v37 = vld [vmem:[#allocation3 + $0x9f8] sm:$0xff] }
0x13be   :  { %4333 = vmatmul.mubr.bf16.vlgmr.msra.gmra.mrb[92].mxu1 %v11545_v27 }
0x13bf   :  { %4497 = vmatmul.mubr.bf16.vlgmr.msra.gmra.mrb[100].mxu0 %v11545_v27  ;;  %4342 = vmatpush1.bf16.msra.mxu1 %v3637_v48  ;;  %v3662_v27 = vld [vmem:[#allocation3 + $0x8e8] sm:$0xff]  ;;  %v3693_v48 = vld [vmem:[#allocation3 + $0x9e0] sm:$0xff] }
0x13c0   :  { %4373 = vmatprep.mubr.bf16.mxu1 %v11547_v15  ;;  %4506 = vmatpush1.bf16.msra.mxu0 %v3639_v11  ;;  %v3695_v11 = vld [vmem:[#allocation3 + $0x9f0] sm:$0xff] }
0x13c1   :  { %4537 = vmatprep.mubr.bf16.mxu0 %v11547_v15  ;;  %4343 = vmatprep.subr.bf16.mxu1 %v3646_v53  ;;  %v3670_v15 = vld [vmem:[#allocation3 + $0x928] sm:$0xff] }
0x13c2   :  { %4507 = vmatprep.subr.bf16.mxu0 %v3648_v63  ;;  %v3702_v53 = vld [vmem:[#allocation3 + $0xa28] sm:$0xff]  ;;  %v3704_v63 = vld [vmem:[#allocation3 + $0xa38] sm:$0xff] }
0x13c3   :  { %4344 = vmatpush1.bf16.msra.mxu1 %v3645_v30  ;;  %v3701_v30 = vld [vmem:[#allocation3 + $0xa20] sm:$0xff] }
0x13c4   :  { %4508 = vmatpush1.bf16.msra.mxu0 %v3647_v42  ;;  %4345 = vmatprep.subr.bf16.mxu1 %v3654_v46  ;;  %v3703_v42 = vld [vmem:[#allocation3 + $0xa30] sm:$0xff]  ;;  %v3710_v46 = vld [vmem:[#allocation3 + $0xa68] sm:$0xff] }
0x13c5   :  { %4509 = vmatprep.subr.bf16.mxu0 %v3656_v20  ;;  %v3712_v20 = vld [vmem:[#allocation3 + $0xa78] sm:$0xff] }
0x13c7   :  { %4346 = vmatpush1.bf16.msra.mxu1 %v3653_v51  ;;  %v3709_v51 = vld [vmem:[#allocation3 + $0xa60] sm:$0xff] }
0x13c8   :  { %4510 = vmatpush1.bf16.msra.mxu0 %v3655_v19  ;;  %4347 = vmatprep.subr.bf16.mxu1 %v3662_v27  ;;  %v3711_v19 = vld [vmem:[#allocation3 + $0xa70] sm:$0xff]  ;;  %v3718_v27 = vld [vmem:[#allocation3 + $0xaa8] sm:$0xff] }
0x13c9   :  { %4511 = vmatprep.subr.bf16.mxu0 %v3664_v55  ;;  %v3720_v55 = vld [vmem:[#allocation3 + $0xab8] sm:$0xff] }
0x13cb   :  { %4348 = vmatpush1.bf16.msra.mxu1 %v3661_v60  ;;  %v3717_v60 = vld [vmem:[#allocation3 + $0xaa0] sm:$0xff] }
0x13cc   :  { %4512 = vmatpush1.bf16.msra.mxu0 %v3663_v49  ;;  %4349 = vmatprep.subr.bf16.mxu1 %v3670_v15  ;;  %v3719_v49 = vld [vmem:[#allocation3 + $0xab0] sm:$0xff]  ;;  %v3726_v15 = vld [vmem:[#allocation3 + $0xae8] sm:$0xff] }
0x13cd   :  { %4513 = vmatprep.subr.bf16.mxu0 %v3672_v43  ;;  %v3728_v43 = vld [vmem:[#allocation3 + $0xaf8] sm:$0xff] }
0x13cf   :  { %4350 = vmatpush1.bf16.msra.mxu1 %v3669_v44  ;;  %v3725_v44 = vld [vmem:[#allocation3 + $0xae0] sm:$0xff] }
0x13d0   :  { %4514 = vmatpush1.bf16.msra.mxu0 %v3671_v29  ;;  %4351 = vmatprep.subr.bf16.mxu1 %v3678_v59  ;;  %v3727_v29 = vld [vmem:[#allocation3 + $0xaf0] sm:$0xff]  ;;  %v3734_v59 = vld [vmem:[#allocation3 + $0xb28] sm:$0xff] }
0x13d1   :  { %4515 = vmatprep.subr.bf16.mxu0 %v3680_v26  ;;  %v3736_v26 = vld [vmem:[#allocation3 + $0xb38] sm:$0xff] }
0x13d3   :  { %4352 = vmatpush1.bf16.msra.mxu1 %v3677_v24  ;;  %v3733_v24 = vld [vmem:[#allocation3 + $0xb20] sm:$0xff] }
0x13d4   :  { %4516 = vmatpush1.bf16.msra.mxu0 %v3679_v52  ;;  %4353 = vmatprep.subr.bf16.mxu1 %v3686_v21  ;;  %v3735_v52 = vld [vmem:[#allocation3 + $0xb30] sm:$0xff]  ;;  %v3742_v21 = vld [vmem:[#allocation3 + $0xb68] sm:$0xff] }
0x13d5   :  { %4517 = vmatprep.subr.bf16.mxu0 %v3688_v14  ;;  %v3744_v14 = vld [vmem:[#allocation3 + $0xb78] sm:$0xff] }
0x13d7   :  { %4354 = vmatpush1.bf16.msra.mxu1 %v3685_v10  ;;  %v3741_v10 = vld [vmem:[#allocation3 + $0xb60] sm:$0xff] }
0x13d8   :  { %4518 = vmatpush1.bf16.msra.mxu0 %v3687_v58  ;;  %4355 = vmatprep.subr.bf16.mxu1 %v3694_v39  ;;  %v3743_v58 = vld [vmem:[#allocation3 + $0xb70] sm:$0xff]  ;;  %v3750_v39 = vld [vmem:[#allocation3 + $0xba8] sm:$0xff] }
0x13d9   :  { %4519 = vmatprep.subr.bf16.mxu0 %v3696_v37  ;;  %v3752_v37 = vld [vmem:[#allocation3 + $0xbb8] sm:$0xff] }
0x13db   :  { %4356 = vmatpush1.bf16.msra.mxu1 %v3693_v48  ;;  %v3749_v48 = vld [vmem:[#allocation3 + $0xba0] sm:$0xff] }
0x13dc   :  { %4520 = vmatpush1.bf16.msra.mxu0 %v3695_v11  ;;  %4357 = vmatprep.subr.bf16.mxu1 %v3702_v53  ;;  %v3751_v11 = vld [vmem:[#allocation3 + $0xbb0] sm:$0xff]  ;;  %v3758_v53 = vld [vmem:[#allocation3 + $0xbe8] sm:$0xff] }
0x13dd   :  { %4521 = vmatprep.subr.bf16.mxu0 %v3704_v63  ;;  %v3760_v63 = vld [vmem:[#allocation3 + $0xbf8] sm:$0xff] }
0x13df   :  { %4358 = vmatpush1.bf16.msra.mxu1 %v3701_v30  ;;  %v3757_v30 = vld [vmem:[#allocation3 + $0xbe0] sm:$0xff] }
0x13e0   :  { %4522 = vmatpush1.bf16.msra.mxu0 %v3703_v42  ;;  %4359 = vmatprep.subr.bf16.mxu1 %v3710_v46  ;;  %v3759_v42 = vld [vmem:[#allocation3 + $0xbf0] sm:$0xff]  ;;  %v3766_v46 = vld [vmem:[#allocation3 + $0xc28] sm:$0xff] }
0x13e1   :  { %4523 = vmatprep.subr.bf16.mxu0 %v3712_v20  ;;  %v3768_v20 = vld [vmem:[#allocation3 + $0xc38] sm:$0xff] }
0x13e3   :  { %4360 = vmatpush1.bf16.msra.mxu1 %v3709_v51  ;;  %v3765_v51 = vld [vmem:[#allocation3 + $0xc20] sm:$0xff] }
0x13e4   :  { %4524 = vmatpush1.bf16.msra.mxu0 %v3711_v19  ;;  %4361 = vmatprep.subr.bf16.mxu1 %v3718_v27  ;;  %v3767_v19 = vld [vmem:[#allocation3 + $0xc30] sm:$0xff]  ;;  %v3774_v27 = vld [vmem:[#allocation3 + $0xc68] sm:$0xff] }
0x13e5   :  { %4525 = vmatprep.subr.bf16.mxu0 %v3720_v55  ;;  %v3776_v55 = vld [vmem:[#allocation3 + $0xc78] sm:$0xff] }
0x13e7   :  { %4362 = vmatpush1.bf16.msra.mxu1 %v3717_v60  ;;  %v3773_v60 = vld [vmem:[#allocation3 + $0xc60] sm:$0xff] }
0x13e8   :  { %4526 = vmatpush1.bf16.msra.mxu0 %v3719_v49  ;;  %4363 = vmatprep.subr.bf16.mxu1 %v3726_v15  ;;  %v3775_v49 = vld [vmem:[#allocation3 + $0xc70] sm:$0xff]  ;;  %v3782_v15 = vld [vmem:[#allocation3 + $0xca8] sm:$0xff] }
0x13e9   :  { %4527 = vmatprep.subr.bf16.mxu0 %v3728_v43  ;;  %v3784_v43 = vld [vmem:[#allocation3 + $0xcb8] sm:$0xff] }
0x13eb   :  { %4364 = vmatpush1.bf16.msra.mxu1 %v3725_v44  ;;  %v3781_v44 = vld [vmem:[#allocation3 + $0xca0] sm:$0xff] }
0x13ec   :  { %4528 = vmatpush1.bf16.msra.mxu0 %v3727_v29  ;;  %4365 = vmatprep.subr.bf16.mxu1 %v3734_v59  ;;  %v3783_v29 = vld [vmem:[#allocation3 + $0xcb0] sm:$0xff]  ;;  %v3792_v59 = vld [vmem:[#allocation3 + $0xcf8] sm:$0xff] }
0x13ed   :  { %4529 = vmatprep.subr.bf16.mxu0 %v3736_v26  ;;  %v3789_v26 = vld [vmem:[#allocation3 + $0xce0] sm:$0xff] }
0x13ef   :  { %4366 = vmatpush1.bf16.msra.mxu1 %v3733_v24  ;;  %v3791_v24 = vld [vmem:[#allocation3 + $0xcf0] sm:$0xff] }
0x13f0   :  { %4530 = vmatpush1.bf16.msra.mxu0 %v3735_v52  ;;  %4367 = vmatprep.subr.bf16.mxu1 %v3742_v21  ;;  %v3800_v52 = vld [vmem:[#allocation3 + $0xd38] sm:$0xff]  ;;  %v3797_v21 = vld [vmem:[#allocation3 + $0xd20] sm:$0xff] }
0x13f1   :  { %4531 = vmatprep.subr.bf16.mxu0 %v3744_v14  ;;  %v3799_v14 = vld [vmem:[#allocation3 + $0xd30] sm:$0xff] }
0x13f3   :  { %4368 = vmatpush1.bf16.msra.mxu1 %v3741_v10  ;;  %v3806_v10 = vld [vmem:[#allocation3 + $0xd68] sm:$0xff] }
0x13f4   :  { %4532 = vmatpush1.bf16.msra.mxu0 %v3743_v58  ;;  %4369 = vmatprep.subr.bf16.mxu1 %v3750_v39  ;;  %v3808_v58 = vld [vmem:[#allocation3 + $0xd78] sm:$0xff]  ;;  %v3805_v39 = vld [vmem:[#allocation3 + $0xd60] sm:$0xff] }
0x13f5   :  { %4533 = vmatprep.subr.bf16.mxu0 %v3752_v37 }
0x13f7   :  { %4370 = vmatpush1.bf16.msra.mxu1 %v3749_v48 }
0x13f8   :  { %4534 = vmatpush1.bf16.msra.mxu0 %v3751_v11  ;;  %4371 = vmatprep.subr.bf16.mxu1 %v3758_v53  ;;  %v3807_v11 = vld [vmem:[#allocation3 + $0xd70] sm:$0xff]  ;;  %v3814_v53 = vld [vmem:[#allocation3 + $0xda8] sm:$0xff] }
0x13f9   :  { %4535 = vmatprep.subr.bf16.mxu0 %v3760_v63 }
0x13fb   :  { %4372 = vmatpush1.bf16.msra.mxu1 %v3757_v30 }
0x13fc   :  { %4536 = vmatpush1.bf16.msra.mxu0 %v3759_v42  ;;  %4382 = vmatprep.subr.bf16.mxu1 %v3766_v46  ;;  %v3816_v42 = vld [vmem:[#allocation3 + $0xdb8] sm:$0xff] }
0x13fd   :  { %4546 = vmatprep.subr.bf16.mxu0 %v3768_v20 }
0x13fe   :  { %4374 = vmatmul.mubr.bf16.vlgmr.msra.gmra.mrb[92].mxu1 %v11569_v35 }
0x13ff   :  { %4538 = vmatmul.mubr.bf16.vlgmr.msra.gmra.mrb[100].mxu0 %v11569_v35  ;;  %4383 = vmatpush1.bf16.msra.mxu1 %v3765_v51  ;;  %v3790_v35 = vld [vmem:[#allocation3 + $0xce8] sm:$0xff] }
0x1400   :  { %4414 = vmatprep.mubr.bf16.mxu1 %v11571_v8  ;;  %4547 = vmatpush1.bf16.msra.mxu0 %v3767_v19 }
0x1401   :  { %4578 = vmatprep.mubr.bf16.mxu0 %v11571_v8  ;;  %4384 = vmatprep.subr.bf16.mxu1 %v3774_v27  ;;  %v3798_v8 = vld [vmem:[#allocation3 + $0xd28] sm:$0xff]  ;;  %v3813_v27 = vld [vmem:[#allocation3 + $0xda0] sm:$0xff] }
0x1402   :  { %4548 = vmatprep.subr.bf16.mxu0 %v3776_v55  ;;  %v3815_v55 = vld [vmem:[#allocation3 + $0xdb0] sm:$0xff] }
0x1403   :  { %4385 = vmatpush1.bf16.msra.mxu1 %v3773_v60  ;;  %v3822_v60 = vld [vmem:[#allocation3 + $0xde8] sm:$0xff] }
0x1404   :  { %4549 = vmatpush1.bf16.msra.mxu0 %v3775_v49  ;;  %4386 = vmatprep.subr.bf16.mxu1 %v3782_v15  ;;  %v3824_v49 = vld [vmem:[#allocation3 + $0xdf8] sm:$0xff]  ;;  %v3821_v15 = vld [vmem:[#allocation3 + $0xde0] sm:$0xff] }
0x1405   :  { %4550 = vmatprep.subr.bf16.mxu0 %v3784_v43  ;;  %v3823_v43 = vld [vmem:[#allocation3 + $0xdf0] sm:$0xff] }
0x1407   :  { %4387 = vmatpush1.bf16.msra.mxu1 %v3781_v44  ;;  %v3830_v44 = vld [vmem:[#allocation3 + $0xe28] sm:$0xff] }
0x1408   :  { %4551 = vmatpush1.bf16.msra.mxu0 %v3783_v29  ;;  %4388 = vmatprep.subr.bf16.mxu1 %v3790_v35  ;;  %v3832_v29 = vld [vmem:[#allocation3 + $0xe38] sm:$0xff]  ;;  %v3829_v35 = vld [vmem:[#allocation3 + $0xe20] sm:$0xff] }
0x1409   :  { %4552 = vmatprep.subr.bf16.mxu0 %v3792_v59  ;;  %v3831_v59 = vld [vmem:[#allocation3 + $0xe30] sm:$0xff] }
0x140b   :  { %4389 = vmatpush1.bf16.msra.mxu1 %v3789_v26  ;;  %v3838_v26 = vld [vmem:[#allocation3 + $0xe68] sm:$0xff] }
0x140c   :  { %4553 = vmatpush1.bf16.msra.mxu0 %v3791_v24  ;;  %4390 = vmatprep.subr.bf16.mxu1 %v3798_v8  ;;  %v3840_v24 = vld [vmem:[#allocation3 + $0xe78] sm:$0xff]  ;;  %v3837_v8 = vld [vmem:[#allocation3 + $0xe60] sm:$0xff] }
0x140d   :  { %4554 = vmatprep.subr.bf16.mxu0 %v3800_v52  ;;  %v3839_v52 = vld [vmem:[#allocation3 + $0xe70] sm:$0xff] }
0x140f   :  { %4391 = vmatpush1.bf16.msra.mxu1 %v3797_v21  ;;  %v3846_v21 = vld [vmem:[#allocation3 + $0xea8] sm:$0xff] }
0x1410   :  { %4555 = vmatpush1.bf16.msra.mxu0 %v3799_v14  ;;  %4392 = vmatprep.subr.bf16.mxu1 %v3806_v10  ;;  %v3848_v14 = vld [vmem:[#allocation3 + $0xeb8] sm:$0xff]  ;;  %v3845_v10 = vld [vmem:[#allocation3 + $0xea0] sm:$0xff] }
0x1411   :  { %v11604_v37 = vpop.f32.mrb[88].mxu1  ;;  %v11606_v48 = vpop.f32.mrb[96].mxu0  ;;  %4556 = vmatprep.subr.bf16.mxu0 %v3808_v58  ;;  %v3847_v58 = vld [vmem:[#allocation3 + $0xeb0] sm:$0xff] }
0x1412   :  { %v11608_v63 = vpop.f32.mrb[89].mxu1  ;;  %v11610_v30 = vpop.f32.mrb[97].mxu0 }
0x1413   :  { %v4092_v46 = vpop.f32.mrb[90].mxu1  ;;  %v4256_v20 = vpop.f32.mrb[98].mxu0  ;;  %4393 = vmatpush1.bf16.msra.mxu1 %v3805_v39  ;;  %v3854_v39 = vld [vmem:[#allocation3 + $0xee8] sm:$0xff] }
0x1414   :  { %4557 = vmatpush1.bf16.msra.mxu0 %v3807_v11  ;;  %v4093_v51 = vpop.f32.mrb[91].mxu1  ;;  %v4257_v19 = vpop.f32.mrb[99].mxu0  ;;  %4394 = vmatprep.subr.bf16.mxu1 %v3814_v53  ;;  %v3856_v11 = vld [vmem:[#allocation3 + $0xef8] sm:$0xff]  ;;  %v3853_v53 = vld [vmem:[#allocation3 + $0xee0] sm:$0xff]  ;;  %v3862_v46 = vld [vmem:[#allocation3 + $0xf28] sm:$0xff] }
0x1415   :  { %4558 = vmatprep.subr.bf16.mxu0 %v3816_v42  ;;  %v3855_v42 = vld [vmem:[#allocation3 + $0xef0] sm:$0xff]  ;;  %v3864_v20 = vld [vmem:[#allocation3 + $0xf38] sm:$0xff]  ;;  %v3861_v51 = vld [vmem:[#allocation3 + $0xf20] sm:$0xff] }
0x1416   :  { %v3863_v19 = vld [vmem:[#allocation3 + $0xf30] sm:$0xff] }
0x1417   :  { %4395 = vmatpush1.bf16.msra.mxu1 %v3813_v27  ;;  %v3870_v27 = vld [vmem:[#allocation3 + $0xf68] sm:$0xff] }
0x1418   :  { %4559 = vmatpush1.bf16.msra.mxu0 %v3815_v55  ;;  %4396 = vmatprep.subr.bf16.mxu1 %v3822_v60  ;;  %v3872_v55 = vld [vmem:[#allocation3 + $0xf78] sm:$0xff]  ;;  %v3869_v60 = vld [vmem:[#allocation3 + $0xf60] sm:$0xff] }
0x1419   :  { %4560 = vmatprep.subr.bf16.mxu0 %v3824_v49  ;;  %v3871_v49 = vld [vmem:[#allocation3 + $0xf70] sm:$0xff] }
0x141b   :  { %4397 = vmatpush1.bf16.msra.mxu1 %v3821_v15  ;;  %v3878_v15 = vld [vmem:[#allocation3 + $0xfa8] sm:$0xff] }
0x141c   :  { %4561 = vmatpush1.bf16.msra.mxu0 %v3823_v43  ;;  %4398 = vmatprep.subr.bf16.mxu1 %v3830_v44  ;;  %v3880_v43 = vld [vmem:[#allocation3 + $0xfb8] sm:$0xff] }
0x141d   :  { %4562 = vmatprep.subr.bf16.mxu0 %v3832_v29  ;;  %v11612_v44 = vld [vmem:[#allocation20] sm:$0xff]  ;;  %v3877_v29 = vld [vmem:[#allocation3 + $0xfa0] sm:$0xff] }
0x141f   :  { %4399 = vmatpush1.bf16.msra.mxu1 %v3829_v35  ;;  %v3879_v35 = vld [vmem:[#allocation3 + $0xfb0] sm:$0xff] }
0x1420   :  { %4563 = vmatpush1.bf16.msra.mxu0 %v3831_v59  ;;  %4400 = vmatprep.subr.bf16.mxu1 %v3838_v26  ;;  %v3886_v59 = vld [vmem:[#allocation3 + $0xfe8] sm:$0xff]  ;;  %v3898_v26 = vrot.slane %v11612_v44, %v10775_v41 }
0x1421   :  { %4564 = vmatprep.subr.bf16.mxu0 %v3840_v24  ;;  %v3888_v24 = vld [vmem:[#allocation3 + $0xff8] sm:$0xff] }
0x1423   :  { %4401 = vmatpush1.bf16.msra.mxu1 %v3837_v8  ;;  %v3906_v8 = vrot.slane %v11612_v44, %v11390_v22 }
0x1424   :  { %4565 = vmatpush1.bf16.msra.mxu0 %v3839_v52  ;;  %4402 = vmatprep.subr.bf16.mxu1 %v3846_v21  ;;  %v3885_v52 = vld [vmem:[#allocation3 + $0xfe0] sm:$0xff]  ;;  %v3887_v21 = vld [vmem:[#allocation3 + $0xff0] sm:$0xff] }
0x1425   :  { %4566 = vmatprep.subr.bf16.mxu0 %v3848_v14  ;;  %v4603_v14 = vld [vmem:[#allocation4 + $0x40] sm:$0xff] }
0x1427   :  { %4403 = vmatpush1.bf16.msra.mxu1 %v3845_v10  ;;  %v9253_v10 = vadd.f32 %v11608_v63, %v3898_v26  ;;  %v4596_v63 = vld [vmem:[#allocation4 + $0x8] sm:$0xff]  ;;  %v4615_v26 = vld [vmem:[#allocation4 + $0xa0] sm:$0xff] }
0x1428   :  { %4567 = vmatpush1.bf16.msra.mxu0 %v3847_v58  ;;  %4404 = vmatprep.subr.bf16.mxu1 %v3854_v39  ;;  %v4619_v58 = vld [vmem:[#allocation4 + $0xc0] sm:$0xff]  ;;  %v9255_v39 = vadd.f32 %v11610_v30, %v3906_v8  ;;  %v4612_v30 = vld [vmem:[#allocation4 + $0x88] sm:$0xff] }
0x1429   :  { %4568 = vmatprep.subr.bf16.mxu0 %v3856_v11  ;;  %v4595_v11 = vld [vmem:[#allocation4] sm:$0xff]  ;;  %v4624_v8 = vld [vmem:[#allocation4 + $0xe8] sm:$0xff] }
0x142b   :  { %4405 = vmatpush1.bf16.msra.mxu1 %v3853_v53  ;;  %v4611_v53 = vld [vmem:[#allocation4 + $0x80] sm:$0xff] }
0x142c   :  { %4569 = vmatpush1.bf16.msra.mxu0 %v3855_v42  ;;  %4406 = vmatprep.subr.bf16.mxu1 %v3862_v46  ;;  %v4588_v42 = vpack.c.bf16 %v9253_v10, %v9253_v10  ;;  %v4604_v46 = vld [vmem:[#allocation4 + $0x48] sm:$0xff]  ;;  %v4625_v10 = vld [vmem:[#allocation4 + $0xf0] sm:$0xff] }
0x142d   :  { %4570 = vmatprep.subr.bf16.mxu0 %v3864_v20  ;;  %v4590_v20 = vpack.c.bf16 %v9255_v39, %v9255_v39  ;;  %v4601_v39 = vld [vmem:[#allocation4 + $0x30] sm:$0xff] }
0x142f   :  { %4407 = vmatpush1.bf16.msra.mxu1 %v3861_v51  ;;  %v4620_v51 = vld [vmem:[#allocation4 + $0xc8] sm:$0xff] }
0x1430   :  { %4571 = vmatpush1.bf16.msra.mxu0 %v3863_v19  ;;  %4408 = vmatprep.subr.bf16.mxu1 %v3870_v27  ;;  %v4605_v19 = vld [vmem:[#allocation4 + $0x50] sm:$0xff] }
0x1431   :  { %4572 = vmatprep.subr.bf16.mxu0 %v3872_v55  ;;  %v4621_v27 = vld [vmem:[#allocation4 + $0xd0] sm:$0xff] }
0x1432   :  { %v4597_v55 = vld [vmem:[#allocation4 + $0x10] sm:$0xff] }
0x1433   :  { %4409 = vmatpush1.bf16.msra.mxu1 %v3869_v60  ;;  %v4613_v60 = vld [vmem:[#allocation4 + $0x90] sm:$0xff] }
0x1434   :  { %4573 = vmatpush1.bf16.msra.mxu0 %v3871_v49  ;;  %4410 = vmatprep.subr.bf16.mxu1 %v3878_v15  ;;  %v4606_v49 = vld [vmem:[#allocation4 + $0x58] sm:$0xff] }
0x1435   :  { %4574 = vmatprep.subr.bf16.mxu0 %v3880_v43  ;;  %v4622_v15 = vld [vmem:[#allocation4 + $0xd8] sm:$0xff] }
0x1436   :  { %v4614_v43 = vld [vmem:[#allocation4 + $0x98] sm:$0xff] }
0x1437   :  { %4411 = vmatpush1.bf16.msra.mxu1 %v3877_v29  ;;  %v4607_v29 = vld [vmem:[#allocation4 + $0x60] sm:$0xff] }
0x1438   :  { %4575 = vmatpush1.bf16.msra.mxu0 %v3879_v35  ;;  %4412 = vmatprep.subr.bf16.mxu1 %v3886_v59  ;;  %v4623_v35 = vld [vmem:[#allocation4 + $0xe0] sm:$0xff] }
0x1439   :  { %4576 = vmatprep.subr.bf16.mxu0 %v3888_v24  ;;  %v4599_v59 = vld [vmem:[#allocation4 + $0x20] sm:$0xff]  ;;  %v4608_v24 = vld [vmem:[#allocation4 + $0x68] sm:$0xff] }
0x143b   :  { %4413 = vmatpush1.bf16.msra.mxu1 %v3885_v52  ;;  %v4600_v52 = vld [vmem:[#allocation4 + $0x28] sm:$0xff] }
0x143c   :  { %4577 = vmatpush1.bf16.msra.mxu0 %v3887_v21  ;;  %7948 = vmatprep.subr.bf16.mxu1 %v4603_v14  ;;  %v4616_v21 = vld [vmem:[#allocation4 + $0xa8] sm:$0xff]  ;;  %v4609_v14 = vld [vmem:[#allocation4 + $0x70] sm:$0xff] }
0x143d   :  { %7970 = vmatprep.subr.bf16.mxu0 %v4619_v58  ;;  %v3894_v58 = vrot.slane %v11612_v44, %v10769_v34 }
0x143e   :  { %4415 = vmatmul.mubr.bf16.vlgmr.msra.gmra.mrb[92].mxu1 %v11586_v32 }
0x143f   :  { %4579 = vmatmul.mubr.bf16.vlgmr.msra.gmra.mrb[100].mxu0 %v11586_v32  ;;  %7949 = vmatpush3.bf16.msra.mxu1 %v4595_v11  ;;  %v4598_v32 = vld [vmem:[#allocation4 + $0x18] sm:$0xff]  ;;  %v3902_v11 = vrot.slane %v11612_v44, %v11311_v45 }
0x1440   :  { %4698 = vmatprep.mubr.bf16.mxu1 %v4588_v42  ;;  %7971 = vmatpush3.bf16.msra.mxu0 %v4611_v53  ;;  %v4617_v53 = vld [vmem:[#allocation4 + $0xb0] sm:$0xff]  ;;  %v4610_v42 = vld [vmem:[#allocation4 + $0x78] sm:$0xff] }
0x1441   :  { %4738 = vmatprep.mubr.bf16.mxu0 %v4590_v20  ;;  %7950 = vmatprep.subr.bf16.mxu1 %v4604_v46  ;;  %v4626_v46 = vld [vmem:[#allocation4 + $0xf8] sm:$0xff]  ;;  %v9252_v20 = vadd.f32 %v11604_v37, %v3894_v58  ;;  %v4652_v37 = vld [vmem:[#allocation4 + $0x1c8] sm:$0xff]  ;;  %v4631_v58 = vld [vmem:[#allocation4 + $0x120] sm:$0xff] }
0x1442   :  { %7972 = vmatprep.subr.bf16.mxu0 %v4620_v51  ;;  %v4602_v51 = vld [vmem:[#allocation4 + $0x38] sm:$0xff] }
0x1443   :  { %7951 = vmatpush3.bf16.msra.mxu1 %v4596_v63  ;;  %v9254_v63 = vadd.f32 %v11606_v48, %v3902_v11  ;;  %v4628_v48 = vld [vmem:[#allocation4 + $0x108] sm:$0xff] }
0x1444   :  { %7973 = vmatpush3.bf16.msra.mxu0 %v4612_v30  ;;  %7952 = vmatprep.subr.bf16.mxu1 %v4605_v19  ;;  %v4618_v30 = vld [vmem:[#allocation4 + $0xb8] sm:$0xff]  ;;  %v4635_v19 = vld [vmem:[#allocation4 + $0x140] sm:$0xff]  ;;  %v4640_v11 = vld [vmem:[#allocation4 + $0x168] sm:$0xff] }
0x1445   :  { %7974 = vmatprep.subr.bf16.mxu0 %v4621_v27  ;;  %v4651_v27 = vld [vmem:[#allocation4 + $0x1c0] sm:$0xff] }
0x1447   :  { %7953 = vmatpush3.bf16.msra.mxu1 %v4597_v55  ;;  %v4587_v55 = vpack.c.bf16 %v9252_v20, %v9252_v20  ;;  %v4641_v20 = vld [vmem:[#allocation4 + $0x170] sm:$0xff] }
0x1448   :  { %7975 = vmatpush3.bf16.msra.mxu0 %v4613_v60  ;;  %7954 = vmatprep.subr.bf16.mxu1 %v4606_v49  ;;  %v4627_v60 = vld [vmem:[#allocation4 + $0x100] sm:$0xff]  ;;  %v4589_v49 = vpack.c.bf16 %v9254_v63, %v9254_v63  ;;  %v4633_v63 = vld [vmem:[#allocation4 + $0x130] sm:$0xff] }
0x1449   :  { %7976 = vmatprep.subr.bf16.mxu0 %v4622_v15  ;;  %v4643_v15 = vld [vmem:[#allocation4 + $0x180] sm:$0xff] }
0x144b   :  { %7955 = vmatpush3.bf16.msra.mxu1 %v4598_v32  ;;  %v4636_v32 = vld [vmem:[#allocation4 + $0x148] sm:$0xff] }
0x144c   :  { %7977 = vmatpush3.bf16.msra.mxu0 %v4614_v43  ;;  %7956 = vmatprep.subr.bf16.mxu1 %v4607_v29  ;;  %v4644_v43 = vld [vmem:[#allocation4 + $0x188] sm:$0xff]  ;;  %v4637_v29 = vld [vmem:[#allocation4 + $0x150] sm:$0xff] }
0x144d   :  { %7978 = vmatprep.subr.bf16.mxu0 %v4623_v35  ;;  %v4653_v35 = vld [vmem:[#allocation4 + $0x1d0] sm:$0xff] }
0x144f   :  { %7957 = vmatpush3.bf16.msra.mxu1 %v4599_v59  ;;  %v4629_v59 = vld [vmem:[#allocation4 + $0x110] sm:$0xff] }
0x1450   :  { %7979 = vmatpush3.bf16.msra.mxu0 %v4615_v26  ;;  %7958 = vmatprep.subr.bf16.mxu1 %v4608_v24  ;;  %v4645_v26 = vld [vmem:[#allocation4 + $0x190] sm:$0xff]  ;;  %v4638_v24 = vld [vmem:[#allocation4 + $0x158] sm:$0xff] }
0x1451   :  { %7980 = vmatprep.subr.bf16.mxu0 %v4624_v8  ;;  %v4654_v8 = vld [vmem:[#allocation4 + $0x1d8] sm:$0xff] }
0x1453   :  { %7959 = vmatpush3.bf16.msra.mxu1 %v4600_v52  ;;  %v4630_v52 = vld [vmem:[#allocation4 + $0x118] sm:$0xff] }
0x1454   :  { %7981 = vmatpush3.bf16.msra.mxu0 %v4616_v21  ;;  %7960 = vmatprep.subr.bf16.mxu1 %v4609_v14  ;;  %v4646_v21 = vld [vmem:[#allocation4 + $0x198] sm:$0xff]  ;;  %v4639_v14 = vld [vmem:[#allocation4 + $0x160] sm:$0xff] }
0x1455   :  { %7982 = vmatprep.subr.bf16.mxu0 %v4625_v10  ;;  %v4655_v10 = vld [vmem:[#allocation4 + $0x1e0] sm:$0xff] }
0x1457   :  { %7961 = vmatpush3.bf16.msra.mxu1 %v4601_v39  ;;  %v4647_v39 = vld [vmem:[#allocation4 + $0x1a0] sm:$0xff] }
0x1458   :  { %7983 = vmatpush3.bf16.msra.mxu0 %v4617_v53  ;;  %7962 = vmatprep.subr.bf16.mxu1 %v4610_v42  ;;  %v4656_v53 = vld [vmem:[#allocation4 + $0x1e8] sm:$0xff] }
0x1459   :  { %7984 = vmatprep.subr.bf16.mxu0 %v4626_v46  ;;  %v4632_v42 = vld [vmem:[#allocation4 + $0x128] sm:$0xff] }
0x145a   :  { %v4648_v46 = vld [vmem:[#allocation4 + $0x1a8] sm:$0xff] }
0x145b   :  { %7963 = vmatpush3.bf16.msra.mxu1 %v4602_v51  ;;  %v4657_v51 = vld [vmem:[#allocation4 + $0x1f0] sm:$0xff] }
0x145c   :  { %7985 = vmatpush3.bf16.msra.mxu0 %v4618_v30  ;;  %7992 = vmatprep.subr.bf16.mxu1 %v4635_v19  ;;  %v4649_v30 = vld [vmem:[#allocation4 + $0x1b0] sm:$0xff]  ;;  %v4642_v19 = vld [vmem:[#allocation4 + $0x178] sm:$0xff] }
0x145d   :  { %8014 = vmatprep.subr.bf16.mxu0 %v4651_v27  ;;  %v4658_v27 = vld [vmem:[#allocation4 + $0x1f8] sm:$0xff] }
0x145e   :  { %4699 = vmatmul.mubr.bf16.vlgmr.msra.gmra.mrb[96].mxu1 %v4587_v55  ;;  %v4634_v55 = vld [vmem:[#allocation4 + $0x138] sm:$0xff] }
0x145f   :  { %4739 = vmatmul.mubr.bf16.vlgmr.msra.gmra.mrb[104].mxu0 %v4589_v49  ;;  %7993 = vmatpush3.bf16.msra.mxu1 %v4627_v60  ;;  %v4650_v60 = vld [vmem:[#allocation4 + $0x1b8] sm:$0xff]  ;;  %v3910_v49 = vrot.slane %v11612_v44, %v11393_v40 }
0x1460   :  { %8015 = vmatpush3.bf16.msra.mxu0 %v4643_v15  ;;  %7994 = vmatprep.subr.bf16.mxu1 %v4636_v32  ;;  %v3918_v15 = vrot.slane %v11612_v44, %v3135_v54  ;;  %v3914_v32 = vrot.slane %v11612_v44, %v11472_v16 }
0x1461   :  { %8016 = vmatprep.subr.bf16.mxu0 %v4652_v37  ;;  %v3922_v37 = vrot.slane %v11612_v44, %v3139_v61  ;;  %v7663_v44 = vld [vmem:[#allocation21] ss:$0 sm:$0xff] }
0x1463   :  { %7995 = vmatpush3.bf16.msra.mxu1 %v4628_v48 }
0x1464   :  { %8017 = vmatpush3.bf16.msra.mxu0 %v4644_v43  ;;  %7996 = vmatprep.subr.bf16.mxu1 %v4637_v29 }
0x1465   :  { %8018 = vmatprep.subr.bf16.mxu0 %v4653_v35 }
0x1467   :  { %7997 = vmatpush3.bf16.msra.mxu1 %v4629_v59 }
0x1468   :  { %8019 = vmatpush3.bf16.msra.mxu0 %v4645_v26  ;;  %7998 = vmatprep.subr.bf16.mxu1 %v4638_v24 }
0x1469   :  { %8020 = vmatprep.subr.bf16.mxu0 %v4654_v8 }
0x146b   :  { %7999 = vmatpush3.bf16.msra.mxu1 %v4630_v52 }
0x146c   :  { %8021 = vmatpush3.bf16.msra.mxu0 %v4646_v21  ;;  %8000 = vmatprep.subr.bf16.mxu1 %v4639_v14 }
0x146d   :  { %8022 = vmatprep.subr.bf16.mxu0 %v4655_v10 }
0x146f   :  { %8001 = vmatpush3.bf16.msra.mxu1 %v4631_v58 }
0x1470   :  { %8023 = vmatpush3.bf16.msra.mxu0 %v4647_v39  ;;  %8002 = vmatprep.subr.bf16.mxu1 %v4640_v11 }
0x1471   :  { %8024 = vmatprep.subr.bf16.mxu0 %v4656_v53 }
0x1473   :  { %8003 = vmatpush3.bf16.msra.mxu1 %v4632_v42 }
0x1474   :  { %8025 = vmatpush3.bf16.msra.mxu0 %v4648_v46  ;;  %8004 = vmatprep.subr.bf16.mxu1 %v4641_v20 }
0x1475   :  { %8026 = vmatprep.subr.bf16.mxu0 %v4657_v51 }
0x1477   :  { %8005 = vmatpush3.bf16.msra.mxu1 %v4633_v63 }
0x1478   :  { %8027 = vmatpush3.bf16.msra.mxu0 %v4649_v30  ;;  %8006 = vmatprep.subr.bf16.mxu1 %v4642_v19 }
0x1479   :  { %8028 = vmatprep.subr.bf16.mxu0 %v4658_v27 }
0x147b   :  { %8007 = vmatpush3.bf16.msra.mxu1 %v4634_v55 }
0x147c   :  { %8029 = vmatpush3.bf16.msra.mxu0 %v4650_v60  ;;  %8589 = vmatprep.subr.mxu1 %v10232_v1 }
0x147d   :  { %9144 = vmatprep.subr.bf16.mxu0 %v10228_v0 }
0x1511   :  { %v4416_v48 = vpop.f32.mrb[92].mxu1 }
0x1512   :  { %v9256_v43 = vadd.f32 %v4416_v48, %v3910_v49  ;;  %v4580_v29 = vpop.f32.mrb[100].mxu0  ;;  %v4418_v35 = vpop.f32.mrb[93].mxu1 }
0x1513   :  { %v9258_v59 = vadd.f32 %v4580_v29, %v3918_v15  ;;  %v9257_v26 = vadd.f32 %v4418_v35, %v3914_v32  ;;  %v4582_v24 = vpop.f32.mrb[101].mxu0  ;;  %v4420_v8 = vpop.f32.mrb[94].mxu1 }
0x1514   :  { %v9259_v52 = vadd.f32 %v4582_v24, %v3922_v37  ;;  %v4584_v21 = vpop.f32.mrb[102].mxu0  ;;  %v4421_v14 = vpop.f32.mrb[95].mxu1  ;;  %v4591_v58 = vpack.c.bf16 %v9256_v43, %v9256_v43 }
0x1515   :  { %v4592_v10 = vpack.c.bf16 %v9257_v26, %v9257_v26  ;;  %v4585_v54 = vpop.f32.mrb[103].mxu0  ;;  %v4593_v11 = vpack.c.bf16 %v9258_v59, %v9258_v59  ;;  %v4937_v14 = vadd.f32 %v11480_v13, %v11335_v57 }
0x1516   :  { %v4594_v39 = vpack.c.bf16 %v9259_v52, %v9259_v52  ;;  %v4936_v52 = vadd.f32 %v11478_v28, %v11330_v62 }
0x1517   :  { %4778 = vmatprep.mubr.bf16.mxu1 %v4592_v10 }
0x1518   :  { %4818 = vmatprep.mubr.bf16.mxu0 %v4594_v39  ;;  %4779 = vmatmul.mubr.bf16.vlgmr.msra.gmra.mrb[100].mxu1 %v4591_v58 }
0x1519   :  { %4819 = vmatmul.mubr.bf16.vlgmr.msra.gmra.mrb[108].mxu0 %v4593_v11  ;;  %8591 = vmatprep.mubr.msk.f32.mxu1 %vm10231_vm0, %v10232_v1  ;;  %v4938_v11 = vadd.f32 %v11482_v50, %v11345_v23  ;;  %v4939_v23 = vadd.f32 %v11484_v31, %v11354_v33 }
0x151a   :  { %8641 = vmatprep.mubr.msk.f32.mxu0 %vm10231_vm0, %v10232_v1 }
0x1531   :  { %v7964_v25 = vpop.f32.mrb[96].mxu1 }
0x1532   :  { %v7986_v61 = vpop.f32.mrb[104].mxu0  ;;  %v7965_v53 = vpop.f32.mrb[97].mxu1 }
0x1533   :  { %v7966_v42 = vadd.f32 %v7965_v53, %v7964_v25  ;;  %v7987_v46 = vpop.f32.mrb[105].mxu0  ;;  %v7967_v20 = vpop.f32.mrb[98].mxu1 }
0x1534   :  { %v7988_v51 = vadd.f32 %v7987_v46, %v7986_v61  ;;  %v7989_v63 = vpop.f32.mrb[106].mxu0  ;;  %v7968_v30 = vpop.f32.mrb[99].mxu1 }
0x1535   :  { %v4701_v19 = vadd.f32 %v7966_v42, %v7663_v44  ;;  %v7990_v27 = vpop.f32.mrb[107].mxu0 }
0x1536   :  { %v5047_v27 = vld [vmem:[#allocation23 + $0x88] sm:$0xff] }
0x1537   :  { %v4741_v55 = vadd.f32 %v7988_v51, %v4701_v19 }
0x15eb   :  { %v8008_v60 = vpop.f32.mrb[100].mxu1 }
0x15ec   :  { %v8030_v49 = vpop.f32.mrb[108].mxu0  ;;  %v8009_v15 = vpop.f32.mrb[101].mxu1 }
0x15ed   :  { %v8010_v32 = vadd.f32 %v8009_v15, %v8008_v60  ;;  %v8031_v37 = vpop.f32.mrb[109].mxu0  ;;  %v8011_v48 = vpop.f32.mrb[102].mxu1  ;;  %v5048_v15 = vld [vmem:[#allocation23 + $0x90] sm:$0xff] }
0x15ee   :  { %v8032_v43 = vadd.f32 %v8031_v37, %v8030_v49  ;;  %v8033_v29 = vpop.f32.mrb[110].mxu0  ;;  %v8012_v35 = vpop.f32.mrb[103].mxu1  ;;  %v5046_v49 = vld [vmem:[#allocation23 + $0x80] sm:$0xff]  ;;  %v5051_v37 = vld [vmem:[#allocation23 + $0xa8] sm:$0xff]  ;;  %v5053_v48 = vld [vmem:[#allocation23 + $0xb8] sm:$0xff] }
0x15ef   :  { %v4781_v59 = vadd.f32 %v8010_v32, %v4741_v55  ;;  %v8034_v26 = vpop.f32.mrb[111].mxu0  ;;  %v5049_v55 = vld [vmem:[#allocation23 + $0x98] sm:$0xff]  ;;  %v9122_v32 = vpack.c.bf16 %v5048_v15, %v5046_v49  ;;  %v5050_v29 = vld [vmem:[#allocation23 + $0xa0] sm:$0xff]  ;;  %v5052_v35 = vld [vmem:[#allocation23 + $0xb0] sm:$0xff] }
0x15f0   :  { %v9120_v60 = vpack.c.bf16 %v5049_v55, %v5047_v27  ;;  %v5055_v26 = vld [vmem:[#allocation23 + $0xc8] sm:$0xff] }
0x15f1   :  { %v4821_v24 = vadd.f32 %v8032_v43, %v4781_v59  ;;  %v9124_v43 = vpack.c.bf16 %v5053_v48, %v5051_v37  ;;  %v9126_v59 = vpack.c.bf16 %v5052_v35, %v5050_v29 }
0x15f3   :  { %8590 = vmatpush3.msk.msra.mxu1 %vm558_vm2, %v4821_v24  ;;  %v5057_v24 = vld [vmem:[#allocation23 + $0xd8] sm:$0xff] }
0x15f4   :  { %8592 = vmatmul.mubr.msk.f32.vlgmr.msra.gmra.mrb[104].mxu1 %vm4826_vm10, %v10657_v2  ;;  %v4935_v2 = vadd.f32 %v11476_v17, %v11322_v36  ;;  %9121 = vmatprep.subr.bf16.mxu1 %v9120_v60 }
0x15f5   :  { %8594 = vmatprep.mubr.msk.f32.mxu1 %vm10231_vm0, %v10232_v1  ;;  %9123 = vmatpush1.bf16.msra.mxu1 %v9122_v32 }
0x15f6   :  { %9125 = vmatprep.subr.bf16.mxu1 %v9124_v43 }
0x15f8   :  { %8595 = vmatmul.mubr.msk.f32.gmra.mrb[106].mxu1 %vm4826_vm10, %v10662_v3 }
0x15f9   :  { %8597 = vmatprep.mubr.msk.f32.mxu1 %vm10231_vm0, %v10232_v1  ;;  %9127 = vmatpush1.bf16.msra.mxu1 %v9126_v59 }
0x15fc   :  { %8598 = vmatmul.mubr.msk.f32.gmra.mrb[108].mxu1 %vm4826_vm10, %v10667_v4 }
0x15fd   :  { %8600 = vmatprep.mubr.msk.f32.mxu1 %vm10231_vm0, %v10232_v1 }
0x1600   :  { %8601 = vmatmul.mubr.msk.f32.gmra.mrb[110].mxu1 %vm4826_vm10, %v10672_v5 }
0x1601   :  { %8603 = vmatprep.mubr.msk.f32.mxu1 %vm10231_vm0, %v10232_v1 }
0x1604   :  { %8604 = vmatmul.mubr.msk.f32.gmra.mrb[112].mxu1 %vm4826_vm10, %v10677_v6 }
0x1605   :  { %5154 = vmatprep.mubr.f32.mxu1 %v10232_v1 }
0x16c7   :  { %v11661_v3 = vpop.f32.mrb[104].mxu1 }
0x16c8   :  { %v11664_v8 = vadd.f32 %v4935_v2, %v11661_v3  ;;  %v8593_v4 = vpop.f32.mrb[105].mxu1  ;;  %v9128_v2 = vpack.c.bf16 %v5057_v24, %v5055_v26 }
0x16c9   :  { %v5054_v4 = vld [vmem:[#allocation23 + $0xc0] sm:$0xff] }
0x16ca   :  { %v4947_v5 = vsel %vm658_vm4, %v11664_v8, 0.0  ;;  %v4962_v6 = vmul.f32 %v11664_v8, %v11664_v8  ;;  %9129 = vmatprep.subr.bf16.mxu1 %v9128_v2 }
0x16cb   :  { %4948 = vadd.xlane.f32.xlu0 %v4947_v5  ;;  %v11672_v21 = vpop.f32.mrb[106].mxu1 }
0x16cc   :  { %v11675_v36 = vadd.f32 %v4936_v52, %v11672_v21  ;;  %v8596_v17 = vpop.f32.mrb[107].mxu1  ;;  %v4967_v10 = vsel %vm658_vm4, %v4962_v6, 0.0  ;;  %v5056_v52 = vld [vmem:[#allocation23 + $0xd0] sm:$0xff]  ;;  %v5059_v6 = vld [vmem:[#allocation23 + $0xe8] sm:$0xff] }
0x16cd   :  { %v9130_v5 = vpack.c.bf16 %v5056_v52, %v5054_v4  ;;  %v5061_v17 = vld [vmem:[#allocation23 + $0xf8] sm:$0xff] }
0x16ce   :  { %v4950_v62 = vsel %vm658_vm4, %v11675_v36, 0.0  ;;  %v4963_v28 = vmul.f32 %v11675_v36, %v11675_v36 }
0x16cf   :  { %4968 = vadd.xlane.f32.xlu0 %v4967_v10  ;;  %4951 = vadd.xlane.f32.xlu1 %v4950_v62  ;;  %v11684_v54 = vpop.f32.mrb[108].mxu1  ;;  %v5058_v10 = vld [vmem:[#allocation23 + $0xe0] sm:$0xff]  ;;  %v5060_v62 = vld [vmem:[#allocation23 + $0xf0] sm:$0xff] }
0x16d0   :  { %v11687_v58 = vadd.f32 %v4937_v14, %v11684_v54  ;;  %v8599_v39 = vpop.f32.mrb[109].mxu1  ;;  %v4970_v57 = vsel %vm658_vm4, %v4963_v28, 0.0  ;;  %9131 = vmatpush1.bf16.msra.mxu1 %v9130_v5  ;;  %v9132_v14 = vpack.c.bf16 %v5061_v17, %v5059_v6  ;;  %v9134_v28 = vpack.c.bf16 %v5060_v62, %v5058_v10  ;;  %v7670_v6 = vld [vmem:[%s12470_s22 + $0x8] sm:$0x3f] }
0x16d2   :  { %v4953_v13 = vsel %vm658_vm4, %v11687_v58, 0.0  ;;  %v4964_v25 = vmul.f32 %v11687_v58, %v11687_v58  ;;  %9133 = vmatprep.subr.bf16.mxu1 %v9132_v14 }
0x16d3   :  { %4971 = vadd.xlane.f32.xlu1 %v4970_v57  ;;  %4954 = vadd.xlane.f32.xlu0 %v4953_v13  ;;  %v11696_v61 = vpop.f32.mrb[110].mxu1 }
0x16d4   :  { %v11699_v44 = vadd.f32 %v4938_v11, %v11696_v61  ;;  %v8602_v53 = vpop.f32.mrb[111].mxu1  ;;  %v4973_v42 = vsel %vm658_vm4, %v4964_v25, 0.0  ;;  %9135 = vmatpush1.bf16.msra.mxu1 %v9134_v28  ;;  %v5030_v28 = vrot.slane %v7670_v6, %v10769_v34 }
0x16d5   :  { %9136 = vmatprep.subr.bf16.mxu1 %v10228_v0 }
0x16d6   :  { %v4956_v50 = vsel %vm658_vm4, %v11699_v44, 0.0  ;;  %v4965_v46 = vmul.f32 %v11699_v44, %v11699_v44 }
0x16d7   :  { %4974 = vadd.xlane.f32.xlu1 %v4973_v42  ;;  %4957 = vadd.xlane.f32.xlu0 %v4956_v50  ;;  %v11708_v20 = vpop.f32.mrb[112].mxu1 }
0x16d8   :  { %v11711_v51 = vadd.f32 %v4939_v23, %v11708_v20  ;;  %v4976_v63 = vsel %vm658_vm4, %v4965_v46, 0.0  ;;  %v8605_v30 = vpop.f32.mrb[113].mxu1 }
0x16da   :  { %v4959_v19 = vsel %vm671_vm5, %v11711_v51, 0.0  ;;  %v4966_v33 = vmul.f32 %v11711_v51, %v11711_v51 }
0x16db   :  { %4977 = vadd.xlane.f32.xlu1 %v4976_v63  ;;  %4960 = vadd.xlane.f32.xlu0 %v4959_v19 }
0x16dc   :  { %v4979_v31 = vsel %vm671_vm5, %v4966_v33, 0.0 }
0x16df   :  { %4980 = vadd.xlane.f32.xlu1 %v4979_v31 }
0x1758   :  { %v4949_v39 = vpop.xlane.xlu0 %4948 }
0x1759   :  { %v4982_v11 = vmul.f32 0.015625, %v4949_v39 }
0x175b   :  { %v4992_v25 = vmul.f32 %v4982_v11, %v4982_v11  ;;  %v5007_v62 = vsub.f32 %v11664_v8, %v4982_v11 }
0x175c   :  { %v4969_v57 = vpop.xlane.xlu0 %4968  ;;  %v4952_v13 = vpop.xlane.xlu1 %4951 }
0x175d   :  { %v4987_v53 = vmul.f32 0.015625, %v4969_v57  ;;  %v4983_v42 = vmul.f32 0.015625, %v4952_v13 }
0x175f   :  { %v4997_v23 = vsub.f32 %v4987_v53, %v4992_v25  ;;  %v4993_v30 = vmul.f32 %v4983_v42, %v4983_v42  ;;  %v5039_v53 = vrot.slane %v7670_v6, %v10775_v41 }
0x1760   :  { %v4972_v50 = vpop.xlane.xlu1 %4971  ;;  %v4955_v46 = vpop.xlane.xlu0 %4954 }
0x1761   :  { %v5002_v63 = vmax.f32 %v4997_v23, 0.0  ;;  %v4988_v19 = vmul.f32 0.015625, %v4972_v50  ;;  %v4984_v33 = vmul.f32 0.015625, %v4955_v46  ;;  %v5008_v50 = vsub.f32 %v11675_v36, %v4983_v42 }
0x1763   :  { %v5012_v31 = vadd.f32 1e-12, %v5002_v63  ;;  %v4998_v27 = vsub.f32 %v4988_v19, %v4993_v30  ;;  %v4994_v55 = vmul.f32 %v4984_v33, %v4984_v33  ;;  %v5009_v11 = vsub.f32 %v11687_v58, %v4984_v33 }
0x1764   :  { %v4975_v60 = vpop.xlane.xlu1 %4974  ;;  %v4958_v49 = vpop.xlane.xlu0 %4957 }
0x1765   :  { %9639 = vrsqrt.f32 %v5012_v31  ;;  %v5003_v15 = vmax.f32 %v4998_v27, 0.0  ;;  %v4989_v32 = vmul.f32 0.015625, %v4975_v60  ;;  %v4985_v37 = vmul.f32 0.015625, %v4958_v49 }
0x1767   :  { %v5013_v48 = vadd.f32 1e-12, %v5003_v15  ;;  %v4999_v43 = vsub.f32 %v4989_v32, %v4994_v55  ;;  %v4995_v29 = vmul.f32 %v4985_v37, %v4985_v37  ;;  %v5010_v15 = vsub.f32 %v11699_v44, %v4985_v37 }
0x1768   :  { %v4978_v35 = vpop.xlane.xlu1 %4977  ;;  %v4961_v59 = vpop.xlane.xlu0 %4960 }
0x1769   :  { %9641 = vrsqrt.f32 %v5013_v48  ;;  %v5004_v26 = vmax.f32 %v4999_v43, 0.0  ;;  %v4990_v24 = vmul.f32 0.015625, %v4978_v35  ;;  %v4986_v2 = vmul.f32 0.015625, %v4961_v59 }
0x176b   :  { %v5014_v4 = vadd.f32 1e-12, %v5004_v26  ;;  %v5000_v52 = vsub.f32 %v4990_v24, %v4995_v29  ;;  %v4996_v5 = vmul.f32 %v4986_v2, %v4986_v2  ;;  %v5011_v33 = vsub.f32 %v11711_v51, %v4986_v2  ;;  %v5063_v2 = vld [vmem:[#allocation24 + $0x2] sm:$0x3] }
0x176c   :  { %v4981_v17 = vpop.xlane.xlu1 %4980  ;;  %v5072_v6 = vrot.slane %v5063_v2, %v10775_v41 }
0x176d   :  { %9643 = vrsqrt.f32 %v5014_v4  ;;  %v5005_v14 = vmax.f32 %v5000_v52, 0.0  ;;  %v4991_v10 = vmul.f32 0.015625, %v4981_v17  ;;  %v5068_v52 = vrot.slane %v5063_v2, %v10769_v34 }
0x176f   :  { %v9640_v39 = vpop.eup %9639  ;;  %v5015_v57 = vadd.f32 1e-12, %v5005_v14  ;;  %v5001_v13 = vsub.f32 %v4991_v10, %v4996_v5 }
0x1770   :  { %v5022_v25 = vmul.f32 %v9640_v39, %v5007_v62 }
0x1771   :  { %9645 = vrsqrt.f32 %v5015_v57  ;;  %v5006_v23 = vmax.f32 %v5001_v13, 0.0 }
0x1772   :  { %v5031_v46 = vmul.f32 %v5030_v28, %v5022_v25 }
0x1773   :  { %v9642_v63 = vpop.eup %9641  ;;  %v5016_v30 = vadd.f32 1e-12, %v5006_v23 }
0x1774   :  { %v5040_v19 = vadd.f32 %v5039_v53, %v5031_v46  ;;  %v5023_v31 = vmul.f32 %v9642_v63, %v5008_v50 }
0x1775   :  { %9647 = vrsqrt.f32 %v5016_v30 }
0x1776   :  { %7671 = vmatmul.mubr.msk.f32.vlgmr.msra.gmra.mrb[114].mxu1 %vm658_vm4, %v5040_v19  ;;  %v5032_v27 = vmul.f32 %v5030_v28, %v5023_v31 }
0x1777   :  { %v9644_v55 = vpop.eup %9643  ;;  %5160 = vmatprep.mubr.f32.mxu1 %v10232_v1 }
0x1778   :  { %v5041_v60 = vadd.f32 %v5039_v53, %v5032_v27  ;;  %v5024_v49 = vmul.f32 %v9644_v55, %v5009_v11 }
0x177a   :  { %7672 = vmatmul.mubr.msk.f32.gmra.mrb[116].mxu1 %vm658_vm4, %v5041_v60  ;;  %v5033_v42 = vmul.f32 %v5030_v28, %v5024_v49 }
0x177b   :  { %v9646_v32 = vpop.eup %9645  ;;  %5166 = vmatprep.mubr.f32.mxu1 %v10232_v1 }
0x177c   :  { %v5042_v48 = vadd.f32 %v5039_v53, %v5033_v42  ;;  %v5025_v43 = vmul.f32 %v9646_v32, %v5010_v15 }
0x177e   :  { %7673 = vmatmul.mubr.msk.f32.gmra.mrb[118].mxu1 %vm658_vm4, %v5042_v48  ;;  %v5034_v29 = vmul.f32 %v5030_v28, %v5025_v43 }
0x177f   :  { %v9648_v35 = vpop.eup %9647  ;;  %5172 = vmatprep.mubr.f32.mxu1 %v10232_v1 }
0x1780   :  { %v5043_v59 = vadd.f32 %v5039_v53, %v5034_v29  ;;  %v5026_v26 = vmul.f32 %v9648_v35, %v5011_v33 }
0x1782   :  { %7674 = vmatmul.mubr.msk.f32.gmra.mrb[120].mxu1 %vm658_vm4, %v5043_v59  ;;  %v5035_v37 = vmul.f32 %v5030_v28, %v5026_v26 }
0x1783   :  { %5178 = vmatprep.mubr.f32.mxu1 %v10232_v1 }
0x1784   :  { %v5044_v24 = vadd.f32 %v5039_v53, %v5035_v37 }
0x1786   :  { %7675 = vmatmul.mubr.msk.f32.gmra.mrb[122].mxu1 %vm658_vm4, %v5044_v24 }
0x1787   :  { %8616 = vmatprep.mubr.msk.f32.mxu1 %vm10231_vm0, %v10232_v1 }
0x1849   :  { %v5156_v4 = vpop.f32.mrb[114].mxu1 }
0x184a   :  { %v5158_v5 = vpop.f32.mrb[115].mxu1  ;;  %v11743_v14 = vadd.f32 %v5156_v4, %v5068_v52 }
0x184b   :  { %v5159_v28 = vadd.f32 %v5158_v5, %v5072_v6 }
0x184d   :  { %v5162_v17 = vpop.f32.mrb[116].mxu1 }
0x184e   :  { %v11745_v10 = vadd.f32 %v5162_v17, %v5068_v52  ;;  %v5164_v62 = vpop.f32.mrb[117].mxu1 }
0x184f   :  { %v5165_v39 = vadd.f32 %v5164_v62, %v5072_v6 }
0x1850   :  { %v11749_v57 = vpack.i.bf16 %v11745_v10, %v11743_v14 }
0x1851   :  { %v5168_v13 = vpop.f32.mrb[118].mxu1  ;;  %v9145_v25 = vpack.c.bf16 %v5165_v39, %v5159_v28  ;;  %v11751_v53 = vpack.i.bf16 %v5165_v39, %v5159_v28 }
0x1852   :  { %v5170_v23 = vpop.f32.mrb[119].mxu1  ;;  %9538 = vrot.lane.b32.xlu0 %v11749_v57, %s10229_s25  ;;  %v11756_v46 = vadd.f32 %v5168_v13, %v5068_v52 }
0x1853   :  { %9146 = vmatpush3.bf16.msra.mxu0 %v9145_v25  ;;  %v5171_v19 = vadd.f32 %v5170_v23, %v5072_v6 }
0x1854   :  { %9147 = vmatprep.subr.bf16.mxu0 %v10228_v0 }
0x1855   :  { %v5174_v50 = vpop.f32.mrb[120].mxu1 }
0x1856   :  { %v11758_v63 = vadd.f32 %v5174_v50, %v5068_v52  ;;  %v5176_v30 = vpop.f32.mrb[121].mxu1 }
0x1857   :  { %v5177_v31 = vadd.f32 %v5176_v30, %v5072_v6 }
0x1858   :  { %v11762_v11 = vpack.i.bf16 %v11758_v63, %v11756_v46 }
0x1859   :  { %v5180_v27 = vpop.f32.mrb[122].mxu1  ;;  %v9148_v55 = vpack.c.bf16 %v5177_v31, %v5171_v19  ;;  %v11764_v60 = vpack.i.bf16 %v5177_v31, %v5171_v19 }
0x185a   :  { %v5182_v49 = vpop.f32.mrb[123].mxu1  ;;  %9543 = vrot.lane.b32.xlu1 %v11762_v11, %s10229_s25  ;;  %v11768_v15 = vadd.f32 %v5180_v27, %v5068_v52 }
0x185b   :  { %9149 = vmatpush3.bf16.msra.mxu0 %v9148_v55  ;;  %v11771_v42 = vadd.f32 %v5182_v49, %v5072_v6 }
0x185c   :  { %8639 = vmatprep.subr.mxu0 %v10232_v1 }
0x185e   :  { %5207 = vrot.lane.b32.xlu1 %v11768_v15, %s10229_s25 }
0x185f   :  { %8640 = vmatpush3.msk.msra.mxu0 %vm558_vm2, %v11771_v42 }
0x1860   :  { %9150 = vmatprep.subr.bf16.mxu0 %v10228_v0 }
0x18c4   :  { %v9539_v32 = vpop.permute.xlu0 %9538 }
0x18c5   :  { %v9541_v48 = vunpack.i.h.bf16 %v9539_v32  ;;  %v9540_v43 = vunpack.i.l.bf16 %v9539_v32 }
0x18c7   :  { %v9137_v33 = vpack.c.bf16 %v9541_v48, %v9540_v43 }
0x18c9   :  { %9139 = vmatpush3.bf16.xpose.msk.msra.mxu1 %vm10850_vm7, %v9137_v33 }
0x18ca   :  { %9140 = vmatprep.subr.bf16.mxu1 %v10228_v0 }
0x18cc   :  { %v9544_v29 = vpop.permute.xlu1 %9543 }
0x18cd   :  { %v9546_v35 = vunpack.i.h.bf16 %v9544_v29  ;;  %v9545_v59 = vunpack.i.l.bf16 %v9544_v29 }
0x18cf   :  { %v9141_v26 = vpack.c.bf16 %v9546_v35, %v9545_v59 }
0x18d0   :  { %v5208_v37 = vpop.permute.xlu1 %5207 }
0x18d1   :  { %9143 = vmatpush3.bf16.xpose.msk.msra.mxu1 %vm10850_vm7, %v9141_v26 }
0x18d2   :  { %8614 = vmatprep.subr.mxu1 %v10232_v1 }
0x18d9   :  { %8615 = vmatpush3.xpose.msk.msra.mxu1 %vm919_vm6, %v5208_v37 }
0x18da   :  { %9158 = vmatprep.subr.bf16.mxu1 %v10228_v0 }
0x18dc   :  { %8617 = vmatmul.mubr.msk.f32.vlgmr.msra.gmra.mrb[124].mxu1 %vm919_vm6, %v11743_v14 }
0x18dd   :  { %8619 = vmatprep.mubr.msk.f32.mxu1 %vm10231_vm0, %v10232_v1 }
0x18e0   :  { %8620 = vmatmul.mubr.msk.f32.gmra.mrb[126].mxu1 %vm919_vm6, %v11745_v10 }
0x18e1   :  { %8622 = vmatprep.mubr.msk.f32.mxu1 %vm10231_vm0, %v10232_v1 }
0x18e4   :  { %8623 = vmatmul.mubr.msk.f32.gmra.mrb[128].mxu1 %vm919_vm6, %v11756_v46 }
0x18e5   :  { %8625 = vmatprep.mubr.msk.f32.mxu1 %vm10231_vm0, %v10232_v1 }
0x18e8   :  { %8626 = vmatmul.mubr.msk.f32.gmra.mrb[130].mxu1 %vm919_vm6, %v11758_v63 }
0x18e9   :  { %8628 = vmatprep.mubr.msk.f32.mxu1 %vm10231_vm0, %v10232_v1 }
0x18ec   :  { %8629 = vmatmul.mubr.msk.f32.gmra.mrb[132].mxu1 %vm919_vm6, %v11768_v15 }
0x18ed   :  { %8691 = vmatprep.mubr.msk.f32.mxu1 %vm10231_vm0, %v10232_v1 }
0x19af   :  { %v5295_v24 = vpop.f32.mrb[124].mxu1 }
0x19b0   :  { %v5319_v2 = vmul.f32 0.25, %v5295_v24  ;;  %v8618_v4 = vpop.f32.mrb[125].mxu1 }
0x19b2   :  { %v5324_v52 = vadd.f32 %v5319_v2, %v10905_v38 }
0x19b3   :  { %v5300_v5 = vpop.f32.mrb[126].mxu1 }
0x19b4   :  { %v5320_v6 = vmul.f32 0.25, %v5300_v5  ;;  %v8621_v17 = vpop.f32.mrb[127].mxu1  ;;  %v5329_v62 = vsel %vm1040_vm8, %v5324_v52, -inf }
0x19b5   :  { %5330 = vmax.xlane.f32.xlu1 %v5329_v62 }
0x19b6   :  { %v5325_v28 = vadd.f32 %v5320_v6, %v10910_v47 }
0x19b7   :  { %v5305_v39 = vpop.f32.mrb[128].mxu1 }
0x19b8   :  { %v5321_v13 = vmul.f32 0.25, %v5305_v39  ;;  %v8624_v25 = vpop.f32.mrb[129].mxu1  ;;  %v5332_v23 = vsel %vm1040_vm8, %v5325_v28, -inf }
0x19b9   :  { %5333 = vmax.xlane.f32.xlu0 %v5332_v23 }
0x19ba   :  { %v5326_v50 = vadd.f32 %v5321_v13, %v10915_v56 }
0x19bb   :  { %v5310_v30 = vpop.f32.mrb[130].mxu1 }
0x19bc   :  { %v5322_v19 = vmul.f32 0.25, %v5310_v30  ;;  %v8627_v31 = vpop.f32.mrb[131].mxu1  ;;  %v5335_v27 = vsel %vm1040_vm8, %v5326_v50, -inf }
0x19bd   :  { %5336 = vmax.xlane.f32.xlu0 %v5335_v27 }
0x19be   :  { %v5327_v55 = vadd.f32 %v5322_v19, %v10919_v12 }
0x19bf   :  { %v5315_v49 = vpop.f32.mrb[132].mxu1 }
0x19c0   :  { %v5323_v32 = vmul.f32 0.25, %v5315_v49  ;;  %v8630_v48 = vpop.f32.mrb[133].mxu1  ;;  %v5338_v43 = vsel %vm1040_vm8, %v5327_v55, -inf }
0x19c1   :  { %5339 = vmax.xlane.f32.xlu0 %v5338_v43 }
0x19c2   :  { %v5328_v33 = vadd.f32 %v5323_v32, %v10923_v18 }
0x19c4   :  { %v5341_v29 = vsel %vm1053_vm9, %v5328_v33, -inf }
0x19c5   :  { %5342 = vmax.xlane.f32.xlu1 %v5341_v29 }
0x19d6   :  { %9548 = vrot.lane.b32.xlu1 %v11749_v57, %s10242_s4 }
0x1a42   :  { %v5331_v35 = vpop.xlane.xlu1 %5330 }
0x1a43   :  { %v5344_v59 = vsub.f32 %v5324_v52, %v5331_v35 }
0x1a45   :  { %v5349_v26 = vmul.f32 1.442695, %v5344_v59 }
0x1a46   :  { %v5334_v37 = vpop.xlane.xlu0 %5333 }
0x1a47   :  { %9649 = vpow2.f32 %v5349_v26  ;;  %v5345_v24 = vsub.f32 %v5325_v28, %v5334_v37 }
0x1a49   :  { %v5351_v2 = vmul.f32 1.442695, %v5345_v24 }
0x1a4a   :  { %v5337_v4 = vpop.xlane.xlu0 %5336 }
0x1a4b   :  { %9651 = vpow2.f32 %v5351_v2  ;;  %v5346_v5 = vsub.f32 %v5326_v50, %v5337_v4 }
0x1a4d   :  { %v5353_v6 = vmul.f32 1.442695, %v5346_v5 }
0x1a4e   :  { %v5340_v17 = vpop.xlane.xlu0 %5339 }
0x1a4f   :  { %9653 = vpow2.f32 %v5353_v6  ;;  %v5347_v62 = vsub.f32 %v5327_v55, %v5340_v17 }
0x1a51   :  { %v9650_v39 = vpop.eup %9649  ;;  %v5355_v13 = vmul.f32 1.442695, %v5347_v62 }
0x1a52   :  { %v5343_v25 = vpop.xlane.xlu1 %5342  ;;  %v5359_v23 = vsel %vm1040_vm8, %v9650_v39, 0.0 }
0x1a53   :  { %9655 = vpow2.f32 %v5355_v13  ;;  %v5348_v30 = vsub.f32 %v5328_v33, %v5343_v25  ;;  %5360 = vadd.xlane.f32.xlu0 %v5359_v23 }
0x1a55   :  { %v9652_v52 = vpop.eup %9651  ;;  %v5357_v19 = vmul.f32 1.442695, %v5348_v30 }
0x1a56   :  { %v5362_v28 = vsel %vm1040_vm8, %v9652_v52, 0.0  ;;  %v9549_v48 = vpop.permute.xlu1 %9548 }
0x1a57   :  { %9657 = vpow2.f32 %v5357_v19  ;;  %5363 = vadd.xlane.f32.xlu1 %v5362_v28  ;;  %v9551_v35 = vunpack.i.h.bf16 %v9549_v48  ;;  %v9550_v59 = vunpack.i.l.bf16 %v9549_v48 }
0x1a59   :  { %v9654_v31 = vpop.eup %9653  ;;  %v9151_v2 = vpack.c.bf16 %v9551_v35, %v9550_v59 }
0x1a5a   :  { %v5365_v50 = vsel %vm1040_vm8, %v9654_v31, 0.0 }
0x1a5b   :  { %5366 = vadd.xlane.f32.xlu0 %v5365_v50 }
0x1a5d   :  { %v9656_v27 = vpop.eup %9655 }
0x1a5e   :  { %v5368_v55 = vsel %vm1040_vm8, %v9656_v27, 0.0 }
0x1a5f   :  { %5369 = vadd.xlane.f32.xlu1 %v5368_v55 }
0x1a61   :  { %v9658_v49 = vpop.eup %9657 }
0x1a62   :  { %v5371_v32 = vsel %vm1053_vm9, %v9658_v49, 0.0 }
0x1a63   :  { %5372 = vadd.xlane.f32.xlu0 %v5371_v32 }
0x1a70   :  { %5510 = vrot.lane.b32.xlu1 %v11768_v15, %s10242_s4 }
0x1a74   :  { %5492 = vrot.lane.b32.xlu1 %v11743_v14, %s10243_s7 }
0x1a78   :  { %5494 = vrot.lane.b32.xlu1 %v11745_v10, %s10243_s7 }
0x1a79   :  { %9553 = vrot.lane.b32.xlu0 %v11762_v11, %s10242_s4 }
0x1a7c   :  { %5498 = vrot.lane.b32.xlu1 %v11758_v63, %s10243_s7 }
0x1a7d   :  { %5496 = vrot.lane.b32.xlu0 %v11756_v46, %s10243_s7 }
0x1a81   :  { %5500 = vrot.lane.b32.xlu0 %v11768_v15, %s10243_s7 }
0x1ae0   :  { %v5361_v43 = vpop.xlane.xlu0 %5360 }
0x1ae1   :  { %9659 = vrcp.f32 %v5361_v43 }
0x1ae4   :  { %v5364_v33 = vpop.xlane.xlu1 %5363 }
0x1ae5   :  { %9661 = vrcp.f32 %v5364_v33 }
0x1ae8   :  { %v5367_v29 = vpop.xlane.xlu0 %5366 }
0x1ae9   :  { %9663 = vrcp.f32 %v5367_v29 }
0x1aeb   :  { %v9660_v26 = vpop.eup %9659 }
0x1aec   :  { %v5370_v37 = vpop.xlane.xlu1 %5369  ;;  %v5379_v24 = vmul.f32 %v9660_v26, %v9650_v39 }
0x1aed   :  { %9665 = vrcp.f32 %v5370_v37 }
0x1aee   :  { %8642 = vmatmul.mubr.msk.f32.vlgmr.msra.gmra.mrb[86].mxu0 %vm1040_vm8, %v5379_v24 }
0x1aef   :  { %v9662_v4 = vpop.eup %9661  ;;  %9153 = vmatpush3.bf16.xpose.msk.msra.mxu0 %vm10850_vm7, %v9151_v2  ;;  %8644 = vmatprep.mubr.msk.f32.mxu0 %vm10231_vm0, %v10232_v1 }
0x1af0   :  { %v5373_v5 = vpop.xlane.xlu0 %5372  ;;  %v5380_v6 = vmul.f32 %v9662_v4, %v9652_v52  ;;  %9154 = vmatprep.subr.bf16.mxu0 %v10228_v0  ;;  %v5511_v28 = vpop.permute.xlu1 %5510 }
0x1af1   :  { %9667 = vrcp.f32 %v5373_v5 }
0x1af2   :  { %8645 = vmatmul.mubr.msk.f32.gmra.mrb[112].mxu0 %vm1040_vm8, %v5380_v6 }
0x1af3   :  { %v9664_v17 = vpop.eup %9663  ;;  %8647 = vmatprep.mubr.msk.f32.mxu0 %vm10231_vm0, %v10232_v1 }
0x1af4   :  { %v9554_v62 = vpop.permute.xlu0 %9553  ;;  %v5381_v39 = vmul.f32 %v9664_v17, %v9654_v31  ;;  %v5493_v50 = vpop.permute.xlu1 %5492 }
0x1af5   :  { %v9556_v13 = vunpack.i.h.bf16 %v9554_v62  ;;  %v9555_v25 = vunpack.i.l.bf16 %v9554_v62 }
0x1af6   :  { %8648 = vmatmul.mubr.msk.f32.gmra.mrb[114].mxu0 %vm1040_vm8, %v5381_v39 }
0x1af7   :  { %v9666_v23 = vpop.eup %9665  ;;  %v9155_v30 = vpack.c.bf16 %v9556_v13, %v9555_v25  ;;  %8650 = vmatprep.mubr.msk.f32.mxu0 %vm10231_vm0, %v10232_v1 }
0x1af8   :  { %v5382_v52 = vmul.f32 %v9666_v23, %v9656_v27  ;;  %v5495_v27 = vpop.permute.xlu1 %5494  ;;  %v5497_v55 = vpop.permute.xlu0 %5496 }
0x1af9   :  { %9157 = vmatpush3.bf16.xpose.msk.msra.mxu0 %vm10850_vm7, %v9155_v30 }
0x1afa   :  { %8651 = vmatmul.mubr.msk.f32.gmra.mrb[116].mxu0 %vm1040_vm8, %v5382_v52  ;;  %8664 = vmatprep.subr.mxu0 %v10232_v1 }
0x1afb   :  { %v9668_v19 = vpop.eup %9667  ;;  %8653 = vmatprep.mubr.msk.f32.mxu0 %vm10231_vm0, %v10232_v1 }
0x1afc   :  { %v5383_v31 = vmul.f32 %v9668_v19, %v9658_v49  ;;  %v5499_v49 = vpop.permute.xlu1 %5498  ;;  %v5501_v32 = vpop.permute.xlu0 %5500 }
0x1afe   :  { %8654 = vmatmul.mubr.msk.f32.gmra.mrb[118].mxu0 %vm1040_vm8, %v5383_v31 }
0x1aff   :  { %8666 = vmatprep.mubr.msk.f32.mxu0 %vm10231_vm0, %v10232_v1 }
0x1b01   :  { %8665 = vmatpush3.xpose.msk.msra.mxu0 %vm919_vm6, %v5511_v28 }
0x1b02   :  { %9164 = vmatprep.subr.bf16.mxu0 %v10228_v0 }
0x1b04   :  { %8667 = vmatmul.mubr.msk.f32.vlgmr.msra.gmra.mrb[120].mxu0 %vm919_vm6, %v5493_v50 }
0x1b05   :  { %8669 = vmatprep.mubr.msk.f32.mxu0 %vm10231_vm0, %v10232_v1 }
0x1b08   :  { %8670 = vmatmul.mubr.msk.f32.gmra.mrb[122].mxu0 %vm919_vm6, %v5495_v27 }
0x1b09   :  { %8672 = vmatprep.mubr.msk.f32.mxu0 %vm10231_vm0, %v10232_v1 }
0x1b0c   :  { %8673 = vmatmul.mubr.msk.f32.gmra.mrb[124].mxu0 %vm919_vm6, %v5497_v55 }
0x1b0d   :  { %8675 = vmatprep.mubr.msk.f32.mxu0 %vm10231_vm0, %v10232_v1 }
0x1b10   :  { %8676 = vmatmul.mubr.msk.f32.gmra.mrb[126].mxu0 %vm919_vm6, %v5499_v49 }
0x1b11   :  { %8678 = vmatprep.mubr.msk.f32.mxu0 %vm10231_vm0, %v10232_v1 }
0x1b14   :  { %8679 = vmatmul.mubr.msk.f32.gmra.mrb[128].mxu0 %vm919_vm6, %v5501_v32 }
0x1b15   :  { %8710 = vmatprep.mubr.msk.f32.mxu0 %vm10231_vm0, %v10232_v1 }
0x1bc1   :  { %v11875_v48 = vpop.f32.mrb[86].mxu0 }
0x1bc2   :  { %v8643_v43 = vpop.f32.mrb[87].mxu0 }
0x1bc5   :  { %v11877_v33 = vpop.f32.mrb[112].mxu0 }
0x1bc6   :  { %v8646_v29 = vpop.f32.mrb[113].mxu0 }
0x1bc9   :  { %v11879_v35 = vpop.f32.mrb[114].mxu0 }
0x1bca   :  { %v8649_v59 = vpop.f32.mrb[115].mxu0 }
0x1bcd   :  { %v11881_v26 = vpop.f32.mrb[116].mxu0 }
0x1bce   :  { %v8652_v37 = vpop.f32.mrb[117].mxu0 }
0x1bd1   :  { %v11883_v24 = vpop.f32.mrb[118].mxu0 }
0x1bd2   :  { %v8655_v2 = vpop.f32.mrb[119].mxu0 }
0x1bd7   :  { %v5598_v4 = vpop.f32.mrb[120].mxu0 }
0x1bd8   :  { %v5622_v5 = vmul.f32 0.25, %v5598_v4  ;;  %v8668_v6 = vpop.f32.mrb[121].mxu0 }
0x1bda   :  { %v5627_v17 = vadd.f32 %v5622_v5, %v10905_v38 }
0x1bdb   :  { %v5603_v62 = vpop.f32.mrb[122].mxu0 }
0x1bdc   :  { %v5623_v39 = vmul.f32 0.25, %v5603_v62  ;;  %v8671_v13 = vpop.f32.mrb[123].mxu0  ;;  %v5632_v25 = vsel %vm1040_vm8, %v5627_v17, -inf }
0x1bdd   :  { %5633 = vmax.xlane.f32.xlu1 %v5632_v25 }
0x1bde   :  { %v5628_v23 = vadd.f32 %v5623_v39, %v10910_v47 }
0x1bdf   :  { %v5608_v30 = vpop.f32.mrb[124].mxu0 }
0x1be0   :  { %v5624_v52 = vmul.f32 0.25, %v5608_v30  ;;  %v8674_v19 = vpop.f32.mrb[125].mxu0  ;;  %v5635_v28 = vsel %vm1040_vm8, %v5628_v23, -inf }
0x1be1   :  { %5636 = vmax.xlane.f32.xlu0 %v5635_v28 }
0x1be2   :  { %v5629_v31 = vadd.f32 %v5624_v52, %v10915_v56 }
0x1be3   :  { %v5613_v50 = vpop.f32.mrb[126].mxu0 }
0x1be4   :  { %v5625_v27 = vmul.f32 0.25, %v5613_v50  ;;  %v8677_v55 = vpop.f32.mrb[127].mxu0  ;;  %v5638_v49 = vsel %vm1040_vm8, %v5629_v31, -inf }
0x1be5   :  { %5639 = vmax.xlane.f32.xlu0 %v5638_v49 }
0x1be6   :  { %v5630_v32 = vadd.f32 %v5625_v27, %v10919_v12 }
0x1be7   :  { %v5618_v43 = vpop.f32.mrb[128].mxu0 }
0x1be8   :  { %v5626_v29 = vmul.f32 0.25, %v5618_v43  ;;  %v8680_v59 = vpop.f32.mrb[129].mxu0  ;;  %v5641_v37 = vsel %vm1040_vm8, %v5630_v32, -inf }
0x1be9   :  { %5642 = vmax.xlane.f32.xlu0 %v5641_v37 }
0x1bea   :  { %v5631_v2 = vadd.f32 %v5626_v29, %v10923_v18 }
0x1bec   :  { %v5644_v4 = vsel %vm1053_vm9, %v5631_v2, -inf }
0x1bed   :  { %5645 = vmax.xlane.f32.xlu1 %v5644_v4 }
0x1bfe   :  { %9558 = vrot.lane.b32.xlu1 %v11751_v53, %s10243_s7 }
0x1c6a   :  { %v5634_v5 = vpop.xlane.xlu1 %5633 }
0x1c6b   :  { %v5647_v6 = vsub.f32 %v5627_v17, %v5634_v5 }
0x1c6d   :  { %v5652_v62 = vmul.f32 1.442695, %v5647_v6 }
0x1c6e   :  { %v5637_v39 = vpop.xlane.xlu0 %5636 }
0x1c6f   :  { %9669 = vpow2.f32 %v5652_v62  ;;  %v5648_v13 = vsub.f32 %v5628_v23, %v5637_v39 }
0x1c71   :  { %v5654_v25 = vmul.f32 1.442695, %v5648_v13 }
0x1c72   :  { %v5640_v30 = vpop.xlane.xlu0 %5639 }
0x1c73   :  { %9671 = vpow2.f32 %v5654_v25  ;;  %v5649_v52 = vsub.f32 %v5629_v31, %v5640_v30  ;;  %v5188_v25 = vld [vmem:[#allocation26 + $0x50] sm:$0xff]  ;;  %v5189_v30 = vld [vmem:[#allocation26 + $0x58] sm:$0xff] }
0x1c75   :  { %v5656_v19 = vmul.f32 1.442695, %v5649_v52  ;;  %v9165_v52 = vpack.c.bf16 %v5189_v30, %v5188_v25 }
0x1c76   :  { %v5643_v28 = vpop.xlane.xlu0 %5642 }
0x1c77   :  { %9673 = vpow2.f32 %v5656_v19  ;;  %v5650_v50 = vsub.f32 %v5630_v32, %v5643_v28  ;;  %9166 = vmatpush3.bf16.msra.mxu0 %v9165_v52 }
0x1c78   :  { %9170 = vmatprep.subr.bf16.mxu0 %v10228_v0 }
0x1c79   :  { %v9670_v27 = vpop.eup %9669  ;;  %v5658_v55 = vmul.f32 1.442695, %v5650_v50 }
0x1c7a   :  { %v5646_v49 = vpop.xlane.xlu1 %5645  ;;  %v5662_v43 = vsel %vm1040_vm8, %v9670_v27, 0.0 }
0x1c7b   :  { %9675 = vpow2.f32 %v5658_v55  ;;  %v5651_v29 = vsub.f32 %v5631_v2, %v5646_v49  ;;  %5663 = vadd.xlane.f32.xlu0 %v5662_v43 }
0x1c7d   :  { %v11898_v17 = vpop.eup %9671  ;;  %v5660_v59 = vmul.f32 1.442695, %v5651_v29 }
0x1c7e   :  { %v9559_v23 = vpop.permute.xlu1 %9558  ;;  %v5665_v37 = vsel %vm1040_vm8, %v11898_v17, 0.0 }
0x1c7f   :  { %9677 = vpow2.f32 %v5660_v59  ;;  %v9561_v31 = vunpack.i.h.bf16 %v9559_v23  ;;  %v9560_v4 = vunpack.i.l.bf16 %v9559_v23  ;;  %5666 = vadd.xlane.f32.xlu1 %v5665_v37  ;;  %v5186_v37 = vld [vmem:[#allocation26 + $0x40] sm:$0xff] }
0x1c81   :  { %v9674_v32 = vpop.eup %9673  ;;  %v9159_v5 = vpack.c.bf16 %v9561_v31, %v9560_v4  ;;  %v5187_v31 = vld [vmem:[#allocation26 + $0x48] sm:$0xff] }
0x1c82   :  { %v5668_v6 = vsel %vm1040_vm8, %v9674_v32, 0.0 }
0x1c83   :  { %5669 = vadd.xlane.f32.xlu0 %v5668_v6  ;;  %9160 = vmatpush3.bf16.msra.mxu1 %v9159_v5  ;;  %v9168_v5 = vpack.c.bf16 %v5187_v31, %v5186_v37 }
0x1c84   :  { %9161 = vmatprep.subr.bf16.mxu1 %v10228_v0 }
0x1c85   :  { %v9676_v2 = vpop.eup %9675 }
0x1c86   :  { %v5671_v62 = vsel %vm1040_vm8, %v9676_v2, 0.0 }
0x1c87   :  { %5672 = vadd.xlane.f32.xlu1 %v5671_v62 }
0x1c89   :  { %v9678_v39 = vpop.eup %9677 }
0x1c8a   :  { %v5674_v13 = vsel %vm1053_vm9, %v9678_v39, 0.0 }
0x1c8b   :  { %5675 = vadd.xlane.f32.xlu0 %v5674_v13 }
0x1c98   :  { %5699 = vrot.lane.b32.xlu1 %v11771_v42, %s10243_s7 }
0x1c9c   :  { %9568 = vrot.lane.b32.xlu1 %v11749_v57, %s10212_s15 }
0x1ca0   :  { %9573 = vrot.lane.b32.xlu1 %v11762_v11, %s10212_s15 }
0x1ca1   :  { %9563 = vrot.lane.b32.xlu0 %v11764_v60, %s10243_s7 }
0x1ca4   :  { %6022 = vrot.lane.b32.xlu1 %v11743_v14, %s10244_s28 }
0x1ca5   :  { %6040 = vrot.lane.b32.xlu0 %v11768_v15, %s10212_s15 }
0x1ca8   :  { %6026 = vrot.lane.b32.xlu1 %v11756_v46, %s10244_s28 }
0x1ca9   :  { %6024 = vrot.lane.b32.xlu0 %v11745_v10, %s10244_s28 }
0x1cac   :  { %6030 = vrot.lane.b32.xlu1 %v11768_v15, %s10244_s28 }
0x1cad   :  { %6028 = vrot.lane.b32.xlu0 %v11758_v63, %s10244_s28 }
0x1d08   :  { %v5664_v19 = vpop.xlane.xlu0 %5663 }
0x1d09   :  { %9679 = vrcp.f32 %v5664_v19 }
0x1d0c   :  { %v5667_v50 = vpop.xlane.xlu1 %5666 }
0x1d0d   :  { %9681 = vrcp.f32 %v5667_v50 }
0x1d10   :  { %v5670_v28 = vpop.xlane.xlu0 %5669 }
0x1d11   :  { %9683 = vrcp.f32 %v5670_v28 }
0x1d13   :  { %v9680_v4 = vpop.eup %9679 }
0x1d14   :  { %v5673_v59 = vpop.xlane.xlu1 %5672  ;;  %v5682_v6 = vmul.f32 %v9680_v4, %v9670_v27 }
0x1d15   :  { %9685 = vrcp.f32 %v5673_v59 }
0x1d17   :  { %v9682_v13 = vpop.eup %9681 }
0x1d18   :  { %v5676_v55 = vpop.xlane.xlu0 %5675  ;;  %v5700_v62 = vpop.permute.xlu1 %5699  ;;  %v5683_v25 = vmul.f32 %v9682_v13, %v11898_v17 }
0x1d19   :  { %9687 = vrcp.f32 %v5676_v55 }
0x1d1b   :  { %v9684_v30 = vpop.eup %9683 }
0x1d1c   :  { %v9564_v49 = vpop.permute.xlu0 %9563  ;;  %v5684_v27 = vmul.f32 %v9684_v30, %v9674_v32 }
0x1d1d   :  { %v9566_v43 = vunpack.i.h.bf16 %v9564_v49  ;;  %v9565_v29 = vunpack.i.l.bf16 %v9564_v49 }
0x1d1f   :  { %v9162_v23 = vpack.c.bf16 %v9566_v43, %v9565_v29  ;;  %v9686_v52 = vpop.eup %9685 }
0x1d20   :  { %v5685_v19 = vmul.f32 %v9686_v52, %v9676_v2  ;;  %v6041_v4 = vpop.permute.xlu0 %6040 }
0x1d21   :  { %9163 = vmatpush3.bf16.msra.mxu1 %v9162_v23 }
0x1d22   :  { %8689 = vmatprep.subr.mxu1 %v10232_v1 }
0x1d23   :  { %v9688_v28 = vpop.eup %9687 }
0x1d24   :  { %v5686_v17 = vmul.f32 %v9688_v28, %v9678_v39 }
0x1d25   :  { %8690 = vmatpush3.msk.msra.mxu1 %vm558_vm2, %v5700_v62 }
0x1d26   :  { %8692 = vmatmul.mubr.msk.f32.vlgmr.msra.gmra.mrb[134].mxu1 %vm1040_vm8, %v5682_v6  ;;  %9167 = vmatprep.subr.bf16.mxu1 %v10228_v0 }
0x1d27   :  { %8694 = vmatprep.mubr.msk.f32.mxu1 %vm10231_vm0, %v10232_v1  ;;  %9169 = vmatpush3.bf16.msra.mxu1 %v9168_v5 }
0x1d28   :  { %9178 = vmatprep.subr.bf16.mxu1 %v10228_v0 }
0x1d2a   :  { %8695 = vmatmul.mubr.msk.f32.gmra.mrb[136].mxu1 %vm1040_vm8, %v5683_v25  ;;  %v6025_v25 = vpop.permute.xlu0 %6024 }
0x1d2b   :  { %8697 = vmatprep.mubr.msk.f32.mxu1 %vm10231_vm0, %v10232_v1 }
0x1d2e   :  { %8698 = vmatmul.mubr.msk.f32.gmra.mrb[138].mxu1 %vm1040_vm8, %v5684_v27 }
0x1d2f   :  { %8700 = vmatprep.mubr.msk.f32.mxu1 %vm10231_vm0, %v10232_v1 }
0x1d32   :  { %8701 = vmatmul.mubr.msk.f32.gmra.mrb[140].mxu1 %vm1040_vm8, %v5685_v19 }
0x1d33   :  { %8703 = vmatprep.mubr.msk.f32.mxu1 %vm10231_vm0, %v10232_v1 }
0x1d36   :  { %8704 = vmatmul.mubr.msk.f32.gmra.mrb[142].mxu1 %vm1040_vm8, %v5686_v17  ;;  %v6029_v17 = vpop.permute.xlu0 %6028 }
0x1d37   :  { %8729 = vmatprep.mubr.msk.f32.mxu1 %vm10231_vm0, %v10232_v1 }
0x1d3a   :  { %8730 = vmatmul.mubr.msk.f32.vlgmr.msra.gmra.mrb[144].mxu1 %vm919_vm6, %v11875_v48  ;;  %v9569_v48 = vpop.permute.xlu1 %9568 }
0x1d3b   :  { %8732 = vmatprep.mubr.msk.f32.mxu1 %vm10231_vm0, %v10232_v1  ;;  %v9570_v32 = vunpack.i.l.bf16 %v9569_v48 }
0x1d3e   :  { %8733 = vmatmul.mubr.msk.f32.gmra.mrb[146].mxu1 %vm919_vm6, %v11877_v33  ;;  %v9571_v33 = vunpack.i.h.bf16 %v9569_v48  ;;  %v9574_v39 = vpop.permute.xlu1 %9573 }
0x1d3f   :  { %8735 = vmatprep.mubr.msk.f32.mxu1 %vm10231_vm0, %v10232_v1 }
0x1d40   :  { %v9171_v2 = vpack.c.bf16 %v9571_v33, %v9570_v32 }
0x1d42   :  { %8736 = vmatmul.mubr.msk.f32.gmra.mrb[148].mxu1 %vm919_vm6, %v11879_v35  ;;  %v6023_v6 = vpop.permute.xlu1 %6022 }
0x1d43   :  { %8738 = vmatprep.mubr.msk.f32.mxu1 %vm10231_vm0, %v10232_v1 }
0x1d46   :  { %8739 = vmatmul.mubr.msk.f32.gmra.mrb[150].mxu1 %vm919_vm6, %v11881_v26  ;;  %v9576_v26 = vunpack.i.h.bf16 %v9574_v39  ;;  %v6027_v52 = vpop.permute.xlu1 %6026 }
0x1d47   :  { %8741 = vmatprep.mubr.msk.f32.mxu1 %vm10231_vm0, %v10232_v1 }
0x1d4a   :  { %8742 = vmatmul.mubr.msk.f32.gmra.mrb[152].mxu1 %vm919_vm6, %v11883_v24  ;;  %v9575_v24 = vunpack.i.l.bf16 %v9574_v39  ;;  %v6031_v32 = vpop.permute.xlu1 %6030 }
0x1d4b   :  { %8779 = vmatprep.mubr.msk.f32.mxu1 %vm10231_vm0, %v10232_v1 }
0x1d4c   :  { %v9175_v43 = vpack.c.bf16 %v9576_v26, %v9575_v24 }
0x1df9   :  { %v5788_v35 = vpop.f32.mrb[134].mxu1 }
0x1dfa   :  { %v8693_v50 = vpop.f32.mrb[135].mxu1  ;;  %8711 = vmatmul.mubr.msk.f32.vlgmr.msra.gmra.mrb[130].mxu0 %vm919_vm6, %v5788_v35 }
0x1dfb   :  { %9173 = vmatpush3.bf16.xpose.msk.msra.mxu0 %vm10850_vm7, %v9171_v2  ;;  %8713 = vmatprep.mubr.msk.f32.mxu0 %vm10231_vm0, %v10232_v1 }
0x1dfc   :  { %9174 = vmatprep.subr.bf16.mxu0 %v10228_v0 }
0x1dfd   :  { %v5793_v55 = vpop.f32.mrb[136].mxu1 }
0x1dfe   :  { %v8696_v49 = vpop.f32.mrb[137].mxu1  ;;  %8714 = vmatmul.mubr.msk.f32.gmra.mrb[132].mxu0 %vm919_vm6, %v5793_v55 }
0x1dff   :  { %8716 = vmatprep.mubr.msk.f32.mxu0 %vm10231_vm0, %v10232_v1 }
0x1e01   :  { %v5798_v29 = vpop.f32.mrb[138].mxu1 }
0x1e02   :  { %v8699_v59 = vpop.f32.mrb[139].mxu1  ;;  %8717 = vmatmul.mubr.msk.f32.gmra.mrb[134].mxu0 %vm919_vm6, %v5798_v29 }
0x1e03   :  { %9177 = vmatpush3.bf16.xpose.msk.msra.mxu0 %vm10850_vm7, %v9175_v43  ;;  %8719 = vmatprep.mubr.msk.f32.mxu0 %vm10231_vm0, %v10232_v1 }
0x1e04   :  { %8752 = vmatprep.subr.mxu0 %v10232_v1 }
0x1e05   :  { %v5803_v23 = vpop.f32.mrb[140].mxu1 }
0x1e06   :  { %v8702_v37 = vpop.f32.mrb[141].mxu1  ;;  %8720 = vmatmul.mubr.msk.f32.gmra.mrb[136].mxu0 %vm919_vm6, %v5803_v23 }
0x1e07   :  { %8722 = vmatprep.mubr.msk.f32.mxu0 %vm10231_vm0, %v10232_v1 }
0x1e09   :  { %v5808_v31 = vpop.f32.mrb[142].mxu1 }
0x1e0a   :  { %v8705_v5 = vpop.f32.mrb[143].mxu1  ;;  %8723 = vmatmul.mubr.msk.f32.gmra.mrb[138].mxu0 %vm919_vm6, %v5808_v31 }
0x1e0b   :  { %8753 = vmatpush3.xpose.msk.msra.mxu0 %vm919_vm6, %v6041_v4  ;;  %8754 = vmatprep.mubr.msk.f32.mxu0 %vm10231_vm0, %v10232_v1 }
0x1e0c   :  { %9184 = vmatprep.subr.bf16.mxu0 %v10228_v0 }
0x1e0d   :  { %v5998_v62 = vpop.f32.mrb[144].mxu1 }
0x1e0e   :  { %v8731_v13 = vpop.f32.mrb[145].mxu1  ;;  %8755 = vmatmul.mubr.msk.f32.vlgmr.msra.gmra.mrb[140].mxu0 %vm919_vm6, %v6023_v6 }
0x1e0f   :  { %8757 = vmatprep.mubr.msk.f32.mxu0 %vm10231_vm0, %v10232_v1 }
0x1e11   :  { %v6003_v30 = vpop.f32.mrb[146].mxu1 }
0x1e12   :  { %v8734_v27 = vpop.f32.mrb[147].mxu1  ;;  %8758 = vmatmul.mubr.msk.f32.gmra.mrb[142].mxu0 %vm919_vm6, %v6025_v25 }
0x1e13   :  { %8760 = vmatprep.mubr.msk.f32.mxu0 %vm10231_vm0, %v10232_v1 }
0x1e15   :  { %v6008_v19 = vpop.f32.mrb[148].mxu1 }
0x1e16   :  { %v8737_v28 = vpop.f32.mrb[149].mxu1  ;;  %8761 = vmatmul.mubr.msk.f32.gmra.mrb[144].mxu0 %vm919_vm6, %v6027_v52 }
0x1e17   :  { %8763 = vmatprep.mubr.msk.f32.mxu0 %vm10231_vm0, %v10232_v1 }
0x1e19   :  { %v6013_v48 = vpop.f32.mrb[150].mxu1 }
0x1e1a   :  { %v8740_v33 = vpop.f32.mrb[151].mxu1  ;;  %8764 = vmatmul.mubr.msk.f32.gmra.mrb[146].mxu0 %vm919_vm6, %v6029_v17 }
0x1e1b   :  { %8766 = vmatprep.mubr.msk.f32.mxu0 %vm10231_vm0, %v10232_v1 }
0x1e1d   :  { %v6018_v2 = vpop.f32.mrb[152].mxu1 }
0x1e1e   :  { %v8743_v35 = vpop.f32.mrb[153].mxu1  ;;  %8767 = vmatmul.mubr.msk.f32.gmra.mrb[148].mxu0 %vm919_vm6, %v6031_v32 }
0x1e1f   :  { %8798 = vmatprep.mubr.msk.f32.mxu0 %vm10231_vm0, %v10232_v1 }
0x1ecd   :  { %v5893_v39 = vpop.f32.mrb[130].mxu0 }
0x1ece   :  { %v12005_v50 = vadd.f32 %v5998_v62, %v5893_v39  ;;  %v8712_v26 = vpop.f32.mrb[131].mxu0 }
0x1ed1   :  { %v5898_v24 = vpop.f32.mrb[132].mxu0 }
0x1ed2   :  { %v12007_v55 = vadd.f32 %v6003_v30, %v5898_v24  ;;  %v8715_v49 = vpop.f32.mrb[133].mxu0 }
0x1ed5   :  { %v5903_v43 = vpop.f32.mrb[134].mxu0 }
0x1ed6   :  { %v12009_v29 = vadd.f32 %v6008_v19, %v5903_v43  ;;  %v8718_v59 = vpop.f32.mrb[135].mxu0 }
0x1ed9   :  { %v5908_v23 = vpop.f32.mrb[136].mxu0 }
0x1eda   :  { %v12011_v37 = vadd.f32 %v6013_v48, %v5908_v23  ;;  %v8721_v31 = vpop.f32.mrb[137].mxu0 }
0x1edd   :  { %v5913_v4 = vpop.f32.mrb[138].mxu0 }
0x1ede   :  { %v12013_v5 = vadd.f32 %v6018_v2, %v5913_v4  ;;  %v8724_v6 = vpop.f32.mrb[139].mxu0 }
0x1ee1   :  { %v6128_v13 = vpop.f32.mrb[140].mxu0 }
0x1ee2   :  { %v6152_v62 = vmul.f32 0.25, %v6128_v13  ;;  %v8756_v25 = vpop.f32.mrb[141].mxu0 }
0x1ee4   :  { %v6157_v27 = vadd.f32 %v6152_v62, %v10905_v38 }
0x1ee5   :  { %v6133_v30 = vpop.f32.mrb[142].mxu0 }
0x1ee6   :  { %v6153_v52 = vmul.f32 0.25, %v6133_v30  ;;  %v8759_v28 = vpop.f32.mrb[143].mxu0  ;;  %v6162_v19 = vsel %vm1040_vm8, %v6157_v27, -inf }
0x1ee7   :  { %6163 = vmax.xlane.f32.xlu0 %v6162_v19 }
0x1ee8   :  { %v6158_v17 = vadd.f32 %v6153_v52, %v10910_v47 }
0x1ee9   :  { %v6138_v48 = vpop.f32.mrb[144].mxu0 }
0x1eea   :  { %v6154_v33 = vmul.f32 0.25, %v6138_v48  ;;  %v8762_v32 = vpop.f32.mrb[145].mxu0  ;;  %v6165_v2 = vsel %vm1040_vm8, %v6158_v17, -inf }
0x1eeb   :  { %6166 = vmax.xlane.f32.xlu1 %v6165_v2 }
0x1eec   :  { %v6159_v35 = vadd.f32 %v6154_v33, %v10915_v56 }
0x1eed   :  { %v6143_v39 = vpop.f32.mrb[146].mxu0 }
0x1eee   :  { %v6155_v26 = vmul.f32 0.25, %v6143_v39  ;;  %v8765_v24 = vpop.f32.mrb[147].mxu0  ;;  %v6168_v49 = vsel %vm1040_vm8, %v6159_v35, -inf }
0x1eef   :  { %6169 = vmax.xlane.f32.xlu0 %v6168_v49 }
0x1ef0   :  { %v6160_v43 = vadd.f32 %v6155_v26, %v10919_v12 }
0x1ef1   :  { %v6148_v59 = vpop.f32.mrb[148].mxu0 }
0x1ef2   :  { %v6156_v23 = vmul.f32 0.25, %v6148_v59  ;;  %v8768_v31 = vpop.f32.mrb[149].mxu0  ;;  %v6171_v4 = vsel %vm1040_vm8, %v6160_v43, -inf }
0x1ef3   :  { %6172 = vmax.xlane.f32.xlu0 %v6171_v4 }
0x1ef4   :  { %v6161_v6 = vadd.f32 %v6156_v23, %v10923_v18 }
0x1ef6   :  { %v6174_v13 = vsel %vm1053_vm9, %v6161_v6, -inf }
0x1ef7   :  { %6175 = vmax.xlane.f32.xlu0 %v6174_v13 }
0x1f0d   :  { %9578 = vrot.lane.b32.xlu0 %v11751_v53, %s10244_s28 }
0x1f74   :  { %v6164_v62 = vpop.xlane.xlu0 %6163 }
0x1f75   :  { %v6177_v25 = vsub.f32 %v6157_v27, %v6164_v62 }
0x1f77   :  { %v6182_v30 = vmul.f32 1.442695, %v6177_v25 }
0x1f78   :  { %v6167_v52 = vpop.xlane.xlu1 %6166 }
0x1f79   :  { %9689 = vpow2.f32 %v6182_v30  ;;  %v6178_v28 = vsub.f32 %v6158_v17, %v6167_v52  ;;  %v5191_v30 = vld [vmem:[#allocation26 + $0x68] sm:$0xff] }
0x1f7b   :  { %v6184_v19 = vmul.f32 1.442695, %v6178_v28 }
0x1f7c   :  { %v6170_v48 = vpop.xlane.xlu0 %6169 }
0x1f7d   :  { %9691 = vpow2.f32 %v6184_v19  ;;  %v6179_v17 = vsub.f32 %v6159_v35, %v6170_v48 }
0x1f7f   :  { %v6186_v31 = vmul.f32 1.442695, %v6179_v17 }
0x1f80   :  { %v6173_v33 = vpop.xlane.xlu0 %6172 }
0x1f81   :  { %v6180_v4 = vsub.f32 %v6160_v43, %v6173_v33  ;;  %9693 = vpow2.f32 %v6186_v31 }
0x1f83   :  { %v9690_v32 = vpop.eup %9689  ;;  %v6188_v13 = vmul.f32 1.442695, %v6180_v4 }
0x1f84   :  { %v6176_v2 = vpop.xlane.xlu0 %6175  ;;  %v6192_v39 = vsel %vm1040_vm8, %v9690_v32, 0.0 }
0x1f85   :  { %6193 = vadd.xlane.f32.xlu1 %v6192_v39  ;;  %v6181_v62 = vsub.f32 %v6161_v6, %v6176_v2  ;;  %9695 = vpow2.f32 %v6188_v13  ;;  %v5190_v6 = vld [vmem:[#allocation26 + $0x60] sm:$0xff] }
0x1f87   :  { %v12028_v26 = vpop.eup %9691  ;;  %v6190_v25 = vmul.f32 1.442695, %v6181_v62 }
0x1f88   :  { %v9579_v24 = vpop.permute.xlu0 %9578  ;;  %v6195_v49 = vsel %vm1040_vm8, %v12028_v26, 0.0 }
0x1f89   :  { %v9581_v27 = vunpack.i.h.bf16 %v9579_v24  ;;  %v9580_v59 = vunpack.i.l.bf16 %v9579_v24  ;;  %6196 = vadd.xlane.f32.xlu0 %v6195_v49  ;;  %9697 = vpow2.f32 %v6190_v25 }
0x1f8b   :  { %v9179_v23 = vpack.c.bf16 %v9581_v27, %v9580_v59 }
0x1f8d   :  { %9180 = vmatpush3.bf16.msra.mxu1 %v9179_v23 }
0x1f8e   :  { %9181 = vmatprep.subr.bf16.mxu1 %v10228_v0 }
0x1f96   :  { %9583 = vrot.lane.b32.xlu1 %v11764_v60, %s10244_s28 }
0x1f9f   :  { %6225 = vrot.lane.b32.xlu0 %v11771_v42, %s10244_s28 }
0x1fa3   :  { %9588 = vrot.lane.b32.xlu0 %v11749_v57, %s10223_s17  ;;  %v9694_v57 = vpop.eup %9693 }
0x1fa4   :  { %v9696_v35 = vpop.eup %9695 }
0x1fa5   :  { %v6201_v43 = vsel %vm1040_vm8, %v9696_v35, 0.0 }
0x1fa7   :  { %9593 = vrot.lane.b32.xlu0 %v11762_v11, %s10223_s17  ;;  %v6198_v11 = vsel %vm1040_vm8, %v9694_v57, 0.0 }
0x1fab   :  { %6466 = vrot.lane.b32.xlu0 %v11768_v15, %s10223_s17 }
0x1faf   :  { %6448 = vrot.lane.b32.xlu0 %v11743_v14, %s10245_s10  ;;  %v9698_v14 = vpop.eup %9697 }
0x1fb3   :  { %6450 = vrot.lane.b32.xlu0 %v11745_v10, %s10245_s10  ;;  %v6204_v10 = vsel %vm1053_vm9, %v9698_v14, 0.0 }
0x1fb7   :  { %6452 = vrot.lane.b32.xlu0 %v11756_v46, %s10245_s10  ;;  %v9185_v46 = vpack.c.bf16 %v5191_v30, %v5190_v6 }
0x1fb9   :  { %9186 = vmatpush3.bf16.msra.mxu0 %v9185_v46 }
0x1fba   :  { %6199 = vadd.xlane.f32.xlu1 %v6198_v11  ;;  %9195 = vmatprep.subr.bf16.mxu0 %v10228_v0 }
0x1fbb   :  { %6454 = vrot.lane.b32.xlu0 %v11758_v63, %s10245_s10 }
0x1fbe   :  { %6202 = vadd.xlane.f32.xlu1 %v6201_v43 }
0x1fbf   :  { %6456 = vrot.lane.b32.xlu0 %v11768_v15, %s10245_s10 }
0x1fc2   :  { %6205 = vadd.xlane.f32.xlu1 %v6204_v10 }
0x2012   :  { %v6194_v52 = vpop.xlane.xlu1 %6193 }
0x2013   :  { %9699 = vrcp.f32 %v6194_v52 }
0x2016   :  { %v9584_v28 = vpop.permute.xlu1 %9583  ;;  %v6197_v63 = vpop.xlane.xlu0 %6196 }
0x2017   :  { %v9586_v19 = vunpack.i.h.bf16 %v9584_v28  ;;  %v9585_v48 = vunpack.i.l.bf16 %v9584_v28  ;;  %9701 = vrcp.f32 %v6197_v63 }
0x2019   :  { %v9182_v33 = vpack.c.bf16 %v9586_v19, %v9585_v48 }
0x201a   :  { %v6226_v2 = vpop.permute.xlu0 %6225 }
0x201b   :  { %9183 = vmatpush3.bf16.msra.mxu1 %v9182_v33 }
0x201c   :  { %8777 = vmatprep.subr.mxu1 %v10232_v1 }
0x201d   :  { %v9700_v15 = vpop.eup %9699 }
0x201e   :  { %v6212_v39 = vmul.f32 %v9700_v15, %v9690_v32  ;;  %v9589_v24 = vpop.permute.xlu0 %9588 }
0x201f   :  { %8778 = vmatpush3.msk.msra.mxu1 %vm558_vm2, %v6226_v2  ;;  %v9591_v49 = vunpack.i.h.bf16 %v9589_v24  ;;  %v9590_v27 = vunpack.i.l.bf16 %v9589_v24 }
0x2020   :  { %8780 = vmatmul.mubr.msk.f32.vlgmr.msra.gmra.mrb[154].mxu1 %vm1040_vm8, %v6212_v39  ;;  %9187 = vmatprep.subr.bf16.mxu1 %v10228_v0 }
0x2021   :  { %v9702_v59 = vpop.eup %9701  ;;  %8782 = vmatprep.mubr.msk.f32.mxu1 %vm10231_vm0, %v10232_v1  ;;  %v9188_v17 = vpack.c.bf16 %v9591_v49, %v9590_v27 }
0x2022   :  { %v6213_v23 = vmul.f32 %v9702_v59, %v12028_v26  ;;  %v9594_v31 = vpop.permute.xlu0 %9593 }
0x2023   :  { %v9596_v32 = vunpack.i.h.bf16 %v9594_v31  ;;  %v9595_v4 = vunpack.i.l.bf16 %v9594_v31 }
0x2024   :  { %8783 = vmatmul.mubr.msk.f32.gmra.mrb[156].mxu1 %vm1040_vm8, %v6213_v23 }
0x2025   :  { %8785 = vmatprep.mubr.msk.f32.mxu1 %vm10231_vm0, %v10232_v1  ;;  %v9192_v13 = vpack.c.bf16 %v9596_v32, %v9595_v4 }
0x2026   :  { %9190 = vmatpush3.bf16.xpose.msk.msra.mxu1 %vm10850_vm7, %v9188_v17  ;;  %v6467_v26 = vpop.permute.xlu0 %6466 }
0x2027   :  { %9191 = vmatprep.subr.bf16.mxu1 %v10228_v0 }
0x202a   :  { %v6449_v30 = vpop.permute.xlu0 %6448 }
0x202e   :  { %9194 = vmatpush3.bf16.xpose.msk.msra.mxu1 %vm10850_vm7, %v9192_v13  ;;  %v6451_v28 = vpop.permute.xlu0 %6450 }
0x202f   :  { %8821 = vmatprep.subr.mxu1 %v10232_v1 }
0x2036   :  { %8822 = vmatpush3.xpose.msk.msra.mxu1 %vm919_vm6, %v6467_v26 }
0x2037   :  { %9201 = vmatprep.subr.bf16.mxu1 %v10228_v0 }
0x2047   :  { %v6200_v62 = vpop.xlane.xlu1 %6199 }
0x2048   :  { %9703 = vrcp.f32 %v6200_v62 }
0x204b   :  { %v6203_v25 = vpop.xlane.xlu1 %6202 }
0x204c   :  { %9705 = vrcp.f32 %v6203_v25 }
0x204f   :  { %v6206_v11 = vpop.xlane.xlu1 %6205 }
0x2050   :  { %9707 = vrcp.f32 %v6206_v11 }
0x2052   :  { %v9704_v43 = vpop.eup %9703 }
0x2053   :  { %v6214_v10 = vmul.f32 %v9704_v43, %v9694_v57  ;;  %v6453_v57 = vpop.permute.xlu0 %6452 }
0x2055   :  { %8786 = vmatmul.mubr.msk.f32.gmra.mrb[158].mxu1 %vm1040_vm8, %v6214_v10 }
0x2056   :  { %v9706_v6 = vpop.eup %9705  ;;  %8788 = vmatprep.mubr.msk.f32.mxu1 %vm10231_vm0, %v10232_v1 }
0x2057   :  { %v6215_v9 = vmul.f32 %v9706_v6, %v9696_v35  ;;  %v6455_v35 = vpop.permute.xlu0 %6454 }
0x2059   :  { %8789 = vmatmul.mubr.msk.f32.gmra.mrb[160].mxu1 %vm1040_vm8, %v6215_v9 }
0x205a   :  { %v9708_v46 = vpop.eup %9707  ;;  %8791 = vmatprep.mubr.msk.f32.mxu1 %vm10231_vm0, %v10232_v1 }
0x205b   :  { %v6216_v52 = vmul.f32 %v9708_v46, %v9698_v14  ;;  %v6457_v14 = vpop.permute.xlu0 %6456 }
0x205d   :  { %8792 = vmatmul.mubr.msk.f32.gmra.mrb[162].mxu1 %vm1040_vm8, %v6216_v52 }
0x205e   :  { %8823 = vmatprep.mubr.msk.f32.mxu1 %vm10231_vm0, %v10232_v1 }
0x2061   :  { %8824 = vmatmul.mubr.msk.f32.vlgmr.msra.gmra.mrb[164].mxu1 %vm919_vm6, %v6449_v30 }
0x2062   :  { %8826 = vmatprep.mubr.msk.f32.mxu1 %vm10231_vm0, %v10232_v1 }
0x2065   :  { %8827 = vmatmul.mubr.msk.f32.gmra.mrb[166].mxu1 %vm919_vm6, %v6451_v28 }
0x2066   :  { %8829 = vmatprep.mubr.msk.f32.mxu1 %vm10231_vm0, %v10232_v1 }
0x2069   :  { %8830 = vmatmul.mubr.msk.f32.gmra.mrb[168].mxu1 %vm919_vm6, %v6453_v57 }
0x206a   :  { %8832 = vmatprep.mubr.msk.f32.mxu1 %vm10231_vm0, %v10232_v1 }
0x206d   :  { %8833 = vmatmul.mubr.msk.f32.gmra.mrb[170].mxu1 %vm919_vm6, %v6455_v35 }
0x206e   :  { %8835 = vmatprep.mubr.msk.f32.mxu1 %vm10231_vm0, %v10232_v1 }
0x2071   :  { %8836 = vmatmul.mubr.msk.f32.gmra.mrb[172].mxu1 %vm919_vm6, %v6457_v14 }
0x2072   :  { %8867 = vmatprep.mubr.msk.f32.mxu1 %vm10231_vm0, %v10232_v1 }
0x20f3   :  { %v6314_v63 = vpop.f32.mrb[154].mxu1 }
0x20f4   :  { %v8781_v19 = vpop.f32.mrb[155].mxu1  ;;  %8799 = vmatmul.mubr.msk.f32.vlgmr.msra.gmra.mrb[150].mxu0 %vm919_vm6, %v6314_v63 }
0x20f5   :  { %8801 = vmatprep.mubr.msk.f32.mxu0 %vm10231_vm0, %v10232_v1 }
0x20f7   :  { %v6319_v48 = vpop.f32.mrb[156].mxu1 }
0x20f8   :  { %v8784_v33 = vpop.f32.mrb[157].mxu1  ;;  %8802 = vmatmul.mubr.msk.f32.gmra.mrb[152].mxu0 %vm919_vm6, %v6319_v48 }
0x20f9   :  { %8804 = vmatprep.mubr.msk.f32.mxu0 %vm10231_vm0, %v10232_v1 }
0x2128   :  { %v6324_v2 = vpop.f32.mrb[158].mxu1 }
0x2129   :  { %v8787_v15 = vpop.f32.mrb[159].mxu1  ;;  %8805 = vmatmul.mubr.msk.f32.gmra.mrb[154].mxu0 %vm919_vm6, %v6324_v2 }
0x212a   :  { %8807 = vmatprep.mubr.msk.f32.mxu0 %vm10231_vm0, %v10232_v1 }
0x212c   :  { %v6329_v39 = vpop.f32.mrb[160].mxu1 }
0x212d   :  { %v8790_v24 = vpop.f32.mrb[161].mxu1  ;;  %8808 = vmatmul.mubr.msk.f32.gmra.mrb[156].mxu0 %vm919_vm6, %v6329_v39 }
0x212e   :  { %8810 = vmatprep.mubr.msk.f32.mxu0 %vm10231_vm0, %v10232_v1 }
0x2130   :  { %v6334_v49 = vpop.f32.mrb[162].mxu1 }
0x2131   :  { %v8793_v27 = vpop.f32.mrb[163].mxu1  ;;  %8811 = vmatmul.mubr.msk.f32.gmra.mrb[158].mxu0 %vm919_vm6, %v6334_v49 }
0x2132   :  { %8848 = vmatprep.mubr.msk.f32.mxu0 %vm10231_vm0, %v10232_v1 }
0x2134   :  { %v6554_v59 = vpop.f32.mrb[164].mxu1 }
0x2135   :  { %v6578_v23 = vmul.f32 0.25, %v6554_v59  ;;  %v8825_v17 = vpop.f32.mrb[165].mxu1 }
0x2137   :  { %v6583_v31 = vadd.f32 %v6578_v23, %v10905_v38 }
0x2138   :  { %v6559_v32 = vpop.f32.mrb[166].mxu1 }
0x2139   :  { %v6579_v4 = vmul.f32 0.25, %v6559_v32  ;;  %v8828_v13 = vpop.f32.mrb[167].mxu1  ;;  %v6588_v26 = vsel %vm1040_vm8, %v6583_v31, -inf }
0x213a   :  { %6589 = vmax.xlane.f32.xlu1 %v6588_v26 }
0x213b   :  { %v6584_v62 = vadd.f32 %v6579_v4, %v10910_v47 }
0x213c   :  { %v6564_v25 = vpop.f32.mrb[168].mxu1 }
0x213d   :  { %v6580_v11 = vmul.f32 0.25, %v6564_v25  ;;  %v8831_v43 = vpop.f32.mrb[169].mxu1  ;;  %v6591_v10 = vsel %vm1040_vm8, %v6584_v62, -inf }
0x213e   :  { %6592 = vmax.xlane.f32.xlu0 %v6591_v10 }
0x213f   :  { %v6585_v6 = vadd.f32 %v6580_v11, %v10915_v56 }
0x2140   :  { %v6569_v9 = vpop.f32.mrb[170].mxu1 }
0x2141   :  { %v6581_v30 = vmul.f32 0.25, %v6569_v9  ;;  %v8834_v46 = vpop.f32.mrb[171].mxu1  ;;  %v6594_v38 = vsel %vm1040_vm8, %v6585_v6, -inf }
0x2142   :  { %6595 = vmax.xlane.f32.xlu1 %v6594_v38 }
0x2143   :  { %v6586_v52 = vadd.f32 %v6581_v30, %v10919_v12 }
0x2144   :  { %v6574_v28 = vpop.f32.mrb[172].mxu1 }
0x2145   :  { %v6582_v57 = vmul.f32 0.25, %v6574_v28  ;;  %v8837_v35 = vpop.f32.mrb[173].mxu1  ;;  %v6597_v47 = vsel %vm1040_vm8, %v6586_v52, -inf }
0x2146   :  { %6598 = vmax.xlane.f32.xlu1 %v6597_v47 }
0x2147   :  { %v6587_v14 = vadd.f32 %v6582_v57, %v10923_v18 }
0x2149   :  { %v6600_v63 = vsel %vm1053_vm9, %v6587_v14, -inf }
0x214a   :  { %6601 = vmax.xlane.f32.xlu1 %v6600_v63 }
0x215b   :  { %9598 = vrot.lane.b32.xlu1 %v11751_v53, %s10245_s10 }
0x21c7   :  { %v6419_v56 = vpop.f32.mrb[150].mxu0  ;;  %v6590_v19 = vpop.xlane.xlu1 %6589 }
0x21c8   :  { %v12127_v48 = vadd.f32 %v6419_v56, %v12005_v50  ;;  %v6603_v12 = vsub.f32 %v6583_v31, %v6590_v19  ;;  %v8800_v33 = vpop.f32.mrb[151].mxu0 }
0x21ca   :  { %v6608_v2 = vmul.f32 1.442695, %v6603_v12 }
0x21cb   :  { %v6424_v15 = vpop.f32.mrb[152].mxu0  ;;  %v6593_v39 = vpop.xlane.xlu0 %6592 }
0x21cc   :  { %9709 = vpow2.f32 %v6608_v2  ;;  %v12130_v24 = vadd.f32 %v6424_v15, %v12007_v55  ;;  %v6604_v18 = vsub.f32 %v6584_v62, %v6593_v39  ;;  %v8803_v49 = vpop.f32.mrb[153].mxu0  ;;  %v5192_v2 = vld [vmem:[#allocation26 + $0x70] sm:$0xff] }
0x21ce   :  { %v6610_v27 = vmul.f32 1.442695, %v6604_v18 }
0x21cf   :  { %v6596_v59 = vpop.xlane.xlu1 %6595 }
0x21d0   :  { %9711 = vpow2.f32 %v6610_v27  ;;  %v6605_v53 = vsub.f32 %v6585_v6, %v6596_v59 }
0x21d2   :  { %v6612_v23 = vmul.f32 1.442695, %v6605_v53 }
0x21d3   :  { %v6599_v17 = vpop.xlane.xlu1 %6598 }
0x21d4   :  { %9713 = vpow2.f32 %v6612_v23  ;;  %v6606_v50 = vsub.f32 %v6586_v52, %v6599_v17 }
0x21d6   :  { %v9710_v32 = vpop.eup %9709  ;;  %v6614_v31 = vmul.f32 1.442695, %v6606_v50 }
0x21d7   :  { %v6602_v4 = vpop.xlane.xlu1 %6601  ;;  %v6618_v13 = vsel %vm1040_vm8, %v9710_v32, 0.0 }
0x21d8   :  { %9715 = vpow2.f32 %v6614_v31  ;;  %v6607_v26 = vsub.f32 %v6587_v14, %v6602_v4  ;;  %6619 = vadd.xlane.f32.xlu1 %v6618_v13 }
0x21da   :  { %v9712_v55 = vpop.eup %9711  ;;  %v6616_v25 = vmul.f32 1.442695, %v6607_v26 }
0x21db   :  { %v9599_v62 = vpop.permute.xlu1 %9598  ;;  %v6621_v11 = vsel %vm1040_vm8, %v9712_v55, 0.0 }
0x21dc   :  { %9717 = vpow2.f32 %v6616_v25  ;;  %v9601_v43 = vunpack.i.h.bf16 %v9599_v62  ;;  %v9600_v10 = vunpack.i.l.bf16 %v9599_v62  ;;  %6622 = vadd.xlane.f32.xlu1 %v6621_v11 }
0x21de   :  { %v9714_v6 = vpop.eup %9713  ;;  %v9196_v9 = vpack.c.bf16 %v9601_v43, %v9600_v10 }
0x21df   :  { %v6624_v30 = vsel %vm1040_vm8, %v9714_v6, 0.0 }
0x21e0   :  { %6625 = vadd.xlane.f32.xlu1 %v6624_v30  ;;  %9197 = vmatpush3.bf16.msra.mxu0 %v9196_v9 }
0x21e1   :  { %9198 = vmatprep.subr.bf16.mxu0 %v10228_v0 }
0x21e2   :  { %v9716_v46 = vpop.eup %9715 }
0x21e3   :  { %v6627_v38 = vsel %vm1040_vm8, %v9716_v46, 0.0 }
0x21e4   :  { %6628 = vadd.xlane.f32.xlu1 %v6627_v38 }
0x21e6   :  { %v9718_v52 = vpop.eup %9717 }
0x21e7   :  { %v6630_v28 = vsel %vm1053_vm9, %v9718_v52, 0.0 }
0x21e8   :  { %6631 = vadd.xlane.f32.xlu0 %v6630_v28 }
0x21f5   :  { %6651 = vrot.lane.b32.xlu1 %v11771_v42, %s10245_s10  ;;  %v5193_v42 = vld [vmem:[#allocation26 + $0x78] sm:$0xff] }
0x21f6   :  { %v9202_v15 = vpack.c.bf16 %v5193_v42, %v5192_v2 }
0x21f8   :  { %9203 = vmatpush3.bf16.msra.mxu1 %v9202_v15 }
0x21f9   :  { %9216 = vmatprep.subr.bf16.mxu1 %v10228_v0 }
0x21fc   :  { %v6429_v57 = vpop.f32.mrb[154].mxu0 }
0x21fd   :  { %v12141_v35 = vadd.f32 %v6429_v57, %v12009_v29  ;;  %v8806_v47 = vpop.f32.mrb[155].mxu0 }
0x21fe   :  { %9603 = vrot.lane.b32.xlu0 %v11764_v60, %s10245_s10  ;;  %v12189_v47 = vld [vmem:[%s12470_s22 + $0x8] sm:$0x3f] }
0x2200   :  { %v6434_v14 = vpop.f32.mrb[156].mxu0 }
0x2201   :  { %v12146_v63 = vadd.f32 %v6434_v14, %v12011_v37  ;;  %v8809_v56 = vpop.f32.mrb[157].mxu0  ;;  %v6882_v14 = vrot.slane %v12189_v47, %v11311_v45 }
0x2204   :  { %v6439_v19 = vpop.f32.mrb[158].mxu0 }
0x2205   :  { %v12149_v12 = vadd.f32 %v6439_v19, %v12013_v5  ;;  %v8812_v33 = vpop.f32.mrb[159].mxu0 }
0x2265   :  { %v6620_v29 = vpop.xlane.xlu1 %6619 }
0x2266   :  { %9719 = vrcp.f32 %v6620_v29 }
0x2269   :  { %v6623_v39 = vpop.xlane.xlu1 %6622 }
0x226a   :  { %9721 = vrcp.f32 %v6623_v39 }
0x226d   :  { %v6626_v60 = vpop.xlane.xlu1 %6625 }
0x226e   :  { %9723 = vrcp.f32 %v6626_v60 }
0x2270   :  { %v9720_v53 = vpop.eup %9719 }
0x2271   :  { %v6629_v59 = vpop.xlane.xlu1 %6628  ;;  %v6638_v23 = vmul.f32 %v9720_v53, %v9710_v32 }
0x2272   :  { %9725 = vrcp.f32 %v6629_v59 }
0x2274   :  { %v9722_v50 = vpop.eup %9721 }
0x2275   :  { %v6632_v18 = vpop.xlane.xlu0 %6631  ;;  %v6652_v17 = vpop.permute.xlu1 %6651  ;;  %v6639_v31 = vmul.f32 %v9722_v50, %v9712_v55 }
0x2276   :  { %9727 = vrcp.f32 %v6632_v18 }
0x2278   :  { %v9724_v4 = vpop.eup %9723 }
0x2279   :  { %v9604_v37 = vpop.permute.xlu0 %9603  ;;  %v6640_v32 = vmul.f32 %v9724_v4, %v9714_v6 }
0x227a   :  { %v9606_v49 = vunpack.i.h.bf16 %v9604_v37  ;;  %v9605_v27 = vunpack.i.l.bf16 %v9604_v37 }
0x227c   :  { %v9199_v5 = vpack.c.bf16 %v9606_v49, %v9605_v27  ;;  %v9726_v13 = vpop.eup %9725 }
0x227d   :  { %v6641_v26 = vmul.f32 %v9726_v13, %v9716_v46 }
0x227e   :  { %9200 = vmatpush3.bf16.msra.mxu0 %v9199_v5 }
0x227f   :  { %8846 = vmatprep.subr.mxu0 %v10232_v1 }
0x2280   :  { %v9728_v25 = vpop.eup %9727 }
0x2281   :  { %v6642_v55 = vmul.f32 %v9728_v25, %v9718_v52 }
0x2282   :  { %8847 = vmatpush3.msk.msra.mxu0 %vm558_vm2, %v6652_v17 }
0x2283   :  { %8849 = vmatmul.mubr.msk.f32.vlgmr.msra.gmra.mrb[160].mxu0 %vm1040_vm8, %v6638_v23  ;;  %9204 = vmatprep.subr.bf16.mxu0 %v10228_v0 }
0x2284   :  { %8851 = vmatprep.mubr.msk.f32.mxu0 %vm10231_vm0, %v10232_v1 }
0x2287   :  { %8852 = vmatmul.mubr.msk.f32.gmra.mrb[162].mxu0 %vm1040_vm8, %v6639_v31 }
0x2288   :  { %8854 = vmatprep.mubr.msk.f32.mxu0 %vm10231_vm0, %v10232_v1 }
0x228b   :  { %8855 = vmatmul.mubr.msk.f32.gmra.mrb[164].mxu0 %vm1040_vm8, %v6640_v32 }
0x228c   :  { %8857 = vmatprep.mubr.msk.f32.mxu0 %vm10231_vm0, %v10232_v1 }
0x228f   :  { %8858 = vmatmul.mubr.msk.f32.gmra.mrb[166].mxu0 %vm1040_vm8, %v6641_v26 }
0x2290   :  { %8860 = vmatprep.mubr.msk.f32.mxu0 %vm10231_vm0, %v10232_v1 }
0x2293   :  { %8861 = vmatmul.mubr.msk.f32.gmra.mrb[168].mxu0 %vm1040_vm8, %v6642_v55 }
0x2294   :  { %8898 = vmatprep.mubr.msk.f32.mxu0 %vm10231_vm0, %v10232_v1 }
0x2356   :  { %v6740_v62 = vpop.f32.mrb[160].mxu0 }
0x2357   :  { %v8850_v11 = vpop.f32.mrb[161].mxu0  ;;  %8868 = vmatmul.mubr.msk.f32.vlgmr.msra.gmra.mrb[174].mxu1 %vm919_vm6, %v6740_v62 }
0x2358   :  { %8870 = vmatprep.mubr.msk.f32.mxu1 %vm10231_vm0, %v10232_v1  ;;  %v6987_v11 = vld [vmem:[#allocation27 + $0x40] sm:$0xff] }
0x235a   :  { %v6745_v43 = vpop.f32.mrb[162].mxu0 }
0x235b   :  { %v8853_v10 = vpop.f32.mrb[163].mxu0  ;;  %8871 = vmatmul.mubr.msk.f32.gmra.mrb[176].mxu1 %vm919_vm6, %v6745_v43  ;;  %v6988_v43 = vld [vmem:[#allocation27 + $0x48] sm:$0xff] }
0x235c   :  { %8873 = vmatprep.mubr.msk.f32.mxu1 %vm10231_vm0, %v10232_v1  ;;  %v9205_v10 = vpack.c.bf16 %v6988_v43, %v6987_v11 }
0x235e   :  { %v6750_v6 = vpop.f32.mrb[164].mxu0  ;;  %9206 = vmatpush3.bf16.msra.mxu0 %v9205_v10 }
0x235f   :  { %v8856_v9 = vpop.f32.mrb[165].mxu0  ;;  %8874 = vmatmul.mubr.msk.f32.gmra.mrb[178].mxu1 %vm919_vm6, %v6750_v6  ;;  %9207 = vmatprep.subr.bf16.mxu0 %v10228_v0  ;;  %v6989_v6 = vld [vmem:[#allocation27 + $0x50] sm:$0xff] }
0x2360   :  { %8876 = vmatprep.mubr.msk.f32.mxu1 %vm10231_vm0, %v10232_v1  ;;  %v6990_v9 = vld [vmem:[#allocation27 + $0x58] sm:$0xff] }
0x2362   :  { %v6755_v30 = vpop.f32.mrb[166].mxu0 }
0x2363   :  { %v8859_v46 = vpop.f32.mrb[167].mxu0  ;;  %8877 = vmatmul.mubr.msk.f32.gmra.mrb[180].mxu1 %vm919_vm6, %v6755_v30  ;;  %v9208_v30 = vpack.c.bf16 %v6990_v9, %v6989_v6 }
0x2364   :  { %8879 = vmatprep.mubr.msk.f32.mxu1 %vm10231_vm0, %v10232_v1  ;;  %v6991_v46 = vld [vmem:[#allocation27 + $0x60] sm:$0xff] }
0x2365   :  { %9209 = vmatpush3.bf16.msra.mxu0 %v9208_v30  ;;  %v6971_v30 = vrot.slane %v12189_v47, %v11390_v22 }
0x2366   :  { %v6760_v38 = vpop.f32.mrb[168].mxu0  ;;  %9210 = vmatprep.subr.bf16.mxu0 %v10228_v0 }
0x2367   :  { %v8862_v52 = vpop.f32.mrb[169].mxu0  ;;  %8880 = vmatmul.mubr.msk.f32.gmra.mrb[182].mxu1 %vm919_vm6, %v6760_v38  ;;  %v6992_v38 = vld [vmem:[#allocation27 + $0x68] sm:$0xff] }
0x2368   :  { %8945 = vmatprep.mubr.msk.f32.mxu1 %vm10231_vm0, %v10232_v1  ;;  %v9211_v52 = vpack.c.bf16 %v6992_v38, %v6991_v46 }
0x236a   :  { %9212 = vmatpush3.bf16.msra.mxu0 %v9211_v52 }
0x236b   :  { %9213 = vmatprep.subr.bf16.mxu0 %v10228_v0 }
0x242a   :  { %v6845_v28 = vpop.f32.mrb[174].mxu1 }
0x242b   :  { %v6869_v57 = vadd.f32 %v6845_v28, %v12127_v48  ;;  %v8869_v56 = vpop.f32.mrb[175].mxu1  ;;  %v6993_v28 = vld [vmem:[#allocation27 + $0x70] sm:$0xff] }
0x242d   :  { %v6874_v19 = vadd.f32 %v6869_v57, %v11664_v8  ;;  %v6994_v57 = vld [vmem:[#allocation27 + $0x78] sm:$0xff] }
0x242e   :  { %v6850_v33 = vpop.f32.mrb[176].mxu1 }
0x242f   :  { %v12194_v2 = vadd.f32 %v6882_v14, %v6874_v19  ;;  %v6870_v42 = vadd.f32 %v6850_v33, %v12130_v24  ;;  %v8872_v15 = vpop.f32.mrb[177].mxu1  ;;  %v7771_v33 = vld [vmem:[%s12469_s21 + $0xa8] sm:$0xff] }
0x2431   :  { %v6875_v29 = vadd.f32 %v6870_v42, %v11675_v36  ;;  %v6888_v48 = vsel %vm658_vm4, %v12194_v2, 0.0  ;;  %v6903_v39 = vmul.f32 %v12194_v2, %v12194_v2 }
0x2432   :  { %6889 = vadd.xlane.f32.xlu1 %v6888_v48  ;;  %v6855_v60 = vpop.f32.mrb[178].mxu1 }
0x2433   :  { %v12202_v45 = vadd.f32 %v6882_v14, %v6875_v29  ;;  %v6871_v8 = vadd.f32 %v6855_v60, %v12141_v35  ;;  %v8875_v18 = vpop.f32.mrb[179].mxu1  ;;  %v6908_v37 = vsel %vm658_vm4, %v6903_v39, 0.0 }
0x2434   :  { %6909 = vadd.xlane.f32.xlu0 %v6908_v37 }
0x2435   :  { %v6876_v24 = vadd.f32 %v6871_v8, %v11687_v58  ;;  %v6904_v36 = vmul.f32 %v12202_v45, %v12202_v45  ;;  %v6891_v35 = vsel %vm658_vm4, %v12202_v45, 0.0 }
0x2436   :  { %v6860_v49 = vpop.f32.mrb[180].mxu1 }
0x2437   :  { %v12209_v27 = vadd.f32 %v6882_v14, %v6876_v24  ;;  %v6872_v59 = vadd.f32 %v6860_v49, %v12146_v63  ;;  %v8878_v5 = vpop.f32.mrb[181].mxu1  ;;  %v6911_v53 = vsel %vm658_vm4, %v6904_v36, 0.0 }
0x2438   :  { %6912 = vadd.xlane.f32.xlu1 %v6911_v53  ;;  %6892 = vadd.xlane.f32.xlu0 %v6891_v35 }
0x2439   :  { %v6877_v23 = vadd.f32 %v6872_v59, %v11699_v44  ;;  %v6905_v58 = vmul.f32 %v12209_v27, %v12209_v27  ;;  %v6894_v32 = vsel %vm658_vm4, %v12209_v27, 0.0 }
0x243a   :  { %v6865_v17 = vpop.f32.mrb[182].mxu1 }
0x243b   :  { %v12218_v50 = vadd.f32 %v6882_v14, %v6877_v23  ;;  %v6873_v31 = vadd.f32 %v6865_v17, %v12149_v12  ;;  %v8881_v4 = vpop.f32.mrb[183].mxu1  ;;  %v6914_v63 = vsel %vm658_vm4, %v6905_v58, 0.0 }
0x243c   :  { %6915 = vadd.xlane.f32.xlu1 %v6914_v63  ;;  %6895 = vadd.xlane.f32.xlu0 %v6894_v32 }
0x243d   :  { %v6878_v13 = vadd.f32 %v6873_v31, %v11711_v51  ;;  %v6906_v44 = vmul.f32 %v12218_v50, %v12218_v50  ;;  %v6897_v12 = vsel %vm658_vm4, %v12218_v50, 0.0 }
0x243f   :  { %v12227_v26 = vadd.f32 %v6882_v14, %v6878_v13  ;;  %v6917_v25 = vsel %vm658_vm4, %v6906_v44, 0.0  ;;  %v9214_v14 = vpack.c.bf16 %v6994_v57, %v6993_v28 }
0x2440   :  { %6918 = vadd.xlane.f32.xlu1 %v6917_v25  ;;  %6898 = vadd.xlane.f32.xlu0 %v6897_v12 }
0x2441   :  { %v6907_v55 = vmul.f32 %v12227_v26, %v12227_v26  ;;  %v6900_v51 = vsel %vm671_vm5, %v12227_v26, 0.0  ;;  %9215 = vmatpush3.bf16.msra.mxu0 %v9214_v14  ;;  %v6980_v14 = vrot.slane %v12189_v47, %v11393_v40 }
0x2442   :  { %9240 = vmatprep.subr.bf16.mxu0 %v10228_v0 }
0x2443   :  { %v6920_v62 = vsel %vm671_vm5, %v6907_v55, 0.0 }
0x2444   :  { %6921 = vadd.xlane.f32.xlu1 %v6920_v62  ;;  %6901 = vadd.xlane.f32.xlu0 %v6900_v51 }
0x2455   :  { %7256 = vrot.lane.b32.xlu1 %v11672_v21, %s10229_s25  ;;  %v7766_v21 = vld [vmem:[%s12469_s21 + $0x80] sm:$0xff] }
0x2459   :  { %7258 = vrot.lane.b32.xlu1 %v11684_v54, %s10229_s25  ;;  %v7767_v54 = vld [vmem:[%s12469_s21 + $0x88] sm:$0xff] }
0x245a   :  { %7254 = vrot.lane.b32.xlu0 %v11661_v3, %s10229_s25  ;;  %v7768_v3 = vld [vmem:[%s12469_s21 + $0x90] sm:$0xff]  ;;  %v9217_v56 = vpack.c.bf16 %v7767_v54, %v7766_v21 }
0x245c   :  { %9218 = vmatpush3.bf16.msra.mxu1 %v9217_v56 }
0x245d   :  { %7260 = vrot.lane.b32.xlu1 %v11696_v61, %s10229_s25  ;;  %v7769_v61 = vld [vmem:[%s12469_s21 + $0x98] sm:$0xff]  ;;  %9219 = vmatprep.subr.bf16.mxu1 %v10228_v0 }
0x245e   :  { %7262 = vrot.lane.b32.xlu0 %v11708_v20, %s10229_s25  ;;  %v9220_v19 = vpack.c.bf16 %v7769_v61, %v7768_v3  ;;  %v7770_v20 = vld [vmem:[%s12469_s21 + $0xa0] sm:$0xff] }
0x245f   :  { %v9223_v42 = vpack.c.bf16 %v7771_v33, %v7770_v20 }
0x2460   :  { %9221 = vmatpush3.bf16.msra.mxu1 %v9220_v19 }
0x2461   :  { %9222 = vmatprep.subr.bf16.mxu1 %v10228_v0 }
0x2464   :  { %9224 = vmatpush3.bf16.msra.mxu1 %v9223_v42 }
0x2465   :  { %9225 = vmatprep.subr.bf16.mxu1 %v10228_v0 }
0x24bf   :  { %v6890_v15 = vpop.xlane.xlu1 %6889 }
0x24c0   :  { %v6923_v29 = vmul.f32 0.015625, %v6890_v15 }
0x24c1   :  { %v6910_v48 = vpop.xlane.xlu0 %6909 }
0x24c2   :  { %v6933_v39 = vmul.f32 %v6923_v29, %v6923_v29  ;;  %v6928_v60 = vmul.f32 0.015625, %v6910_v48  ;;  %v6948_v9 = vsub.f32 %v12194_v2, %v6923_v29 }
0x24c4   :  { %v6938_v8 = vsub.f32 %v6928_v60, %v6933_v39 }
0x24c5   :  { %v6913_v18 = vpop.xlane.xlu1 %6912  ;;  %v6893_v37 = vpop.xlane.xlu0 %6892 }
0x24c6   :  { %v6943_v24 = vmax.f32 %v6938_v8, 0.0  ;;  %v6924_v36 = vmul.f32 0.015625, %v6893_v37  ;;  %v6929_v59 = vmul.f32 0.015625, %v6913_v18 }
0x24c8   :  { %v6953_v49 = vadd.f32 1e-12, %v6943_v24  ;;  %v6934_v5 = vmul.f32 %v6924_v36, %v6924_v36  ;;  %v6949_v61 = vsub.f32 %v12202_v45, %v6924_v36 }
0x24c9   :  { %v6916_v53 = vpop.xlane.xlu1 %6915  ;;  %v6896_v35 = vpop.xlane.xlu0 %6895 }
0x24ca   :  { %9729 = vrsqrt.f32 %v6953_v49  ;;  %v6939_v23 = vsub.f32 %v6929_v59, %v6934_v5  ;;  %v6925_v58 = vmul.f32 0.015625, %v6896_v35  ;;  %v6930_v31 = vmul.f32 0.015625, %v6916_v53 }
0x24cc   :  { %v6944_v17 = vmax.f32 %v6939_v23, 0.0  ;;  %v6935_v4 = vmul.f32 %v6925_v58, %v6925_v58  ;;  %v6950_v42 = vsub.f32 %v12209_v27, %v6925_v58  ;;  %v7772_v23 = vld [vmem:[%s12469_s21 + $0xb0] sm:$0xff]  ;;  %v7773_v58 = vld [vmem:[%s12469_s21 + $0xb8] sm:$0xff] }
0x24cd   :  { %v6919_v63 = vpop.xlane.xlu1 %6918  ;;  %v6899_v32 = vpop.xlane.xlu0 %6898 }
0x24ce   :  { %v6954_v13 = vadd.f32 1e-12, %v6944_v17  ;;  %v6940_v44 = vsub.f32 %v6930_v31, %v6935_v4  ;;  %v6926_v25 = vmul.f32 0.015625, %v6899_v32  ;;  %v6931_v55 = vmul.f32 0.015625, %v6919_v63  ;;  %v7774_v31 = vld [vmem:[%s12469_s21 + $0xc0] sm:$0xff]  ;;  %v7775_v4 = vld [vmem:[%s12469_s21 + $0xc8] sm:$0xff] }
0x24cf   :  { %v9226_v17 = vpack.c.bf16 %v7773_v58, %v7772_v23  ;;  %v9229_v63 = vpack.c.bf16 %v7775_v4, %v7774_v31  ;;  %v7776_v32 = vld [vmem:[%s12469_s21 + $0xd0] sm:$0xff]  ;;  %v7153_v4 = vrot.slane %v12189_v47, %v11472_v16 }
0x24d0   :  { %9731 = vrsqrt.f32 %v6954_v13  ;;  %v6945_v12 = vmax.f32 %v6940_v44, 0.0  ;;  %v6936_v62 = vmul.f32 %v6926_v25, %v6926_v25  ;;  %v6951_v39 = vsub.f32 %v12218_v50, %v6926_v25  ;;  %v7777_v13 = vld [vmem:[%s12469_s21 + $0xd8] sm:$0xff]  ;;  %v7778_v25 = vld [vmem:[%s12469_s21 + $0xe0] sm:$0xff] }
0x24d1   :  { %v6922_v51 = vpop.xlane.xlu1 %6921  ;;  %v6902_v11 = vpop.xlane.xlu0 %6901  ;;  %9227 = vmatpush3.bf16.msra.mxu1 %v9226_v17  ;;  %v9232_v44 = vpack.c.bf16 %v7777_v13, %v7776_v32 }
0x24d2   :  { %v6955_v43 = vadd.f32 1e-12, %v6945_v12  ;;  %v6941_v10 = vsub.f32 %v6931_v55, %v6936_v62  ;;  %v6927_v6 = vmul.f32 0.015625, %v6902_v11  ;;  %v6932_v52 = vmul.f32 0.015625, %v6922_v51  ;;  %9228 = vmatprep.subr.bf16.mxu1 %v10228_v0  ;;  %v7779_v12 = vld [vmem:[%s12469_s21 + $0xe8] sm:$0xff]  ;;  %v7780_v62 = vld [vmem:[%s12469_s21 + $0xf0] sm:$0xff] }
0x24d3   :  { %v9235_v55 = vpack.c.bf16 %v7779_v12, %v7778_v25  ;;  %v7781_v51 = vld [vmem:[%s12469_s21 + $0xf8] sm:$0xff] }
0x24d4   :  { %v9730_v46 = vpop.eup %9729  ;;  %9733 = vrsqrt.f32 %v6955_v43  ;;  %v6946_v38 = vmax.f32 %v6941_v10, 0.0  ;;  %v6937_v28 = vmul.f32 %v6927_v6, %v6927_v6  ;;  %v6952_v24 = vsub.f32 %v12227_v26, %v6927_v6  ;;  %v7760_v43 = vld [vmem:[#allocation29 + $0x1] ss:$0 sm:$0xff] }
0x24d5   :  { %v6963_v57 = vmul.f32 %v9730_v46, %v6948_v9  ;;  %9230 = vmatpush3.bf16.msra.mxu1 %v9229_v63  ;;  %v9238_v11 = vpack.c.bf16 %v7781_v51, %v7780_v62  ;;  %v7255_v25 = vpop.permute.xlu0 %7254 }
0x24d6   :  { %v6956_v21 = vadd.f32 1e-12, %v6946_v38  ;;  %v6942_v54 = vsub.f32 %v6932_v52, %v6937_v28  ;;  %9231 = vmatprep.subr.bf16.mxu1 %v10228_v0 }
0x24d7   :  { %v6972_v3 = vmul.f32 %v6971_v30, %v6963_v57 }
0x24d8   :  { %9735 = vrsqrt.f32 %v6956_v21  ;;  %v6947_v56 = vmax.f32 %v6942_v54, 0.0 }
0x24d9   :  { %v6981_v19 = vadd.f32 %v6980_v14, %v6972_v3  ;;  %9233 = vmatpush3.bf16.msra.mxu1 %v9232_v44 }
0x24da   :  { %v9732_v20 = vpop.eup %9731  ;;  %v6957_v33 = vadd.f32 1e-12, %v6947_v56  ;;  %9234 = vmatprep.subr.bf16.mxu1 %v10228_v0 }
0x24db   :  { %v6964_v22 = vmul.f32 %v9732_v20, %v6949_v61  ;;  %8899 = vmatmul.mubr.msk.f32.vlgmr.msra.gmra.mrb[170].mxu0 %vm658_vm4, %v6981_v19 }
0x24dc   :  { %9737 = vrsqrt.f32 %v6957_v33  ;;  %8901 = vmatprep.mubr.msk.f32.mxu0 %vm10231_vm0, %v10232_v1 }
0x24dd   :  { %v6973_v40 = vmul.f32 %v6971_v30, %v6964_v22  ;;  %9236 = vmatpush3.bf16.msra.mxu1 %v9235_v55  ;;  %v7257_v55 = vpop.permute.xlu1 %7256 }
0x24de   :  { %v9734_v15 = vpop.eup %9733  ;;  %9237 = vmatprep.subr.bf16.mxu1 %v10228_v0 }
0x24df   :  { %v6965_v29 = vmul.f32 %v9734_v15, %v6950_v42  ;;  %v6982_v48 = vadd.f32 %v6980_v14, %v6973_v40 }
0x24e1   :  { %8902 = vmatmul.mubr.msk.f32.gmra.mrb[172].mxu0 %vm658_vm4, %v6982_v48  ;;  %v6974_v60 = vmul.f32 %v6971_v30, %v6965_v29  ;;  %9239 = vmatpush3.bf16.msra.mxu1 %v9238_v11 }
0x24e2   :  { %v9736_v8 = vpop.eup %9735  ;;  %8904 = vmatprep.mubr.msk.f32.mxu0 %vm10231_vm0, %v10232_v1 }
0x24e3   :  { %v6966_v18 = vmul.f32 %v9736_v8, %v6951_v39  ;;  %v6983_v37 = vadd.f32 %v6980_v14, %v6974_v60 }
0x24e5   :  { %8905 = vmatmul.mubr.msk.f32.gmra.mrb[174].mxu0 %vm658_vm4, %v6983_v37  ;;  %v6975_v36 = vmul.f32 %v6971_v30, %v6966_v18 }
0x24e6   :  { %v9738_v49 = vpop.eup %9737  ;;  %8907 = vmatprep.mubr.msk.f32.mxu0 %vm10231_vm0, %v10232_v1 }
0x24e7   :  { %v6967_v59 = vmul.f32 %v9738_v49, %v6952_v24  ;;  %v6984_v5 = vadd.f32 %v6980_v14, %v6975_v36 }
0x24e9   :  { %8908 = vmatmul.mubr.msk.f32.gmra.mrb[176].mxu0 %vm658_vm4, %v6984_v5  ;;  %v6976_v53 = vmul.f32 %v6971_v30, %v6967_v59 }
0x24ea   :  { %8910 = vmatprep.mubr.msk.f32.mxu0 %vm10231_vm0, %v10232_v1 }
0x24eb   :  { %v6985_v35 = vadd.f32 %v6980_v14, %v6976_v53 }
0x24ed   :  { %8911 = vmatmul.mubr.msk.f32.gmra.mrb[178].mxu0 %vm658_vm4, %v6985_v35 }
0x24ee   :  { %8976 = vmatprep.mubr.msk.f32.mxu0 %vm10231_vm0, %v10232_v1 }
0x25ae   :  { %v7084_v10 = vpop.f32.mrb[170].mxu0 }
0x25af   :  { %v7085_v6 = vadd.f32 %v7760_v43, %v7084_v10  ;;  %v8900_v9 = vpop.f32.mrb[171].mxu0 }
0x25b1   :  { %v7113_v30 = vmul.f32 0.70710677, %v7085_v6  ;;  %v7108_v20 = vmul.f32 0.5, %v7085_v6 }
0x25b3   :  { %9739 = verf.f32 %v7113_v30 }
0x25b4   :  { %v7089_v46 = vpop.f32.mrb[172].mxu0 }
0x25b5   :  { %v7090_v38 = vadd.f32 %v7760_v43, %v7089_v46  ;;  %v8903_v52 = vpop.f32.mrb[173].mxu0  ;;  %v7259_v46 = vpop.permute.xlu1 %7258 }
0x25b7   :  { %v7114_v28 = vmul.f32 0.70710677, %v7090_v38  ;;  %v7109_v60 = vmul.f32 0.5, %v7090_v38 }
0x25b8   :  { %v7094_v57 = vpop.f32.mrb[174].mxu0 }
0x25b9   :  { %9741 = verf.f32 %v7114_v28  ;;  %v7095_v14 = vadd.f32 %v7760_v43, %v7094_v57  ;;  %v8906_v21 = vpop.f32.mrb[175].mxu0 }
0x25bb   :  { %v7115_v54 = vmul.f32 0.70710677, %v7095_v14  ;;  %v7110_v24 = vmul.f32 0.5, %v7095_v14 }
0x25bc   :  { %v7099_v3 = vpop.f32.mrb[176].mxu0 }
0x25bd   :  { %v9740_v56 = vpop.eup %9739  ;;  %9743 = verf.f32 %v7115_v54  ;;  %v7100_v61 = vadd.f32 %v7760_v43, %v7099_v3  ;;  %v8909_v19 = vpop.f32.mrb[177].mxu0 }
0x25be   :  { %v7123_v33 = vadd.f32 1.0, %v9740_v56 }
0x25bf   :  { %v7116_v22 = vmul.f32 0.70710677, %v7100_v61  ;;  %v7111_v5 = vmul.f32 0.5, %v7100_v61  ;;  %v7261_v61 = vpop.permute.xlu1 %7260 }
0x25c0   :  { %v7128_v42 = vmul.f32 %v7123_v33, %v7108_v20  ;;  %v7104_v40 = vpop.f32.mrb[178].mxu0 }
0x25c1   :  { %9745 = verf.f32 %v7116_v22  ;;  %v7105_v15 = vadd.f32 %v7760_v43, %v7104_v40  ;;  %v8912_v29 = vpop.f32.mrb[179].mxu0 }
0x25c2   :  { %8946 = vmatmul.mubr.f32.vlgmr.msra.gmra.mrb[184].mxu1 %v7128_v42  ;;  %v7263_v29 = vpop.permute.xlu0 %7262 }
0x25c3   :  { %v9742_v48 = vpop.eup %9741  ;;  %v7117_v39 = vmul.f32 0.70710677, %v7105_v15  ;;  %8948 = vmatprep.mubr.msk.f32.mxu1 %vm10231_vm0, %v10232_v1  ;;  %v7112_v58 = vmul.f32 0.5, %v7105_v15 }
0x25c4   :  { %v7124_v8 = vadd.f32 1.0, %v9742_v48 }
0x25c5   :  { %9747 = verf.f32 %v7117_v39 }
0x25c6   :  { %v7129_v18 = vmul.f32 %v7124_v8, %v7109_v60 }
0x25c7   :  { %v9744_v37 = vpop.eup %9743 }
0x25c8   :  { %v7125_v36 = vadd.f32 1.0, %v9744_v37  ;;  %8949 = vmatmul.mubr.f32.gmra.mrb[186].mxu1 %v7129_v18  ;;  %v7372_v18 = vld [vmem:[%s12513_s9] sm:$0xff]  ;;  %v7373_v37 = vld [vmem:[%s12513_s9 + $0x8] sm:$0xff] }
0x25c9   :  { %8951 = vmatprep.mubr.msk.f32.mxu1 %vm10231_vm0, %v10232_v1 }
0x25ca   :  { %v7130_v49 = vmul.f32 %v7125_v36, %v7110_v24  ;;  %v9241_v24 = vpack.c.bf16 %v7373_v37, %v7372_v18  ;;  %v7374_v36 = vld [vmem:[%s12513_s9 + $0x10] sm:$0xff] }
0x25cb   :  { %v9746_v59 = vpop.eup %9745 }
0x25cc   :  { %v7126_v53 = vadd.f32 1.0, %v9746_v59  ;;  %8952 = vmatmul.mubr.f32.gmra.mrb[188].mxu1 %v7130_v49  ;;  %9242 = vmatpush3.bf16.msra.mxu0 %v9241_v24  ;;  %v7375_v49 = vld [vmem:[%s12513_s9 + $0x18] sm:$0xff] }
0x25cd   :  { %8954 = vmatprep.mubr.msk.f32.mxu1 %vm10231_vm0, %v10232_v1  ;;  %9243 = vmatprep.subr.bf16.mxu0 %v10228_v0  ;;  %v9244_v59 = vpack.c.bf16 %v7375_v49, %v7374_v36 }
0x25ce   :  { %v7131_v35 = vmul.f32 %v7126_v53, %v7111_v5  ;;  %v7376_v5 = vld [vmem:[%s12513_s9 + $0x20] sm:$0xff]  ;;  %v7377_v53 = vld [vmem:[%s12513_s9 + $0x28] sm:$0xff] }
0x25cf   :  { %v9748_v23 = vpop.eup %9747 }
0x25d0   :  { %v7127_v17 = vadd.f32 1.0, %v9748_v23  ;;  %8955 = vmatmul.mubr.f32.gmra.mrb[190].mxu1 %v7131_v35  ;;  %9245 = vmatpush3.bf16.msra.mxu0 %v9244_v59  ;;  %v9247_v35 = vpack.c.bf16 %v7377_v53, %v7376_v5  ;;  %v7378_v23 = vld [vmem:[%s12513_s9 + $0x30] sm:$0xff] }
0x25d1   :  { %8957 = vmatprep.mubr.msk.f32.mxu1 %vm10231_vm0, %v10232_v1  ;;  %9246 = vmatprep.subr.bf16.mxu0 %v10228_v0 }
0x25d2   :  { %v7132_v31 = vmul.f32 %v7127_v17, %v7112_v58  ;;  %v7379_v58 = vld [vmem:[%s12513_s9 + $0x38] sm:$0xff] }
0x25d3   :  { %v9250_v17 = vpack.c.bf16 %v7379_v58, %v7378_v23 }
0x25d4   :  { %8958 = vmatmul.mubr.f32.gmra.mrb[192].mxu1 %v7132_v31  ;;  %9248 = vmatpush3.bf16.msra.mxu0 %v9247_v35 }
0x25d5   :  { %9249 = vmatprep.subr.bf16.mxu0 %v10228_v0 }
0x25d8   :  { %9251 = vmatpush3.bf16.msra.mxu0 %v9250_v17 }
0x2695   :  { %v7220_v63 = vpop.f32.mrb[184].mxu1 }
0x2696   :  { %v7221_v32 = vadd.f32 %v7220_v63, %v7153_v4  ;;  %v8947_v13 = vpop.f32.mrb[185].mxu1 }
0x2698   :  { %v7244_v44 = vadd.f32 %v7221_v32, %v12194_v2 }
0x269a   :  { %v12341_v12 = vadd.f32 %v7255_v25, %v7244_v44 }
0x269b   :  { %v7225_v62 = vpop.f32.mrb[186].mxu1 }
0x269c   :  { %v7226_v51 = vadd.f32 %v7225_v62, %v7153_v4  ;;  %v8950_v11 = vpop.f32.mrb[187].mxu1  ;;  %v7274_v43 = vsel %vm658_vm4, %v12341_v12, 0.0  ;;  %v7289_v10 = vmul.f32 %v12341_v12, %v12341_v12 }
0x269d   :  { %7275 = vadd.xlane.f32.xlu1 %v7274_v43 }
0x269e   :  { %v7245_v16 = vadd.f32 %v7226_v51, %v12202_v45  ;;  %v7294_v47 = vsel %vm658_vm4, %v7289_v10, 0.0 }
0x269f   :  { %7295 = vadd.xlane.f32.xlu0 %v7294_v47  ;;  %v7230_v2 = vpop.f32.mrb[188].mxu1 }
0x26a0   :  { %v12349_v6 = vadd.f32 %v7257_v55, %v7245_v16  ;;  %v7231_v9 = vadd.f32 %v7230_v2, %v7153_v4  ;;  %v8953_v30 = vpop.f32.mrb[189].mxu1 }
0x26a2   :  { %v7246_v38 = vadd.f32 %v7231_v9, %v12209_v27  ;;  %v7277_v52 = vsel %vm658_vm4, %v12349_v6, 0.0  ;;  %v7290_v28 = vmul.f32 %v12349_v6, %v12349_v6 }
0x26a3   :  { %7278 = vadd.xlane.f32.xlu0 %v7277_v52  ;;  %v7235_v57 = vpop.f32.mrb[190].mxu1 }
0x26a4   :  { %v12356_v45 = vadd.f32 %v7259_v46, %v7246_v38  ;;  %v7236_v14 = vadd.f32 %v7235_v57, %v7153_v4  ;;  %v8956_v21 = vpop.f32.mrb[191].mxu1  ;;  %v7297_v3 = vsel %vm658_vm4, %v7290_v28, 0.0 }
0x26a6   :  { %v7247_v54 = vadd.f32 %v7236_v14, %v12218_v50  ;;  %v7280_v56 = vsel %vm658_vm4, %v12356_v45, 0.0  ;;  %v7291_v27 = vmul.f32 %v12356_v45, %v12356_v45 }
0x26a7   :  { %7298 = vadd.xlane.f32.xlu0 %v7297_v3  ;;  %7281 = vadd.xlane.f32.xlu1 %v7280_v56  ;;  %v7240_v19 = vpop.f32.mrb[192].mxu1 }
0x26a8   :  { %v12364_v20 = vadd.f32 %v7261_v61, %v7247_v54  ;;  %v7241_v33 = vadd.f32 %v7240_v19, %v7153_v4  ;;  %v8959_v22 = vpop.f32.mrb[193].mxu1  ;;  %v7300_v50 = vsel %vm658_vm4, %v7291_v27, 0.0  ;;  %v7357_v19 = vrot.slane %v10679_v7, %v10769_v34 }
0x26aa   :  { %v7248_v42 = vadd.f32 %v7241_v33, %v12227_v26  ;;  %v7283_v40 = vsel %vm658_vm4, %v12364_v20, 0.0  ;;  %v7292_v15 = vmul.f32 %v12364_v20, %v12364_v20 }
0x26ab   :  { %7301 = vadd.xlane.f32.xlu0 %v7300_v50  ;;  %7284 = vadd.xlane.f32.xlu1 %v7283_v40 }
0x26ac   :  { %v12372_v48 = vadd.f32 %v7263_v29, %v7248_v42  ;;  %v7303_v39 = vsel %vm658_vm4, %v7292_v15, 0.0  ;;  %v7366_v15 = vrot.slane %v10679_v7, %v10775_v41 }
0x26ae   :  { %v7286_v60 = vsel %vm671_vm5, %v12372_v48, 0.0  ;;  %v7293_v26 = vmul.f32 %v12372_v48, %v12372_v48 }
0x26af   :  { %7304 = vadd.xlane.f32.xlu0 %v7303_v39  ;;  %7287 = vadd.xlane.f32.xlu1 %v7286_v60 }
0x26b0   :  { %v7306_v8 = vsel %vm671_vm5, %v7293_v26, 0.0 }
0x26b3   :  { %7307 = vadd.xlane.f32.xlu0 %v7306_v8 }
0x272a   :  { %v7276_v31 = vpop.xlane.xlu1 %7275 }
0x272b   :  { %v7309_v4 = vmul.f32 0.015625, %v7276_v31 }
0x272c   :  { %v7296_v63 = vpop.xlane.xlu0 %7295 }
0x272d   :  { %v7319_v32 = vmul.f32 %v7309_v4, %v7309_v4  ;;  %v7314_v13 = vmul.f32 0.015625, %v7296_v63  ;;  %v7334_v61 = vsub.f32 %v12341_v12, %v7309_v4 }
0x272f   :  { %v7324_v44 = vsub.f32 %v7314_v13, %v7319_v32 }
0x2730   :  { %v7279_v25 = vpop.xlane.xlu0 %7278 }
0x2731   :  { %v7329_v55 = vmax.f32 %v7324_v44, 0.0  ;;  %v7310_v62 = vmul.f32 0.015625, %v7279_v25  ;;  %v7782_v44 = vld [vmem:[#allocation32] ss:$0 sm:$0xff] }
0x2733   :  { %v7339_v0 = vadd.f32 1e-12, %v7329_v55  ;;  %v7320_v43 = vmul.f32 %v7310_v62, %v7310_v62  ;;  %v7335_v34 = vsub.f32 %v12349_v6, %v7310_v62 }
0x2734   :  { %v7299_v51 = vpop.xlane.xlu0 %7298  ;;  %v7282_v11 = vpop.xlane.xlu1 %7281 }
0x2735   :  { %9749 = vrsqrt.f32 %v7339_v0  ;;  %v7315_v10 = vmul.f32 0.015625, %v7299_v51  ;;  %v7311_v16 = vmul.f32 0.015625, %v7282_v11 }
0x2737   :  { %v7325_v47 = vsub.f32 %v7315_v10, %v7320_v43  ;;  %v7321_v46 = vmul.f32 %v7311_v16, %v7311_v16  ;;  %v7336_v41 = vsub.f32 %v12356_v45, %v7311_v16 }
0x2738   :  { %v7302_v2 = vpop.xlane.xlu0 %7301  ;;  %v7285_v9 = vpop.xlane.xlu1 %7284 }
0x2739   :  { %v7330_v30 = vmax.f32 %v7325_v47, 0.0  ;;  %v7316_v38 = vmul.f32 0.015625, %v7302_v2  ;;  %v7312_v52 = vmul.f32 0.015625, %v7285_v9 }
0x273b   :  { %v7340_v28 = vadd.f32 1e-12, %v7330_v30  ;;  %v7326_v57 = vsub.f32 %v7316_v38, %v7321_v46  ;;  %v7322_v14 = vmul.f32 %v7312_v52, %v7312_v52  ;;  %v7337_v35 = vsub.f32 %v12364_v20, %v7312_v52 }
0x273c   :  { %v7305_v21 = vpop.xlane.xlu0 %7304  ;;  %v7288_v54 = vpop.xlane.xlu1 %7287 }
0x273d   :  { %9751 = vrsqrt.f32 %v7340_v28  ;;  %v7331_v3 = vmax.f32 %v7326_v57, 0.0  ;;  %v7317_v56 = vmul.f32 0.015625, %v7305_v21  ;;  %v7313_v27 = vmul.f32 0.015625, %v7288_v54 }
0x273f   :  { %v9750_v33 = vpop.eup %9749  ;;  %v7341_v22 = vadd.f32 1e-12, %v7331_v3  ;;  %v7327_v42 = vsub.f32 %v7317_v56, %v7322_v14  ;;  %v7323_v39 = vmul.f32 %v7313_v27, %v7313_v27  ;;  %v7338_v31 = vsub.f32 %v12372_v48, %v7313_v27 }
0x2740   :  { %v7349_v50 = vmul.f32 %v9750_v33, %v7334_v61  ;;  %v7308_v40 = vpop.xlane.xlu0 %7307 }
0x2741   :  { %9753 = vrsqrt.f32 %v7341_v22  ;;  %v7332_v29 = vmax.f32 %v7327_v42, 0.0  ;;  %v7318_v60 = vmul.f32 0.015625, %v7308_v40 }
0x2742   :  { %v7358_v26 = vmul.f32 %v7357_v19, %v7349_v50 }
0x2743   :  { %v7342_v8 = vadd.f32 1e-12, %v7332_v29  ;;  %v7328_v18 = vsub.f32 %v7318_v60, %v7323_v39 }
0x2744   :  { %v7367_v37 = vadd.f32 %v7366_v15, %v7358_v26 }
0x2745   :  { %9755 = vrsqrt.f32 %v7342_v8  ;;  %v7333_v12 = vmax.f32 %v7328_v18, 0.0 }
0x2746   :  { %8977 = vmatmul.mubr.msk.f32.vlgmr.msra.gmra.mrb[180].mxu0 %vm658_vm4, %v7367_v37 }
0x2747   :  { %v9752_v24 = vpop.eup %9751  ;;  %v7343_v36 = vadd.f32 1e-12, %v7333_v12  ;;  %8979 = vmatprep.mubr.msk.f32.mxu0 %vm10231_vm0, %v10232_v1 }
0x2748   :  { %v7350_v7 = vmul.f32 %v9752_v24, %v7335_v34 }
0x2749   :  { %9757 = vrsqrt.f32 %v7343_v36 }
0x274a   :  { %v7359_v49 = vmul.f32 %v7357_v19, %v7350_v7 }
0x274b   :  { %v9754_v59 = vpop.eup %9753 }
0x274c   :  { %v7368_v5 = vadd.f32 %v7366_v15, %v7359_v49  ;;  %v7351_v53 = vmul.f32 %v9754_v59, %v7336_v41 }
0x274e   :  { %8980 = vmatmul.mubr.msk.f32.gmra.mrb[182].mxu0 %vm658_vm4, %v7368_v5  ;;  %v7360_v6 = vmul.f32 %v7357_v19, %v7351_v53 }
0x274f   :  { %v9756_v23 = vpop.eup %9755  ;;  %8982 = vmatprep.mubr.msk.f32.mxu0 %vm10231_vm0, %v10232_v1 }
0x2750   :  { %v7369_v58 = vadd.f32 %v7366_v15, %v7360_v6  ;;  %v7352_v17 = vmul.f32 %v9756_v23, %v7337_v35 }
0x2752   :  { %8983 = vmatmul.mubr.msk.f32.gmra.mrb[184].mxu0 %vm658_vm4, %v7369_v58  ;;  %v7361_v45 = vmul.f32 %v7357_v19, %v7352_v17 }
0x2753   :  { %v9758_v4 = vpop.eup %9757  ;;  %8985 = vmatprep.mubr.msk.f32.mxu0 %vm10231_vm0, %v10232_v1 }
0x2754   :  { %v7370_v63 = vadd.f32 %v7366_v15, %v7361_v45  ;;  %v7353_v20 = vmul.f32 %v9758_v4, %v7338_v31 }
0x2756   :  { %8986 = vmatmul.mubr.msk.f32.gmra.mrb[186].mxu0 %vm658_vm4, %v7370_v63  ;;  %v7362_v32 = vmul.f32 %v7357_v19, %v7353_v20 }
0x2757   :  { %8988 = vmatprep.mubr.msk.f32.mxu0 %vm10231_vm0, %v10232_v1 }
0x2758   :  { %v7371_v13 = vadd.f32 %v7366_v15, %v7362_v32 }
0x275a   :  { %8989 = vmatmul.mubr.msk.f32.gmra.mrb[188].mxu0 %vm658_vm4, %v7371_v13 }
0x2819   :  { %v7468_v48 = vpop.f32.mrb[180].mxu0 }
0x281a   :  { %v7469_v25 = vadd.f32 %v7782_v44, %v7468_v48  ;;  %v8978_v55 = vpop.f32.mrb[181].mxu0 }
0x281c   :  { %7493 = vst.msk [vmem:[#allocation33] sm:$0xff] %vm7492_vm11, %v7469_v25 }
0x2821   :  { %v7473_v62 = vpop.f32.mrb[182].mxu0 }
0x2822   :  { %v7474_v0 = vadd.f32 %v7782_v44, %v7473_v62  ;;  %v8981_v51 = vpop.f32.mrb[183].mxu0 }
0x2824   :  { %7494 = vst.msk [vmem:[#allocation33 + $0x8] sm:$0xff] %vm7492_vm11, %v7474_v0 }
0x2825   :  { %v7478_v11 = vpop.f32.mrb[184].mxu0 }
0x2826   :  { %v7479_v43 = vadd.f32 %v7782_v44, %v7478_v11  ;;  %v8984_v10 = vpop.f32.mrb[185].mxu0 }
0x2828   :  { %7495 = vst.msk [vmem:[#allocation33 + $0x10] sm:$0xff] %vm7492_vm11, %v7479_v43 }
0x2829   :  { %v7483_v1 = vpop.f32.mrb[186].mxu0 }
0x282a   :  { %v7484_v16 = vadd.f32 %v7782_v44, %v7483_v1  ;;  %v8987_v47 = vpop.f32.mrb[187].mxu0 }
0x282c   :  { %7496 = vst.msk [vmem:[#allocation33 + $0x18] sm:$0xff] %vm7492_vm11, %v7484_v16 }
0x282d   :  { %v7488_v2 = vpop.f32.mrb[188].mxu0 }
0x282e   :  { %v7489_v9 = vadd.f32 %v7782_v44, %v7488_v2  ;;  %v8990_v30 = vpop.f32.mrb[189].mxu0 }
0x2830   :  { %7498 = vst.msk [vmem:[#allocation33 + $0x20] sm:$0x3] %vm7497_vm12, %v7489_v9 }
0x2831   :  { %10167 = shalt.err (!%p10164_p8)
}
0x2832   :  { %s12514_s13 = sld [smem:[#allocation67_spill]] }
0x2838   :  { %s10168_s15 = scalar_lea.hbm %s12514_s13, 640 }
0x2839   :  { %p10169_p9 = scmp.ne.s32.totalorder %s12514_s13, %s10168_s15  ;;  %p10172_p10 = scmp.lt.u32.totalorder %s10168_s15, %s12514_s13 }
0x283b   :  { %p10174_p11 = pnand %p10172_p10, %p10169_p9 }
0x283d   :  { %10177 = shalt.err (!%p10174_p11)
}
0x283e   :  { %7510 = dma.vmem_to_hbm [thread:$0]  %s7505_s24, 640, %s12514_s13, [#allocation8], %s10207_s8, %s10207_s8, %s10208_s5  }
0x283f   :  { %10202 = dma.done.wait [#allocation8], 640  }
0x2840   :  { %10203 = vsyncadd [#allocation8], 4294966656 }
0x2841   :  { %7514 = vsyncpa [#allocation7], 1 }
0x2842   :  { %7515 = vsyncpa [#allocation10], 1 }
0x2843   :  { %7516 = vsyncpa [#allocation13], 1 }
0x2844   :  { %7517 = vsyncpa [#allocation16], 1 }
0x2845   :  { %7518 = vsyncpa [#allocation19], 1 }
0x2846   :  { %7519 = vsyncpa [#allocation22], 1 }
0x2847   :  { %7520 = vsyncpa [#allocation25], 1 }
0x2848   :  { %7521 = vsyncpa [#allocation28], 1 }
0x2849   :  { %7522 = vsyncpa [#allocation31], 1 }
0x284a   :  { %7523 = vsyncpa [#allocation8], 1 }
0x284b   :  { %7524 = vsyncmov [#allocation5] }
0x284e   :  { %s7525_s10 = vpop.sfrf %7524 }
0x284f   :  { %p7788_p12 = scmp.ne.s32.totalorder %s7525_s10, 0 }
0x2851   :  { %7529 = shalt.err (%p7788_p12)  }
0x2852   :  { %7531 = vsyncmov [#allocation5 + $0x1] }
0x2855   :  { %s7532_s9 = vpop.sfrf %7531 }
0x2856   :  { %p7789_p13 = scmp.ne.s32.totalorder %s7532_s9, 0 }
0x2858   :  { %7536 = shalt.err (%p7789_p13)  }
0x2859   :  { %7538 = vsyncmov [#allocation5 + $0x2] }
0x285c   :  { %s7539_s8 = vpop.sfrf %7538 }
0x285d   :  { %p7790_p0 = scmp.ne.s32.totalorder %s7539_s8, 0 }
0x285f   :  { %7543 = shalt.err (%p7790_p0)  }

</bundles_post_ra>
